<compile_context>
chip_gen: v7x
topology: tpu7x:2x2x1
jax: 0.10.0
libtpu: 0.0.40
codegen_flags: <defaults>
</compile_context>

<pallas_src>
import functools

import jax
import jax.numpy as jnp
from jax.experimental import pallas as pl
from jax.experimental.pallas import tpu as pltpu


# ----------------------------- Pallas kernel --------------------------------

def _matmul_bias_act_kernel(x_ref, w_ref, b_ref, o_ref, *, relu):
    """One (tm, tn) output tile; K reduced along grid axis 2 (usually 1 step).

    Accumulates directly into o_ref (f32), applies bias (+ReLU) on last k."""
    k = pl.program_id(2)
    prod = jnp.dot(x_ref[...], w_ref[...], preferred_element_type=jnp.float32)

    @pl.when(k == 0)
    def _():
        o_ref[...] = prod

    @pl.when(k > 0)
    def _():
        o_ref[...] += prod

    @pl.when(k == pl.num_programs(2) - 1)
    def _():
        y = o_ref[...] + b_ref[...]
        if relu:
            y = jnp.maximum(y, 0.0)
        o_ref[...] = y


def _round_up(x, m):
    return (x + m - 1) // m * m


def _pick_tm(M):
    """Sublane-aligned M tile: single tile for small M, ~2 tiles for large M
    (so the parallel M axis can feed both TensorCores on v7x)."""
    m8 = _round_up(M, 8)
    if m8 <= 256:
        return m8
    return min(512, _round_up(-(-M // 2), 8))


def matmul_bias_act(x, wp, bp, *, relu, n_valid, tm=None, tn=None, tk=None):
    """y = act(x @ wp + bp)[:M, :n_valid].

    x:  (M, K) activations (K <= Kp; padded here with jnp.pad).
    wp: (Kp, Np) weights, pre-padded/pre-reshaped once at init.
    bp: (1, Np)  bias, pre-padded once at init.
    """
    M, K = x.shape
    Kp, Np = wp.shape
    assert K <= Kp and bp.shape == (1, Np)

    if tm is None:
        tm = _pick_tm(M)
    Mp = _round_up(M, tm)
    x = x.astype(jnp.float32)
    if (Mp, Kp) != (M, K):
        x = jnp.pad(x, ((0, Mp - M), (0, Kp - K)))

    if tn is None:
        tn = Np           # whole padded N in one tile (lane-dense output)
    if tk is None:
        tk = Kp           # whole-K reduction: single grid step on axis 2

    grid = (Mp // tm, Np // tn, Kp // tk)
    out = pl.pallas_call(
        functools.partial(_matmul_bias_act_kernel, relu=relu),
        out_shape=jax.ShapeDtypeStruct((Mp, Np), jnp.float32),
        grid_spec=pltpu.PrefetchScalarGridSpec(
            num_scalar_prefetch=0,
            grid=grid,
            in_specs=[
                pl.BlockSpec((tm, tk), lambda i, j, k: (i, k)),
                pl.BlockSpec((tk, tn), lambda i, j, k: (k, j)),
                pl.BlockSpec((1, tn), lambda i, j, k: (0, j)),
            ],
            out_specs=pl.BlockSpec((tm, tn), lambda i, j, k: (i, j)),
        ),
        compiler_params=pltpu.CompilerParams(
            dimension_semantics=("parallel", "parallel", "arbitrary"),
            vmem_limit_bytes=32 * 1024 * 1024),
    )(x, wp, bp)
    return out[:M, :n_valid]


# ------------------------------ glue (JAX) -----------------------------------

def _im2col_nhwc(x, kh, kw, stride):
    """x: (B, H, W, C) -> patches (B*OH*OW, KH*KW*C), (kh, kw, c) flattening.

    Stack + contiguous reshape only -- no 6-D transpose."""
    B, H, W, C = x.shape
    oh = (H - kh) // stride + 1
    ow = (W - kw) // stride + 1
    cols = []
    for i in range(kh):
        for j in range(kw):
            cols.append(x[:, i:i + stride * oh:stride,
                          j:j + stride * ow:stride, :])     # (B, oh, ow, C)
    p = jnp.stack(cols, axis=3)                              # (B, oh, ow, kh*kw, C)
    return p.reshape(B * oh * ow, kh * kw * C), oh, ow


def conv2d_relu(x, wp, bp, *, kh, kw, stride, cout):
    """Conv2d (valid padding) + ReLU on NHWC activations.

    wp is pre-reshaped to (Kp, Np) with K in (kh, kw, cin) order; output stays
    NHWC so no per-layer transpose is needed."""
    B = x.shape[0]
    patches, oh, ow = _im2col_nhwc(x, kh, kw, stride)
    y = matmul_bias_act(patches, wp, bp, relu=True, n_valid=cout)
    return y.reshape(B, oh, ow, cout)


def init_params(key, action_size):
    """PyTorch-layout parameters (conv OIHW, linears stored (in, out))."""
    ks = jax.random.split(key, 10)

    def w(k, shape, fan_in):
        return jax.random.normal(k, shape, jnp.float32) / jnp.sqrt(fan_in)

    return {
        "conv1_w": w(ks[0], (32, 4, 8, 8), 4 * 8 * 8),
        "conv1_b": 0.01 * jax.random.normal(ks[1], (32,), jnp.float32),
        "conv2_w": w(ks[2], (64, 32, 4, 4), 32 * 4 * 4),
        "conv2_b": 0.01 * jax.random.normal(ks[3], (64,), jnp.float32),
        "conv3_w": w(ks[4], (64, 64, 3, 3), 64 * 3 * 3),
        "conv3_b": 0.01 * jax.random.normal(ks[5], (64,), jnp.float32),
        "fc1_w": w(ks[6], (64 * 7 * 7, 512), 64 * 7 * 7),   # rows in (c,h,w) order
        "fc1_b": 0.01 * jax.random.normal(ks[7], (512,), jnp.float32),
        "fc2_w": w(ks[8], (512, action_size), 512),
        "fc2_b": 0.01 * jax.random.normal(ks[9], (action_size,), jnp.float32),
    }


def prepare_params(params):
    """One-time reshape + zero-pad of all weights/biases to kernel layouts."""
    def pad2(a, kp, np_):
        a = a.astype(jnp.float32)
        return jnp.pad(a, ((0, kp - a.shape[0]), (0, np_ - a.shape[1])))

    def padb(b, np_):
        b = b.astype(jnp.float32).reshape(1, -1)
        return jnp.pad(b, ((0, 0), (0, np_ - b.shape[1])))

    def conv_w(w):
        # (Cout, Cin, KH, KW) -> (KH, KW, Cin, Cout) -> (KH*KW*Cin, Cout), padded.
        cout, cin, kh, kw = w.shape
        w2 = jnp.transpose(w, (2, 3, 1, 0)).reshape(kh * kw * cin, cout)
        return pad2(w2, _round_up(kh * kw * cin, 128), _round_up(cout, 128))

    # fc1 rows are stored in PyTorch's (c, h, w) flatten order; permute once to
    # (h, w, c) so the NHWC conv3 output can be flattened directly.
    fc1 = params["fc1_w"].reshape(64, 7, 7, 512).transpose(1, 2, 0, 3)
    fc1 = fc1.reshape(64 * 7 * 7, 512)

    a = params["fc2_w"].shape[1]
    return {
        "conv1_w": conv_w(params["conv1_w"]),
        "conv1_b": padb(params["conv1_b"], 128),
        "conv2_w": conv_w(params["conv2_w"]),
        "conv2_b": padb(params["conv2_b"], 128),
        "conv3_w": conv_w(params["conv3_w"]),
        "conv3_b": padb(params["conv3_b"], 128),
        "fc1_w": pad2(fc1, _round_up(64 * 7 * 7, 128), 512),
        "fc1_b": padb(params["fc1_b"], 512),
        "fc2_w": pad2(params["fc2_w"], 512, _round_up(a, 128)),
        "fc2_b": padb(params["fc2_b"], _round_up(a, 128)),
    }


def qnetwork_cnn_forward(prep, x, *, action_size):
    """x: (B, 4, 84, 84) in [0, 255] (or already in [0, 1])."""
    B = x.shape[0]
    x = x.astype(jnp.float32)
    # matches: if x.max() > 1.0: x = x / 255.0  -- folded into conv1's weights
    scale = jnp.where(jnp.max(x) > 1.0, 1.0 / 255.0, 1.0)
    x = jnp.transpose(x, (0, 2, 3, 1))                       # NHWC, once
    w1 = prep["conv1_w"] * scale                             # tiny pre-padded weight

    x = conv2d_relu(x, w1, prep["conv1_b"], kh=8, kw=8, stride=4, cout=32)   # (B,20,20,32)
    x = conv2d_relu(x, prep["conv2_w"], prep["conv2_b"],
                    kh=4, kw=4, stride=2, cout=64)                            # (B,9,9,64)
    x = conv2d_relu(x, prep["conv3_w"], prep["conv3_b"],
                    kh=3, kw=3, stride=1, cout=64)                            # (B,7,7,64)
    x = x.reshape(B, -1)                                     # (h,w,c) flatten; fc1 rows pre-permuted
    x = matmul_bias_act(x, prep["fc1_w"], prep["fc1_b"],
                        relu=True, n_valid=512, tn=256)      # (B, 512), 2 N tiles
    x = matmul_bias_act(x, prep["fc2_w"], prep["fc2_b"],
                        relu=False, n_valid=action_size)     # (B, A)
    return x


# ----------------------- pure-JAX reference (for check) ----------------------

def _reference_forward(params, x):
    x = x.astype(jnp.float32)
    scale = jnp.where(jnp.max(x) > 1.0, 1.0 / 255.0, 1.0)
    x = x * scale
    dn = ("NCHW", "OIHW", "NCHW")

    def conv(x, w, b, s):
        y = jax.lax.conv_general_dilated(x, w, (s, s), "VALID",
                                         dimension_numbers=dn)
        return jax.nn.relu(y + b[None, :, None, None])

    x = conv(x, params["conv1_w"], params["conv1_b"], 4)
    x = conv(x, params["conv2_w"], params["conv2_b"], 2)
    x = conv(x, params["conv3_w"], params["conv3_b"], 1)
    x = x.reshape(x.shape[0], -1)
    x = jax.nn.relu(x @ params["fc1_w"] + params["fc1_b"])
    return x @ params["fc2_w"] + params["fc2_b"]


if __name__ == "__main__":
    key = jax.random.PRNGKey(0)
    pkey, xkey = jax.random.split(key)
    action_size = 6
    batch = 2

    params = init_params(pkey, action_size)
    prep = prepare_params(params)   # one-time weight reshape/pad (not per call)

    # Module contract fixes spatial shape (fc1 expects 64*7*7): (B, 4, 84, 84).
    x = jax.random.uniform(xkey, (batch, 4, 84, 84), jnp.float32, 0.0, 255.0)

    fwd = jax.jit(functools.partial(qnetwork_cnn_forward, action_size=action_size))
    q = jax.block_until_ready(fwd(prep, x))
    assert q.shape == (batch, action_size), q.shape

    ref = _reference_forward(params, x)
    err = float(jnp.max(jnp.abs(q - ref)))
    assert jnp.allclose(q, ref, atol=2e-3, rtol=2e-3), err

    print("KERNEL_OK")
</pallas_src>

<mosaic_0001>
module attributes {stable_mosaic.version = 11 : i64} {
  func.func @_matmul_bias_act_kernel(%arg0: i32, %arg1: i32, %arg2: i32, %arg3: memref<400x256xf32, #tpu.memory_space<vmem>>, %arg4: memref<256x128xf32, #tpu.memory_space<vmem>>, %arg5: memref<1x128xf32, #tpu.memory_space<vmem>>, %arg6: memref<400x128xf32, #tpu.memory_space<vmem>>) attributes {dimension_semantics = [#tpu.dimension_semantics<parallel>, #tpu.dimension_semantics<parallel>, #tpu.dimension_semantics<arbitrary>], iteration_bounds = array<i64: 2, 1, 1>, scalar_prefetch = 0 : i64, scratch_operands = 0 : i64, tpu.core_type = #tpu.core_type<tc>, window_params = [{transform_indices = @transform_0, window_bounds = array<i64: 400, 256>}, {transform_indices = @transform_1, window_bounds = array<i64: 256, 128>}, {transform_indices = @transform_2, window_bounds = array<i64: 1, 128>}, {transform_indices = @transform_3, window_bounds = array<i64: 400, 128>}]} {
    %c0 = arith.constant 0 : index
    %c0_0 = arith.constant 0 : index
    %0 = vector.load %arg3[%c0, %c0_0] : memref<400x256xf32, #tpu.memory_space<vmem>>, vector<400x256xf32>
    %c0_1 = arith.constant 0 : index
    %c0_2 = arith.constant 0 : index
    %1 = vector.load %arg4[%c0_1, %c0_2] : memref<256x128xf32, #tpu.memory_space<vmem>>, vector<256x128xf32>
    %cst = arith.constant dense<0.000000e+00> : vector<400x128xf32>
    %2 = tpu.matmul %0, %1, %cst {dimension_numbers = #tpu.dot_dimension_numbers<[1], [0], [0], [1], [0, 0, 1, 1], [], []>} : vector<400x256xf32>, vector<256x128xf32>, vector<400x128xf32> -> vector<400x128xf32>
    %c0_i32 = arith.constant 0 : i32
    %3 = arith.cmpi eq, %arg2, %c0_i32 : i32
    %4 = arith.extui %3 : i1 to i32
    %c0_i32_3 = arith.constant 0 : i32
    %5 = arith.cmpi ne, %4, %c0_i32_3 : i32
    scf.if %5 {
      %c0_8 = arith.constant 0 : index
      %c0_9 = arith.constant 0 : index
      %12 = vector.load %arg6[%c0_8, %c0_9] : memref<400x128xf32, #tpu.memory_space<vmem>>, vector<400x128xf32>
      tpu.vector_store %arg6[%c0_8, %c0_9], %2 {strides = array<i32>} : memref<400x128xf32, #tpu.memory_space<vmem>>, vector<400x128xf32>,
    } else {
    }
    %c0_i32_4 = arith.constant 0 : i32
    %6 = arith.cmpi sgt, %arg2, %c0_i32_4 : i32
    %7 = arith.extui %6 : i1 to i32
    %c0_i32_5 = arith.constant 0 : i32
    %8 = arith.cmpi ne, %7, %c0_i32_5 : i32
    scf.if %8 {
      %c0_8 = arith.constant 0 : index
      %c0_9 = arith.constant 0 : index
      %12 = vector.load %arg6[%c0_8, %c0_9] : memref<400x128xf32, #tpu.memory_space<vmem>>, vector<400x128xf32>
      %13 = arith.addf %12, %2 : vector<400x128xf32>
      %c0_10 = arith.constant 0 : index
      %c0_11 = arith.constant 0 : index
      %14 = vector.load %arg6[%c0_10, %c0_11] : memref<400x128xf32, #tpu.memory_space<vmem>>, vector<400x128xf32>
      tpu.vector_store %arg6[%c0_10, %c0_11], %13 {strides = array<i32>} : memref<400x128xf32, #tpu.memory_space<vmem>>, vector<400x128xf32>,
    } else {
    }
    %c0_i32_6 = arith.constant 0 : i32
    %9 = arith.cmpi eq, %arg2, %c0_i32_6 : i32
    %10 = arith.extui %9 : i1 to i32
    %c0_i32_7 = arith.constant 0 : i32
    %11 = arith.cmpi ne, %10, %c0_i32_7 : i32
    scf.if %11 {
      %c0_8 = arith.constant 0 : index
      %c0_9 = arith.constant 0 : index
      %12 = vector.load %arg6[%c0_8, %c0_9] : memref<400x128xf32, #tpu.memory_space<vmem>>, vector<400x128xf32>
      %c0_10 = arith.constant 0 : index
      %c0_11 = arith.constant 0 : index
      %13 = vector.load %arg5[%c0_10, %c0_11] : memref<1x128xf32, #tpu.memory_space<vmem>>, vector<1x128xf32>
      %14 = vector.broadcast %13 : vector<1x128xf32> to vector<400x128xf32>
      %15 = arith.addf %12, %14 : vector<400x128xf32>
      %cst_12 = arith.constant 0.000000e+00 : f32
      %16 = vector.broadcast %cst_12 : f32 to vector<400x128xf32>
      %17 = arith.maximumf %15, %16 : vector<400x128xf32>
      %c0_13 = arith.constant 0 : index
      %c0_14 = arith.constant 0 : index
      %18 = vector.load %arg6[%c0_13, %c0_14] : memref<400x128xf32, #tpu.memory_space<vmem>>, vector<400x128xf32>
      tpu.vector_store %arg6[%c0_13, %c0_14], %17 {strides = array<i32>} : memref<400x128xf32, #tpu.memory_space<vmem>>, vector<400x128xf32>,
    } else {
    }
    return
  }
  func.func @transform_0(%arg0: i32, %arg1: i32, %arg2: i32) -> (i32, i32) {
    %c0_i32 = arith.constant 0 : i32
    return %arg0, %arg2 : i32, i32
  }
  func.func @transform_1(%arg0: i32, %arg1: i32, %arg2: i32) -> (i32, i32) {
    %c0_i32 = arith.constant 0 : i32
    return %arg2, %arg1 : i32, i32
  }
  func.func @transform_2(%arg0: i32, %arg1: i32, %arg2: i32) -> (i32, i32) {
    %c0_i32 = arith.constant 0 : i32
    %c0_i32_0 = arith.constant 0 : i32
    return %c0_i32, %arg1 : i32, i32
  }
  func.func @transform_3(%arg0: i32, %arg1: i32, %arg2: i32) -> (i32, i32) {
    %c0_i32 = arith.constant 0 : i32
    return %arg0, %arg1 : i32, i32
  }
}

module attributes {stable_mosaic.version = 11 : i64} {
  func.func @_matmul_bias_act_kernel(%arg0: i32, %arg1: i32, %arg2: i32, %arg3: memref<168x512xf32, #tpu.memory_space<vmem>>, %arg4: memref<512x128xf32, #tpu.memory_space<vmem>>, %arg5: memref<1x128xf32, #tpu.memory_space<vmem>>, %arg6: memref<168x128xf32, #tpu.memory_space<vmem>>) attributes {dimension_semantics = [#tpu.dimension_semantics<parallel>, #tpu.dimension_semantics<parallel>, #tpu.dimension_semantics<arbitrary>], iteration_bounds = array<i64: 1, 1, 1>, scalar_prefetch = 0 : i64, scratch_operands = 0 : i64, tpu.core_type = #tpu.core_type<tc>, window_params = [{transform_indices = @transform_0, window_bounds = array<i64: 168, 512>}, {transform_indices = @transform_1, window_bounds = array<i64: 512, 128>}, {transform_indices = @transform_2, window_bounds = array<i64: 1, 128>}, {transform_indices = @transform_3, window_bounds = array<i64: 168, 128>}]} {
    %c0 = arith.constant 0 : index
    %c0_0 = arith.constant 0 : index
    %0 = vector.load %arg3[%c0, %c0_0] : memref<168x512xf32, #tpu.memory_space<vmem>>, vector<168x512xf32>
    %c0_1 = arith.constant 0 : index
    %c0_2 = arith.constant 0 : index
    %1 = vector.load %arg4[%c0_1, %c0_2] : memref<512x128xf32, #tpu.memory_space<vmem>>, vector<512x128xf32>
    %cst = arith.constant dense<0.000000e+00> : vector<168x128xf32>
    %2 = tpu.matmul %0, %1, %cst {dimension_numbers = #tpu.dot_dimension_numbers<[1], [0], [0], [1], [0, 0, 1, 1], [], []>} : vector<168x512xf32>, vector<512x128xf32>, vector<168x128xf32> -> vector<168x128xf32>
    %c0_i32 = arith.constant 0 : i32
    %3 = arith.cmpi eq, %arg2, %c0_i32 : i32
    %4 = arith.extui %3 : i1 to i32
    %c0_i32_3 = arith.constant 0 : i32
    %5 = arith.cmpi ne, %4, %c0_i32_3 : i32
    scf.if %5 {
      %c0_8 = arith.constant 0 : index
      %c0_9 = arith.constant 0 : index
      %12 = vector.load %arg6[%c0_8, %c0_9] : memref<168x128xf32, #tpu.memory_space<vmem>>, vector<168x128xf32>
      tpu.vector_store %arg6[%c0_8, %c0_9], %2 {strides = array<i32>} : memref<168x128xf32, #tpu.memory_space<vmem>>, vector<168x128xf32>,
    } else {
    }
    %c0_i32_4 = arith.constant 0 : i32
    %6 = arith.cmpi sgt, %arg2, %c0_i32_4 : i32
    %7 = arith.extui %6 : i1 to i32
    %c0_i32_5 = arith.constant 0 : i32
    %8 = arith.cmpi ne, %7, %c0_i32_5 : i32
    scf.if %8 {
      %c0_8 = arith.constant 0 : index
      %c0_9 = arith.constant 0 : index
      %12 = vector.load %arg6[%c0_8, %c0_9] : memref<168x128xf32, #tpu.memory_space<vmem>>, vector<168x128xf32>
      %13 = arith.addf %12, %2 : vector<168x128xf32>
      %c0_10 = arith.constant 0 : index
      %c0_11 = arith.constant 0 : index
      %14 = vector.load %arg6[%c0_10, %c0_11] : memref<168x128xf32, #tpu.memory_space<vmem>>, vector<168x128xf32>
      tpu.vector_store %arg6[%c0_10, %c0_11], %13 {strides = array<i32>} : memref<168x128xf32, #tpu.memory_space<vmem>>, vector<168x128xf32>,
    } else {
    }
    %c0_i32_6 = arith.constant 0 : i32
    %9 = arith.cmpi eq, %arg2, %c0_i32_6 : i32
    %10 = arith.extui %9 : i1 to i32
    %c0_i32_7 = arith.constant 0 : i32
    %11 = arith.cmpi ne, %10, %c0_i32_7 : i32
    scf.if %11 {
      %c0_8 = arith.constant 0 : index
      %c0_9 = arith.constant 0 : index
      %12 = vector.load %arg6[%c0_8, %c0_9] : memref<168x128xf32, #tpu.memory_space<vmem>>, vector<168x128xf32>
      %c0_10 = arith.constant 0 : index
      %c0_11 = arith.constant 0 : index
      %13 = vector.load %arg5[%c0_10, %c0_11] : memref<1x128xf32, #tpu.memory_space<vmem>>, vector<1x128xf32>
      %14 = vector.broadcast %13 : vector<1x128xf32> to vector<168x128xf32>
      %15 = arith.addf %12, %14 : vector<168x128xf32>
      %cst_12 = arith.constant 0.000000e+00 : f32
      %16 = vector.broadcast %cst_12 : f32 to vector<168x128xf32>
      %17 = arith.maximumf %15, %16 : vector<168x128xf32>
      %c0_13 = arith.constant 0 : index
      %c0_14 = arith.constant 0 : index
      %18 = vector.load %arg6[%c0_13, %c0_14] : memref<168x128xf32, #tpu.memory_space<vmem>>, vector<168x128xf32>
      tpu.vector_store %arg6[%c0_13, %c0_14], %17 {strides = array<i32>} : memref<168x128xf32, #tpu.memory_space<vmem>>, vector<168x128xf32>,
    } else {
    }
    return
  }
  func.func @transform_0(%arg0: i32, %arg1: i32, %arg2: i32) -> (i32, i32) {
    %c0_i32 = arith.constant 0 : i32
    return %arg0, %arg2 : i32, i32
  }
  func.func @transform_1(%arg0: i32, %arg1: i32, %arg2: i32) -> (i32, i32) {
    %c0_i32 = arith.constant 0 : i32
    return %arg2, %arg1 : i32, i32
  }
  func.func @transform_2(%arg0: i32, %arg1: i32, %arg2: i32) -> (i32, i32) {
    %c0_i32 = arith.constant 0 : i32
    %c0_i32_0 = arith.constant 0 : i32
    return %c0_i32, %arg1 : i32, i32
  }
  func.func @transform_3(%arg0: i32, %arg1: i32, %arg2: i32) -> (i32, i32) {
    %c0_i32 = arith.constant 0 : i32
    return %arg0, %arg1 : i32, i32
  }
}

module attributes {stable_mosaic.version = 11 : i64} {
  func.func @_matmul_bias_act_kernel(%arg0: i32, %arg1: i32, %arg2: i32, %arg3: memref<104x640xf32, #tpu.memory_space<vmem>>, %arg4: memref<640x128xf32, #tpu.memory_space<vmem>>, %arg5: memref<1x128xf32, #tpu.memory_space<vmem>>, %arg6: memref<104x128xf32, #tpu.memory_space<vmem>>) attributes {dimension_semantics = [#tpu.dimension_semantics<parallel>, #tpu.dimension_semantics<parallel>, #tpu.dimension_semantics<arbitrary>], iteration_bounds = array<i64: 1, 1, 1>, scalar_prefetch = 0 : i64, scratch_operands = 0 : i64, tpu.core_type = #tpu.core_type<tc>, window_params = [{transform_indices = @transform_0, window_bounds = array<i64: 104, 640>}, {transform_indices = @transform_1, window_bounds = array<i64: 640, 128>}, {transform_indices = @transform_2, window_bounds = array<i64: 1, 128>}, {transform_indices = @transform_3, window_bounds = array<i64: 104, 128>}]} {
    %c0 = arith.constant 0 : index
    %c0_0 = arith.constant 0 : index
    %0 = vector.load %arg3[%c0, %c0_0] : memref<104x640xf32, #tpu.memory_space<vmem>>, vector<104x640xf32>
    %c0_1 = arith.constant 0 : index
    %c0_2 = arith.constant 0 : index
    %1 = vector.load %arg4[%c0_1, %c0_2] : memref<640x128xf32, #tpu.memory_space<vmem>>, vector<640x128xf32>
    %cst = arith.constant dense<0.000000e+00> : vector<104x128xf32>
    %2 = tpu.matmul %0, %1, %cst {dimension_numbers = #tpu.dot_dimension_numbers<[1], [0], [0], [1], [0, 0, 1, 1], [], []>} : vector<104x640xf32>, vector<640x128xf32>, vector<104x128xf32> -> vector<104x128xf32>
    %c0_i32 = arith.constant 0 : i32
    %3 = arith.cmpi eq, %arg2, %c0_i32 : i32
    %4 = arith.extui %3 : i1 to i32
    %c0_i32_3 = arith.constant 0 : i32
    %5 = arith.cmpi ne, %4, %c0_i32_3 : i32
    scf.if %5 {
      %c0_8 = arith.constant 0 : index
      %c0_9 = arith.constant 0 : index
      %12 = vector.load %arg6[%c0_8, %c0_9] : memref<104x128xf32, #tpu.memory_space<vmem>>, vector<104x128xf32>
      tpu.vector_store %arg6[%c0_8, %c0_9], %2 {strides = array<i32>} : memref<104x128xf32, #tpu.memory_space<vmem>>, vector<104x128xf32>,
    } else {
    }
    %c0_i32_4 = arith.constant 0 : i32
    %6 = arith.cmpi sgt, %arg2, %c0_i32_4 : i32
    %7 = arith.extui %6 : i1 to i32
    %c0_i32_5 = arith.constant 0 : i32
    %8 = arith.cmpi ne, %7, %c0_i32_5 : i32
    scf.if %8 {
      %c0_8 = arith.constant 0 : index
      %c0_9 = arith.constant 0 : index
      %12 = vector.load %arg6[%c0_8, %c0_9] : memref<104x128xf32, #tpu.memory_space<vmem>>, vector<104x128xf32>
      %13 = arith.addf %12, %2 : vector<104x128xf32>
      %c0_10 = arith.constant 0 : index
      %c0_11 = arith.constant 0 : index
      %14 = vector.load %arg6[%c0_10, %c0_11] : memref<104x128xf32, #tpu.memory_space<vmem>>, vector<104x128xf32>
      tpu.vector_store %arg6[%c0_10, %c0_11], %13 {strides = array<i32>} : memref<104x128xf32, #tpu.memory_space<vmem>>, vector<104x128xf32>,
    } else {
    }
    %c0_i32_6 = arith.constant 0 : i32
    %9 = arith.cmpi eq, %arg2, %c0_i32_6 : i32
    %10 = arith.extui %9 : i1 to i32
    %c0_i32_7 = arith.constant 0 : i32
    %11 = arith.cmpi ne, %10, %c0_i32_7 : i32
    scf.if %11 {
      %c0_8 = arith.constant 0 : index
      %c0_9 = arith.constant 0 : index
      %12 = vector.load %arg6[%c0_8, %c0_9] : memref<104x128xf32, #tpu.memory_space<vmem>>, vector<104x128xf32>
      %c0_10 = arith.constant 0 : index
      %c0_11 = arith.constant 0 : index
      %13 = vector.load %arg5[%c0_10, %c0_11] : memref<1x128xf32, #tpu.memory_space<vmem>>, vector<1x128xf32>
      %14 = vector.broadcast %13 : vector<1x128xf32> to vector<104x128xf32>
      %15 = arith.addf %12, %14 : vector<104x128xf32>
      %cst_12 = arith.constant 0.000000e+00 : f32
      %16 = vector.broadcast %cst_12 : f32 to vector<104x128xf32>
      %17 = arith.maximumf %15, %16 : vector<104x128xf32>
      %c0_13 = arith.constant 0 : index
      %c0_14 = arith.constant 0 : index
      %18 = vector.load %arg6[%c0_13, %c0_14] : memref<104x128xf32, #tpu.memory_space<vmem>>, vector<104x128xf32>
      tpu.vector_store %arg6[%c0_13, %c0_14], %17 {strides = array<i32>} : memref<104x128xf32, #tpu.memory_space<vmem>>, vector<104x128xf32>,
    } else {
    }
    return
  }
  func.func @transform_0(%arg0: i32, %arg1: i32, %arg2: i32) -> (i32, i32) {
    %c0_i32 = arith.constant 0 : i32
    return %arg0, %arg2 : i32, i32
  }
  func.func @transform_1(%arg0: i32, %arg1: i32, %arg2: i32) -> (i32, i32) {
    %c0_i32 = arith.constant 0 : i32
    return %arg2, %arg1 : i32, i32
  }
  func.func @transform_2(%arg0: i32, %arg1: i32, %arg2: i32) -> (i32, i32) {
    %c0_i32 = arith.constant 0 : i32
    %c0_i32_0 = arith.constant 0 : i32
    return %c0_i32, %arg1 : i32, i32
  }
  func.func @transform_3(%arg0: i32, %arg1: i32, %arg2: i32) -> (i32, i32) {
    %c0_i32 = arith.constant 0 : i32
    return %arg0, %arg1 : i32, i32
  }
}

module attributes {stable_mosaic.version = 11 : i64} {
  func.func @_matmul_bias_act_kernel(%arg0: i32, %arg1: i32, %arg2: i32, %arg3: memref<8x3200xf32, #tpu.memory_space<vmem>>, %arg4: memref<3200x256xf32, #tpu.memory_space<vmem>>, %arg5: memref<1x256xf32, #tpu.memory_space<vmem>>, %arg6: memref<8x256xf32, #tpu.memory_space<vmem>>) attributes {dimension_semantics = [#tpu.dimension_semantics<parallel>, #tpu.dimension_semantics<parallel>, #tpu.dimension_semantics<arbitrary>], iteration_bounds = array<i64: 1, 2, 1>, scalar_prefetch = 0 : i64, scratch_operands = 0 : i64, tpu.core_type = #tpu.core_type<tc>, window_params = [{transform_indices = @transform_0, window_bounds = array<i64: 8, 3200>}, {transform_indices = @transform_1, window_bounds = array<i64: 3200, 256>}, {transform_indices = @transform_2, window_bounds = array<i64: 1, 256>}, {transform_indices = @transform_3, window_bounds = array<i64: 8, 256>}]} {
    %c0 = arith.constant 0 : index
    %c0_0 = arith.constant 0 : index
    %0 = vector.load %arg3[%c0, %c0_0] : memref<8x3200xf32, #tpu.memory_space<vmem>>, vector<8x3200xf32>
    %c0_1 = arith.constant 0 : index
    %c0_2 = arith.constant 0 : index
    %1 = vector.load %arg4[%c0_1, %c0_2] : memref<3200x256xf32, #tpu.memory_space<vmem>>, vector<3200x256xf32>
    %cst = arith.constant dense<0.000000e+00> : vector<8x256xf32>
    %2 = tpu.matmul %0, %1, %cst {dimension_numbers = #tpu.dot_dimension_numbers<[1], [0], [0], [1], [0, 0, 1, 1], [], []>} : vector<8x3200xf32>, vector<3200x256xf32>, vector<8x256xf32> -> vector<8x256xf32>
    %c0_i32 = arith.constant 0 : i32
    %3 = arith.cmpi eq, %arg2, %c0_i32 : i32
    %4 = arith.extui %3 : i1 to i32
    %c0_i32_3 = arith.constant 0 : i32
    %5 = arith.cmpi ne, %4, %c0_i32_3 : i32
    scf.if %5 {
      %c0_8 = arith.constant 0 : index
      %c0_9 = arith.constant 0 : index
      %12 = vector.load %arg6[%c0_8, %c0_9] : memref<8x256xf32, #tpu.memory_space<vmem>>, vector<8x256xf32>
      tpu.vector_store %arg6[%c0_8, %c0_9], %2 {strides = array<i32>} : memref<8x256xf32, #tpu.memory_space<vmem>>, vector<8x256xf32>,
    } else {
    }
    %c0_i32_4 = arith.constant 0 : i32
    %6 = arith.cmpi sgt, %arg2, %c0_i32_4 : i32
    %7 = arith.extui %6 : i1 to i32
    %c0_i32_5 = arith.constant 0 : i32
    %8 = arith.cmpi ne, %7, %c0_i32_5 : i32
    scf.if %8 {
      %c0_8 = arith.constant 0 : index
      %c0_9 = arith.constant 0 : index
      %12 = vector.load %arg6[%c0_8, %c0_9] : memref<8x256xf32, #tpu.memory_space<vmem>>, vector<8x256xf32>
      %13 = arith.addf %12, %2 : vector<8x256xf32>
      %c0_10 = arith.constant 0 : index
      %c0_11 = arith.constant 0 : index
      %14 = vector.load %arg6[%c0_10, %c0_11] : memref<8x256xf32, #tpu.memory_space<vmem>>, vector<8x256xf32>
      tpu.vector_store %arg6[%c0_10, %c0_11], %13 {strides = array<i32>} : memref<8x256xf32, #tpu.memory_space<vmem>>, vector<8x256xf32>,
    } else {
    }
    %c0_i32_6 = arith.constant 0 : i32
    %9 = arith.cmpi eq, %arg2, %c0_i32_6 : i32
    %10 = arith.extui %9 : i1 to i32
    %c0_i32_7 = arith.constant 0 : i32
    %11 = arith.cmpi ne, %10, %c0_i32_7 : i32
    scf.if %11 {
      %c0_8 = arith.constant 0 : index
      %c0_9 = arith.constant 0 : index
      %12 = vector.load %arg6[%c0_8, %c0_9] : memref<8x256xf32, #tpu.memory_space<vmem>>, vector<8x256xf32>
      %c0_10 = arith.constant 0 : index
      %c0_11 = arith.constant 0 : index
      %13 = vector.load %arg5[%c0_10, %c0_11] : memref<1x256xf32, #tpu.memory_space<vmem>>, vector<1x256xf32>
      %14 = vector.broadcast %13 : vector<1x256xf32> to vector<8x256xf32>
      %15 = arith.addf %12, %14 : vector<8x256xf32>
      %cst_12 = arith.constant 0.000000e+00 : f32
      %16 = vector.broadcast %cst_12 : f32 to vector<8x256xf32>
      %17 = arith.maximumf %15, %16 : vector<8x256xf32>
      %c0_13 = arith.constant 0 : index
      %c0_14 = arith.constant 0 : index
      %18 = vector.load %arg6[%c0_13, %c0_14] : memref<8x256xf32, #tpu.memory_space<vmem>>, vector<8x256xf32>
      tpu.vector_store %arg6[%c0_13, %c0_14], %17 {strides = array<i32>} : memref<8x256xf32, #tpu.memory_space<vmem>>, vector<8x256xf32>,
    } else {
    }
    return
  }
  func.func @transform_0(%arg0: i32, %arg1: i32, %arg2: i32) -> (i32, i32) {
    %c0_i32 = arith.constant 0 : i32
    return %arg0, %arg2 : i32, i32
  }
  func.func @transform_1(%arg0: i32, %arg1: i32, %arg2: i32) -> (i32, i32) {
    %c0_i32 = arith.constant 0 : i32
    return %arg2, %arg1 : i32, i32
  }
  func.func @transform_2(%arg0: i32, %arg1: i32, %arg2: i32) -> (i32, i32) {
    %c0_i32 = arith.constant 0 : i32
    %c0_i32_0 = arith.constant 0 : i32
    return %c0_i32, %arg1 : i32, i32
  }
  func.func @transform_3(%arg0: i32, %arg1: i32, %arg2: i32) -> (i32, i32) {
    %c0_i32 = arith.constant 0 : i32
    return %arg0, %arg1 : i32, i32
  }
}

module attributes {stable_mosaic.version = 11 : i64} {
  func.func @_matmul_bias_act_kernel(%arg0: i32, %arg1: i32, %arg2: i32, %arg3: memref<8x512xf32, #tpu.memory_space<vmem>>, %arg4: memref<512x128xf32, #tpu.memory_space<vmem>>, %arg5: memref<1x128xf32, #tpu.memory_space<vmem>>, %arg6: memref<8x128xf32, #tpu.memory_space<vmem>>) attributes {dimension_semantics = [#tpu.dimension_semantics<parallel>, #tpu.dimension_semantics<parallel>, #tpu.dimension_semantics<arbitrary>], iteration_bounds = array<i64: 1, 1, 1>, scalar_prefetch = 0 : i64, scratch_operands = 0 : i64, tpu.core_type = #tpu.core_type<tc>, window_params = [{transform_indices = @transform_0, window_bounds = array<i64: 8, 512>}, {transform_indices = @transform_1, window_bounds = array<i64: 512, 128>}, {transform_indices = @transform_2, window_bounds = array<i64: 1, 128>}, {transform_indices = @transform_3, window_bounds = array<i64: 8, 128>}]} {
    %c0 = arith.constant 0 : index
    %c0_0 = arith.constant 0 : index
    %0 = vector.load %arg3[%c0, %c0_0] : memref<8x512xf32, #tpu.memory_space<vmem>>, vector<8x512xf32>
    %c0_1 = arith.constant 0 : index
    %c0_2 = arith.constant 0 : index
    %1 = vector.load %arg4[%c0_1, %c0_2] : memref<512x128xf32, #tpu.memory_space<vmem>>, vector<512x128xf32>
    %cst = arith.constant dense<0.000000e+00> : vector<8x128xf32>
    %2 = tpu.matmul %0, %1, %cst {dimension_numbers = #tpu.dot_dimension_numbers<[1], [0], [0], [1], [0, 0, 1, 1], [], []>} : vector<8x512xf32>, vector<512x128xf32>, vector<8x128xf32> -> vector<8x128xf32>
    %c0_i32 = arith.constant 0 : i32
    %3 = arith.cmpi eq, %arg2, %c0_i32 : i32
    %4 = arith.extui %3 : i1 to i32
    %c0_i32_3 = arith.constant 0 : i32
    %5 = arith.cmpi ne, %4, %c0_i32_3 : i32
    scf.if %5 {
      %c0_8 = arith.constant 0 : index
      %c0_9 = arith.constant 0 : index
      %12 = vector.load %arg6[%c0_8, %c0_9] : memref<8x128xf32, #tpu.memory_space<vmem>>, vector<8x128xf32>
      tpu.vector_store %arg6[%c0_8, %c0_9], %2 {strides = array<i32>} : memref<8x128xf32, #tpu.memory_space<vmem>>, vector<8x128xf32>,
    } else {
    }
    %c0_i32_4 = arith.constant 0 : i32
    %6 = arith.cmpi sgt, %arg2, %c0_i32_4 : i32
    %7 = arith.extui %6 : i1 to i32
    %c0_i32_5 = arith.constant 0 : i32
    %8 = arith.cmpi ne, %7, %c0_i32_5 : i32
    scf.if %8 {
      %c0_8 = arith.constant 0 : index
      %c0_9 = arith.constant 0 : index
      %12 = vector.load %arg6[%c0_8, %c0_9] : memref<8x128xf32, #tpu.memory_space<vmem>>, vector<8x128xf32>
      %13 = arith.addf %12, %2 : vector<8x128xf32>
      %c0_10 = arith.constant 0 : index
      %c0_11 = arith.constant 0 : index
      %14 = vector.load %arg6[%c0_10, %c0_11] : memref<8x128xf32, #tpu.memory_space<vmem>>, vector<8x128xf32>
      tpu.vector_store %arg6[%c0_10, %c0_11], %13 {strides = array<i32>} : memref<8x128xf32, #tpu.memory_space<vmem>>, vector<8x128xf32>,
    } else {
    }
    %c0_i32_6 = arith.constant 0 : i32
    %9 = arith.cmpi eq, %arg2, %c0_i32_6 : i32
    %10 = arith.extui %9 : i1 to i32
    %c0_i32_7 = arith.constant 0 : i32
    %11 = arith.cmpi ne, %10, %c0_i32_7 : i32
    scf.if %11 {
      %c0_8 = arith.constant 0 : index
      %c0_9 = arith.constant 0 : index
      %12 = vector.load %arg6[%c0_8, %c0_9] : memref<8x128xf32, #tpu.memory_space<vmem>>, vector<8x128xf32>
      %c0_10 = arith.constant 0 : index
      %c0_11 = arith.constant 0 : index
      %13 = vector.load %arg5[%c0_10, %c0_11] : memref<1x128xf32, #tpu.memory_space<vmem>>, vector<1x128xf32>
      %14 = vector.broadcast %13 : vector<1x128xf32> to vector<8x128xf32>
      %15 = arith.addf %12, %14 : vector<8x128xf32>
      %c0_12 = arith.constant 0 : index
      %c0_13 = arith.constant 0 : index
      %16 = vector.load %arg6[%c0_12, %c0_13] : memref<8x128xf32, #tpu.memory_space<vmem>>, vector<8x128xf32>
      tpu.vector_store %arg6[%c0_12, %c0_13], %15 {strides = array<i32>} : memref<8x128xf32, #tpu.memory_space<vmem>>, vector<8x128xf32>,
    } else {
    }
    return
  }
  func.func @transform_0(%arg0: i32, %arg1: i32, %arg2: i32) -> (i32, i32) {
    %c0_i32 = arith.constant 0 : i32
    return %arg0, %arg2 : i32, i32
  }
  func.func @transform_1(%arg0: i32, %arg1: i32, %arg2: i32) -> (i32, i32) {
    %c0_i32 = arith.constant 0 : i32
    return %arg2, %arg1 : i32, i32
  }
  func.func @transform_2(%arg0: i32, %arg1: i32, %arg2: i32) -> (i32, i32) {
    %c0_i32 = arith.constant 0 : i32
    %c0_i32_0 = arith.constant 0 : i32
    return %c0_i32, %arg1 : i32, i32
  }
  func.func @transform_3(%arg0: i32, %arg1: i32, %arg2: i32) -> (i32, i32) {
    %c0_i32 = arith.constant 0 : i32
    return %arg0, %arg1 : i32, i32
  }
}

</mosaic_0001>

<bundles_post_ra>
// kernel: qnetwork_cnn_forward.5
= control target key start
LH: loop header
LB: loop body
LE: loop exit
PB: predicated region body
PF: predicated region fallthrough
CT: control target
= control target key end

     0   :  { %s1410_s12 = smov 0   ;;  %s1412_s13 = smov 0   ;;  %s1784_s0 = inlined_call_operand.vmem [shape: f32[800,256], index: 0, kind: input, shape index: {}]   ;;  %s1785_s1 = inlined_call_operand.vmem [shape: f32[256,128], index: 1, kind: input, shape index: {}]   ;;  %s1786_s2 = inlined_call_operand.vmem [shape: f32[1,128], index: 2, kind: input, shape index: {}]   ;;  %s1787_s3 = inlined_call_operand.vmem [shape: f32[800,128], index: 3, kind: output, shape index: {}]  }
   0x1   :  { %s1414_s14 = smov 0  }
   0x2 LB: > { %s32_s15 = sadd.s32 1, %s1383_s13  ;;  %p1252_p0 = scmp.ge.s32.totalorder %s1387_s14, 1  ;;  %s1387_s14 = sphi %s1414_s14, %s13_s14   ;;  %s1383_s13 = sphi %s1412_s13, %s1789_s13   ;;  %s1379_s12 = sphi %s1410_s12, %s1788_s12  }
   0x3   : > { %p34_p1 = scmp.ge.s32.totalorder %s32_s15, 2  ;;  %p191_p2 = scmp.lt.s32.totalorder %s1387_s14, 3 }
   0x5   : > { %s1791_s15 = smov (%p34_p1, %s32_s15), 0  ;;  %p192_p3 = pnand %p1252_p0, %p191_p2 }
   0x6   : > { %v367_v0 = vld [vmem:[%s1785_s1] sm:$0xff] (!%p192_p3)  ;;  %v368_v1 = vld [vmem:[%s1785_s1 + $0x8] sm:$0xff] (!%p192_p3)  ;;  %v369_v2 = vld [vmem:[%s1785_s1 + $0x10] sm:$0xff] (!%p192_p3)  ;;  %s234_s22 = smul.u32 (!%p192_p3), 50, %s1379_s12  ;;  %v1389_v3 = vmov (!%p192_p3), 0.0|0.0  }
   0x7   : > { %195 = sbr.rel (%p192_p3) target bundleno = 385 (0x181), region = 32  ;;  %1260 = vmatprep.subr.bf16.mxu0 (!%p192_p3), %v1389_v3  ;;  %1308 = vmatprep.subr.bf16.mxu1 (!%p192_p3), %v1389_v3  ;;  %v1261_v4 = vpack.c.bf16 (!%p192_p3), %v368_v1, %v367_v0  ;;  %v370_v5 = vld [vmem:[%s1785_s1 + $0x18] sm:$0xff] (!%p192_p3)  ;;  %v371_v7 = vld [vmem:[%s1785_s1 + $0x20] sm:$0xff] (!%p192_p3)  ;;  %v372_v8 = vld [vmem:[%s1785_s1 + $0x28] sm:$0xff] (!%p192_p3) }
   0x8   : > { %p236_p4 = scmp.lt.s32.totalorder (!%p192_p3), %s234_s22, 99  ;;  %v1264_v6 = vpack.c.bf16 (!%p192_p3), %v370_v5, %v369_v2  ;;  %v1267_v9 = vpack.c.bf16 (!%p192_p3), %v372_v8, %v371_v7  ;;  %v373_v10 = vld [vmem:[%s1785_s1 + $0x30] sm:$0xff] (!%p192_p3)  ;;  %v374_v11 = vld [vmem:[%s1785_s1 + $0x38] sm:$0xff] (!%p192_p3)  ;;  %v375_v15 = vld [vmem:[%s1785_s1 + $0x40] sm:$0xff] (!%p192_p3) }
   0x9   : > { %1262 = vmatpush1.bf16.msra.mxu0 (!%p192_p3), %v1261_v4  ;;  %1324 = vmatpush1.bf16.msra.mxu1 (!%p192_p3), %v1261_v4  ;;  %v1270_v13 = vpack.c.bf16 (!%p192_p3), %v374_v11, %v373_v10  ;;  %v376_v16 = vld [vmem:[%s1785_s1 + $0x48] sm:$0xff] (!%p192_p3)  ;;  %v377_v18 = vld [vmem:[%s1785_s1 + $0x50] sm:$0xff] (!%p192_p3)  ;;  %v378_v19 = vld [vmem:[%s1785_s1 + $0x58] sm:$0xff] (!%p192_p3) }
   0xa   : > { %1263 = vmatprep.subr.bf16.mxu0 (!%p192_p3), %v1389_v3  ;;  %1309 = vmatprep.subr.bf16.mxu1 (!%p192_p3), %v1389_v3  ;;  %v1273_v17 = vpack.c.bf16 (!%p192_p3), %v376_v16, %v375_v15  ;;  %v1276_v20 = vpack.c.bf16 (!%p192_p3), %v378_v19, %v377_v18  ;;  %v379_v21 = vld [vmem:[%s1785_s1 + $0x60] sm:$0xff] (!%p192_p3)  ;;  %v380_v22 = vld [vmem:[%s1785_s1 + $0x68] sm:$0xff] (!%p192_p3)  ;;  %v381_v24 = vld [vmem:[%s1785_s1 + $0x70] sm:$0xff] (!%p192_p3) }
   0xb   : > { %v1279_v23 = vpack.c.bf16 (!%p192_p3), %v380_v22, %v379_v21  ;;  %v382_v25 = vld [vmem:[%s1785_s1 + $0x78] sm:$0xff] (!%p192_p3)  ;;  %v383_v27 = vld [vmem:[%s1785_s1 + $0x80] sm:$0xff] (!%p192_p3)  ;;  %v384_v28 = vld [vmem:[%s1785_s1 + $0x88] sm:$0xff] (!%p192_p3) }
   0xc   : > { %v1282_v26 = vpack.c.bf16 (!%p192_p3), %v382_v25, %v381_v24  ;;  %v1285_v29 = vpack.c.bf16 (!%p192_p3), %v384_v28, %v383_v27  ;;  %v385_v30 = vld [vmem:[%s1785_s1 + $0x90] sm:$0xff] (!%p192_p3)  ;;  %v386_v31 = vld [vmem:[%s1785_s1 + $0x98] sm:$0xff] (!%p192_p3)  ;;  %v387_v33 = vld [vmem:[%s1785_s1 + $0xa0] sm:$0xff] (!%p192_p3) }
   0xd   : > { %1265 = vmatpush1.bf16.msra.mxu0 (!%p192_p3), %v1264_v6  ;;  %1325 = vmatpush1.bf16.msra.mxu1 (!%p192_p3), %v1264_v6  ;;  %v1288_v32 = vpack.c.bf16 (!%p192_p3), %v386_v31, %v385_v30  ;;  %v388_v34 = vld [vmem:[%s1785_s1 + $0xa8] sm:$0xff] (!%p192_p3)  ;;  %v389_v36 = vld [vmem:[%s1785_s1 + $0xb0] sm:$0xff] (!%p192_p3)  ;;  %v390_v37 = vld [vmem:[%s1785_s1 + $0xb8] sm:$0xff] (!%p192_p3) }
   0xe   : > { %s1793_s22 = smov (!%p236_p4, %s234_s22), 99  ;;  %1266 = vmatprep.subr.bf16.mxu0 %v1389_v3  ;;  %1310 = vmatprep.subr.bf16.mxu1 %v1389_v3  ;;  %v1291_v35 = vpack.c.bf16 %v388_v34, %v387_v33  ;;  %v1294_v38 = vpack.c.bf16 %v390_v37, %v389_v36  ;;  %v391_v39 = vld [vmem:[%s1785_s1 + $0xc0] sm:$0xff]  ;;  %v392_v40 = vld [vmem:[%s1785_s1 + $0xc8] sm:$0xff]  ;;  %v393_v42 = vld [vmem:[%s1785_s1 + $0xd0] sm:$0xff] }
   0xf   : > { %s1259_s29 = sshll.u32 %s1793_s22, 4  ;;  %v1297_v41 = vpack.c.bf16 %v392_v40, %v391_v39  ;;  %v394_v43 = vld [vmem:[%s1785_s1 + $0xd8] sm:$0xff]  ;;  %v395_v45 = vld [vmem:[%s1785_s1 + $0xe0] sm:$0xff]  ;;  %v396_v46 = vld [vmem:[%s1785_s1 + $0xe8] sm:$0xff]  ;;  %s1255_s19 = sshll.u32 %s1793_s22, 3 }
  0x10   : > { %s1456_s5 = scalar_lea.vmem %s1784_s0, %s1259_s29  ;;  %v1300_v44 = vpack.c.bf16 %v394_v43, %v393_v42  ;;  %v1303_v47 = vpack.c.bf16 %v396_v46, %v395_v45  ;;  %v397_v48 = vld [vmem:[%s1785_s1 + $0xf0] sm:$0xff]  ;;  %v398_v49 = vld [vmem:[%s1785_s1 + $0xf8] sm:$0xff] }
  0x11   : > { %v268_v12 = vld [vmem:[%s1456_s5 + $0x8] sm:$0xff]  ;;  %1268 = vmatpush1.bf16.msra.mxu0 %v1267_v9  ;;  %1326 = vmatpush1.bf16.msra.mxu1 %v1267_v9  ;;  %v318_v14 = vld [vmem:[%s1456_s5 + $0x198] sm:$0xff]  ;;  %v1306_v50 = vpack.c.bf16 %v398_v49, %v397_v48  ;;  %v267_v51 = vld [vmem:[%s1456_s5] sm:$0xff] }
  0x12   : > { %1269 = vmatprep.subr.bf16.mxu0 %v1389_v3  ;;  %1311 = vmatprep.subr.bf16.mxu1 %v1389_v3  ;;  %v317_v52 = vld [vmem:[%s1456_s5 + $0x190] sm:$0xff]  ;;  %v270_v53 = vld [vmem:[%s1456_s5 + $0x18] sm:$0xff]  ;;  %v320_v54 = vld [vmem:[%s1456_s5 + $0x1a8] sm:$0xff] }
  0x13   : > { %463 = vmatprep.mubr.f32.mxu0 %v268_v12  ;;  %588 = vmatprep.mubr.f32.mxu1 %v318_v14  ;;  %v269_v55 = vld [vmem:[%s1456_s5 + $0x10] sm:$0xff]  ;;  %v319_v56 = vld [vmem:[%s1456_s5 + $0x1a0] sm:$0xff]  ;;  %v272_v57 = vld [vmem:[%s1456_s5 + $0x28] sm:$0xff] }
  0x14   : > { %v322_v58 = vld [vmem:[%s1456_s5 + $0x1b8] sm:$0xff]  ;;  %v271_v59 = vld [vmem:[%s1456_s5 + $0x20] sm:$0xff]  ;;  %v321_v60 = vld [vmem:[%s1456_s5 + $0x1b0] sm:$0xff] }
  0x15   : > { %1271 = vmatpush1.bf16.msra.mxu0 %v1270_v13  ;;  %1327 = vmatpush1.bf16.msra.mxu1 %v1270_v13  ;;  %v274_v61 = vld [vmem:[%s1456_s5 + $0x38] sm:$0xff]  ;;  %v324_v62 = vld [vmem:[%s1456_s5 + $0x1c8] sm:$0xff]  ;;  %v273_v63 = vld [vmem:[%s1456_s5 + $0x30] sm:$0xff] }
  0x16   : > { %1272 = vmatprep.subr.bf16.mxu0 %v1389_v3  ;;  %1312 = vmatprep.subr.bf16.mxu1 %v1389_v3  ;;  %v323_v0 = vld [vmem:[%s1456_s5 + $0x1c0] sm:$0xff]  ;;  %v276_v1 = vld [vmem:[%s1456_s5 + $0x48] sm:$0xff]  ;;  %v326_v2 = vld [vmem:[%s1456_s5 + $0x1d8] sm:$0xff] }
  0x17   : > { %v325_v4 = vld [vmem:[%s1456_s5 + $0x1d0] sm:$0xff]  ;;  %v278_v5 = vld [vmem:[%s1456_s5 + $0x58] sm:$0xff]  ;;  %v328_v6 = vld [vmem:[%s1456_s5 + $0x1e8] sm:$0xff] }
  0x18   : > { %v277_v7 = vld [vmem:[%s1456_s5 + $0x50] sm:$0xff]  ;;  %v327_v8 = vld [vmem:[%s1456_s5 + $0x1e0] sm:$0xff]  ;;  %v280_v9 = vld [vmem:[%s1456_s5 + $0x68] sm:$0xff] }
  0x19   : > { %1274 = vmatpush1.bf16.msra.mxu0 %v1273_v17  ;;  %1328 = vmatpush1.bf16.msra.mxu1 %v1273_v17  ;;  %v330_v10 = vld [vmem:[%s1456_s5 + $0x1f8] sm:$0xff]  ;;  %v279_v11 = vld [vmem:[%s1456_s5 + $0x60] sm:$0xff]  ;;  %v329_v12 = vld [vmem:[%s1456_s5 + $0x1f0] sm:$0xff] }
  0x1a   : > { %1275 = vmatprep.subr.bf16.mxu0 %v1389_v3  ;;  %1313 = vmatprep.subr.bf16.mxu1 %v1389_v3  ;;  %v282_v13 = vld [vmem:[%s1456_s5 + $0x78] sm:$0xff]  ;;  %v332_v14 = vld [vmem:[%s1456_s5 + $0x208] sm:$0xff]  ;;  %v281_v15 = vld [vmem:[%s1456_s5 + $0x70] sm:$0xff] }
  0x1b   : > { %v331_v16 = vld [vmem:[%s1456_s5 + $0x200] sm:$0xff]  ;;  %v284_v17 = vld [vmem:[%s1456_s5 + $0x88] sm:$0xff]  ;;  %v334_v18 = vld [vmem:[%s1456_s5 + $0x218] sm:$0xff] }
  0x1c   : > { %v283_v19 = vld [vmem:[%s1456_s5 + $0x80] sm:$0xff]  ;;  %v286_v21 = vld [vmem:[%s1456_s5 + $0x98] sm:$0xff]  ;;  %v336_v22 = vld [vmem:[%s1456_s5 + $0x228] sm:$0xff] }
  0x1d   : > { %1277 = vmatpush1.bf16.msra.mxu0 %v1276_v20  ;;  %1329 = vmatpush1.bf16.msra.mxu1 %v1276_v20  ;;  %v333_v20 = vld [vmem:[%s1456_s5 + $0x210] sm:$0xff]  ;;  %v335_v24 = vld [vmem:[%s1456_s5 + $0x220] sm:$0xff]  ;;  %v288_v25 = vld [vmem:[%s1456_s5 + $0xa8] sm:$0xff] }
  0x1e   : > { %1278 = vmatprep.subr.bf16.mxu0 %v1389_v3  ;;  %1314 = vmatprep.subr.bf16.mxu1 %v1389_v3  ;;  %v287_v27 = vld [vmem:[%s1456_s5 + $0xa0] sm:$0xff]  ;;  %v337_v28 = vld [vmem:[%s1456_s5 + $0x230] sm:$0xff]  ;;  %v340_v30 = vld [vmem:[%s1456_s5 + $0x248] sm:$0xff] }
  0x1f   : > { %v289_v31 = vld [vmem:[%s1456_s5 + $0xb0] sm:$0xff]  ;;  %v292_v33 = vld [vmem:[%s1456_s5 + $0xc8] sm:$0xff]  ;;  %v342_v34 = vld [vmem:[%s1456_s5 + $0x258] sm:$0xff] }
  0x20   : > { %v341_v36 = vld [vmem:[%s1456_s5 + $0x250] sm:$0xff]  ;;  %v294_v37 = vld [vmem:[%s1456_s5 + $0xd8] sm:$0xff]  ;;  %v343_v40 = vld [vmem:[%s1456_s5 + $0x260] sm:$0xff] }
  0x21   : > { %1280 = vmatpush1.bf16.msra.mxu0 %v1279_v23  ;;  %1330 = vmatpush1.bf16.msra.mxu1 %v1279_v23  ;;  %v285_v23 = vld [vmem:[%s1456_s5 + $0x90] sm:$0xff]  ;;  %v346_v42 = vld [vmem:[%s1456_s5 + $0x278] sm:$0xff]  ;;  %v295_v43 = vld [vmem:[%s1456_s5 + $0xe0] sm:$0xff] }
  0x22   : > { %1281 = vmatprep.subr.bf16.mxu0 %v1389_v3  ;;  %1315 = vmatprep.subr.bf16.mxu1 %v1389_v3  ;;  %v293_v39 = vld [vmem:[%s1456_s5 + $0xd0] sm:$0xff]  ;;  %v298_v45 = vld [vmem:[%s1456_s5 + $0xf8] sm:$0xff]  ;;  %v348_v46 = vld [vmem:[%s1456_s5 + $0x288] sm:$0xff] }
  0x23   : > { %v347_v48 = vld [vmem:[%s1456_s5 + $0x280] sm:$0xff]  ;;  %v300_v49 = vld [vmem:[%s1456_s5 + $0x108] sm:$0xff] }
  0x25   : > { %1283 = vmatpush1.bf16.msra.mxu0 %v1282_v26  ;;  %1331 = vmatpush1.bf16.msra.mxu1 %v1282_v26  ;;  %v338_v26 = vld [vmem:[%s1456_s5 + $0x238] sm:$0xff] }
  0x26   : > { %1284 = vmatprep.subr.bf16.mxu0 %v1389_v3  ;;  %1316 = vmatprep.subr.bf16.mxu1 %v1389_v3 }
  0x29   : > { %1286 = vmatpush1.bf16.msra.mxu0 %v1285_v29  ;;  %1332 = vmatpush1.bf16.msra.mxu1 %v1285_v29  ;;  %v290_v29 = vld [vmem:[%s1456_s5 + $0xb8] sm:$0xff] }
  0x2a   : > { %1287 = vmatprep.subr.bf16.mxu0 %v1389_v3  ;;  %1317 = vmatprep.subr.bf16.mxu1 %v1389_v3 }
  0x2d   : > { %1289 = vmatpush1.bf16.msra.mxu0 %v1288_v32  ;;  %1333 = vmatpush1.bf16.msra.mxu1 %v1288_v32  ;;  %v339_v32 = vld [vmem:[%s1456_s5 + $0x240] sm:$0xff] }
  0x2e   : > { %1290 = vmatprep.subr.bf16.mxu0 %v1389_v3  ;;  %1318 = vmatprep.subr.bf16.mxu1 %v1389_v3 }
  0x31   : > { %1292 = vmatpush1.bf16.msra.mxu0 %v1291_v35  ;;  %1334 = vmatpush1.bf16.msra.mxu1 %v1291_v35  ;;  %v291_v35 = vld [vmem:[%s1456_s5 + $0xc0] sm:$0xff] }
  0x32   : > { %1293 = vmatprep.subr.bf16.mxu0 %v1389_v3  ;;  %1319 = vmatprep.subr.bf16.mxu1 %v1389_v3 }
  0x35   : > { %1295 = vmatpush1.bf16.msra.mxu0 %v1294_v38  ;;  %1335 = vmatpush1.bf16.msra.mxu1 %v1294_v38  ;;  %v344_v38 = vld [vmem:[%s1456_s5 + $0x268] sm:$0xff] }
  0x36   : > { %1296 = vmatprep.subr.bf16.mxu0 %v1389_v3  ;;  %1320 = vmatprep.subr.bf16.mxu1 %v1389_v3 }
  0x39   : > { %1298 = vmatpush1.bf16.msra.mxu0 %v1297_v41  ;;  %1336 = vmatpush1.bf16.msra.mxu1 %v1297_v41  ;;  %v296_v41 = vld [vmem:[%s1456_s5 + $0xe8] sm:$0xff] }
  0x3a   : > { %1299 = vmatprep.subr.bf16.mxu0 %v1389_v3  ;;  %1321 = vmatprep.subr.bf16.mxu1 %v1389_v3 }
  0x3d   : > { %1301 = vmatpush1.bf16.msra.mxu0 %v1300_v44  ;;  %1337 = vmatpush1.bf16.msra.mxu1 %v1300_v44  ;;  %v345_v44 = vld [vmem:[%s1456_s5 + $0x270] sm:$0xff] }
  0x3e   : > { %1302 = vmatprep.subr.bf16.mxu0 %v1389_v3  ;;  %1322 = vmatprep.subr.bf16.mxu1 %v1389_v3 }
  0x41   : > { %1304 = vmatpush1.bf16.msra.mxu0 %v1303_v47  ;;  %1338 = vmatpush1.bf16.msra.mxu1 %v1303_v47  ;;  %v297_v47 = vld [vmem:[%s1456_s5 + $0xf0] sm:$0xff] }
  0x42   : > { %1305 = vmatprep.subr.bf16.mxu0 %v1389_v3  ;;  %1323 = vmatprep.subr.bf16.mxu1 %v1389_v3  ;;  %v275_v3 = vld [vmem:[%s1456_s5 + $0x40] sm:$0xff] }
  0x45   : > { %1307 = vmatpush1.bf16.msra.mxu0 %v1306_v50  ;;  %1339 = vmatpush1.bf16.msra.mxu1 %v1306_v50  ;;  %v350_v50 = vld [vmem:[%s1456_s5 + $0x298] sm:$0xff] }
  0x48   : > { %464 = vmatmul.mubr.f32.vlgmr.msra.gmra.mrb[0].mxu0 %v267_v51  ;;  %589 = vmatmul.mubr.f32.vlgmr.msra.gmra.mrb[0].mxu1 %v317_v52  ;;  %v299_v51 = vld [vmem:[%s1456_s5 + $0x100] sm:$0xff]  ;;  %v349_v52 = vld [vmem:[%s1456_s5 + $0x290] sm:$0xff] }
  0x49   : > { %468 = vmatprep.mubr.f32.mxu0 %v270_v53  ;;  %593 = vmatprep.mubr.f32.mxu1 %v320_v54  ;;  %v302_v53 = vld [vmem:[%s1456_s5 + $0x118] sm:$0xff]  ;;  %v352_v54 = vld [vmem:[%s1456_s5 + $0x2a8] sm:$0xff] }
  0x4c   : > { %469 = vmatmul.mubr.f32.gmra.mrb[2].mxu0 %v269_v55  ;;  %594 = vmatmul.mubr.f32.gmra.mrb[2].mxu1 %v319_v56  ;;  %v301_v55 = vld [vmem:[%s1456_s5 + $0x110] sm:$0xff]  ;;  %v351_v56 = vld [vmem:[%s1456_s5 + $0x2a0] sm:$0xff] }
  0x4d   : > { %473 = vmatprep.mubr.f32.mxu0 %v272_v57  ;;  %598 = vmatprep.mubr.f32.mxu1 %v322_v58  ;;  %v304_v57 = vld [vmem:[%s1456_s5 + $0x128] sm:$0xff]  ;;  %v354_v58 = vld [vmem:[%s1456_s5 + $0x2b8] sm:$0xff] }
  0x50   : > { %474 = vmatmul.mubr.f32.gmra.mrb[4].mxu0 %v271_v59  ;;  %599 = vmatmul.mubr.f32.gmra.mrb[4].mxu1 %v321_v60  ;;  %v303_v59 = vld [vmem:[%s1456_s5 + $0x120] sm:$0xff]  ;;  %v353_v60 = vld [vmem:[%s1456_s5 + $0x2b0] sm:$0xff] }
  0x51   : > { %478 = vmatprep.mubr.f32.mxu0 %v274_v61  ;;  %603 = vmatprep.mubr.f32.mxu1 %v324_v62  ;;  %v306_v61 = vld [vmem:[%s1456_s5 + $0x138] sm:$0xff]  ;;  %v356_v62 = vld [vmem:[%s1456_s5 + $0x2c8] sm:$0xff] }
  0x54   : > { %479 = vmatmul.mubr.f32.gmra.mrb[6].mxu0 %v273_v63  ;;  %604 = vmatmul.mubr.f32.gmra.mrb[6].mxu1 %v323_v0  ;;  %v305_v63 = vld [vmem:[%s1456_s5 + $0x130] sm:$0xff]  ;;  %v355_v0 = vld [vmem:[%s1456_s5 + $0x2c0] sm:$0xff] }
  0x55   : > { %483 = vmatprep.mubr.f32.mxu0 %v276_v1  ;;  %608 = vmatprep.mubr.f32.mxu1 %v326_v2  ;;  %v308_v1 = vld [vmem:[%s1456_s5 + $0x148] sm:$0xff]  ;;  %v358_v2 = vld [vmem:[%s1456_s5 + $0x2d8] sm:$0xff] }
  0x58   : > { %484 = vmatmul.mubr.f32.gmra.mrb[8].mxu0 %v275_v3  ;;  %609 = vmatmul.mubr.f32.gmra.mrb[8].mxu1 %v325_v4  ;;  %v307_v3 = vld [vmem:[%s1456_s5 + $0x140] sm:$0xff]  ;;  %v357_v4 = vld [vmem:[%s1456_s5 + $0x2d0] sm:$0xff] }
  0x59   : > { %488 = vmatprep.mubr.f32.mxu0 %v278_v5  ;;  %613 = vmatprep.mubr.f32.mxu1 %v328_v6  ;;  %v310_v5 = vld [vmem:[%s1456_s5 + $0x158] sm:$0xff]  ;;  %v360_v6 = vld [vmem:[%s1456_s5 + $0x2e8] sm:$0xff] }
  0x5c   : > { %489 = vmatmul.mubr.f32.gmra.mrb[10].mxu0 %v277_v7  ;;  %614 = vmatmul.mubr.f32.gmra.mrb[10].mxu1 %v327_v8  ;;  %v309_v7 = vld [vmem:[%s1456_s5 + $0x150] sm:$0xff]  ;;  %v359_v8 = vld [vmem:[%s1456_s5 + $0x2e0] sm:$0xff] }
  0x5d   : > { %493 = vmatprep.mubr.f32.mxu0 %v280_v9  ;;  %618 = vmatprep.mubr.f32.mxu1 %v330_v10  ;;  %v312_v9 = vld [vmem:[%s1456_s5 + $0x168] sm:$0xff]  ;;  %v362_v10 = vld [vmem:[%s1456_s5 + $0x2f8] sm:$0xff] }
  0x60   : > { %494 = vmatmul.mubr.f32.gmra.mrb[12].mxu0 %v279_v11  ;;  %619 = vmatmul.mubr.f32.gmra.mrb[12].mxu1 %v329_v12  ;;  %v311_v11 = vld [vmem:[%s1456_s5 + $0x160] sm:$0xff]  ;;  %v361_v12 = vld [vmem:[%s1456_s5 + $0x2f0] sm:$0xff] }
  0x61   : > { %498 = vmatprep.mubr.f32.mxu0 %v282_v13  ;;  %623 = vmatprep.mubr.f32.mxu1 %v332_v14  ;;  %v314_v13 = vld [vmem:[%s1456_s5 + $0x178] sm:$0xff]  ;;  %v364_v14 = vld [vmem:[%s1456_s5 + $0x308] sm:$0xff] }
  0x64   : > { %499 = vmatmul.mubr.f32.gmra.mrb[14].mxu0 %v281_v15  ;;  %624 = vmatmul.mubr.f32.gmra.mrb[14].mxu1 %v331_v16  ;;  %v313_v15 = vld [vmem:[%s1456_s5 + $0x170] sm:$0xff]  ;;  %v363_v16 = vld [vmem:[%s1456_s5 + $0x300] sm:$0xff] }
  0x65   : > { %503 = vmatprep.mubr.f32.mxu0 %v284_v17  ;;  %628 = vmatprep.mubr.f32.mxu1 %v334_v18  ;;  %v316_v17 = vld [vmem:[%s1456_s5 + $0x188] sm:$0xff]  ;;  %v366_v18 = vld [vmem:[%s1456_s5 + $0x318] sm:$0xff] }
  0x68   : > { %504 = vmatmul.mubr.f32.gmra.mrb[16].mxu0 %v283_v19  ;;  %629 = vmatmul.mubr.f32.gmra.mrb[16].mxu1 %v333_v20  ;;  %v315_v19 = vld [vmem:[%s1456_s5 + $0x180] sm:$0xff]  ;;  %v365_v20 = vld [vmem:[%s1456_s5 + $0x310] sm:$0xff]  ;;  %s1675_s5 = scalar_lea.vmem %s1787_s3, %s1255_s19 }
  0x69   : > { %508 = vmatprep.mubr.f32.mxu0 %v286_v21  ;;  %633 = vmatprep.mubr.f32.mxu1 %v336_v22  ;;  %v1667_v21 = vld [vmem:[%s1786_s2] ss:$0 sm:$0xff] }
  0x6c   : > { %509 = vmatmul.mubr.f32.gmra.mrb[18].mxu0 %v285_v23  ;;  %634 = vmatmul.mubr.f32.gmra.mrb[18].mxu1 %v335_v24 }
  0x6d   : > { %513 = vmatprep.mubr.f32.mxu0 %v288_v25  ;;  %638 = vmatprep.mubr.f32.mxu1 %v338_v26 }
  0x70   : > { %514 = vmatmul.mubr.f32.gmra.mrb[20].mxu0 %v287_v27  ;;  %639 = vmatmul.mubr.f32.gmra.mrb[20].mxu1 %v337_v28 }
  0x71   : > { %518 = vmatprep.mubr.f32.mxu0 %v290_v29  ;;  %643 = vmatprep.mubr.f32.mxu1 %v340_v30 }
  0x74   : > { %519 = vmatmul.mubr.f32.gmra.mrb[22].mxu0 %v289_v31  ;;  %644 = vmatmul.mubr.f32.gmra.mrb[22].mxu1 %v339_v32 }
  0x75   : > { %523 = vmatprep.mubr.f32.mxu0 %v292_v33  ;;  %648 = vmatprep.mubr.f32.mxu1 %v342_v34 }
  0x78   : > { %524 = vmatmul.mubr.f32.gmra.mrb[24].mxu0 %v291_v35  ;;  %649 = vmatmul.mubr.f32.gmra.mrb[24].mxu1 %v341_v36 }
  0x79   : > { %528 = vmatprep.mubr.f32.mxu0 %v294_v37  ;;  %653 = vmatprep.mubr.f32.mxu1 %v344_v38 }
  0x7c   : > { %529 = vmatmul.mubr.f32.gmra.mrb[26].mxu0 %v293_v39  ;;  %654 = vmatmul.mubr.f32.gmra.mrb[26].mxu1 %v343_v40 }
  0x7d   : > { %533 = vmatprep.mubr.f32.mxu0 %v296_v41  ;;  %658 = vmatprep.mubr.f32.mxu1 %v346_v42 }
  0x80   : > { %534 = vmatmul.mubr.f32.gmra.mrb[28].mxu0 %v295_v43  ;;  %659 = vmatmul.mubr.f32.gmra.mrb[28].mxu1 %v345_v44 }
  0x81   : > { %538 = vmatprep.mubr.f32.mxu0 %v298_v45  ;;  %663 = vmatprep.mubr.f32.mxu1 %v348_v46 }
  0x84   : > { %539 = vmatmul.mubr.f32.gmra.mrb[30].mxu0 %v297_v47  ;;  %664 = vmatmul.mubr.f32.gmra.mrb[30].mxu1 %v347_v48 }
  0x85   : > { %543 = vmatprep.mubr.f32.mxu0 %v300_v49  ;;  %668 = vmatprep.mubr.f32.mxu1 %v350_v50 }
  0x88   : > { %544 = vmatmul.mubr.f32.gmra.mrb[32].mxu0 %v299_v51  ;;  %669 = vmatmul.mubr.f32.gmra.mrb[32].mxu1 %v349_v52 }
  0x89   : > { %548 = vmatprep.mubr.f32.mxu0 %v302_v53  ;;  %673 = vmatprep.mubr.f32.mxu1 %v352_v54 }
  0x8c   : > { %549 = vmatmul.mubr.f32.gmra.mrb[34].mxu0 %v301_v55  ;;  %674 = vmatmul.mubr.f32.gmra.mrb[34].mxu1 %v351_v56 }
  0x8d   : > { %553 = vmatprep.mubr.f32.mxu0 %v304_v57  ;;  %678 = vmatprep.mubr.f32.mxu1 %v354_v58 }
  0x90   : > { %554 = vmatmul.mubr.f32.gmra.mrb[36].mxu0 %v303_v59  ;;  %679 = vmatmul.mubr.f32.gmra.mrb[36].mxu1 %v353_v60 }
  0x91   : > { %558 = vmatprep.mubr.f32.mxu0 %v306_v61  ;;  %683 = vmatprep.mubr.f32.mxu1 %v356_v62 }
  0x94   : > { %559 = vmatmul.mubr.f32.gmra.mrb[38].mxu0 %v305_v63  ;;  %684 = vmatmul.mubr.f32.gmra.mrb[38].mxu1 %v355_v0 }
  0x95   : > { %563 = vmatprep.mubr.f32.mxu0 %v308_v1  ;;  %688 = vmatprep.mubr.f32.mxu1 %v358_v2 }
  0x98   : > { %564 = vmatmul.mubr.f32.gmra.mrb[40].mxu0 %v307_v3  ;;  %689 = vmatmul.mubr.f32.gmra.mrb[40].mxu1 %v357_v4 }
  0x99   : > { %568 = vmatprep.mubr.f32.mxu0 %v310_v5  ;;  %693 = vmatprep.mubr.f32.mxu1 %v360_v6 }
  0x9c   : > { %569 = vmatmul.mubr.f32.gmra.mrb[42].mxu0 %v309_v7  ;;  %694 = vmatmul.mubr.f32.gmra.mrb[42].mxu1 %v359_v8 }
  0x9d   : > { %573 = vmatprep.mubr.f32.mxu0 %v312_v9  ;;  %698 = vmatprep.mubr.f32.mxu1 %v362_v10 }
  0xa0   : > { %574 = vmatmul.mubr.f32.gmra.mrb[44].mxu0 %v311_v11  ;;  %699 = vmatmul.mubr.f32.gmra.mrb[44].mxu1 %v361_v12 }
  0xa1   : > { %578 = vmatprep.mubr.f32.mxu0 %v314_v13  ;;  %703 = vmatprep.mubr.f32.mxu1 %v364_v14 }
  0xa4   : > { %579 = vmatmul.mubr.f32.gmra.mrb[46].mxu0 %v313_v15  ;;  %704 = vmatmul.mubr.f32.gmra.mrb[46].mxu1 %v363_v16 }
  0xa5   : > { %583 = vmatprep.mubr.f32.mxu0 %v316_v17  ;;  %708 = vmatprep.mubr.f32.mxu1 %v366_v18 }
  0xa8   : > { %584 = vmatmul.mubr.f32.gmra.mrb[48].mxu0 %v315_v19  ;;  %709 = vmatmul.mubr.f32.gmra.mrb[48].mxu1 %v365_v20 }
 0x11b   : > { %v465_v22 = vpop.f32.mrb[0].mxu0  ;;  %v590_v23 = vpop.f32.mrb[0].mxu1 }
 0x11c   : > { %v982_v24 = vadd.f32 %v1667_v21, %v465_v22  ;;  %v1007_v25 = vadd.f32 %v1667_v21, %v590_v23  ;;  %v467_v26 = vpop.f32.mrb[1].mxu0  ;;  %v592_v27 = vpop.f32.mrb[1].mxu1 }
 0x11e   : > { %v1032_v28 = vmax.f32 %v982_v24, 0.0  ;;  %v1057_v29 = vmax.f32 %v1007_v25, 0.0 }
 0x11f   : > { %v470_v30 = vpop.f32.mrb[2].mxu0  ;;  %v595_v31 = vpop.f32.mrb[2].mxu1 }
 0x120   : > { %1082 = vst [vmem:[%s1675_s5] sm:$0xff] %v1032_v28  ;;  %1107 = vst [vmem:[%s1675_s5 + $0xc8] sm:$0xff] %v1057_v29  ;;  %v983_v32 = vadd.f32 %v1667_v21, %v470_v30  ;;  %v1008_v33 = vadd.f32 %v1667_v21, %v595_v31  ;;  %v472_v34 = vpop.f32.mrb[3].mxu0  ;;  %v597_v35 = vpop.f32.mrb[3].mxu1 }
 0x122   : > { %v1033_v36 = vmax.f32 %v983_v32, 0.0  ;;  %v1058_v37 = vmax.f32 %v1008_v33, 0.0 }
 0x123   : > { %v475_v38 = vpop.f32.mrb[4].mxu0  ;;  %v600_v39 = vpop.f32.mrb[4].mxu1 }
 0x124   : > { %1083 = vst [vmem:[%s1675_s5 + $0x8] sm:$0xff] %v1033_v36  ;;  %1108 = vst [vmem:[%s1675_s5 + $0xd0] sm:$0xff] %v1058_v37  ;;  %v984_v40 = vadd.f32 %v1667_v21, %v475_v38  ;;  %v1009_v41 = vadd.f32 %v1667_v21, %v600_v39  ;;  %v477_v42 = vpop.f32.mrb[5].mxu0  ;;  %v602_v43 = vpop.f32.mrb[5].mxu1 }
 0x126   : > { %v1034_v44 = vmax.f32 %v984_v40, 0.0  ;;  %v1059_v45 = vmax.f32 %v1009_v41, 0.0 }
 0x127   : > { %v480_v46 = vpop.f32.mrb[6].mxu0  ;;  %v605_v47 = vpop.f32.mrb[6].mxu1 }
 0x128   : > { %1084 = vst [vmem:[%s1675_s5 + $0x10] sm:$0xff] %v1034_v44  ;;  %1109 = vst [vmem:[%s1675_s5 + $0xd8] sm:$0xff] %v1059_v45  ;;  %v985_v48 = vadd.f32 %v1667_v21, %v480_v46  ;;  %v1010_v49 = vadd.f32 %v1667_v21, %v605_v47  ;;  %v482_v50 = vpop.f32.mrb[7].mxu0  ;;  %v607_v51 = vpop.f32.mrb[7].mxu1 }
 0x12a   : > { %v1035_v52 = vmax.f32 %v985_v48, 0.0  ;;  %v1060_v53 = vmax.f32 %v1010_v49, 0.0 }
 0x12b   : > { %v485_v54 = vpop.f32.mrb[8].mxu0  ;;  %v610_v55 = vpop.f32.mrb[8].mxu1 }
 0x12c   : > { %1085 = vst [vmem:[%s1675_s5 + $0x18] sm:$0xff] %v1035_v52  ;;  %1110 = vst [vmem:[%s1675_s5 + $0xe0] sm:$0xff] %v1060_v53  ;;  %v986_v56 = vadd.f32 %v1667_v21, %v485_v54  ;;  %v1011_v57 = vadd.f32 %v1667_v21, %v610_v55  ;;  %v487_v58 = vpop.f32.mrb[9].mxu0  ;;  %v612_v59 = vpop.f32.mrb[9].mxu1 }
 0x12e   : > { %v1036_v60 = vmax.f32 %v986_v56, 0.0  ;;  %v1061_v61 = vmax.f32 %v1011_v57, 0.0 }
 0x12f   : > { %v490_v62 = vpop.f32.mrb[10].mxu0  ;;  %v615_v63 = vpop.f32.mrb[10].mxu1 }
 0x130   : > { %1086 = vst [vmem:[%s1675_s5 + $0x20] sm:$0xff] %v1036_v60  ;;  %1111 = vst [vmem:[%s1675_s5 + $0xe8] sm:$0xff] %v1061_v61  ;;  %v987_v0 = vadd.f32 %v1667_v21, %v490_v62  ;;  %v1012_v1 = vadd.f32 %v1667_v21, %v615_v63  ;;  %v492_v2 = vpop.f32.mrb[11].mxu0  ;;  %v617_v3 = vpop.f32.mrb[11].mxu1 }
 0x132   : > { %v1037_v4 = vmax.f32 %v987_v0, 0.0  ;;  %v1062_v5 = vmax.f32 %v1012_v1, 0.0 }
 0x133   : > { %v495_v6 = vpop.f32.mrb[12].mxu0  ;;  %v620_v7 = vpop.f32.mrb[12].mxu1 }
 0x134   : > { %1087 = vst [vmem:[%s1675_s5 + $0x28] sm:$0xff] %v1037_v4  ;;  %1112 = vst [vmem:[%s1675_s5 + $0xf0] sm:$0xff] %v1062_v5  ;;  %v988_v8 = vadd.f32 %v1667_v21, %v495_v6  ;;  %v1013_v9 = vadd.f32 %v1667_v21, %v620_v7  ;;  %v497_v10 = vpop.f32.mrb[13].mxu0  ;;  %v622_v11 = vpop.f32.mrb[13].mxu1 }
 0x136   : > { %v1038_v12 = vmax.f32 %v988_v8, 0.0  ;;  %v1063_v13 = vmax.f32 %v1013_v9, 0.0 }
 0x137   : > { %v500_v14 = vpop.f32.mrb[14].mxu0  ;;  %v625_v15 = vpop.f32.mrb[14].mxu1 }
 0x138   : > { %1088 = vst [vmem:[%s1675_s5 + $0x30] sm:$0xff] %v1038_v12  ;;  %1113 = vst [vmem:[%s1675_s5 + $0xf8] sm:$0xff] %v1063_v13  ;;  %v989_v16 = vadd.f32 %v1667_v21, %v500_v14  ;;  %v1014_v17 = vadd.f32 %v1667_v21, %v625_v15  ;;  %v502_v18 = vpop.f32.mrb[15].mxu0  ;;  %v627_v19 = vpop.f32.mrb[15].mxu1 }
 0x13a   : > { %v1039_v20 = vmax.f32 %v989_v16, 0.0  ;;  %v1064_v22 = vmax.f32 %v1014_v17, 0.0 }
 0x13b   : > { %v505_v23 = vpop.f32.mrb[16].mxu0  ;;  %v630_v24 = vpop.f32.mrb[16].mxu1 }
 0x13c   : > { %1089 = vst [vmem:[%s1675_s5 + $0x38] sm:$0xff] %v1039_v20  ;;  %1114 = vst [vmem:[%s1675_s5 + $0x100] sm:$0xff] %v1064_v22  ;;  %v990_v25 = vadd.f32 %v1667_v21, %v505_v23  ;;  %v1015_v26 = vadd.f32 %v1667_v21, %v630_v24  ;;  %v507_v27 = vpop.f32.mrb[17].mxu0  ;;  %v632_v28 = vpop.f32.mrb[17].mxu1 }
 0x13e   : > { %v1040_v29 = vmax.f32 %v990_v25, 0.0  ;;  %v1065_v30 = vmax.f32 %v1015_v26, 0.0 }
 0x13f   : > { %v510_v31 = vpop.f32.mrb[18].mxu0  ;;  %v635_v32 = vpop.f32.mrb[18].mxu1 }
 0x140   : > { %1090 = vst [vmem:[%s1675_s5 + $0x40] sm:$0xff] %v1040_v29  ;;  %1115 = vst [vmem:[%s1675_s5 + $0x108] sm:$0xff] %v1065_v30  ;;  %v991_v33 = vadd.f32 %v1667_v21, %v510_v31  ;;  %v1016_v34 = vadd.f32 %v1667_v21, %v635_v32  ;;  %v512_v35 = vpop.f32.mrb[19].mxu0  ;;  %v637_v36 = vpop.f32.mrb[19].mxu1 }
 0x142   : > { %v1041_v37 = vmax.f32 %v991_v33, 0.0  ;;  %v1066_v38 = vmax.f32 %v1016_v34, 0.0 }
 0x143   : > { %v515_v39 = vpop.f32.mrb[20].mxu0  ;;  %v640_v40 = vpop.f32.mrb[20].mxu1 }
 0x144   : > { %1091 = vst [vmem:[%s1675_s5 + $0x48] sm:$0xff] %v1041_v37  ;;  %1116 = vst [vmem:[%s1675_s5 + $0x110] sm:$0xff] %v1066_v38  ;;  %v992_v41 = vadd.f32 %v1667_v21, %v515_v39  ;;  %v1017_v42 = vadd.f32 %v1667_v21, %v640_v40  ;;  %v517_v43 = vpop.f32.mrb[21].mxu0  ;;  %v642_v44 = vpop.f32.mrb[21].mxu1 }
 0x146   : > { %v1042_v45 = vmax.f32 %v992_v41, 0.0  ;;  %v1067_v46 = vmax.f32 %v1017_v42, 0.0 }
 0x147   : > { %v520_v47 = vpop.f32.mrb[22].mxu0  ;;  %v645_v48 = vpop.f32.mrb[22].mxu1 }
 0x148   : > { %1092 = vst [vmem:[%s1675_s5 + $0x50] sm:$0xff] %v1042_v45  ;;  %1117 = vst [vmem:[%s1675_s5 + $0x118] sm:$0xff] %v1067_v46  ;;  %v993_v49 = vadd.f32 %v1667_v21, %v520_v47  ;;  %v1018_v50 = vadd.f32 %v1667_v21, %v645_v48  ;;  %v522_v51 = vpop.f32.mrb[23].mxu0  ;;  %v647_v52 = vpop.f32.mrb[23].mxu1 }
 0x14a   : > { %v1043_v53 = vmax.f32 %v993_v49, 0.0  ;;  %v1068_v54 = vmax.f32 %v1018_v50, 0.0 }
 0x14b   : > { %v525_v55 = vpop.f32.mrb[24].mxu0  ;;  %v650_v56 = vpop.f32.mrb[24].mxu1 }
 0x14c   : > { %1093 = vst [vmem:[%s1675_s5 + $0x58] sm:$0xff] %v1043_v53  ;;  %1118 = vst [vmem:[%s1675_s5 + $0x120] sm:$0xff] %v1068_v54  ;;  %v994_v57 = vadd.f32 %v1667_v21, %v525_v55  ;;  %v1019_v58 = vadd.f32 %v1667_v21, %v650_v56  ;;  %v527_v59 = vpop.f32.mrb[25].mxu0  ;;  %v652_v60 = vpop.f32.mrb[25].mxu1 }
 0x14e   : > { %v1044_v61 = vmax.f32 %v994_v57, 0.0  ;;  %v1069_v62 = vmax.f32 %v1019_v58, 0.0 }
 0x14f   : > { %v530_v63 = vpop.f32.mrb[26].mxu0  ;;  %v655_v0 = vpop.f32.mrb[26].mxu1 }
 0x150   : > { %1094 = vst [vmem:[%s1675_s5 + $0x60] sm:$0xff] %v1044_v61  ;;  %1119 = vst [vmem:[%s1675_s5 + $0x128] sm:$0xff] %v1069_v62  ;;  %v995_v1 = vadd.f32 %v1667_v21, %v530_v63  ;;  %v1020_v2 = vadd.f32 %v1667_v21, %v655_v0  ;;  %v532_v3 = vpop.f32.mrb[27].mxu0  ;;  %v657_v4 = vpop.f32.mrb[27].mxu1 }
 0x152   : > { %v1045_v5 = vmax.f32 %v995_v1, 0.0  ;;  %v1070_v6 = vmax.f32 %v1020_v2, 0.0 }
 0x153   : > { %v535_v7 = vpop.f32.mrb[28].mxu0  ;;  %v660_v8 = vpop.f32.mrb[28].mxu1 }
 0x154   : > { %1095 = vst [vmem:[%s1675_s5 + $0x68] sm:$0xff] %v1045_v5  ;;  %1120 = vst [vmem:[%s1675_s5 + $0x130] sm:$0xff] %v1070_v6  ;;  %v996_v9 = vadd.f32 %v1667_v21, %v535_v7  ;;  %v1021_v10 = vadd.f32 %v1667_v21, %v660_v8  ;;  %v537_v11 = vpop.f32.mrb[29].mxu0  ;;  %v662_v12 = vpop.f32.mrb[29].mxu1 }
 0x156   : > { %v1046_v13 = vmax.f32 %v996_v9, 0.0  ;;  %v1071_v14 = vmax.f32 %v1021_v10, 0.0 }
 0x157   : > { %v540_v15 = vpop.f32.mrb[30].mxu0  ;;  %v665_v16 = vpop.f32.mrb[30].mxu1 }
 0x158   : > { %1096 = vst [vmem:[%s1675_s5 + $0x70] sm:$0xff] %v1046_v13  ;;  %1121 = vst [vmem:[%s1675_s5 + $0x138] sm:$0xff] %v1071_v14  ;;  %v997_v17 = vadd.f32 %v1667_v21, %v540_v15  ;;  %v1022_v18 = vadd.f32 %v1667_v21, %v665_v16  ;;  %v542_v19 = vpop.f32.mrb[31].mxu0  ;;  %v667_v20 = vpop.f32.mrb[31].mxu1 }
 0x15a   : > { %v1047_v22 = vmax.f32 %v997_v17, 0.0  ;;  %v1072_v23 = vmax.f32 %v1022_v18, 0.0 }
 0x15b   : > { %v545_v24 = vpop.f32.mrb[32].mxu0  ;;  %v670_v25 = vpop.f32.mrb[32].mxu1 }
 0x15c   : > { %1097 = vst [vmem:[%s1675_s5 + $0x78] sm:$0xff] %v1047_v22  ;;  %1122 = vst [vmem:[%s1675_s5 + $0x140] sm:$0xff] %v1072_v23  ;;  %v998_v26 = vadd.f32 %v1667_v21, %v545_v24  ;;  %v1023_v27 = vadd.f32 %v1667_v21, %v670_v25  ;;  %v547_v28 = vpop.f32.mrb[33].mxu0  ;;  %v672_v29 = vpop.f32.mrb[33].mxu1 }
 0x15e   : > { %v1048_v30 = vmax.f32 %v998_v26, 0.0  ;;  %v1073_v31 = vmax.f32 %v1023_v27, 0.0 }
 0x15f   : > { %v550_v32 = vpop.f32.mrb[34].mxu0  ;;  %v675_v33 = vpop.f32.mrb[34].mxu1 }
 0x160   : > { %1098 = vst [vmem:[%s1675_s5 + $0x80] sm:$0xff] %v1048_v30  ;;  %1123 = vst [vmem:[%s1675_s5 + $0x148] sm:$0xff] %v1073_v31  ;;  %v999_v34 = vadd.f32 %v1667_v21, %v550_v32  ;;  %v1024_v35 = vadd.f32 %v1667_v21, %v675_v33  ;;  %v552_v36 = vpop.f32.mrb[35].mxu0  ;;  %v677_v37 = vpop.f32.mrb[35].mxu1 }
 0x162   : > { %v1049_v38 = vmax.f32 %v999_v34, 0.0  ;;  %v1074_v39 = vmax.f32 %v1024_v35, 0.0 }
 0x163   : > { %v555_v40 = vpop.f32.mrb[36].mxu0  ;;  %v680_v41 = vpop.f32.mrb[36].mxu1 }
 0x164   : > { %1099 = vst [vmem:[%s1675_s5 + $0x88] sm:$0xff] %v1049_v38  ;;  %1124 = vst [vmem:[%s1675_s5 + $0x150] sm:$0xff] %v1074_v39  ;;  %v1000_v42 = vadd.f32 %v1667_v21, %v555_v40  ;;  %v1025_v43 = vadd.f32 %v1667_v21, %v680_v41  ;;  %v557_v44 = vpop.f32.mrb[37].mxu0  ;;  %v682_v45 = vpop.f32.mrb[37].mxu1 }
 0x166   : > { %v1050_v46 = vmax.f32 %v1000_v42, 0.0  ;;  %v1075_v47 = vmax.f32 %v1025_v43, 0.0 }
 0x167   : > { %v560_v48 = vpop.f32.mrb[38].mxu0  ;;  %v685_v49 = vpop.f32.mrb[38].mxu1 }
 0x168   : > { %1100 = vst [vmem:[%s1675_s5 + $0x90] sm:$0xff] %v1050_v46  ;;  %1125 = vst [vmem:[%s1675_s5 + $0x158] sm:$0xff] %v1075_v47  ;;  %v1001_v50 = vadd.f32 %v1667_v21, %v560_v48  ;;  %v1026_v51 = vadd.f32 %v1667_v21, %v685_v49  ;;  %v562_v52 = vpop.f32.mrb[39].mxu0  ;;  %v687_v53 = vpop.f32.mrb[39].mxu1 }
 0x16a   : > { %v1051_v54 = vmax.f32 %v1001_v50, 0.0  ;;  %v1076_v55 = vmax.f32 %v1026_v51, 0.0 }
 0x16b   : > { %v565_v56 = vpop.f32.mrb[40].mxu0  ;;  %v690_v57 = vpop.f32.mrb[40].mxu1 }
 0x16c   : > { %1101 = vst [vmem:[%s1675_s5 + $0x98] sm:$0xff] %v1051_v54  ;;  %1126 = vst [vmem:[%s1675_s5 + $0x160] sm:$0xff] %v1076_v55  ;;  %v1002_v58 = vadd.f32 %v1667_v21, %v565_v56  ;;  %v1027_v59 = vadd.f32 %v1667_v21, %v690_v57  ;;  %v567_v60 = vpop.f32.mrb[41].mxu0  ;;  %v692_v61 = vpop.f32.mrb[41].mxu1 }
 0x16e   : > { %v1052_v62 = vmax.f32 %v1002_v58, 0.0  ;;  %v1077_v63 = vmax.f32 %v1027_v59, 0.0 }
 0x16f   : > { %v570_v0 = vpop.f32.mrb[42].mxu0  ;;  %v695_v1 = vpop.f32.mrb[42].mxu1 }
 0x170   : > { %1102 = vst [vmem:[%s1675_s5 + $0xa0] sm:$0xff] %v1052_v62  ;;  %1127 = vst [vmem:[%s1675_s5 + $0x168] sm:$0xff] %v1077_v63  ;;  %v1003_v2 = vadd.f32 %v1667_v21, %v570_v0  ;;  %v1028_v3 = vadd.f32 %v1667_v21, %v695_v1  ;;  %v572_v4 = vpop.f32.mrb[43].mxu0  ;;  %v697_v5 = vpop.f32.mrb[43].mxu1 }
 0x172   : > { %v1053_v6 = vmax.f32 %v1003_v2, 0.0  ;;  %v1078_v7 = vmax.f32 %v1028_v3, 0.0 }
 0x173   : > { %v575_v8 = vpop.f32.mrb[44].mxu0  ;;  %v700_v9 = vpop.f32.mrb[44].mxu1 }
 0x174   : > { %1103 = vst [vmem:[%s1675_s5 + $0xa8] sm:$0xff] %v1053_v6  ;;  %1128 = vst [vmem:[%s1675_s5 + $0x170] sm:$0xff] %v1078_v7  ;;  %v1004_v10 = vadd.f32 %v1667_v21, %v575_v8  ;;  %v1029_v11 = vadd.f32 %v1667_v21, %v700_v9  ;;  %v577_v12 = vpop.f32.mrb[45].mxu0  ;;  %v702_v13 = vpop.f32.mrb[45].mxu1 }
 0x176   : > { %v1054_v14 = vmax.f32 %v1004_v10, 0.0  ;;  %v1079_v15 = vmax.f32 %v1029_v11, 0.0 }
 0x177   : > { %v580_v16 = vpop.f32.mrb[46].mxu0  ;;  %v705_v17 = vpop.f32.mrb[46].mxu1 }
 0x178   : > { %1104 = vst [vmem:[%s1675_s5 + $0xb0] sm:$0xff] %v1054_v14  ;;  %1129 = vst [vmem:[%s1675_s5 + $0x178] sm:$0xff] %v1079_v15  ;;  %v1005_v18 = vadd.f32 %v1667_v21, %v580_v16  ;;  %v1030_v19 = vadd.f32 %v1667_v21, %v705_v17  ;;  %v582_v20 = vpop.f32.mrb[47].mxu0  ;;  %v707_v22 = vpop.f32.mrb[47].mxu1 }
 0x17a   : > { %v1055_v23 = vmax.f32 %v1005_v18, 0.0  ;;  %v1080_v24 = vmax.f32 %v1030_v19, 0.0 }
 0x17b   : > { %v585_v25 = vpop.f32.mrb[48].mxu0  ;;  %v710_v26 = vpop.f32.mrb[48].mxu1 }
 0x17c   : > { %1105 = vst [vmem:[%s1675_s5 + $0xb8] sm:$0xff] %v1055_v23  ;;  %1130 = vst [vmem:[%s1675_s5 + $0x180] sm:$0xff] %v1080_v24  ;;  %v1006_v27 = vadd.f32 %v1667_v21, %v585_v25  ;;  %v1031_v28 = vadd.f32 %v1667_v21, %v710_v26  ;;  %v587_v29 = vpop.f32.mrb[49].mxu0  ;;  %v712_v30 = vpop.f32.mrb[49].mxu1 }
 0x17e   : > { %v1056_v31 = vmax.f32 %v1006_v27, 0.0  ;;  %v1081_v32 = vmax.f32 %v1031_v28, 0.0 }
 0x180   : > { %1106 = vst [vmem:[%s1675_s5 + $0xc0] sm:$0xff] %v1056_v31  ;;  %1131 = vst [vmem:[%s1675_s5 + $0x188] sm:$0xff] %v1081_v32 }
 0x181 PF: > { %s13_s14 = sadd.s32 1, %s1387_s14   ;;  %s1788_s12 = smov %s1383_s13 }
 0x182   : > { %p10_p5 = scmp.ge.s32.totalorder %s13_s14, 4   ;;  %s1789_s13 = smov %s1791_s15 }
 0x184   :  { %12 = sbr.rel (!%p10_p5) target bundleno = 2 (0x2), region = 80 }

// kernel: qnetwork_cnn_forward.6
= control target key start
LH: loop header
LB: loop body
LE: loop exit
PB: predicated region body
PF: predicated region fallthrough
CT: control target
= control target key end

     0   :  { %v790_v0 = vmov 0.0|0.0   ;;  %s1376_s1 = inlined_call_operand.vmem [shape: f32[512,128], index: 1, kind: input, shape index: {}]   ;;  %s1377_s0 = inlined_call_operand.vmem [shape: f32[168,512], index: 0, kind: input, shape index: {}]   ;;  %s1378_s2 = inlined_call_operand.vmem [shape: f32[1,128], index: 2, kind: input, shape index: {}]   ;;  %s1379_s3 = inlined_call_operand.vmem [shape: f32[168,128], index: 3, kind: output, shape index: {}]  }
   0x1   :  { %693 = vmatprep.subr.bf16.mxu0 %v790_v0  ;;  %741 = vmatprep.subr.bf16.mxu1 %v790_v0  ;;  %v98_v1 = vld [vmem:[%s1376_s1] sm:$0xff]  ;;  %v99_v2 = vld [vmem:[%s1376_s1 + $0x8] sm:$0xff]  ;;  %v100_v6 = vld [vmem:[%s1376_s1 + $0x10] sm:$0xff] }
   0x2   :  { %v130_v3 = vld [vmem:[%s1376_s1 + $0x100] sm:$0xff]  ;;  %v694_v4 = vpack.c.bf16 %v99_v2, %v98_v1  ;;  %v131_v5 = vld [vmem:[%s1376_s1 + $0x108] sm:$0xff]  ;;  %v101_v7 = vld [vmem:[%s1376_s1 + $0x18] sm:$0xff] }
   0x3   :  { %v742_v8 = vpack.c.bf16 %v131_v5, %v130_v3  ;;  %v132_v9 = vld [vmem:[%s1376_s1 + $0x110] sm:$0xff]  ;;  %v133_v10 = vld [vmem:[%s1376_s1 + $0x118] sm:$0xff]  ;;  %v697_v11 = vpack.c.bf16 %v101_v7, %v100_v6  ;;  %v102_v13 = vld [vmem:[%s1376_s1 + $0x20] sm:$0xff] }
   0x4   :  { %695 = vmatpush1.bf16.msra.mxu0 %v694_v4  ;;  %v745_v12 = vpack.c.bf16 %v133_v10, %v132_v9  ;;  %v103_v14 = vld [vmem:[%s1376_s1 + $0x28] sm:$0xff]  ;;  %v134_v15 = vld [vmem:[%s1376_s1 + $0x120] sm:$0xff]  ;;  %v104_v19 = vld [vmem:[%s1376_s1 + $0x30] sm:$0xff] }
   0x5   :  { %743 = vmatpush1.bf16.msra.mxu1 %v742_v8  ;;  %696 = vmatprep.subr.bf16.mxu0 %v790_v0  ;;  %v135_v16 = vld [vmem:[%s1376_s1 + $0x128] sm:$0xff]  ;;  %v700_v17 = vpack.c.bf16 %v103_v14, %v102_v13  ;;  %v105_v20 = vld [vmem:[%s1376_s1 + $0x38] sm:$0xff]  ;;  %v136_v21 = vld [vmem:[%s1376_s1 + $0x130] sm:$0xff] }
   0x6   :  { %744 = vmatprep.subr.bf16.mxu1 %v790_v0  ;;  %v748_v18 = vpack.c.bf16 %v135_v16, %v134_v15  ;;  %v137_v22 = vld [vmem:[%s1376_s1 + $0x138] sm:$0xff]  ;;  %v703_v23 = vpack.c.bf16 %v105_v20, %v104_v19  ;;  %v106_v25 = vld [vmem:[%s1376_s1 + $0x40] sm:$0xff]  ;;  %v107_v26 = vld [vmem:[%s1376_s1 + $0x48] sm:$0xff] }
   0x7   :  { %v751_v24 = vpack.c.bf16 %v137_v22, %v136_v21  ;;  %v138_v27 = vld [vmem:[%s1376_s1 + $0x140] sm:$0xff]  ;;  %v139_v28 = vld [vmem:[%s1376_s1 + $0x148] sm:$0xff]  ;;  %v706_v29 = vpack.c.bf16 %v107_v26, %v106_v25  ;;  %v108_v31 = vld [vmem:[%s1376_s1 + $0x50] sm:$0xff] }
   0x8   :  { %698 = vmatpush1.bf16.msra.mxu0 %v697_v11  ;;  %v754_v30 = vpack.c.bf16 %v139_v28, %v138_v27  ;;  %v109_v32 = vld [vmem:[%s1376_s1 + $0x58] sm:$0xff]  ;;  %v140_v33 = vld [vmem:[%s1376_s1 + $0x150] sm:$0xff]  ;;  %v110_v37 = vld [vmem:[%s1376_s1 + $0x60] sm:$0xff] }
   0x9   :  { %746 = vmatpush1.bf16.msra.mxu1 %v745_v12  ;;  %699 = vmatprep.subr.bf16.mxu0 %v790_v0  ;;  %v141_v34 = vld [vmem:[%s1376_s1 + $0x158] sm:$0xff]  ;;  %v709_v35 = vpack.c.bf16 %v109_v32, %v108_v31  ;;  %v111_v38 = vld [vmem:[%s1376_s1 + $0x68] sm:$0xff]  ;;  %v142_v39 = vld [vmem:[%s1376_s1 + $0x160] sm:$0xff] }
   0xa   :  { %747 = vmatprep.subr.bf16.mxu1 %v790_v0  ;;  %v757_v36 = vpack.c.bf16 %v141_v34, %v140_v33  ;;  %v143_v40 = vld [vmem:[%s1376_s1 + $0x168] sm:$0xff]  ;;  %v17_v42 = vld [vmem:[%s1377_s0 + $0x18] sm:$0xff]  ;;  %v712_v43 = vpack.c.bf16 %v111_v38, %v110_v37  ;;  %v112_v45 = vld [vmem:[%s1376_s1 + $0x70] sm:$0xff] }
   0xb   :  { %v15_v41 = vld [vmem:[%s1377_s0 + $0x8] sm:$0xff]  ;;  %396 = vmatprep.mubr.f32.mxu1 %v17_v42  ;;  %v760_v44 = vpack.c.bf16 %v143_v40, %v142_v39  ;;  %v113_v46 = vld [vmem:[%s1376_s1 + $0x78] sm:$0xff]  ;;  %v144_v47 = vld [vmem:[%s1376_s1 + $0x170] sm:$0xff] }
   0xc   :  { %701 = vmatpush1.bf16.msra.mxu0 %v700_v17  ;;  %226 = vmatprep.mubr.f32.mxu0 %v15_v41  ;;  %v145_v48 = vld [vmem:[%s1376_s1 + $0x178] sm:$0xff]  ;;  %v715_v49 = vpack.c.bf16 %v113_v46, %v112_v45  ;;  %v114_v51 = vld [vmem:[%s1376_s1 + $0x80] sm:$0xff]  ;;  %v115_v52 = vld [vmem:[%s1376_s1 + $0x88] sm:$0xff] }
   0xd   :  { %749 = vmatpush1.bf16.msra.mxu1 %v748_v18  ;;  %702 = vmatprep.subr.bf16.mxu0 %v790_v0  ;;  %v763_v50 = vpack.c.bf16 %v145_v48, %v144_v47  ;;  %v146_v53 = vld [vmem:[%s1376_s1 + $0x180] sm:$0xff]  ;;  %v147_v54 = vld [vmem:[%s1376_s1 + $0x188] sm:$0xff]  ;;  %v718_v55 = vpack.c.bf16 %v115_v52, %v114_v51  ;;  %v116_v57 = vld [vmem:[%s1376_s1 + $0x90] sm:$0xff] }
   0xe   :  { %750 = vmatprep.subr.bf16.mxu1 %v790_v0  ;;  %v766_v56 = vpack.c.bf16 %v147_v54, %v146_v53  ;;  %v117_v58 = vld [vmem:[%s1376_s1 + $0x98] sm:$0xff]  ;;  %v148_v59 = vld [vmem:[%s1376_s1 + $0x190] sm:$0xff]  ;;  %v118_v63 = vld [vmem:[%s1376_s1 + $0xa0] sm:$0xff] }
   0xf   :  { %v149_v60 = vld [vmem:[%s1376_s1 + $0x198] sm:$0xff]  ;;  %v721_v61 = vpack.c.bf16 %v117_v58, %v116_v57  ;;  %v119_v1 = vld [vmem:[%s1376_s1 + $0xa8] sm:$0xff]  ;;  %v150_v2 = vld [vmem:[%s1376_s1 + $0x1a0] sm:$0xff] }
  0x10   :  { %704 = vmatpush1.bf16.msra.mxu0 %v703_v23  ;;  %v769_v62 = vpack.c.bf16 %v149_v60, %v148_v59  ;;  %v151_v3 = vld [vmem:[%s1376_s1 + $0x1a8] sm:$0xff]  ;;  %v724_v4 = vpack.c.bf16 %v119_v1, %v118_v63  ;;  %v120_v6 = vld [vmem:[%s1376_s1 + $0xb0] sm:$0xff]  ;;  %v121_v7 = vld [vmem:[%s1376_s1 + $0xb8] sm:$0xff] }
  0x11   :  { %752 = vmatpush1.bf16.msra.mxu1 %v751_v24  ;;  %705 = vmatprep.subr.bf16.mxu0 %v790_v0  ;;  %v772_v5 = vpack.c.bf16 %v151_v3, %v150_v2  ;;  %v152_v8 = vld [vmem:[%s1376_s1 + $0x1b0] sm:$0xff]  ;;  %v153_v9 = vld [vmem:[%s1376_s1 + $0x1b8] sm:$0xff]  ;;  %v727_v10 = vpack.c.bf16 %v121_v7, %v120_v6  ;;  %v122_v12 = vld [vmem:[%s1376_s1 + $0xc0] sm:$0xff] }
  0x12   :  { %753 = vmatprep.subr.bf16.mxu1 %v790_v0  ;;  %v775_v11 = vpack.c.bf16 %v153_v9, %v152_v8  ;;  %v123_v13 = vld [vmem:[%s1376_s1 + $0xc8] sm:$0xff]  ;;  %v154_v14 = vld [vmem:[%s1376_s1 + $0x1c0] sm:$0xff]  ;;  %v124_v18 = vld [vmem:[%s1376_s1 + $0xd0] sm:$0xff] }
  0x13   :  { %v155_v15 = vld [vmem:[%s1376_s1 + $0x1c8] sm:$0xff]  ;;  %v730_v16 = vpack.c.bf16 %v123_v13, %v122_v12  ;;  %v125_v19 = vld [vmem:[%s1376_s1 + $0xd8] sm:$0xff]  ;;  %v156_v20 = vld [vmem:[%s1376_s1 + $0x1d0] sm:$0xff] }
  0x14   :  { %707 = vmatpush1.bf16.msra.mxu0 %v706_v29  ;;  %v778_v17 = vpack.c.bf16 %v155_v15, %v154_v14  ;;  %v157_v21 = vld [vmem:[%s1376_s1 + $0x1d8] sm:$0xff]  ;;  %v733_v22 = vpack.c.bf16 %v125_v19, %v124_v18  ;;  %v126_v24 = vld [vmem:[%s1376_s1 + $0xe0] sm:$0xff]  ;;  %v127_v25 = vld [vmem:[%s1376_s1 + $0xe8] sm:$0xff] }
  0x15   :  { %755 = vmatpush1.bf16.msra.mxu1 %v754_v30  ;;  %708 = vmatprep.subr.bf16.mxu0 %v790_v0  ;;  %v781_v23 = vpack.c.bf16 %v157_v21, %v156_v20  ;;  %v158_v26 = vld [vmem:[%s1376_s1 + $0x1e0] sm:$0xff]  ;;  %v159_v27 = vld [vmem:[%s1376_s1 + $0x1e8] sm:$0xff]  ;;  %v736_v28 = vpack.c.bf16 %v127_v25, %v126_v24  ;;  %v128_v30 = vld [vmem:[%s1376_s1 + $0xf0] sm:$0xff] }
  0x16   :  { %756 = vmatprep.subr.bf16.mxu1 %v790_v0  ;;  %v784_v29 = vpack.c.bf16 %v159_v27, %v158_v26  ;;  %v129_v31 = vld [vmem:[%s1376_s1 + $0xf8] sm:$0xff]  ;;  %v160_v32 = vld [vmem:[%s1376_s1 + $0x1f0] sm:$0xff]  ;;  %v19_v38 = vld [vmem:[%s1377_s0 + $0x28] sm:$0xff] }
  0x17   :  { %v161_v33 = vld [vmem:[%s1376_s1 + $0x1f8] sm:$0xff]  ;;  %v739_v34 = vpack.c.bf16 %v129_v31, %v128_v30  ;;  %v16_v37 = vld [vmem:[%s1377_s0 + $0x10] sm:$0xff]  ;;  %v23_v41 = vld [vmem:[%s1377_s0 + $0x48] sm:$0xff] }
  0x18   :  { %710 = vmatpush1.bf16.msra.mxu0 %v709_v35  ;;  %v787_v35 = vpack.c.bf16 %v161_v33, %v160_v32  ;;  %v21_v39 = vld [vmem:[%s1377_s0 + $0x38] sm:$0xff]  ;;  %v20_v40 = vld [vmem:[%s1377_s0 + $0x30] sm:$0xff]  ;;  %v27_v45 = vld [vmem:[%s1377_s0 + $0x68] sm:$0xff] }
  0x19   :  { %758 = vmatpush1.bf16.msra.mxu1 %v757_v36  ;;  %711 = vmatprep.subr.bf16.mxu0 %v790_v0  ;;  %v14_v36 = vld [vmem:[%s1377_s0] sm:$0xff]  ;;  %v25_v42 = vld [vmem:[%s1377_s0 + $0x58] sm:$0xff]  ;;  %v28_v48 = vld [vmem:[%s1377_s0 + $0x70] sm:$0xff] }
  0x1a   :  { %759 = vmatprep.subr.bf16.mxu1 %v790_v0  ;;  %v29_v46 = vld [vmem:[%s1377_s0 + $0x78] sm:$0xff]  ;;  %v26_v47 = vld [vmem:[%s1377_s0 + $0x60] sm:$0xff]  ;;  %v32_v52 = vld [vmem:[%s1377_s0 + $0x90] sm:$0xff] }
  0x1b   :  { %v30_v51 = vld [vmem:[%s1377_s0 + $0x80] sm:$0xff]  ;;  %v35_v53 = vld [vmem:[%s1377_s0 + $0xa8] sm:$0xff]  ;;  %v37_v54 = vld [vmem:[%s1377_s0 + $0xb8] sm:$0xff] }
  0x1c   :  { %713 = vmatpush1.bf16.msra.mxu0 %v712_v43  ;;  %v22_v43 = vld [vmem:[%s1377_s0 + $0x40] sm:$0xff]  ;;  %v39_v57 = vld [vmem:[%s1377_s0 + $0xc8] sm:$0xff]  ;;  %v41_v58 = vld [vmem:[%s1377_s0 + $0xd8] sm:$0xff] }
  0x1d   :  { %761 = vmatpush1.bf16.msra.mxu1 %v760_v44  ;;  %714 = vmatprep.subr.bf16.mxu0 %v790_v0  ;;  %v24_v44 = vld [vmem:[%s1377_s0 + $0x50] sm:$0xff]  ;;  %v38_v59 = vld [vmem:[%s1377_s0 + $0xc0] sm:$0xff]  ;;  %v47_v2 = vld [vmem:[%s1377_s0 + $0x108] sm:$0xff] }
  0x1e   :  { %762 = vmatprep.subr.bf16.mxu1 %v790_v0  ;;  %v40_v60 = vld [vmem:[%s1377_s0 + $0xd0] sm:$0xff]  ;;  %v42_v63 = vld [vmem:[%s1377_s0 + $0xe0] sm:$0xff]  ;;  %v49_v3 = vld [vmem:[%s1377_s0 + $0x118] sm:$0xff] }
  0x1f   :  { %v44_v1 = vld [vmem:[%s1377_s0 + $0xf0] sm:$0xff]  ;;  %v51_v6 = vld [vmem:[%s1377_s0 + $0x128] sm:$0xff]  ;;  %v53_v7 = vld [vmem:[%s1377_s0 + $0x138] sm:$0xff] }
  0x20   :  { %716 = vmatpush1.bf16.msra.mxu0 %v715_v49  ;;  %v31_v49 = vld [vmem:[%s1377_s0 + $0x88] sm:$0xff]  ;;  %v50_v8 = vld [vmem:[%s1377_s0 + $0x120] sm:$0xff]  ;;  %v52_v9 = vld [vmem:[%s1377_s0 + $0x130] sm:$0xff] }
  0x21   :  { %764 = vmatpush1.bf16.msra.mxu1 %v763_v50  ;;  %717 = vmatprep.subr.bf16.mxu0 %v790_v0  ;;  %v33_v50 = vld [vmem:[%s1377_s0 + $0x98] sm:$0xff]  ;;  %v54_v12 = vld [vmem:[%s1377_s0 + $0x140] sm:$0xff]  ;;  %v56_v13 = vld [vmem:[%s1377_s0 + $0x150] sm:$0xff] }
  0x22   :  { %765 = vmatprep.subr.bf16.mxu1 %v790_v0  ;;  %v59_v14 = vld [vmem:[%s1377_s0 + $0x168] sm:$0xff]  ;;  %v61_v15 = vld [vmem:[%s1377_s0 + $0x178] sm:$0xff]  ;;  %v62_v20 = vld [vmem:[%s1377_s0 + $0x180] sm:$0xff] }
  0x23   :  { %v63_v18 = vld [vmem:[%s1377_s0 + $0x188] sm:$0xff]  ;;  %v65_v19 = vld [vmem:[%s1377_s0 + $0x198] sm:$0xff]  ;;  %v64_v21 = vld [vmem:[%s1377_s0 + $0x190] sm:$0xff] }
  0x24   :  { %719 = vmatpush1.bf16.msra.mxu0 %v718_v55  ;;  %v34_v55 = vld [vmem:[%s1377_s0 + $0xa0] sm:$0xff]  ;;  %v68_v25 = vld [vmem:[%s1377_s0 + $0x1b0] sm:$0xff]  ;;  %v71_v26 = vld [vmem:[%s1377_s0 + $0x1c8] sm:$0xff] }
  0x25   :  { %767 = vmatpush1.bf16.msra.mxu1 %v766_v56  ;;  %720 = vmatprep.subr.bf16.mxu0 %v790_v0  ;;  %v36_v56 = vld [vmem:[%s1377_s0 + $0xb0] sm:$0xff]  ;;  %v66_v24 = vld [vmem:[%s1377_s0 + $0x1a0] sm:$0xff]  ;;  %v73_v27 = vld [vmem:[%s1377_s0 + $0x1d8] sm:$0xff] }
  0x26   :  { %768 = vmatprep.subr.bf16.mxu1 %v790_v0  ;;  %v75_v30 = vld [vmem:[%s1377_s0 + $0x1e8] sm:$0xff]  ;;  %v77_v31 = vld [vmem:[%s1377_s0 + $0x1f8] sm:$0xff]  ;;  %v74_v32 = vld [vmem:[%s1377_s0 + $0x1e0] sm:$0xff] }
  0x27   :  { %v76_v33 = vld [vmem:[%s1377_s0 + $0x1f0] sm:$0xff] }
  0x28   :  { %722 = vmatpush1.bf16.msra.mxu0 %v721_v61  ;;  %v43_v61 = vld [vmem:[%s1377_s0 + $0xe8] sm:$0xff] }
  0x29   :  { %770 = vmatpush1.bf16.msra.mxu1 %v769_v62  ;;  %723 = vmatprep.subr.bf16.mxu0 %v790_v0  ;;  %v45_v62 = vld [vmem:[%s1377_s0 + $0xf8] sm:$0xff] }
  0x2a   :  { %771 = vmatprep.subr.bf16.mxu1 %v790_v0 }
  0x2c   :  { %725 = vmatpush1.bf16.msra.mxu0 %v724_v4  ;;  %v46_v4 = vld [vmem:[%s1377_s0 + $0x100] sm:$0xff] }
  0x2d   :  { %773 = vmatpush1.bf16.msra.mxu1 %v772_v5  ;;  %726 = vmatprep.subr.bf16.mxu0 %v790_v0  ;;  %v48_v5 = vld [vmem:[%s1377_s0 + $0x110] sm:$0xff] }
  0x2e   :  { %774 = vmatprep.subr.bf16.mxu1 %v790_v0 }
  0x30   :  { %728 = vmatpush1.bf16.msra.mxu0 %v727_v10  ;;  %v55_v10 = vld [vmem:[%s1377_s0 + $0x148] sm:$0xff] }
  0x31   :  { %776 = vmatpush1.bf16.msra.mxu1 %v775_v11  ;;  %729 = vmatprep.subr.bf16.mxu0 %v790_v0  ;;  %v57_v11 = vld [vmem:[%s1377_s0 + $0x158] sm:$0xff] }
  0x32   :  { %777 = vmatprep.subr.bf16.mxu1 %v790_v0 }
  0x34   :  { %731 = vmatpush1.bf16.msra.mxu0 %v730_v16  ;;  %v58_v16 = vld [vmem:[%s1377_s0 + $0x160] sm:$0xff] }
  0x35   :  { %779 = vmatpush1.bf16.msra.mxu1 %v778_v17  ;;  %732 = vmatprep.subr.bf16.mxu0 %v790_v0  ;;  %v60_v17 = vld [vmem:[%s1377_s0 + $0x170] sm:$0xff] }
  0x36   :  { %780 = vmatprep.subr.bf16.mxu1 %v790_v0 }
  0x38   :  { %734 = vmatpush1.bf16.msra.mxu0 %v733_v22  ;;  %v67_v22 = vld [vmem:[%s1377_s0 + $0x1a8] sm:$0xff] }
  0x39   :  { %782 = vmatpush1.bf16.msra.mxu1 %v781_v23  ;;  %735 = vmatprep.subr.bf16.mxu0 %v790_v0  ;;  %v69_v23 = vld [vmem:[%s1377_s0 + $0x1b8] sm:$0xff] }
  0x3a   :  { %783 = vmatprep.subr.bf16.mxu1 %v790_v0 }
  0x3c   :  { %737 = vmatpush1.bf16.msra.mxu0 %v736_v28  ;;  %v70_v28 = vld [vmem:[%s1377_s0 + $0x1c0] sm:$0xff] }
  0x3d   :  { %785 = vmatpush1.bf16.msra.mxu1 %v784_v29  ;;  %738 = vmatprep.subr.bf16.mxu0 %v790_v0  ;;  %v72_v29 = vld [vmem:[%s1377_s0 + $0x1d0] sm:$0xff] }
  0x3e   :  { %786 = vmatprep.subr.bf16.mxu1 %v790_v0  ;;  %v18_v0 = vld [vmem:[%s1377_s0 + $0x20] sm:$0xff] }
  0x40   :  { %740 = vmatpush1.bf16.msra.mxu0 %v739_v34  ;;  %v79_v34 = vld [vmem:[%s1377_s0 + $0x208] sm:$0xff] }
  0x41   :  { %788 = vmatpush1.bf16.msra.mxu1 %v787_v35  ;;  %v81_v35 = vld [vmem:[%s1377_s0 + $0x218] sm:$0xff] }
  0x43   :  { %227 = vmatmul.mubr.f32.vlgmr.msra.gmra.mrb[0].mxu0 %v14_v36  ;;  %v78_v36 = vld [vmem:[%s1377_s0 + $0x200] sm:$0xff] }
  0x44   :  { %397 = vmatmul.mubr.f32.vlgmr.msra.gmra.mrb[0].mxu1 %v16_v37  ;;  %231 = vmatprep.mubr.f32.mxu0 %v19_v38  ;;  %v80_v37 = vld [vmem:[%s1377_s0 + $0x210] sm:$0xff]  ;;  %v83_v38 = vld [vmem:[%s1377_s0 + $0x228] sm:$0xff] }
  0x45   :  { %401 = vmatprep.mubr.f32.mxu1 %v21_v39  ;;  %v85_v39 = vld [vmem:[%s1377_s0 + $0x238] sm:$0xff] }
  0x47   :  { %232 = vmatmul.mubr.f32.gmra.mrb[2].mxu0 %v18_v0  ;;  %v82_v0 = vld [vmem:[%s1377_s0 + $0x220] sm:$0xff] }
  0x48   :  { %402 = vmatmul.mubr.f32.gmra.mrb[2].mxu1 %v20_v40  ;;  %236 = vmatprep.mubr.f32.mxu0 %v23_v41  ;;  %v84_v40 = vld [vmem:[%s1377_s0 + $0x230] sm:$0xff]  ;;  %v87_v41 = vld [vmem:[%s1377_s0 + $0x248] sm:$0xff] }
  0x49   :  { %406 = vmatprep.mubr.f32.mxu1 %v25_v42  ;;  %v89_v42 = vld [vmem:[%s1377_s0 + $0x258] sm:$0xff] }
  0x4b   :  { %237 = vmatmul.mubr.f32.gmra.mrb[4].mxu0 %v22_v43  ;;  %v86_v43 = vld [vmem:[%s1377_s0 + $0x240] sm:$0xff] }
  0x4c   :  { %407 = vmatmul.mubr.f32.gmra.mrb[4].mxu1 %v24_v44  ;;  %241 = vmatprep.mubr.f32.mxu0 %v27_v45  ;;  %v88_v44 = vld [vmem:[%s1377_s0 + $0x250] sm:$0xff]  ;;  %v91_v45 = vld [vmem:[%s1377_s0 + $0x268] sm:$0xff] }
  0x4d   :  { %411 = vmatprep.mubr.f32.mxu1 %v29_v46  ;;  %v93_v46 = vld [vmem:[%s1377_s0 + $0x278] sm:$0xff] }
  0x4f   :  { %242 = vmatmul.mubr.f32.gmra.mrb[6].mxu0 %v26_v47  ;;  %v90_v47 = vld [vmem:[%s1377_s0 + $0x260] sm:$0xff] }
  0x50   :  { %412 = vmatmul.mubr.f32.gmra.mrb[6].mxu1 %v28_v48  ;;  %246 = vmatprep.mubr.f32.mxu0 %v31_v49  ;;  %v92_v48 = vld [vmem:[%s1377_s0 + $0x270] sm:$0xff]  ;;  %v95_v49 = vld [vmem:[%s1377_s0 + $0x288] sm:$0xff] }
  0x51   :  { %416 = vmatprep.mubr.f32.mxu1 %v33_v50  ;;  %v97_v50 = vld [vmem:[%s1377_s0 + $0x298] sm:$0xff] }
  0x53   :  { %247 = vmatmul.mubr.f32.gmra.mrb[8].mxu0 %v30_v51  ;;  %v94_v51 = vld [vmem:[%s1377_s0 + $0x280] sm:$0xff] }
  0x54   :  { %417 = vmatmul.mubr.f32.gmra.mrb[8].mxu1 %v32_v52  ;;  %251 = vmatprep.mubr.f32.mxu0 %v35_v53  ;;  %v96_v52 = vld [vmem:[%s1377_s0 + $0x290] sm:$0xff] }
  0x55   :  { %421 = vmatprep.mubr.f32.mxu1 %v37_v54 }
  0x57   :  { %252 = vmatmul.mubr.f32.gmra.mrb[10].mxu0 %v34_v55  ;;  %v1290_v55 = vld [vmem:[%s1378_s2] ss:$0 sm:$0xff] }
  0x58   :  { %422 = vmatmul.mubr.f32.gmra.mrb[10].mxu1 %v36_v56  ;;  %256 = vmatprep.mubr.f32.mxu0 %v39_v57 }
  0x59   :  { %426 = vmatprep.mubr.f32.mxu1 %v41_v58 }
  0x5b   :  { %257 = vmatmul.mubr.f32.gmra.mrb[12].mxu0 %v38_v59 }
  0x5c   :  { %427 = vmatmul.mubr.f32.gmra.mrb[12].mxu1 %v40_v60  ;;  %261 = vmatprep.mubr.f32.mxu0 %v43_v61 }
  0x5d   :  { %431 = vmatprep.mubr.f32.mxu1 %v45_v62 }
  0x5f   :  { %262 = vmatmul.mubr.f32.gmra.mrb[14].mxu0 %v42_v63 }
  0x60   :  { %432 = vmatmul.mubr.f32.gmra.mrb[14].mxu1 %v44_v1  ;;  %266 = vmatprep.mubr.f32.mxu0 %v47_v2 }
  0x61   :  { %436 = vmatprep.mubr.f32.mxu1 %v49_v3 }
  0x63   :  { %267 = vmatmul.mubr.f32.gmra.mrb[16].mxu0 %v46_v4 }
  0x64   :  { %437 = vmatmul.mubr.f32.gmra.mrb[16].mxu1 %v48_v5  ;;  %271 = vmatprep.mubr.f32.mxu0 %v51_v6 }
  0x65   :  { %441 = vmatprep.mubr.f32.mxu1 %v53_v7 }
  0x67   :  { %272 = vmatmul.mubr.f32.gmra.mrb[18].mxu0 %v50_v8 }
  0x68   :  { %442 = vmatmul.mubr.f32.gmra.mrb[18].mxu1 %v52_v9  ;;  %276 = vmatprep.mubr.f32.mxu0 %v55_v10 }
  0x69   :  { %446 = vmatprep.mubr.f32.mxu1 %v57_v11 }
  0x6b   :  { %277 = vmatmul.mubr.f32.gmra.mrb[20].mxu0 %v54_v12 }
  0x6c   :  { %447 = vmatmul.mubr.f32.gmra.mrb[20].mxu1 %v56_v13  ;;  %281 = vmatprep.mubr.f32.mxu0 %v59_v14 }
  0x6d   :  { %451 = vmatprep.mubr.f32.mxu1 %v61_v15 }
  0x6f   :  { %282 = vmatmul.mubr.f32.gmra.mrb[22].mxu0 %v58_v16 }
  0x70   :  { %452 = vmatmul.mubr.f32.gmra.mrb[22].mxu1 %v60_v17  ;;  %286 = vmatprep.mubr.f32.mxu0 %v63_v18 }
  0x71   :  { %456 = vmatprep.mubr.f32.mxu1 %v65_v19 }
  0x73   :  { %287 = vmatmul.mubr.f32.gmra.mrb[24].mxu0 %v62_v20 }
  0x74   :  { %457 = vmatmul.mubr.f32.gmra.mrb[24].mxu1 %v64_v21  ;;  %291 = vmatprep.mubr.f32.mxu0 %v67_v22 }
  0x75   :  { %461 = vmatprep.mubr.f32.mxu1 %v69_v23 }
  0x77   :  { %292 = vmatmul.mubr.f32.gmra.mrb[26].mxu0 %v66_v24 }
  0x78   :  { %462 = vmatmul.mubr.f32.gmra.mrb[26].mxu1 %v68_v25  ;;  %296 = vmatprep.mubr.f32.mxu0 %v71_v26 }
  0x79   :  { %466 = vmatprep.mubr.f32.mxu1 %v73_v27 }
  0x7b   :  { %297 = vmatmul.mubr.f32.gmra.mrb[28].mxu0 %v70_v28 }
  0x7c   :  { %467 = vmatmul.mubr.f32.gmra.mrb[28].mxu1 %v72_v29  ;;  %301 = vmatprep.mubr.f32.mxu0 %v75_v30 }
  0x7d   :  { %471 = vmatprep.mubr.f32.mxu1 %v77_v31 }
  0x7f   :  { %302 = vmatmul.mubr.f32.gmra.mrb[30].mxu0 %v74_v32 }
  0x80   :  { %472 = vmatmul.mubr.f32.gmra.mrb[30].mxu1 %v76_v33  ;;  %306 = vmatprep.mubr.f32.mxu0 %v79_v34 }
  0x81   :  { %476 = vmatprep.mubr.f32.mxu1 %v81_v35 }
  0x83   :  { %307 = vmatmul.mubr.f32.gmra.mrb[32].mxu0 %v78_v36 }
  0x84   :  { %477 = vmatmul.mubr.f32.gmra.mrb[32].mxu1 %v80_v37  ;;  %311 = vmatprep.mubr.f32.mxu0 %v83_v38 }
  0x85   :  { %481 = vmatprep.mubr.f32.mxu1 %v85_v39 }
  0x87   :  { %312 = vmatmul.mubr.f32.gmra.mrb[34].mxu0 %v82_v0 }
  0x88   :  { %482 = vmatmul.mubr.f32.gmra.mrb[34].mxu1 %v84_v40  ;;  %316 = vmatprep.mubr.f32.mxu0 %v87_v41 }
  0x89   :  { %486 = vmatprep.mubr.f32.mxu1 %v89_v42 }
  0x8b   :  { %317 = vmatmul.mubr.f32.gmra.mrb[36].mxu0 %v86_v43 }
  0x8c   :  { %487 = vmatmul.mubr.f32.gmra.mrb[36].mxu1 %v88_v44  ;;  %321 = vmatprep.mubr.f32.mxu0 %v91_v45 }
  0x8d   :  { %491 = vmatprep.mubr.f32.mxu1 %v93_v46 }
  0x8f   :  { %322 = vmatmul.mubr.f32.gmra.mrb[38].mxu0 %v90_v47 }
  0x90   :  { %492 = vmatmul.mubr.f32.gmra.mrb[38].mxu1 %v92_v48  ;;  %326 = vmatprep.mubr.f32.mxu0 %v95_v49 }
  0x91   :  { %496 = vmatprep.mubr.f32.mxu1 %v97_v50 }
  0x93   :  { %327 = vmatmul.mubr.f32.gmra.mrb[40].mxu0 %v94_v51 }
  0x94   :  { %497 = vmatmul.mubr.f32.gmra.mrb[40].mxu1 %v96_v52 }
 0x116   :  { %v228_v53 = vpop.f32.mrb[0].mxu0 }
 0x117   :  { %v398_v54 = vpop.f32.mrb[0].mxu1  ;;  %v230_v56 = vpop.f32.mrb[1].mxu0 }
 0x118   :  { %v399_v57 = vadd.f32 %v398_v54, %v228_v53  ;;  %v400_v58 = vpop.f32.mrb[1].mxu1 }
 0x11a   :  { %v625_v59 = vadd.f32 %v1290_v55, %v399_v57  ;;  %v233_v60 = vpop.f32.mrb[2].mxu0 }
 0x11b   :  { %v403_v61 = vpop.f32.mrb[2].mxu1  ;;  %v235_v62 = vpop.f32.mrb[3].mxu0 }
 0x11c   :  { %v646_v63 = vmax.f32 %v625_v59, 0.0  ;;  %v404_v1 = vadd.f32 %v403_v61, %v233_v60  ;;  %v405_v2 = vpop.f32.mrb[3].mxu1 }
 0x11e   :  { %667 = vst [vmem:[%s1379_s3] sm:$0xff] %v646_v63  ;;  %v626_v3 = vadd.f32 %v1290_v55, %v404_v1  ;;  %v238_v4 = vpop.f32.mrb[4].mxu0 }
 0x11f   :  { %v408_v5 = vpop.f32.mrb[4].mxu1  ;;  %v240_v6 = vpop.f32.mrb[5].mxu0 }
 0x120   :  { %v647_v7 = vmax.f32 %v626_v3, 0.0  ;;  %v409_v8 = vadd.f32 %v408_v5, %v238_v4  ;;  %v410_v9 = vpop.f32.mrb[5].mxu1 }
 0x122   :  { %668 = vst [vmem:[%s1379_s3 + $0x8] sm:$0xff] %v647_v7  ;;  %v627_v10 = vadd.f32 %v1290_v55, %v409_v8  ;;  %v243_v11 = vpop.f32.mrb[6].mxu0 }
 0x123   :  { %v413_v12 = vpop.f32.mrb[6].mxu1  ;;  %v245_v13 = vpop.f32.mrb[7].mxu0 }
 0x124   :  { %v648_v14 = vmax.f32 %v627_v10, 0.0  ;;  %v414_v15 = vadd.f32 %v413_v12, %v243_v11  ;;  %v415_v16 = vpop.f32.mrb[7].mxu1 }
 0x126   :  { %669 = vst [vmem:[%s1379_s3 + $0x10] sm:$0xff] %v648_v14  ;;  %v628_v17 = vadd.f32 %v1290_v55, %v414_v15  ;;  %v248_v18 = vpop.f32.mrb[8].mxu0 }
 0x127   :  { %v418_v19 = vpop.f32.mrb[8].mxu1  ;;  %v250_v20 = vpop.f32.mrb[9].mxu0 }
 0x128   :  { %v649_v21 = vmax.f32 %v628_v17, 0.0  ;;  %v419_v22 = vadd.f32 %v418_v19, %v248_v18  ;;  %v420_v23 = vpop.f32.mrb[9].mxu1 }
 0x12a   :  { %670 = vst [vmem:[%s1379_s3 + $0x18] sm:$0xff] %v649_v21  ;;  %v629_v24 = vadd.f32 %v1290_v55, %v419_v22  ;;  %v253_v25 = vpop.f32.mrb[10].mxu0 }
 0x12b   :  { %v423_v26 = vpop.f32.mrb[10].mxu1  ;;  %v255_v27 = vpop.f32.mrb[11].mxu0 }
 0x12c   :  { %v650_v28 = vmax.f32 %v629_v24, 0.0  ;;  %v424_v29 = vadd.f32 %v423_v26, %v253_v25  ;;  %v425_v30 = vpop.f32.mrb[11].mxu1 }
 0x12e   :  { %671 = vst [vmem:[%s1379_s3 + $0x20] sm:$0xff] %v650_v28  ;;  %v630_v31 = vadd.f32 %v1290_v55, %v424_v29  ;;  %v258_v32 = vpop.f32.mrb[12].mxu0 }
 0x12f   :  { %v428_v33 = vpop.f32.mrb[12].mxu1  ;;  %v260_v34 = vpop.f32.mrb[13].mxu0 }
 0x130   :  { %v651_v35 = vmax.f32 %v630_v31, 0.0  ;;  %v429_v36 = vadd.f32 %v428_v33, %v258_v32  ;;  %v430_v37 = vpop.f32.mrb[13].mxu1 }
 0x132   :  { %672 = vst [vmem:[%s1379_s3 + $0x28] sm:$0xff] %v651_v35  ;;  %v631_v38 = vadd.f32 %v1290_v55, %v429_v36  ;;  %v263_v39 = vpop.f32.mrb[14].mxu0 }
 0x133   :  { %v433_v0 = vpop.f32.mrb[14].mxu1  ;;  %v265_v40 = vpop.f32.mrb[15].mxu0 }
 0x134   :  { %v652_v41 = vmax.f32 %v631_v38, 0.0  ;;  %v434_v42 = vadd.f32 %v433_v0, %v263_v39  ;;  %v435_v43 = vpop.f32.mrb[15].mxu1 }
 0x136   :  { %673 = vst [vmem:[%s1379_s3 + $0x30] sm:$0xff] %v652_v41  ;;  %v632_v44 = vadd.f32 %v1290_v55, %v434_v42  ;;  %v268_v45 = vpop.f32.mrb[16].mxu0 }
 0x137   :  { %v438_v46 = vpop.f32.mrb[16].mxu1  ;;  %v270_v47 = vpop.f32.mrb[17].mxu0 }
 0x138   :  { %v653_v48 = vmax.f32 %v632_v44, 0.0  ;;  %v439_v49 = vadd.f32 %v438_v46, %v268_v45  ;;  %v440_v50 = vpop.f32.mrb[17].mxu1 }
 0x13a   :  { %674 = vst [vmem:[%s1379_s3 + $0x38] sm:$0xff] %v653_v48  ;;  %v633_v51 = vadd.f32 %v1290_v55, %v439_v49  ;;  %v273_v52 = vpop.f32.mrb[18].mxu0 }
 0x13b   :  { %v443_v53 = vpop.f32.mrb[18].mxu1  ;;  %v275_v54 = vpop.f32.mrb[19].mxu0 }
 0x13c   :  { %v654_v56 = vmax.f32 %v633_v51, 0.0  ;;  %v444_v57 = vadd.f32 %v443_v53, %v273_v52  ;;  %v445_v58 = vpop.f32.mrb[19].mxu1 }
 0x13e   :  { %675 = vst [vmem:[%s1379_s3 + $0x40] sm:$0xff] %v654_v56  ;;  %v634_v59 = vadd.f32 %v1290_v55, %v444_v57  ;;  %v278_v60 = vpop.f32.mrb[20].mxu0 }
 0x13f   :  { %v448_v61 = vpop.f32.mrb[20].mxu1  ;;  %v280_v62 = vpop.f32.mrb[21].mxu0 }
 0x140   :  { %v655_v63 = vmax.f32 %v634_v59, 0.0  ;;  %v449_v1 = vadd.f32 %v448_v61, %v278_v60  ;;  %v450_v2 = vpop.f32.mrb[21].mxu1 }
 0x142   :  { %676 = vst [vmem:[%s1379_s3 + $0x48] sm:$0xff] %v655_v63  ;;  %v635_v3 = vadd.f32 %v1290_v55, %v449_v1  ;;  %v283_v4 = vpop.f32.mrb[22].mxu0 }
 0x143   :  { %v453_v5 = vpop.f32.mrb[22].mxu1  ;;  %v285_v6 = vpop.f32.mrb[23].mxu0 }
 0x144   :  { %v656_v7 = vmax.f32 %v635_v3, 0.0  ;;  %v454_v8 = vadd.f32 %v453_v5, %v283_v4  ;;  %v455_v9 = vpop.f32.mrb[23].mxu1 }
 0x146   :  { %677 = vst [vmem:[%s1379_s3 + $0x50] sm:$0xff] %v656_v7  ;;  %v636_v10 = vadd.f32 %v1290_v55, %v454_v8  ;;  %v288_v11 = vpop.f32.mrb[24].mxu0 }
 0x147   :  { %v458_v12 = vpop.f32.mrb[24].mxu1  ;;  %v290_v13 = vpop.f32.mrb[25].mxu0 }
 0x148   :  { %v657_v14 = vmax.f32 %v636_v10, 0.0  ;;  %v459_v15 = vadd.f32 %v458_v12, %v288_v11  ;;  %v460_v16 = vpop.f32.mrb[25].mxu1 }
 0x14a   :  { %678 = vst [vmem:[%s1379_s3 + $0x58] sm:$0xff] %v657_v14  ;;  %v637_v17 = vadd.f32 %v1290_v55, %v459_v15  ;;  %v293_v18 = vpop.f32.mrb[26].mxu0 }
 0x14b   :  { %v463_v19 = vpop.f32.mrb[26].mxu1  ;;  %v295_v20 = vpop.f32.mrb[27].mxu0 }
 0x14c   :  { %v658_v21 = vmax.f32 %v637_v17, 0.0  ;;  %v464_v22 = vadd.f32 %v463_v19, %v293_v18  ;;  %v465_v23 = vpop.f32.mrb[27].mxu1 }
 0x14e   :  { %679 = vst [vmem:[%s1379_s3 + $0x60] sm:$0xff] %v658_v21  ;;  %v638_v24 = vadd.f32 %v1290_v55, %v464_v22  ;;  %v298_v25 = vpop.f32.mrb[28].mxu0 }
 0x14f   :  { %v468_v26 = vpop.f32.mrb[28].mxu1  ;;  %v300_v27 = vpop.f32.mrb[29].mxu0 }
 0x150   :  { %v659_v28 = vmax.f32 %v638_v24, 0.0  ;;  %v469_v29 = vadd.f32 %v468_v26, %v298_v25  ;;  %v470_v30 = vpop.f32.mrb[29].mxu1 }
 0x152   :  { %680 = vst [vmem:[%s1379_s3 + $0x68] sm:$0xff] %v659_v28  ;;  %v639_v31 = vadd.f32 %v1290_v55, %v469_v29  ;;  %v303_v32 = vpop.f32.mrb[30].mxu0 }
 0x153   :  { %v473_v33 = vpop.f32.mrb[30].mxu1  ;;  %v305_v34 = vpop.f32.mrb[31].mxu0 }
 0x154   :  { %v660_v35 = vmax.f32 %v639_v31, 0.0  ;;  %v474_v36 = vadd.f32 %v473_v33, %v303_v32  ;;  %v475_v37 = vpop.f32.mrb[31].mxu1 }
 0x156   :  { %681 = vst [vmem:[%s1379_s3 + $0x70] sm:$0xff] %v660_v35  ;;  %v640_v38 = vadd.f32 %v1290_v55, %v474_v36  ;;  %v308_v39 = vpop.f32.mrb[32].mxu0 }
 0x157   :  { %v478_v0 = vpop.f32.mrb[32].mxu1  ;;  %v310_v40 = vpop.f32.mrb[33].mxu0 }
 0x158   :  { %v661_v41 = vmax.f32 %v640_v38, 0.0  ;;  %v479_v42 = vadd.f32 %v478_v0, %v308_v39  ;;  %v480_v43 = vpop.f32.mrb[33].mxu1 }
 0x15a   :  { %682 = vst [vmem:[%s1379_s3 + $0x78] sm:$0xff] %v661_v41  ;;  %v641_v44 = vadd.f32 %v1290_v55, %v479_v42  ;;  %v313_v45 = vpop.f32.mrb[34].mxu0 }
 0x15b   :  { %v483_v46 = vpop.f32.mrb[34].mxu1  ;;  %v315_v47 = vpop.f32.mrb[35].mxu0 }
 0x15c   :  { %v662_v48 = vmax.f32 %v641_v44, 0.0  ;;  %v484_v49 = vadd.f32 %v483_v46, %v313_v45  ;;  %v485_v50 = vpop.f32.mrb[35].mxu1 }
 0x15e   :  { %683 = vst [vmem:[%s1379_s3 + $0x80] sm:$0xff] %v662_v48  ;;  %v642_v51 = vadd.f32 %v1290_v55, %v484_v49  ;;  %v318_v52 = vpop.f32.mrb[36].mxu0 }
 0x15f   :  { %v488_v53 = vpop.f32.mrb[36].mxu1  ;;  %v320_v54 = vpop.f32.mrb[37].mxu0 }
 0x160   :  { %v663_v56 = vmax.f32 %v642_v51, 0.0  ;;  %v489_v57 = vadd.f32 %v488_v53, %v318_v52  ;;  %v490_v58 = vpop.f32.mrb[37].mxu1 }
 0x162   :  { %684 = vst [vmem:[%s1379_s3 + $0x88] sm:$0xff] %v663_v56  ;;  %v643_v59 = vadd.f32 %v1290_v55, %v489_v57  ;;  %v323_v60 = vpop.f32.mrb[38].mxu0 }
 0x163   :  { %v493_v61 = vpop.f32.mrb[38].mxu1  ;;  %v325_v62 = vpop.f32.mrb[39].mxu0 }
 0x164   :  { %v664_v63 = vmax.f32 %v643_v59, 0.0  ;;  %v494_v1 = vadd.f32 %v493_v61, %v323_v60  ;;  %v495_v2 = vpop.f32.mrb[39].mxu1 }
 0x166   :  { %685 = vst [vmem:[%s1379_s3 + $0x90] sm:$0xff] %v664_v63  ;;  %v644_v3 = vadd.f32 %v1290_v55, %v494_v1  ;;  %v328_v4 = vpop.f32.mrb[40].mxu0 }
 0x167   :  { %v498_v5 = vpop.f32.mrb[40].mxu1  ;;  %v330_v6 = vpop.f32.mrb[41].mxu0 }
 0x168   :  { %v665_v7 = vmax.f32 %v644_v3, 0.0  ;;  %v499_v8 = vadd.f32 %v498_v5, %v328_v4  ;;  %v500_v9 = vpop.f32.mrb[41].mxu1 }
 0x16a   :  { %686 = vst [vmem:[%s1379_s3 + $0x98] sm:$0xff] %v665_v7  ;;  %v645_v10 = vadd.f32 %v1290_v55, %v499_v8 }
 0x16c   :  { %v666_v11 = vmax.f32 %v645_v10, 0.0 }
 0x16e   :  { %687 = vst [vmem:[%s1379_s3 + $0xa0] sm:$0xff] %v666_v11 }

// kernel: qnetwork_cnn_forward.7
= control target key start
LH: loop header
LB: loop body
LE: loop exit
PB: predicated region body
PF: predicated region fallthrough
CT: control target
= control target key end

     0   :  { %vm1026_vm0 = vmmov 0   ;;  %s1590_s1 = inlined_call_operand.vmem [shape: f32[640,128], index: 1, kind: input, shape index: {}]   ;;  %s1591_s0 = inlined_call_operand.vmem [shape: f32[104,640], index: 0, kind: input, shape index: {}]   ;;  %s1592_s2 = inlined_call_operand.vmem [shape: f32[1,128], index: 2, kind: input, shape index: {}]   ;;  %s1593_s3 = inlined_call_operand.vmem [shape: f32[104,128], index: 3, kind: output, shape index: {}]  }
   0x1   :  { %v95_v0 = vld [vmem:[%s1590_s1 + $0x80] sm:$0xff]  ;;  %v96_v1 = vld [vmem:[%s1590_s1 + $0x88] sm:$0xff]  ;;  %v97_v11 = vld [vmem:[%s1590_s1 + $0x90] sm:$0xff] }
   0x2   :  { %v127_v2 = vld [vmem:[%s1590_s1 + $0x180] sm:$0xff]  ;;  %v918_v3 = vpack.c.bf16 %v96_v1, %v95_v0  ;;  %v128_v4 = vld [vmem:[%s1590_s1 + $0x188] sm:$0xff]  ;;  %v98_v13 = vld [vmem:[%s1590_s1 + $0x98] sm:$0xff] }
   0x3   :  { %v79_v5 = vld [vmem:[%s1590_s1] sm:$0xff]  ;;  %v80_v6 = vld [vmem:[%s1590_s1 + $0x8] sm:$0xff]  ;;  %v950_v7 = vpack.c.bf16 %v128_v4, %v127_v2  ;;  %v129_v14 = vld [vmem:[%s1590_s1 + $0x190] sm:$0xff]  ;;  %v922_v16 = vpack.c.bf16 %v98_v13, %v97_v11 }
   0x4   :  { %v920_v8 = vpack.c.bf16 %v80_v6, %v79_v5  ;;  %v111_v9 = vld [vmem:[%s1590_s1 + $0x100] sm:$0xff]  ;;  %v112_v10 = vld [vmem:[%s1590_s1 + $0x108] sm:$0xff]  ;;  %919 = vmatprep.subr.bf16.mxu0 %v918_v3  ;;  %v130_v15 = vld [vmem:[%s1590_s1 + $0x198] sm:$0xff] }
   0x5   :  { %v952_v12 = vpack.c.bf16 %v112_v10, %v111_v9  ;;  %951 = vmatprep.subr.bf16.mxu1 %v950_v7  ;;  %v954_v17 = vpack.c.bf16 %v130_v15, %v129_v14  ;;  %v81_v18 = vld [vmem:[%s1590_s1 + $0x10] sm:$0xff]  ;;  %v82_v19 = vld [vmem:[%s1590_s1 + $0x18] sm:$0xff]  ;;  %v99_v23 = vld [vmem:[%s1590_s1 + $0xa0] sm:$0xff] }
   0x6   :  { %921 = vmatpush3.bf16.msra.mxu0 %v920_v8  ;;  %v113_v20 = vld [vmem:[%s1590_s1 + $0x110] sm:$0xff]  ;;  %v924_v21 = vpack.c.bf16 %v82_v19, %v81_v18  ;;  %v114_v22 = vld [vmem:[%s1590_s1 + $0x118] sm:$0xff]  ;;  %v100_v24 = vld [vmem:[%s1590_s1 + $0xa8] sm:$0xff] }
   0x7   :  { %953 = vmatpush3.bf16.msra.mxu1 %v952_v12  ;;  %923 = vmatprep.subr.bf16.mxu0 %v922_v16  ;;  %v956_v25 = vpack.c.bf16 %v114_v22, %v113_v20  ;;  %v926_v26 = vpack.c.bf16 %v100_v24, %v99_v23  ;;  %v131_v27 = vld [vmem:[%s1590_s1 + $0x1a0] sm:$0xff]  ;;  %v132_v28 = vld [vmem:[%s1590_s1 + $0x1a8] sm:$0xff]  ;;  %v101_v35 = vld [vmem:[%s1590_s1 + $0xb0] sm:$0xff] }
   0x8   :  { %955 = vmatprep.subr.bf16.mxu1 %v954_v17  ;;  %v83_v29 = vld [vmem:[%s1590_s1 + $0x20] sm:$0xff]  ;;  %v958_v30 = vpack.c.bf16 %v132_v28, %v131_v27  ;;  %v84_v31 = vld [vmem:[%s1590_s1 + $0x28] sm:$0xff]  ;;  %v102_v36 = vld [vmem:[%s1590_s1 + $0xb8] sm:$0xff] }
   0x9   :  { %v115_v32 = vld [vmem:[%s1590_s1 + $0x120] sm:$0xff]  ;;  %v116_v33 = vld [vmem:[%s1590_s1 + $0x128] sm:$0xff]  ;;  %v928_v34 = vpack.c.bf16 %v84_v31, %v83_v29  ;;  %v133_v37 = vld [vmem:[%s1590_s1 + $0x1b0] sm:$0xff]  ;;  %v930_v39 = vpack.c.bf16 %v102_v36, %v101_v35 }
   0xa   :  { %925 = vmatpush3.bf16.msra.mxu0 %v924_v21  ;;  %v960_v38 = vpack.c.bf16 %v116_v33, %v115_v32  ;;  %v134_v40 = vld [vmem:[%s1590_s1 + $0x1b8] sm:$0xff]  ;;  %v85_v41 = vld [vmem:[%s1590_s1 + $0x30] sm:$0xff]  ;;  %v103_v46 = vld [vmem:[%s1590_s1 + $0xc0] sm:$0xff] }
   0xb   :  { %957 = vmatpush3.bf16.msra.mxu1 %v956_v25  ;;  %927 = vmatprep.subr.bf16.mxu0 %v926_v26  ;;  %v86_v42 = vld [vmem:[%s1590_s1 + $0x38] sm:$0xff]  ;;  %v962_v43 = vpack.c.bf16 %v134_v40, %v133_v37  ;;  %v117_v44 = vld [vmem:[%s1590_s1 + $0x130] sm:$0xff]  ;;  %v104_v47 = vld [vmem:[%s1590_s1 + $0xc8] sm:$0xff] }
   0xc   :  { %959 = vmatprep.subr.bf16.mxu1 %v958_v30  ;;  %v118_v45 = vld [vmem:[%s1590_s1 + $0x138] sm:$0xff]  ;;  %v135_v48 = vld [vmem:[%s1590_s1 + $0x1c0] sm:$0xff]  ;;  %v136_v49 = vld [vmem:[%s1590_s1 + $0x1c8] sm:$0xff]  ;;  %v932_v50 = vpack.c.bf16 %v86_v42, %v85_v41  ;;  %v934_v52 = vpack.c.bf16 %v104_v47, %v103_v46 }
   0xd   :  { %v964_v51 = vpack.c.bf16 %v118_v45, %v117_v44  ;;  %v87_v53 = vld [vmem:[%s1590_s1 + $0x40] sm:$0xff]  ;;  %v88_v54 = vld [vmem:[%s1590_s1 + $0x48] sm:$0xff]  ;;  %v966_v56 = vpack.c.bf16 %v136_v49, %v135_v48  ;;  %v105_v58 = vld [vmem:[%s1590_s1 + $0xd0] sm:$0xff] }
   0xe   :  { %929 = vmatpush3.bf16.msra.mxu0 %v928_v34  ;;  %v119_v55 = vld [vmem:[%s1590_s1 + $0x140] sm:$0xff]  ;;  %v120_v57 = vld [vmem:[%s1590_s1 + $0x148] sm:$0xff]  ;;  %v106_v59 = vld [vmem:[%s1590_s1 + $0xd8] sm:$0xff]  ;;  %v936_v62 = vpack.c.bf16 %v88_v54, %v87_v53 }
   0xf   :  { %961 = vmatpush3.bf16.msra.mxu1 %v960_v38  ;;  %931 = vmatprep.subr.bf16.mxu0 %v930_v39  ;;  %v137_v60 = vld [vmem:[%s1590_s1 + $0x1d0] sm:$0xff]  ;;  %v138_v61 = vld [vmem:[%s1590_s1 + $0x1d8] sm:$0xff]  ;;  %v968_v63 = vpack.c.bf16 %v120_v57, %v119_v55  ;;  %v938_v0 = vpack.c.bf16 %v106_v59, %v105_v58  ;;  %v107_v6 = vld [vmem:[%s1590_s1 + $0xe0] sm:$0xff]  ;;  %v1025_v39 = vmov 0.0|0.0  }
  0x10   :  { %963 = vmatprep.subr.bf16.mxu1 %v962_v43  ;;  %v89_v1 = vld [vmem:[%s1590_s1 + $0x50] sm:$0xff]  ;;  %v90_v2 = vld [vmem:[%s1590_s1 + $0x58] sm:$0xff]  ;;  %v970_v4 = vpack.c.bf16 %v138_v61, %v137_v60  ;;  %v108_v7 = vld [vmem:[%s1590_s1 + $0xe8] sm:$0xff] }
  0x11   :  { %v121_v3 = vld [vmem:[%s1590_s1 + $0x150] sm:$0xff]  ;;  %v122_v5 = vld [vmem:[%s1590_s1 + $0x158] sm:$0xff]  ;;  %v139_v8 = vld [vmem:[%s1590_s1 + $0x1e0] sm:$0xff]  ;;  %v940_v10 = vpack.c.bf16 %v90_v2, %v89_v1  ;;  %v942_v14 = vpack.c.bf16 %v108_v7, %v107_v6 }
  0x12   :  { %933 = vmatpush3.bf16.msra.mxu0 %v932_v50  ;;  %v140_v9 = vld [vmem:[%s1590_s1 + $0x1e8] sm:$0xff]  ;;  %v91_v11 = vld [vmem:[%s1590_s1 + $0x60] sm:$0xff]  ;;  %v972_v13 = vpack.c.bf16 %v122_v5, %v121_v3  ;;  %v17_v17 = vld [vmem:[%s1591_s0 + $0x18] sm:$0xff] }
  0x13   :  { %965 = vmatpush3.bf16.msra.mxu1 %v964_v51  ;;  %935 = vmatprep.subr.bf16.mxu0 %v934_v52  ;;  %v92_v12 = vld [vmem:[%s1590_s1 + $0x68] sm:$0xff]  ;;  %v123_v15 = vld [vmem:[%s1590_s1 + $0x160] sm:$0xff]  ;;  %v974_v18 = vpack.c.bf16 %v140_v9, %v139_v8  ;;  %v109_v20 = vld [vmem:[%s1590_s1 + $0xf0] sm:$0xff] }
  0x14   :  { %967 = vmatprep.subr.bf16.mxu1 %v966_v56  ;;  %v15_v16 = vld [vmem:[%s1591_s0 + $0x8] sm:$0xff]  ;;  %v110_v21 = vld [vmem:[%s1590_s1 + $0xf8] sm:$0xff]  ;;  %v141_v22 = vld [vmem:[%s1590_s1 + $0x1f0] sm:$0xff]  ;;  %353 = vmatprep.mubr.f32.mxu1 %v17_v17  ;;  %v944_v24 = vpack.c.bf16 %v92_v12, %v91_v11 }
  0x15   :  { %v124_v19 = vld [vmem:[%s1590_s1 + $0x168] sm:$0xff]  ;;  %223 = vmatprep.mubr.f32.mxu0 %v15_v16  ;;  %v142_v23 = vld [vmem:[%s1590_s1 + $0x1f8] sm:$0xff]  ;;  %v946_v26 = vpack.c.bf16 %v110_v21, %v109_v20  ;;  %v93_v27 = vld [vmem:[%s1590_s1 + $0x70] sm:$0xff] }
  0x16   :  { %937 = vmatpush3.bf16.msra.mxu0 %v936_v62  ;;  %v976_v25 = vpack.c.bf16 %v124_v19, %v123_v15  ;;  %v94_v28 = vld [vmem:[%s1590_s1 + $0x78] sm:$0xff]  ;;  %v978_v29 = vpack.c.bf16 %v142_v23, %v141_v22  ;;  %v125_v30 = vld [vmem:[%s1590_s1 + $0x170] sm:$0xff]  ;;  %v143_v34 = vld [vmem:[%s1590_s1 + $0x200] sm:$0xff] }
  0x17   :  { %969 = vmatpush3.bf16.msra.mxu1 %v968_v63  ;;  %939 = vmatprep.subr.bf16.mxu0 %v938_v0  ;;  %v126_v31 = vld [vmem:[%s1590_s1 + $0x178] sm:$0xff]  ;;  %v948_v32 = vpack.c.bf16 %v94_v28, %v93_v27  ;;  %v144_v35 = vld [vmem:[%s1590_s1 + $0x208] sm:$0xff]  ;;  %v14_v36 = vld [vmem:[%s1591_s0] sm:$0xff] }
  0x18   :  { %971 = vmatprep.subr.bf16.mxu1 %v970_v4  ;;  %v980_v33 = vpack.c.bf16 %v126_v31, %v125_v30  ;;  %v983_v37 = vpack.c.bf16 %v144_v35, %v143_v34  ;;  %v16_v38 = vld [vmem:[%s1591_s0 + $0x10] sm:$0xff]  ;;  %v22_v41 = vld [vmem:[%s1591_s0 + $0x40] sm:$0xff]  ;;  %v146_v43 = vld [vmem:[%s1590_s1 + $0x218] sm:$0xff] }
  0x19   :  { %v20_v40 = vld [vmem:[%s1591_s0 + $0x30] sm:$0xff]  ;;  %v19_v44 = vld [vmem:[%s1591_s0 + $0x28] sm:$0xff]  ;;  %v21_v45 = vld [vmem:[%s1591_s0 + $0x38] sm:$0xff] }
  0x1a   :  { %941 = vmatpush3.bf16.msra.mxu0 %v940_v10  ;;  %v145_v42 = vld [vmem:[%s1590_s1 + $0x210] sm:$0xff]  ;;  %v25_v46 = vld [vmem:[%s1591_s0 + $0x58] sm:$0xff]  ;;  %v27_v48 = vld [vmem:[%s1591_s0 + $0x68] sm:$0xff] }
  0x1b   :  { %973 = vmatpush3.bf16.msra.mxu1 %v972_v13  ;;  %943 = vmatprep.subr.bf16.mxu0 %v942_v14  ;;  %v986_v47 = vpack.c.bf16 %v146_v43, %v145_v42  ;;  %v147_v49 = vld [vmem:[%s1590_s1 + $0x220] sm:$0xff]  ;;  %v148_v50 = vld [vmem:[%s1590_s1 + $0x228] sm:$0xff]  ;;  %v24_v51 = vld [vmem:[%s1591_s0 + $0x50] sm:$0xff] }
  0x1c   :  { %975 = vmatprep.subr.bf16.mxu1 %v974_v18  ;;  %v26_v52 = vld [vmem:[%s1591_s0 + $0x60] sm:$0xff]  ;;  %v989_v54 = vpack.c.bf16 %v148_v50, %v147_v49  ;;  %v32_v55 = vld [vmem:[%s1591_s0 + $0x90] sm:$0xff]  ;;  %v150_v57 = vld [vmem:[%s1590_s1 + $0x238] sm:$0xff] }
  0x1d   :  { %v30_v53 = vld [vmem:[%s1591_s0 + $0x80] sm:$0xff]  ;;  %v149_v56 = vld [vmem:[%s1590_s1 + $0x230] sm:$0xff]  ;;  %v29_v58 = vld [vmem:[%s1591_s0 + $0x78] sm:$0xff] }
  0x1e   :  { %945 = vmatpush3.bf16.msra.mxu0 %v944_v24  ;;  %v31_v59 = vld [vmem:[%s1591_s0 + $0x88] sm:$0xff]  ;;  %v992_v61 = vpack.c.bf16 %v150_v57, %v149_v56  ;;  %v37_v62 = vld [vmem:[%s1591_s0 + $0xb8] sm:$0xff]  ;;  %v151_v63 = vld [vmem:[%s1590_s1 + $0x240] sm:$0xff] }
  0x1f   :  { %977 = vmatpush3.bf16.msra.mxu1 %v976_v25  ;;  %947 = vmatprep.subr.bf16.mxu0 %v946_v26  ;;  %v35_v60 = vld [vmem:[%s1591_s0 + $0xa8] sm:$0xff]  ;;  %v34_v1 = vld [vmem:[%s1591_s0 + $0xa0] sm:$0xff]  ;;  %v36_v2 = vld [vmem:[%s1591_s0 + $0xb0] sm:$0xff] }
  0x20   :  { %979 = vmatprep.subr.bf16.mxu1 %v978_v29  ;;  %v152_v0 = vld [vmem:[%s1590_s1 + $0x248] sm:$0xff]  ;;  %v40_v3 = vld [vmem:[%s1591_s0 + $0xd0] sm:$0xff]  ;;  %v42_v5 = vld [vmem:[%s1591_s0 + $0xe0] sm:$0xff] }
  0x21   :  { %v995_v4 = vpack.c.bf16 %v152_v0, %v151_v63  ;;  %v153_v6 = vld [vmem:[%s1590_s1 + $0x250] sm:$0xff]  ;;  %v154_v7 = vld [vmem:[%s1590_s1 + $0x258] sm:$0xff]  ;;  %v39_v8 = vld [vmem:[%s1591_s0 + $0xc8] sm:$0xff] }
  0x22   :  { %949 = vmatpush3.bf16.msra.mxu0 %v948_v32  ;;  %v41_v9 = vld [vmem:[%s1591_s0 + $0xd8] sm:$0xff]  ;;  %v998_v11 = vpack.c.bf16 %v154_v7, %v153_v6  ;;  %v47_v12 = vld [vmem:[%s1591_s0 + $0x108] sm:$0xff]  ;;  %v155_v13 = vld [vmem:[%s1590_s1 + $0x260] sm:$0xff] }
  0x23   :  { %981 = vmatpush3.bf16.msra.mxu1 %v980_v33  ;;  %982 = vmatprep.subr.bf16.mxu0 %v1025_v39  ;;  %v45_v10 = vld [vmem:[%s1591_s0 + $0xf8] sm:$0xff]  ;;  %v156_v14 = vld [vmem:[%s1590_s1 + $0x268] sm:$0xff]  ;;  %v44_v15 = vld [vmem:[%s1591_s0 + $0xf0] sm:$0xff] }
  0x24   :  { %1006 = vmatprep.subr.bf16.mxu1 %v1025_v39  ;;  %v46_v16 = vld [vmem:[%s1591_s0 + $0x100] sm:$0xff]  ;;  %v1001_v18 = vpack.c.bf16 %v156_v14, %v155_v13  ;;  %v52_v19 = vld [vmem:[%s1591_s0 + $0x130] sm:$0xff]  ;;  %v158_v21 = vld [vmem:[%s1590_s1 + $0x278] sm:$0xff] }
  0x25   :  { %224 = vmatmul.mubr.f32.vlgmr.msra.gmra.mrb[0].mxu0 %v14_v36  ;;  %v50_v17 = vld [vmem:[%s1591_s0 + $0x120] sm:$0xff]  ;;  %v157_v20 = vld [vmem:[%s1590_s1 + $0x270] sm:$0xff]  ;;  %v49_v22 = vld [vmem:[%s1591_s0 + $0x118] sm:$0xff] }
  0x26   :  { %354 = vmatmul.mubr.f32.vlgmr.msra.gmra.mrb[0].mxu1 %v16_v38  ;;  %984 = vmatpush3.bf16.msra.mxu0 %v983_v37  ;;  %v51_v23 = vld [vmem:[%s1591_s0 + $0x128] sm:$0xff]  ;;  %v1004_v25 = vpack.c.bf16 %v158_v21, %v157_v20  ;;  %v57_v26 = vld [vmem:[%s1591_s0 + $0x158] sm:$0xff]  ;;  %v54_v27 = vld [vmem:[%s1591_s0 + $0x140] sm:$0xff] }
  0x27   :  { %228 = vmatprep.mubr.f32.mxu0 %v20_v40  ;;  %358 = vmatprep.mubr.f32.mxu1 %v22_v41  ;;  %v55_v24 = vld [vmem:[%s1591_s0 + $0x148] sm:$0xff]  ;;  %v56_v28 = vld [vmem:[%s1591_s0 + $0x150] sm:$0xff]  ;;  %v62_v30 = vld [vmem:[%s1591_s0 + $0x180] sm:$0xff] }
  0x28   :  { %1014 = vmatpush3.bf16.msra.mxu1 %v983_v37  ;;  %985 = vmatprep.subr.bf16.mxu0 %v1025_v39  ;;  %v60_v29 = vld [vmem:[%s1591_s0 + $0x170] sm:$0xff]  ;;  %v59_v31 = vld [vmem:[%s1591_s0 + $0x168] sm:$0xff]  ;;  %v61_v32 = vld [vmem:[%s1591_s0 + $0x178] sm:$0xff] }
  0x29   :  { %229 = vmatmul.mubr.f32.gmra.mrb[2].mxu0 %v19_v44  ;;  %1007 = vmatprep.subr.bf16.mxu1 %v1025_v39  ;;  %v65_v33 = vld [vmem:[%s1591_s0 + $0x198] sm:$0xff]  ;;  %v67_v34 = vld [vmem:[%s1591_s0 + $0x1a8] sm:$0xff]  ;;  %v64_v35 = vld [vmem:[%s1591_s0 + $0x190] sm:$0xff] }
  0x2a   :  { %359 = vmatmul.mubr.f32.gmra.mrb[2].mxu1 %v21_v45  ;;  %233 = vmatprep.mubr.f32.mxu0 %v25_v46  ;;  %v66_v36 = vld [vmem:[%s1591_s0 + $0x1a0] sm:$0xff]  ;;  %v72_v38 = vld [vmem:[%s1591_s0 + $0x1d0] sm:$0xff]  ;;  %v71_v40 = vld [vmem:[%s1591_s0 + $0x1c8] sm:$0xff]  ;;  %v1027_v45 = vmov 0.0  }
  0x2b   :  { %363 = vmatprep.mubr.f32.mxu1 %v27_v48  ;;  %987 = vmatpush3.bf16.msra.mxu0 %v986_v47  ;;  %v70_v37 = vld [vmem:[%s1591_s0 + $0x1c0] sm:$0xff]  ;;  %v75_v41 = vld [vmem:[%s1591_s0 + $0x1e8] sm:$0xff]  ;;  %v77_v42 = vld [vmem:[%s1591_s0 + $0x1f8] sm:$0xff] }
  0x2c   :  { %1015 = vmatpush3.bf16.msra.mxu1 %v986_v47  ;;  %988 = vmatprep.subr.bf16.mxu0 %v1025_v39  ;;  %v74_v43 = vld [vmem:[%s1591_s0 + $0x1e0] sm:$0xff]  ;;  %v76_v44 = vld [vmem:[%s1591_s0 + $0x1f0] sm:$0xff]  ;;  %v53_v47 = vld [vmem:[%s1591_s0 + $0x138] sm:$0xff] }
  0x2d   :  { %234 = vmatmul.mubr.f32.gmra.mrb[4].mxu0 %v24_v51  ;;  %1008 = vmatprep.subr.bf16.mxu1 %v1025_v39  ;;  %v18_v46 = vld [vmem:[%s1591_s0 + $0x20] sm:$0xff]  ;;  %v23_v48 = vld [vmem:[%s1591_s0 + $0x48] sm:$0xff]  ;;  %v28_v50 = vld [vmem:[%s1591_s0 + $0x70] sm:$0xff] }
  0x2e   :  { %364 = vmatmul.mubr.f32.gmra.mrb[4].mxu1 %v26_v52  ;;  %238 = vmatprep.mubr.f32.mxu0 %v30_v53  ;;  %v58_v49 = vld [vmem:[%s1591_s0 + $0x160] sm:$0xff]  ;;  %v63_v51 = vld [vmem:[%s1591_s0 + $0x188] sm:$0xff]  ;;  %v33_v52 = vld [vmem:[%s1591_s0 + $0x98] sm:$0xff] }
  0x2f   :  { %368 = vmatprep.mubr.f32.mxu1 %v32_v55  ;;  %990 = vmatpush3.bf16.msra.mxu0 %v989_v54  ;;  %v68_v53 = vld [vmem:[%s1591_s0 + $0x1b0] sm:$0xff]  ;;  %v73_v55 = vld [vmem:[%s1591_s0 + $0x1d8] sm:$0xff]  ;;  %v43_v56 = vld [vmem:[%s1591_s0 + $0xe8] sm:$0xff] }
  0x30   :  { %1016 = vmatpush3.bf16.msra.mxu1 %v989_v54  ;;  %991 = vmatprep.subr.bf16.mxu0 %v1025_v39  ;;  %v38_v54 = vld [vmem:[%s1591_s0 + $0xc0] sm:$0xff] }
  0x31   :  { %239 = vmatmul.mubr.f32.gmra.mrb[6].mxu0 %v29_v58  ;;  %1009 = vmatprep.subr.bf16.mxu1 %v1025_v39  ;;  %v78_v57 = vld [vmem:[%s1591_s0 + $0x200] sm:$0xff]  ;;  %v48_v58 = vld [vmem:[%s1591_s0 + $0x110] sm:$0xff] }
  0x32   :  { %369 = vmatmul.mubr.f32.gmra.mrb[6].mxu1 %v31_v59  ;;  %243 = vmatprep.mubr.f32.mxu0 %v35_v60 }
  0x33   :  { %373 = vmatprep.mubr.f32.mxu1 %v37_v62  ;;  %993 = vmatpush3.bf16.msra.mxu0 %v992_v61 }
  0x34   :  { %1017 = vmatpush3.bf16.msra.mxu1 %v992_v61  ;;  %994 = vmatprep.subr.bf16.mxu0 %v1025_v39 }
  0x35   :  { %244 = vmatmul.mubr.f32.gmra.mrb[8].mxu0 %v34_v1  ;;  %1010 = vmatprep.subr.bf16.mxu1 %v1025_v39 }
  0x36   :  { %374 = vmatmul.mubr.f32.gmra.mrb[8].mxu1 %v36_v2  ;;  %248 = vmatprep.mubr.f32.mxu0 %v40_v3 }
  0x37   :  { %378 = vmatprep.mubr.f32.mxu1 %v42_v5  ;;  %996 = vmatpush3.bf16.msra.mxu0 %v995_v4 }
  0x38   :  { %1018 = vmatpush3.bf16.msra.mxu1 %v995_v4  ;;  %997 = vmatprep.subr.bf16.mxu0 %v1025_v39 }
  0x39   :  { %249 = vmatmul.mubr.f32.gmra.mrb[10].mxu0 %v39_v8  ;;  %1011 = vmatprep.subr.bf16.mxu1 %v1025_v39 }
  0x3a   :  { %379 = vmatmul.mubr.f32.gmra.mrb[10].mxu1 %v41_v9  ;;  %253 = vmatprep.mubr.f32.mxu0 %v45_v10 }
  0x3b   :  { %383 = vmatprep.mubr.f32.mxu1 %v47_v12  ;;  %999 = vmatpush3.bf16.msra.mxu0 %v998_v11 }
  0x3c   :  { %1019 = vmatpush3.bf16.msra.mxu1 %v998_v11  ;;  %1000 = vmatprep.subr.bf16.mxu0 %v1025_v39 }
  0x3d   :  { %254 = vmatmul.mubr.f32.gmra.mrb[12].mxu0 %v44_v15  ;;  %1012 = vmatprep.subr.bf16.mxu1 %v1025_v39 }
  0x3e   :  { %384 = vmatmul.mubr.f32.gmra.mrb[12].mxu1 %v46_v16  ;;  %258 = vmatprep.mubr.f32.mxu0 %v50_v17 }
  0x3f   :  { %388 = vmatprep.mubr.f32.mxu1 %v52_v19  ;;  %1002 = vmatpush3.bf16.msra.mxu0 %v1001_v18 }
  0x40   :  { %1020 = vmatpush3.bf16.msra.mxu1 %v1001_v18  ;;  %1003 = vmatprep.subr.bf16.mxu0 %v1025_v39 }
  0x41   :  { %259 = vmatmul.mubr.f32.gmra.mrb[14].mxu0 %v49_v22  ;;  %1013 = vmatprep.subr.bf16.mxu1 %v1025_v39  ;;  %v69_v39 = vld [vmem:[%s1591_s0 + $0x1b8] sm:$0xff] }
  0x42   :  { %389 = vmatmul.mubr.f32.gmra.mrb[14].mxu1 %v51_v23  ;;  %263 = vmatprep.mubr.f32.mxu0 %v55_v24 }
  0x43   :  { %393 = vmatprep.mubr.f32.mxu1 %v57_v26  ;;  %1005 = vmatpush3.bf16.msra.mxu0 %v1004_v25 }
  0x44   :  { %1021 = vmatpush3.bf16.msra.mxu1 %v1004_v25 }
  0x45   :  { %264 = vmatmul.mubr.f32.gmra.mrb[16].mxu0 %v54_v27 }
  0x46   :  { %394 = vmatmul.mubr.f32.gmra.mrb[16].mxu1 %v56_v28  ;;  %268 = vmatprep.mubr.f32.mxu0 %v60_v29 }
  0x47   :  { %398 = vmatprep.mubr.f32.mxu1 %v62_v30 }
  0x49   :  { %269 = vmatmul.mubr.f32.gmra.mrb[18].mxu0 %v59_v31 }
  0x4a   :  { %399 = vmatmul.mubr.f32.gmra.mrb[18].mxu1 %v61_v32  ;;  %273 = vmatprep.mubr.f32.mxu0 %v65_v33 }
  0x4b   :  { %403 = vmatprep.mubr.f32.mxu1 %v67_v34 }
  0x4d   :  { %274 = vmatmul.mubr.f32.gmra.mrb[20].mxu0 %v64_v35 }
  0x4e   :  { %404 = vmatmul.mubr.f32.gmra.mrb[20].mxu1 %v66_v36  ;;  %278 = vmatprep.mubr.f32.mxu0 %v70_v37 }
  0x4f   :  { %408 = vmatprep.mubr.f32.mxu1 %v72_v38 }
  0x51   :  { %279 = vmatmul.mubr.f32.gmra.mrb[22].mxu0 %v69_v39 }
  0x52   :  { %409 = vmatmul.mubr.f32.gmra.mrb[22].mxu1 %v71_v40  ;;  %283 = vmatprep.mubr.f32.mxu0 %v75_v41 }
  0x53   :  { %413 = vmatprep.mubr.f32.mxu1 %v77_v42 }
  0x55   :  { %284 = vmatmul.mubr.f32.gmra.mrb[24].mxu0 %v74_v43 }
  0x56   :  { %414 = vmatmul.mubr.f32.gmra.mrb[24].mxu1 %v76_v44  ;;  %879 = vmatprep.mubr.msk.f32.mxu0 %vm1026_vm0, %v1027_v45 }
  0x57   :  { %900 = vmatprep.mubr.msk.f32.mxu1 %vm1026_vm0, %v1027_v45 }
  0x59   :  { %880 = vmatmul.mubr.f32.vlgmr.msra.gmra.mrb[26].mxu0 %v18_v46 }
  0x5a   :  { %901 = vmatmul.mubr.f32.vlgmr.msra.gmra.mrb[26].mxu1 %v53_v47  ;;  %882 = vmatprep.mubr.msk.f32.mxu0 %vm1026_vm0, %v1027_v45 }
  0x5b   :  { %903 = vmatprep.mubr.msk.f32.mxu1 %vm1026_vm0, %v1027_v45 }
  0x5d   :  { %883 = vmatmul.mubr.f32.gmra.mrb[28].mxu0 %v23_v48 }
  0x5e   :  { %904 = vmatmul.mubr.f32.gmra.mrb[28].mxu1 %v58_v49  ;;  %885 = vmatprep.mubr.msk.f32.mxu0 %vm1026_vm0, %v1027_v45 }
  0x5f   :  { %906 = vmatprep.mubr.msk.f32.mxu1 %vm1026_vm0, %v1027_v45 }
  0x61   :  { %886 = vmatmul.mubr.f32.gmra.mrb[30].mxu0 %v28_v50 }
  0x62   :  { %907 = vmatmul.mubr.f32.gmra.mrb[30].mxu1 %v63_v51  ;;  %888 = vmatprep.mubr.msk.f32.mxu0 %vm1026_vm0, %v1027_v45 }
  0x63   :  { %909 = vmatprep.mubr.msk.f32.mxu1 %vm1026_vm0, %v1027_v45 }
  0x65   :  { %889 = vmatmul.mubr.f32.gmra.mrb[32].mxu0 %v33_v52 }
  0x66   :  { %910 = vmatmul.mubr.f32.gmra.mrb[32].mxu1 %v68_v53  ;;  %891 = vmatprep.mubr.msk.f32.mxu0 %vm1026_vm0, %v1027_v45 }
  0x67   :  { %912 = vmatprep.mubr.msk.f32.mxu1 %vm1026_vm0, %v1027_v45 }
  0x69   :  { %892 = vmatmul.mubr.f32.gmra.mrb[34].mxu0 %v38_v54 }
  0x6a   :  { %913 = vmatmul.mubr.f32.gmra.mrb[34].mxu1 %v73_v55  ;;  %894 = vmatprep.mubr.msk.f32.mxu0 %vm1026_vm0, %v1027_v45 }
  0x6b   :  { %915 = vmatprep.mubr.msk.f32.mxu1 %vm1026_vm0, %v1027_v45 }
  0x6d   :  { %895 = vmatmul.mubr.f32.gmra.mrb[36].mxu0 %v43_v56 }
  0x6e   :  { %916 = vmatmul.mubr.f32.gmra.mrb[36].mxu1 %v78_v57  ;;  %897 = vmatprep.mubr.msk.f32.mxu0 %vm1026_vm0, %v1027_v45 }
  0x71   :  { %898 = vmatmul.mubr.f32.gmra.mrb[38].mxu0 %v48_v58 }
  0xf8   :  { %v708_v59 = vpop.f32.mrb[0].mxu0 }
  0xf9   :  { %v779_v60 = vpop.f32.mrb[0].mxu1  ;;  %v709_v61 = vpop.f32.mrb[1].mxu0 }
  0xfa   :  { %v710_v62 = vadd.f32 %v709_v61, %v708_v59  ;;  %v780_v63 = vpop.f32.mrb[1].mxu1 }
  0xfb   :  { %v781_v0 = vadd.f32 %v780_v63, %v779_v60 }
  0xfc   :  { %v711_v1 = vpop.f32.mrb[2].mxu0 }
  0xfd   :  { %v782_v2 = vpop.f32.mrb[2].mxu1  ;;  %v712_v3 = vpop.f32.mrb[3].mxu0  ;;  %v1512_v4 = vadd.f32 %v781_v0, %v710_v62 }
  0xfe   :  { %v713_v5 = vadd.f32 %v712_v3, %v711_v1  ;;  %v783_v6 = vpop.f32.mrb[3].mxu1 }
  0xff   :  { %v784_v7 = vadd.f32 %v783_v6, %v782_v2 }
 0x100   :  { %v714_v8 = vpop.f32.mrb[4].mxu0 }
 0x101   :  { %v785_v9 = vpop.f32.mrb[4].mxu1  ;;  %v715_v10 = vpop.f32.mrb[5].mxu0  ;;  %v1514_v11 = vadd.f32 %v784_v7, %v713_v5 }
 0x102   :  { %v716_v12 = vadd.f32 %v715_v10, %v714_v8  ;;  %v786_v13 = vpop.f32.mrb[5].mxu1 }
 0x103   :  { %v787_v14 = vadd.f32 %v786_v13, %v785_v9 }
 0x104   :  { %v717_v15 = vpop.f32.mrb[6].mxu0 }
 0x105   :  { %v788_v16 = vpop.f32.mrb[6].mxu1  ;;  %v718_v17 = vpop.f32.mrb[7].mxu0  ;;  %v1516_v18 = vadd.f32 %v787_v14, %v716_v12 }
 0x106   :  { %v719_v19 = vadd.f32 %v718_v17, %v717_v15  ;;  %v789_v20 = vpop.f32.mrb[7].mxu1 }
 0x107   :  { %v790_v21 = vadd.f32 %v789_v20, %v788_v16 }
 0x108   :  { %v720_v22 = vpop.f32.mrb[8].mxu0 }
 0x109   :  { %v791_v23 = vpop.f32.mrb[8].mxu1  ;;  %v721_v24 = vpop.f32.mrb[9].mxu0  ;;  %v1518_v25 = vadd.f32 %v790_v21, %v719_v19 }
 0x10a   :  { %v722_v26 = vadd.f32 %v721_v24, %v720_v22  ;;  %v792_v27 = vpop.f32.mrb[9].mxu1 }
 0x10b   :  { %v793_v28 = vadd.f32 %v792_v27, %v791_v23 }
 0x10c   :  { %v723_v29 = vpop.f32.mrb[10].mxu0 }
 0x10d   :  { %v794_v30 = vpop.f32.mrb[10].mxu1  ;;  %v724_v31 = vpop.f32.mrb[11].mxu0  ;;  %v1520_v32 = vadd.f32 %v793_v28, %v722_v26  ;;  %v1529_v26 = vld [vmem:[%s1592_s2] ss:$0 sm:$0xff] }
 0x10e   :  { %v725_v33 = vadd.f32 %v724_v31, %v723_v29  ;;  %v795_v34 = vpop.f32.mrb[11].mxu1 }
 0x10f   :  { %v796_v35 = vadd.f32 %v795_v34, %v794_v30 }
 0x110   :  { %v726_v36 = vpop.f32.mrb[12].mxu0 }
 0x111   :  { %v797_v37 = vpop.f32.mrb[12].mxu1  ;;  %v727_v38 = vpop.f32.mrb[13].mxu0  ;;  %v1522_v39 = vadd.f32 %v796_v35, %v725_v33 }
 0x112   :  { %v728_v40 = vadd.f32 %v727_v38, %v726_v36  ;;  %v798_v41 = vpop.f32.mrb[13].mxu1 }
 0x113   :  { %v799_v42 = vadd.f32 %v798_v41, %v797_v37 }
 0x114   :  { %v729_v43 = vpop.f32.mrb[14].mxu0 }
 0x115   :  { %v800_v44 = vpop.f32.mrb[14].mxu1  ;;  %v730_v45 = vpop.f32.mrb[15].mxu0  ;;  %v1524_v46 = vadd.f32 %v799_v42, %v728_v40 }
 0x116   :  { %v731_v47 = vadd.f32 %v730_v45, %v729_v43  ;;  %v801_v48 = vpop.f32.mrb[15].mxu1 }
 0x117   :  { %v802_v49 = vadd.f32 %v801_v48, %v800_v44 }
 0x118   :  { %v732_v50 = vpop.f32.mrb[16].mxu0 }
 0x119   :  { %v803_v51 = vpop.f32.mrb[16].mxu1  ;;  %v733_v52 = vpop.f32.mrb[17].mxu0  ;;  %v391_v53 = vadd.f32 %v802_v49, %v731_v47 }
 0x11a   :  { %v734_v54 = vadd.f32 %v733_v52, %v732_v50  ;;  %v804_v55 = vpop.f32.mrb[17].mxu1 }
 0x11b   :  { %v805_v56 = vadd.f32 %v804_v55, %v803_v51 }
 0x11c   :  { %v735_v57 = vpop.f32.mrb[18].mxu0 }
 0x11d   :  { %v806_v58 = vpop.f32.mrb[18].mxu1  ;;  %v736_v59 = vpop.f32.mrb[19].mxu0  ;;  %v396_v60 = vadd.f32 %v805_v56, %v734_v54 }
 0x11e   :  { %v737_v61 = vadd.f32 %v736_v59, %v735_v57  ;;  %v807_v62 = vpop.f32.mrb[19].mxu1 }
 0x11f   :  { %v808_v63 = vadd.f32 %v807_v62, %v806_v58 }
 0x120   :  { %v738_v0 = vpop.f32.mrb[20].mxu0 }
 0x121   :  { %v809_v1 = vpop.f32.mrb[20].mxu1  ;;  %v739_v2 = vpop.f32.mrb[21].mxu0  ;;  %v401_v3 = vadd.f32 %v808_v63, %v737_v61 }
 0x122   :  { %v740_v5 = vadd.f32 %v739_v2, %v738_v0  ;;  %v810_v6 = vpop.f32.mrb[21].mxu1 }
 0x123   :  { %v811_v7 = vadd.f32 %v810_v6, %v809_v1 }
 0x124   :  { %v741_v8 = vpop.f32.mrb[22].mxu0 }
 0x125   :  { %v812_v9 = vpop.f32.mrb[22].mxu1  ;;  %v742_v10 = vpop.f32.mrb[23].mxu0  ;;  %v406_v12 = vadd.f32 %v811_v7, %v740_v5 }
 0x126   :  { %v743_v13 = vadd.f32 %v742_v10, %v741_v8  ;;  %v813_v14 = vpop.f32.mrb[23].mxu1 }
 0x127   :  { %v814_v15 = vadd.f32 %v813_v14, %v812_v9 }
 0x128   :  { %v744_v16 = vpop.f32.mrb[24].mxu0 }
 0x129   :  { %v815_v17 = vpop.f32.mrb[24].mxu1  ;;  %v745_v19 = vpop.f32.mrb[25].mxu0  ;;  %v411_v20 = vadd.f32 %v814_v15, %v743_v13 }
 0x12a   :  { %v746_v21 = vadd.f32 %v745_v19, %v744_v16  ;;  %v816_v22 = vpop.f32.mrb[25].mxu1 }
 0x12b   :  { %v817_v23 = vadd.f32 %v816_v22, %v815_v17 }
 0x12c   :  { %v485_v24 = vpop.f32.mrb[26].mxu0 }
 0x12d   :  { %v486_v27 = vadd.f32 %v485_v24, %v1512_v4  ;;  %v520_v28 = vpop.f32.mrb[26].mxu1  ;;  %v881_v29 = vpop.f32.mrb[27].mxu0  ;;  %v416_v30 = vadd.f32 %v817_v23, %v746_v21 }
 0x12e   :  { %v521_v31 = vadd.f32 %v520_v28, %v391_v53  ;;  %v902_v33 = vpop.f32.mrb[27].mxu1 }
 0x12f   :  { %v632_v34 = vadd.f32 %v1529_v26, %v486_v27 }
 0x130   :  { %v639_v35 = vadd.f32 %v1529_v26, %v521_v31  ;;  %v490_v36 = vpop.f32.mrb[28].mxu0 }
 0x131   :  { %v645_v37 = vmax.f32 %v632_v34, 0.0  ;;  %v491_v38 = vadd.f32 %v490_v36, %v1514_v11  ;;  %v525_v40 = vpop.f32.mrb[28].mxu1  ;;  %v884_v41 = vpop.f32.mrb[29].mxu0 }
 0x132   :  { %v652_v42 = vmax.f32 %v639_v35, 0.0  ;;  %v526_v43 = vadd.f32 %v525_v40, %v396_v60  ;;  %v905_v44 = vpop.f32.mrb[29].mxu1 }
 0x133   :  { %658 = vst [vmem:[%s1593_s3] sm:$0xff] %v645_v37  ;;  %v633_v4 = vadd.f32 %v1529_v26, %v491_v38 }
 0x134   :  { %665 = vst [vmem:[%s1593_s3 + $0x38] sm:$0xff] %v652_v42  ;;  %v640_v45 = vadd.f32 %v1529_v26, %v526_v43  ;;  %v495_v47 = vpop.f32.mrb[30].mxu0 }
 0x135   :  { %v646_v48 = vmax.f32 %v633_v4, 0.0  ;;  %v496_v11 = vadd.f32 %v495_v47, %v1516_v18  ;;  %v530_v49 = vpop.f32.mrb[30].mxu1  ;;  %v887_v50 = vpop.f32.mrb[31].mxu0 }
 0x136   :  { %v653_v51 = vmax.f32 %v640_v45, 0.0  ;;  %v531_v52 = vadd.f32 %v530_v49, %v401_v3  ;;  %v908_v53 = vpop.f32.mrb[31].mxu1 }
 0x137   :  { %659 = vst [vmem:[%s1593_s3 + $0x8] sm:$0xff] %v646_v48  ;;  %v634_v54 = vadd.f32 %v1529_v26, %v496_v11 }
 0x138   :  { %666 = vst [vmem:[%s1593_s3 + $0x40] sm:$0xff] %v653_v51  ;;  %v641_v55 = vadd.f32 %v1529_v26, %v531_v52  ;;  %v500_v56 = vpop.f32.mrb[32].mxu0 }
 0x139   :  { %v647_v57 = vmax.f32 %v634_v54, 0.0  ;;  %v501_v18 = vadd.f32 %v500_v56, %v1518_v25  ;;  %v535_v58 = vpop.f32.mrb[32].mxu1  ;;  %v890_v59 = vpop.f32.mrb[33].mxu0 }
 0x13a   :  { %v654_v60 = vmax.f32 %v641_v55, 0.0  ;;  %v536_v61 = vadd.f32 %v535_v58, %v406_v12  ;;  %v911_v62 = vpop.f32.mrb[33].mxu1 }
 0x13b   :  { %660 = vst [vmem:[%s1593_s3 + $0x10] sm:$0xff] %v647_v57  ;;  %v635_v63 = vadd.f32 %v1529_v26, %v501_v18 }
 0x13c   :  { %667 = vst [vmem:[%s1593_s3 + $0x48] sm:$0xff] %v654_v60  ;;  %v642_v0 = vadd.f32 %v1529_v26, %v536_v61  ;;  %v505_v1 = vpop.f32.mrb[34].mxu0 }
 0x13d   :  { %v648_v2 = vmax.f32 %v635_v63, 0.0  ;;  %v506_v25 = vadd.f32 %v505_v1, %v1520_v32  ;;  %v540_v3 = vpop.f32.mrb[34].mxu1  ;;  %v893_v5 = vpop.f32.mrb[35].mxu0 }
 0x13e   :  { %v655_v6 = vmax.f32 %v642_v0, 0.0  ;;  %v541_v7 = vadd.f32 %v540_v3, %v411_v20  ;;  %v914_v8 = vpop.f32.mrb[35].mxu1 }
 0x13f   :  { %661 = vst [vmem:[%s1593_s3 + $0x18] sm:$0xff] %v648_v2  ;;  %v636_v9 = vadd.f32 %v1529_v26, %v506_v25 }
 0x140   :  { %668 = vst [vmem:[%s1593_s3 + $0x50] sm:$0xff] %v655_v6  ;;  %v643_v10 = vadd.f32 %v1529_v26, %v541_v7  ;;  %v510_v12 = vpop.f32.mrb[36].mxu0 }
 0x141   :  { %v649_v13 = vmax.f32 %v636_v9, 0.0  ;;  %v511_v32 = vadd.f32 %v510_v12, %v1522_v39  ;;  %v545_v14 = vpop.f32.mrb[36].mxu1  ;;  %v896_v15 = vpop.f32.mrb[37].mxu0 }
 0x142   :  { %v656_v16 = vmax.f32 %v643_v10, 0.0  ;;  %v546_v17 = vadd.f32 %v545_v14, %v416_v30  ;;  %v917_v19 = vpop.f32.mrb[37].mxu1 }
 0x143   :  { %662 = vst [vmem:[%s1593_s3 + $0x20] sm:$0xff] %v649_v13  ;;  %v637_v20 = vadd.f32 %v1529_v26, %v511_v32 }
 0x144   :  { %669 = vst [vmem:[%s1593_s3 + $0x58] sm:$0xff] %v656_v16  ;;  %v644_v21 = vadd.f32 %v1529_v26, %v546_v17  ;;  %v515_v22 = vpop.f32.mrb[38].mxu0 }
 0x145   :  { %v650_v23 = vmax.f32 %v637_v20, 0.0  ;;  %v516_v39 = vadd.f32 %v515_v22, %v1524_v46  ;;  %v899_v24 = vpop.f32.mrb[39].mxu0 }
 0x146   :  { %v657_v27 = vmax.f32 %v644_v21, 0.0 }
 0x147   :  { %663 = vst [vmem:[%s1593_s3 + $0x28] sm:$0xff] %v650_v23  ;;  %v638_v28 = vadd.f32 %v1529_v26, %v516_v39 }
 0x148   :  { %670 = vst [vmem:[%s1593_s3 + $0x60] sm:$0xff] %v657_v27 }
 0x149   :  { %v651_v29 = vmax.f32 %v638_v28, 0.0 }
 0x14b   :  { %664 = vst [vmem:[%s1593_s3 + $0x30] sm:$0xff] %v651_v29 }

// kernel: qnetwork_cnn_forward.9
= control target key start
LH: loop header
LB: loop body
LE: loop exit
PB: predicated region body
PF: predicated region fallthrough
CT: control target
= control target key end

     0   :  { %s616_s1 = inlined_call_operand.vmem [shape: f32[512,128], index: 1, kind: input, shape index: {}]   ;;  %s617_s0 = inlined_call_operand.vmem [shape: f32[8,512], index: 0, kind: input, shape index: {}]   ;;  %s618_s2 = inlined_call_operand.vmem [shape: f32[1,128], index: 2, kind: input, shape index: {}]   ;;  %s619_s3 = inlined_call_operand.vmem [shape: f32[8,128], index: 3, kind: output, shape index: {}]  }
   0x1   :  { %v34_v0 = vld [vmem:[%s616_s1 + $0x80] sm:$0xff]  ;;  %v35_v1 = vld [vmem:[%s616_s1 + $0x88] sm:$0xff]  ;;  %v36_v11 = vld [vmem:[%s616_s1 + $0x90] sm:$0xff] }
   0x2   :  { %v66_v2 = vld [vmem:[%s616_s1 + $0x180] sm:$0xff]  ;;  %v322_v3 = vpack.c.bf16 %v35_v1, %v34_v0  ;;  %v67_v4 = vld [vmem:[%s616_s1 + $0x188] sm:$0xff]  ;;  %v37_v13 = vld [vmem:[%s616_s1 + $0x98] sm:$0xff] }
   0x3   :  { %v18_v5 = vld [vmem:[%s616_s1] sm:$0xff]  ;;  %v19_v6 = vld [vmem:[%s616_s1 + $0x8] sm:$0xff]  ;;  %v354_v7 = vpack.c.bf16 %v67_v4, %v66_v2  ;;  %v68_v14 = vld [vmem:[%s616_s1 + $0x190] sm:$0xff]  ;;  %v326_v16 = vpack.c.bf16 %v37_v13, %v36_v11 }
   0x4   :  { %v324_v8 = vpack.c.bf16 %v19_v6, %v18_v5  ;;  %v50_v9 = vld [vmem:[%s616_s1 + $0x100] sm:$0xff]  ;;  %v51_v10 = vld [vmem:[%s616_s1 + $0x108] sm:$0xff]  ;;  %323 = vmatprep.subr.bf16.mxu0 %v322_v3  ;;  %v69_v15 = vld [vmem:[%s616_s1 + $0x198] sm:$0xff] }
   0x5   :  { %v356_v12 = vpack.c.bf16 %v51_v10, %v50_v9  ;;  %355 = vmatprep.subr.bf16.mxu1 %v354_v7  ;;  %v358_v17 = vpack.c.bf16 %v69_v15, %v68_v14  ;;  %v20_v18 = vld [vmem:[%s616_s1 + $0x10] sm:$0xff]  ;;  %v21_v19 = vld [vmem:[%s616_s1 + $0x18] sm:$0xff]  ;;  %v38_v23 = vld [vmem:[%s616_s1 + $0xa0] sm:$0xff] }
   0x6   :  { %325 = vmatpush3.bf16.msra.mxu0 %v324_v8  ;;  %v52_v20 = vld [vmem:[%s616_s1 + $0x110] sm:$0xff]  ;;  %v328_v21 = vpack.c.bf16 %v21_v19, %v20_v18  ;;  %v53_v22 = vld [vmem:[%s616_s1 + $0x118] sm:$0xff]  ;;  %v39_v24 = vld [vmem:[%s616_s1 + $0xa8] sm:$0xff] }
   0x7   :  { %357 = vmatpush3.bf16.msra.mxu1 %v356_v12  ;;  %327 = vmatprep.subr.bf16.mxu0 %v326_v16  ;;  %v360_v25 = vpack.c.bf16 %v53_v22, %v52_v20  ;;  %v330_v26 = vpack.c.bf16 %v39_v24, %v38_v23  ;;  %v70_v27 = vld [vmem:[%s616_s1 + $0x1a0] sm:$0xff]  ;;  %v71_v28 = vld [vmem:[%s616_s1 + $0x1a8] sm:$0xff]  ;;  %v40_v35 = vld [vmem:[%s616_s1 + $0xb0] sm:$0xff] }
   0x8   :  { %359 = vmatprep.subr.bf16.mxu1 %v358_v17  ;;  %v22_v29 = vld [vmem:[%s616_s1 + $0x20] sm:$0xff]  ;;  %v362_v30 = vpack.c.bf16 %v71_v28, %v70_v27  ;;  %v23_v31 = vld [vmem:[%s616_s1 + $0x28] sm:$0xff]  ;;  %v41_v36 = vld [vmem:[%s616_s1 + $0xb8] sm:$0xff] }
   0x9   :  { %v54_v32 = vld [vmem:[%s616_s1 + $0x120] sm:$0xff]  ;;  %v55_v33 = vld [vmem:[%s616_s1 + $0x128] sm:$0xff]  ;;  %v332_v34 = vpack.c.bf16 %v23_v31, %v22_v29  ;;  %v72_v37 = vld [vmem:[%s616_s1 + $0x1b0] sm:$0xff]  ;;  %v334_v39 = vpack.c.bf16 %v41_v36, %v40_v35 }
   0xa   :  { %329 = vmatpush3.bf16.msra.mxu0 %v328_v21  ;;  %v364_v38 = vpack.c.bf16 %v55_v33, %v54_v32  ;;  %v73_v40 = vld [vmem:[%s616_s1 + $0x1b8] sm:$0xff]  ;;  %v24_v41 = vld [vmem:[%s616_s1 + $0x30] sm:$0xff]  ;;  %v42_v46 = vld [vmem:[%s616_s1 + $0xc0] sm:$0xff] }
   0xb   :  { %361 = vmatpush3.bf16.msra.mxu1 %v360_v25  ;;  %331 = vmatprep.subr.bf16.mxu0 %v330_v26  ;;  %v25_v42 = vld [vmem:[%s616_s1 + $0x38] sm:$0xff]  ;;  %v366_v43 = vpack.c.bf16 %v73_v40, %v72_v37  ;;  %v56_v44 = vld [vmem:[%s616_s1 + $0x130] sm:$0xff]  ;;  %v43_v47 = vld [vmem:[%s616_s1 + $0xc8] sm:$0xff] }
   0xc   :  { %363 = vmatprep.subr.bf16.mxu1 %v362_v30  ;;  %v57_v45 = vld [vmem:[%s616_s1 + $0x138] sm:$0xff]  ;;  %v74_v48 = vld [vmem:[%s616_s1 + $0x1c0] sm:$0xff]  ;;  %v75_v49 = vld [vmem:[%s616_s1 + $0x1c8] sm:$0xff]  ;;  %v336_v50 = vpack.c.bf16 %v25_v42, %v24_v41  ;;  %v338_v52 = vpack.c.bf16 %v43_v47, %v42_v46 }
   0xd   :  { %v368_v51 = vpack.c.bf16 %v57_v45, %v56_v44  ;;  %v26_v53 = vld [vmem:[%s616_s1 + $0x40] sm:$0xff]  ;;  %v27_v54 = vld [vmem:[%s616_s1 + $0x48] sm:$0xff]  ;;  %v370_v56 = vpack.c.bf16 %v75_v49, %v74_v48  ;;  %v44_v58 = vld [vmem:[%s616_s1 + $0xd0] sm:$0xff] }
   0xe   :  { %333 = vmatpush3.bf16.msra.mxu0 %v332_v34  ;;  %v58_v55 = vld [vmem:[%s616_s1 + $0x140] sm:$0xff]  ;;  %v59_v57 = vld [vmem:[%s616_s1 + $0x148] sm:$0xff]  ;;  %v45_v59 = vld [vmem:[%s616_s1 + $0xd8] sm:$0xff]  ;;  %v340_v62 = vpack.c.bf16 %v27_v54, %v26_v53 }
   0xf   :  { %365 = vmatpush3.bf16.msra.mxu1 %v364_v38  ;;  %335 = vmatprep.subr.bf16.mxu0 %v334_v39  ;;  %v76_v60 = vld [vmem:[%s616_s1 + $0x1d0] sm:$0xff]  ;;  %v77_v61 = vld [vmem:[%s616_s1 + $0x1d8] sm:$0xff]  ;;  %v372_v63 = vpack.c.bf16 %v59_v57, %v58_v55  ;;  %v342_v0 = vpack.c.bf16 %v45_v59, %v44_v58  ;;  %v46_v6 = vld [vmem:[%s616_s1 + $0xe0] sm:$0xff] }
  0x10   :  { %367 = vmatprep.subr.bf16.mxu1 %v366_v43  ;;  %v28_v1 = vld [vmem:[%s616_s1 + $0x50] sm:$0xff]  ;;  %v29_v2 = vld [vmem:[%s616_s1 + $0x58] sm:$0xff]  ;;  %v374_v4 = vpack.c.bf16 %v77_v61, %v76_v60  ;;  %v47_v7 = vld [vmem:[%s616_s1 + $0xe8] sm:$0xff] }
  0x11   :  { %v60_v3 = vld [vmem:[%s616_s1 + $0x150] sm:$0xff]  ;;  %v61_v5 = vld [vmem:[%s616_s1 + $0x158] sm:$0xff]  ;;  %v78_v8 = vld [vmem:[%s616_s1 + $0x1e0] sm:$0xff]  ;;  %v344_v10 = vpack.c.bf16 %v29_v2, %v28_v1  ;;  %v346_v14 = vpack.c.bf16 %v47_v7, %v46_v6 }
  0x12   :  { %337 = vmatpush3.bf16.msra.mxu0 %v336_v50  ;;  %v79_v9 = vld [vmem:[%s616_s1 + $0x1e8] sm:$0xff]  ;;  %v30_v11 = vld [vmem:[%s616_s1 + $0x60] sm:$0xff]  ;;  %v376_v13 = vpack.c.bf16 %v61_v5, %v60_v3  ;;  %v17_v17 = vld [vmem:[%s617_s0 + $0x18] sm:$0xff] }
  0x13   :  { %369 = vmatpush3.bf16.msra.mxu1 %v368_v51  ;;  %339 = vmatprep.subr.bf16.mxu0 %v338_v52  ;;  %v31_v12 = vld [vmem:[%s616_s1 + $0x68] sm:$0xff]  ;;  %v62_v15 = vld [vmem:[%s616_s1 + $0x160] sm:$0xff]  ;;  %v378_v18 = vpack.c.bf16 %v79_v9, %v78_v8  ;;  %v48_v20 = vld [vmem:[%s616_s1 + $0xf0] sm:$0xff] }
  0x14   :  { %371 = vmatprep.subr.bf16.mxu1 %v370_v56  ;;  %v15_v16 = vld [vmem:[%s617_s0 + $0x8] sm:$0xff]  ;;  %v49_v21 = vld [vmem:[%s616_s1 + $0xf8] sm:$0xff]  ;;  %v80_v22 = vld [vmem:[%s616_s1 + $0x1f0] sm:$0xff]  ;;  %216 = vmatprep.mubr.f32.mxu1 %v17_v17  ;;  %v348_v24 = vpack.c.bf16 %v31_v12, %v30_v11 }
  0x15   :  { %v63_v19 = vld [vmem:[%s616_s1 + $0x168] sm:$0xff]  ;;  %146 = vmatprep.mubr.f32.mxu0 %v15_v16  ;;  %v81_v23 = vld [vmem:[%s616_s1 + $0x1f8] sm:$0xff]  ;;  %v350_v26 = vpack.c.bf16 %v49_v21, %v48_v20  ;;  %v32_v27 = vld [vmem:[%s616_s1 + $0x70] sm:$0xff] }
  0x16   :  { %341 = vmatpush3.bf16.msra.mxu0 %v340_v62  ;;  %v380_v25 = vpack.c.bf16 %v63_v19, %v62_v15  ;;  %v33_v28 = vld [vmem:[%s616_s1 + $0x78] sm:$0xff]  ;;  %v382_v29 = vpack.c.bf16 %v81_v23, %v80_v22  ;;  %v64_v30 = vld [vmem:[%s616_s1 + $0x170] sm:$0xff]  ;;  %v14_v34 = vld [vmem:[%s617_s0] sm:$0xff] }
  0x17   :  { %373 = vmatpush3.bf16.msra.mxu1 %v372_v63  ;;  %343 = vmatprep.subr.bf16.mxu0 %v342_v0  ;;  %v65_v31 = vld [vmem:[%s616_s1 + $0x178] sm:$0xff]  ;;  %v352_v32 = vpack.c.bf16 %v33_v28, %v32_v27  ;;  %v16_v35 = vld [vmem:[%s617_s0 + $0x10] sm:$0xff]  ;;  %v251_v42 = vld [vmem:[%s618_s2] ss:$0 sm:$0xff] }
  0x18   :  { %375 = vmatprep.subr.bf16.mxu1 %v374_v4  ;;  %v384_v33 = vpack.c.bf16 %v65_v31, %v64_v30 }
  0x1a   :  { %345 = vmatpush3.bf16.msra.mxu0 %v344_v10 }
  0x1b   :  { %377 = vmatpush3.bf16.msra.mxu1 %v376_v13  ;;  %347 = vmatprep.subr.bf16.mxu0 %v346_v14 }
  0x1c   :  { %379 = vmatprep.subr.bf16.mxu1 %v378_v18 }
  0x1e   :  { %349 = vmatpush3.bf16.msra.mxu0 %v348_v24 }
  0x1f   :  { %381 = vmatpush3.bf16.msra.mxu1 %v380_v25  ;;  %351 = vmatprep.subr.bf16.mxu0 %v350_v26 }
  0x20   :  { %383 = vmatprep.subr.bf16.mxu1 %v382_v29 }
  0x22   :  { %353 = vmatpush3.bf16.msra.mxu0 %v352_v32 }
  0x23   :  { %385 = vmatpush3.bf16.msra.mxu1 %v384_v33 }
  0x25   :  { %147 = vmatmul.mubr.f32.vlgmr.msra.gmra.mrb[0].mxu0 %v14_v34 }
  0x26   :  { %217 = vmatmul.mubr.f32.vlgmr.msra.gmra.mrb[0].mxu1 %v16_v35 }
  0xf8   :  { %v284_v36 = vpop.f32.mrb[0].mxu0 }
  0xf9   :  { %v319_v37 = vpop.f32.mrb[0].mxu1  ;;  %v285_v38 = vpop.f32.mrb[1].mxu0 }
  0xfa   :  { %v286_v39 = vadd.f32 %v285_v38, %v284_v36  ;;  %v320_v40 = vpop.f32.mrb[1].mxu1 }
  0xfb   :  { %v321_v41 = vadd.f32 %v320_v40, %v319_v37 }
  0xfd   :  { %v219_v43 = vadd.f32 %v321_v41, %v286_v39 }
  0xff   :  { %v245_v44 = vadd.f32 %v251_v42, %v219_v43 }
 0x101   :  { %246 = vst [vmem:[%s619_s3] sm:$0xff] %v245_v44 }

// kernel: qnetwork_cnn_forward.8
= control target key start
LH: loop header
LB: loop body
LE: loop exit
PB: predicated region body
PF: predicated region fallthrough
CT: control target
= control target key end

     0   :  { %s4733_s12 = smov 0   ;;  %s4735_s13 = smov 0   ;;  %s7282_s0 = inlined_call_operand.vmem [shape: f32[8,3200], index: 0, kind: input, shape index: {}]   ;;  %s7283_s1 = inlined_call_operand.vmem [shape: f32[3200,512], index: 1, kind: input, shape index: {}]   ;;  %s7284_s2 = inlined_call_operand.vmem [shape: f32[1,512], index: 2, kind: input, shape index: {}]   ;;  %s7285_s3 = inlined_call_operand.vmem [shape: f32[8,512], index: 3, kind: output, shape index: {}]  }
   0x1   :  { %s4737_s14 = smov 0   ;;  %s4739_s15 = smov 0  }
   0x2   :  { %s4741_s16 = smov 0  }
   0x3 LB: > { %s28_s17 = sadd.s32 1, %s4706_s15  ;;  %p76_p1 = scmp.ne.s32.totalorder %s4698_s13, %s4694_s12  ;;  %s4710_s16 = sphi %s4741_s16, %s13_s16   ;;  %s4706_s15 = sphi %s4739_s15, %s7289_s15   ;;  %s4702_s14 = sphi %s4737_s14, %s7288_s14   ;;  %s4698_s13 = sphi %s4735_s13, %s7287_s13   ;;  %s4694_s12 = sphi %s4733_s12, %s7286_s12  }
   0x4   : > { %p30_p0 = scmp.ge.s32.totalorder %s28_s17, 2  ;;  %p77_p2 = scmp.eq.s32.totalorder %s4710_s16, 0 }
   0x5   : > { %s69_s19 = sadd.s32 1, %s4698_s13  ;;  %p3795_p5 = scmp.ge.s32.totalorder %s4710_s16, 2 }
   0x6   : > { %s7291_s17 = smov (%p30_p0, %s28_s17), 0  ;;  %p78_p3 = por %p77_p2, %p76_p1 }
   0x7   : > { %s65_s18 = ssub.s32 %s4706_s15, %s7291_s17  ;;  %169 = sbr.rel (%p3795_p5) target bundleno = 418 (0x1a2), region = 20 }
   0x8   : > { %p67_p4 = scmp.eq.s32.totalorder %s65_s18, 0 }
   0xa   : > { %s4768_s20 = scalar_select %p67_p4, %s4698_s13, %s69_s19  }
   0xe   : > { %172 = sbr.rel (!%p78_p3) target bundleno = 418 (0x1a2), region = 24  ;;  %s174_s21 = sand.u32 (%p78_p3), 1, %s4698_s13  }
   0xf   : > { %s3804_s22 = sshll.u32 (%p78_p3), %s4706_s15, 4  ;;  %s4629_s23 = smul.u32 (%p78_p3), 6400, %s174_s21 }
  0x10   : > { %s4776_s26 = scalar_lea.vmem (%p78_p3), %s7283_s1, %s3804_s22 }
  0x11   : > { %v195_v0 = vld [vmem:[%s4776_s26] sm:$0xff] (%p78_p3)  ;;  %v197_v1 = vld [vmem:[%s4776_s26 + $0x8] sm:$0xff] (%p78_p3)  ;;  %s4784_s27 = scalar_lea.vmem (%p78_p3), [#allocation2], %s4629_s23 }
  0x12   : > { %v199_v2 = vld [vmem:[%s4776_s26 + $0x20] sm:$0xff] (%p78_p3)  ;;  %v201_v3 = vld [vmem:[%s4776_s26 + $0x28] sm:$0xff] (%p78_p3)  ;;  %196 = vst [vmem:[%s4784_s27] sm:$0xff] (%p78_p3), %v195_v0  ;;  %198 = vst [vmem:[%s4784_s27 + $0x8] sm:$0xff] (%p78_p3), %v197_v1 }
  0x13   : > { %v203_v4 = vld [vmem:[%s4776_s26 + $0x40] sm:$0xff] (%p78_p3)  ;;  %v205_v5 = vld [vmem:[%s4776_s26 + $0x48] sm:$0xff] (%p78_p3)  ;;  %200 = vst [vmem:[%s4784_s27 + $0x10] sm:$0xff] (%p78_p3), %v199_v2  ;;  %202 = vst [vmem:[%s4784_s27 + $0x18] sm:$0xff] (%p78_p3), %v201_v3 }
  0x14   : > { %204 = vst [vmem:[%s4784_s27 + $0x20] sm:$0xff] (%p78_p3), %v203_v4  ;;  %206 = vst [vmem:[%s4784_s27 + $0x28] sm:$0xff] (%p78_p3), %v205_v5  ;;  %v207_v6 = vld [vmem:[%s4776_s26 + $0x60] sm:$0xff] (%p78_p3)  ;;  %v209_v7 = vld [vmem:[%s4776_s26 + $0x68] sm:$0xff] (%p78_p3) }
  0x15   : > { %v211_v8 = vld [vmem:[%s4776_s26 + $0x80] sm:$0xff]  ;;  %208 = vst [vmem:[%s4784_s27 + $0x30] sm:$0xff] %v207_v6  ;;  %210 = vst [vmem:[%s4784_s27 + $0x38] sm:$0xff] %v209_v7  ;;  %v213_v9 = vld [vmem:[%s4776_s26 + $0x88] sm:$0xff] }
  0x16   : > { %212 = vst [vmem:[%s4784_s27 + $0x40] sm:$0xff] %v211_v8  ;;  %v215_v10 = vld [vmem:[%s4776_s26 + $0xa0] sm:$0xff]  ;;  %v217_v11 = vld [vmem:[%s4776_s26 + $0xa8] sm:$0xff]  ;;  %214 = vst [vmem:[%s4784_s27 + $0x48] sm:$0xff] %v213_v9 }
  0x17   : > { %216 = vst [vmem:[%s4784_s27 + $0x50] sm:$0xff] %v215_v10  ;;  %218 = vst [vmem:[%s4784_s27 + $0x58] sm:$0xff] %v217_v11  ;;  %v219_v12 = vld [vmem:[%s4776_s26 + $0xc0] sm:$0xff]  ;;  %v221_v13 = vld [vmem:[%s4776_s26 + $0xc8] sm:$0xff] }
  0x18   : > { %v223_v14 = vld [vmem:[%s4776_s26 + $0xe0] sm:$0xff]  ;;  %220 = vst [vmem:[%s4784_s27 + $0x60] sm:$0xff] %v219_v12  ;;  %222 = vst [vmem:[%s4784_s27 + $0x68] sm:$0xff] %v221_v13  ;;  %v225_v15 = vld [vmem:[%s4776_s26 + $0xe8] sm:$0xff] }
  0x19   : > { %224 = vst [vmem:[%s4784_s27 + $0x70] sm:$0xff] %v223_v14  ;;  %v227_v16 = vld [vmem:[%s4776_s26 + $0x100] sm:$0xff]  ;;  %v229_v17 = vld [vmem:[%s4776_s26 + $0x108] sm:$0xff]  ;;  %226 = vst [vmem:[%s4784_s27 + $0x78] sm:$0xff] %v225_v15 }
  0x1a   : > { %228 = vst [vmem:[%s4784_s27 + $0x80] sm:$0xff] %v227_v16  ;;  %230 = vst [vmem:[%s4784_s27 + $0x88] sm:$0xff] %v229_v17  ;;  %v231_v18 = vld [vmem:[%s4776_s26 + $0x120] sm:$0xff]  ;;  %v233_v19 = vld [vmem:[%s4776_s26 + $0x128] sm:$0xff] }
  0x1b   : > { %v235_v20 = vld [vmem:[%s4776_s26 + $0x140] sm:$0xff]  ;;  %232 = vst [vmem:[%s4784_s27 + $0x90] sm:$0xff] %v231_v18  ;;  %234 = vst [vmem:[%s4784_s27 + $0x98] sm:$0xff] %v233_v19  ;;  %v237_v21 = vld [vmem:[%s4776_s26 + $0x148] sm:$0xff] }
  0x1c   : > { %236 = vst [vmem:[%s4784_s27 + $0xa0] sm:$0xff] %v235_v20  ;;  %v239_v22 = vld [vmem:[%s4776_s26 + $0x160] sm:$0xff]  ;;  %v241_v23 = vld [vmem:[%s4776_s26 + $0x168] sm:$0xff]  ;;  %238 = vst [vmem:[%s4784_s27 + $0xa8] sm:$0xff] %v237_v21 }
  0x1d   : > { %240 = vst [vmem:[%s4784_s27 + $0xb0] sm:$0xff] %v239_v22  ;;  %242 = vst [vmem:[%s4784_s27 + $0xb8] sm:$0xff] %v241_v23  ;;  %v243_v24 = vld [vmem:[%s4776_s26 + $0x180] sm:$0xff]  ;;  %v245_v25 = vld [vmem:[%s4776_s26 + $0x188] sm:$0xff] }
  0x1e   : > { %v247_v26 = vld [vmem:[%s4776_s26 + $0x1a0] sm:$0xff]  ;;  %244 = vst [vmem:[%s4784_s27 + $0xc0] sm:$0xff] %v243_v24  ;;  %246 = vst [vmem:[%s4784_s27 + $0xc8] sm:$0xff] %v245_v25  ;;  %v249_v27 = vld [vmem:[%s4776_s26 + $0x1a8] sm:$0xff] }
  0x1f   : > { %248 = vst [vmem:[%s4784_s27 + $0xd0] sm:$0xff] %v247_v26  ;;  %v251_v28 = vld [vmem:[%s4776_s26 + $0x1c0] sm:$0xff]  ;;  %v253_v29 = vld [vmem:[%s4776_s26 + $0x1c8] sm:$0xff]  ;;  %250 = vst [vmem:[%s4784_s27 + $0xd8] sm:$0xff] %v249_v27 }
  0x20   : > { %252 = vst [vmem:[%s4784_s27 + $0xe0] sm:$0xff] %v251_v28  ;;  %254 = vst [vmem:[%s4784_s27 + $0xe8] sm:$0xff] %v253_v29  ;;  %v255_v30 = vld [vmem:[%s4776_s26 + $0x1e0] sm:$0xff]  ;;  %v257_v31 = vld [vmem:[%s4776_s26 + $0x1e8] sm:$0xff] }
  0x21   : > { %v259_v32 = vld [vmem:[%s4776_s26 + $0x200] sm:$0xff]  ;;  %256 = vst [vmem:[%s4784_s27 + $0xf0] sm:$0xff] %v255_v30  ;;  %258 = vst [vmem:[%s4784_s27 + $0xf8] sm:$0xff] %v257_v31  ;;  %v261_v33 = vld [vmem:[%s4776_s26 + $0x208] sm:$0xff] }
  0x22   : > { %260 = vst [vmem:[%s4784_s27 + $0x100] sm:$0xff] %v259_v32  ;;  %v263_v34 = vld [vmem:[%s4776_s26 + $0x220] sm:$0xff]  ;;  %v265_v35 = vld [vmem:[%s4776_s26 + $0x228] sm:$0xff]  ;;  %262 = vst [vmem:[%s4784_s27 + $0x108] sm:$0xff] %v261_v33 }
  0x23   : > { %264 = vst [vmem:[%s4784_s27 + $0x110] sm:$0xff] %v263_v34  ;;  %266 = vst [vmem:[%s4784_s27 + $0x118] sm:$0xff] %v265_v35  ;;  %v267_v36 = vld [vmem:[%s4776_s26 + $0x240] sm:$0xff]  ;;  %v269_v37 = vld [vmem:[%s4776_s26 + $0x248] sm:$0xff] }
  0x24   : > { %v271_v38 = vld [vmem:[%s4776_s26 + $0x260] sm:$0xff]  ;;  %268 = vst [vmem:[%s4784_s27 + $0x120] sm:$0xff] %v267_v36  ;;  %270 = vst [vmem:[%s4784_s27 + $0x128] sm:$0xff] %v269_v37  ;;  %v273_v39 = vld [vmem:[%s4776_s26 + $0x268] sm:$0xff] }
  0x25   : > { %272 = vst [vmem:[%s4784_s27 + $0x130] sm:$0xff] %v271_v38  ;;  %v275_v40 = vld [vmem:[%s4776_s26 + $0x280] sm:$0xff]  ;;  %v277_v41 = vld [vmem:[%s4776_s26 + $0x288] sm:$0xff]  ;;  %274 = vst [vmem:[%s4784_s27 + $0x138] sm:$0xff] %v273_v39 }
  0x26   : > { %276 = vst [vmem:[%s4784_s27 + $0x140] sm:$0xff] %v275_v40  ;;  %278 = vst [vmem:[%s4784_s27 + $0x148] sm:$0xff] %v277_v41  ;;  %v279_v42 = vld [vmem:[%s4776_s26 + $0x2a0] sm:$0xff]  ;;  %v281_v43 = vld [vmem:[%s4776_s26 + $0x2a8] sm:$0xff] }
  0x27   : > { %v283_v44 = vld [vmem:[%s4776_s26 + $0x2c0] sm:$0xff]  ;;  %280 = vst [vmem:[%s4784_s27 + $0x150] sm:$0xff] %v279_v42  ;;  %282 = vst [vmem:[%s4784_s27 + $0x158] sm:$0xff] %v281_v43  ;;  %v285_v45 = vld [vmem:[%s4776_s26 + $0x2c8] sm:$0xff] }
  0x28   : > { %284 = vst [vmem:[%s4784_s27 + $0x160] sm:$0xff] %v283_v44  ;;  %v287_v46 = vld [vmem:[%s4776_s26 + $0x2e0] sm:$0xff]  ;;  %v289_v47 = vld [vmem:[%s4776_s26 + $0x2e8] sm:$0xff]  ;;  %286 = vst [vmem:[%s4784_s27 + $0x168] sm:$0xff] %v285_v45 }
  0x29   : > { %288 = vst [vmem:[%s4784_s27 + $0x170] sm:$0xff] %v287_v46  ;;  %290 = vst [vmem:[%s4784_s27 + $0x178] sm:$0xff] %v289_v47  ;;  %v291_v48 = vld [vmem:[%s4776_s26 + $0x300] sm:$0xff]  ;;  %v293_v49 = vld [vmem:[%s4776_s26 + $0x308] sm:$0xff] }
  0x2a   : > { %v295_v50 = vld [vmem:[%s4776_s26 + $0x320] sm:$0xff]  ;;  %292 = vst [vmem:[%s4784_s27 + $0x180] sm:$0xff] %v291_v48  ;;  %294 = vst [vmem:[%s4784_s27 + $0x188] sm:$0xff] %v293_v49  ;;  %v297_v51 = vld [vmem:[%s4776_s26 + $0x328] sm:$0xff] }
  0x2b   : > { %296 = vst [vmem:[%s4784_s27 + $0x190] sm:$0xff] %v295_v50  ;;  %v299_v52 = vld [vmem:[%s4776_s26 + $0x340] sm:$0xff]  ;;  %v301_v53 = vld [vmem:[%s4776_s26 + $0x348] sm:$0xff]  ;;  %298 = vst [vmem:[%s4784_s27 + $0x198] sm:$0xff] %v297_v51 }
  0x2c   : > { %300 = vst [vmem:[%s4784_s27 + $0x1a0] sm:$0xff] %v299_v52  ;;  %302 = vst [vmem:[%s4784_s27 + $0x1a8] sm:$0xff] %v301_v53  ;;  %v303_v54 = vld [vmem:[%s4776_s26 + $0x360] sm:$0xff]  ;;  %v305_v55 = vld [vmem:[%s4776_s26 + $0x368] sm:$0xff] }
  0x2d   : > { %v307_v56 = vld [vmem:[%s4776_s26 + $0x380] sm:$0xff]  ;;  %304 = vst [vmem:[%s4784_s27 + $0x1b0] sm:$0xff] %v303_v54  ;;  %306 = vst [vmem:[%s4784_s27 + $0x1b8] sm:$0xff] %v305_v55  ;;  %v309_v57 = vld [vmem:[%s4776_s26 + $0x388] sm:$0xff] }
  0x2e   : > { %308 = vst [vmem:[%s4784_s27 + $0x1c0] sm:$0xff] %v307_v56  ;;  %v311_v58 = vld [vmem:[%s4776_s26 + $0x3a0] sm:$0xff]  ;;  %v313_v59 = vld [vmem:[%s4776_s26 + $0x3a8] sm:$0xff]  ;;  %310 = vst [vmem:[%s4784_s27 + $0x1c8] sm:$0xff] %v309_v57 }
  0x2f   : > { %312 = vst [vmem:[%s4784_s27 + $0x1d0] sm:$0xff] %v311_v58  ;;  %314 = vst [vmem:[%s4784_s27 + $0x1d8] sm:$0xff] %v313_v59  ;;  %v315_v60 = vld [vmem:[%s4776_s26 + $0x3c0] sm:$0xff]  ;;  %v317_v61 = vld [vmem:[%s4776_s26 + $0x3c8] sm:$0xff] }
  0x30   : > { %v319_v62 = vld [vmem:[%s4776_s26 + $0x3e0] sm:$0xff]  ;;  %316 = vst [vmem:[%s4784_s27 + $0x1e0] sm:$0xff] %v315_v60  ;;  %318 = vst [vmem:[%s4784_s27 + $0x1e8] sm:$0xff] %v317_v61  ;;  %v321_v63 = vld [vmem:[%s4776_s26 + $0x3e8] sm:$0xff] }
  0x31   : > { %320 = vst [vmem:[%s4784_s27 + $0x1f0] sm:$0xff] %v319_v62  ;;  %v323_v0 = vld [vmem:[%s4776_s26 + $0x400] sm:$0xff]  ;;  %v325_v1 = vld [vmem:[%s4776_s26 + $0x408] sm:$0xff]  ;;  %322 = vst [vmem:[%s4784_s27 + $0x1f8] sm:$0xff] %v321_v63 }
  0x32   : > { %324 = vst [vmem:[%s4784_s27 + $0x200] sm:$0xff] %v323_v0  ;;  %326 = vst [vmem:[%s4784_s27 + $0x208] sm:$0xff] %v325_v1  ;;  %v327_v2 = vld [vmem:[%s4776_s26 + $0x420] sm:$0xff]  ;;  %v329_v3 = vld [vmem:[%s4776_s26 + $0x428] sm:$0xff] }
  0x33   : > { %v331_v4 = vld [vmem:[%s4776_s26 + $0x440] sm:$0xff]  ;;  %328 = vst [vmem:[%s4784_s27 + $0x210] sm:$0xff] %v327_v2  ;;  %330 = vst [vmem:[%s4784_s27 + $0x218] sm:$0xff] %v329_v3  ;;  %v333_v5 = vld [vmem:[%s4776_s26 + $0x448] sm:$0xff] }
  0x34   : > { %332 = vst [vmem:[%s4784_s27 + $0x220] sm:$0xff] %v331_v4  ;;  %v335_v6 = vld [vmem:[%s4776_s26 + $0x460] sm:$0xff]  ;;  %v337_v7 = vld [vmem:[%s4776_s26 + $0x468] sm:$0xff]  ;;  %334 = vst [vmem:[%s4784_s27 + $0x228] sm:$0xff] %v333_v5 }
  0x35   : > { %336 = vst [vmem:[%s4784_s27 + $0x230] sm:$0xff] %v335_v6  ;;  %338 = vst [vmem:[%s4784_s27 + $0x238] sm:$0xff] %v337_v7  ;;  %v339_v8 = vld [vmem:[%s4776_s26 + $0x480] sm:$0xff]  ;;  %v341_v9 = vld [vmem:[%s4776_s26 + $0x488] sm:$0xff] }
  0x36   : > { %v343_v10 = vld [vmem:[%s4776_s26 + $0x4a0] sm:$0xff]  ;;  %340 = vst [vmem:[%s4784_s27 + $0x240] sm:$0xff] %v339_v8  ;;  %342 = vst [vmem:[%s4784_s27 + $0x248] sm:$0xff] %v341_v9  ;;  %v345_v11 = vld [vmem:[%s4776_s26 + $0x4a8] sm:$0xff] }
  0x37   : > { %344 = vst [vmem:[%s4784_s27 + $0x250] sm:$0xff] %v343_v10  ;;  %v347_v12 = vld [vmem:[%s4776_s26 + $0x4c0] sm:$0xff]  ;;  %v349_v13 = vld [vmem:[%s4776_s26 + $0x4c8] sm:$0xff]  ;;  %346 = vst [vmem:[%s4784_s27 + $0x258] sm:$0xff] %v345_v11 }
  0x38   : > { %348 = vst [vmem:[%s4784_s27 + $0x260] sm:$0xff] %v347_v12  ;;  %350 = vst [vmem:[%s4784_s27 + $0x268] sm:$0xff] %v349_v13  ;;  %v351_v14 = vld [vmem:[%s4776_s26 + $0x4e0] sm:$0xff]  ;;  %v353_v15 = vld [vmem:[%s4776_s26 + $0x4e8] sm:$0xff] }
  0x39   : > { %v355_v16 = vld [vmem:[%s4776_s26 + $0x500] sm:$0xff]  ;;  %352 = vst [vmem:[%s4784_s27 + $0x270] sm:$0xff] %v351_v14  ;;  %354 = vst [vmem:[%s4784_s27 + $0x278] sm:$0xff] %v353_v15  ;;  %v357_v17 = vld [vmem:[%s4776_s26 + $0x508] sm:$0xff] }
  0x3a   : > { %356 = vst [vmem:[%s4784_s27 + $0x280] sm:$0xff] %v355_v16  ;;  %v359_v18 = vld [vmem:[%s4776_s26 + $0x520] sm:$0xff]  ;;  %v361_v19 = vld [vmem:[%s4776_s26 + $0x528] sm:$0xff]  ;;  %358 = vst [vmem:[%s4784_s27 + $0x288] sm:$0xff] %v357_v17 }
  0x3b   : > { %360 = vst [vmem:[%s4784_s27 + $0x290] sm:$0xff] %v359_v18  ;;  %362 = vst [vmem:[%s4784_s27 + $0x298] sm:$0xff] %v361_v19  ;;  %v363_v20 = vld [vmem:[%s4776_s26 + $0x540] sm:$0xff]  ;;  %v365_v21 = vld [vmem:[%s4776_s26 + $0x548] sm:$0xff] }
  0x3c   : > { %v367_v22 = vld [vmem:[%s4776_s26 + $0x560] sm:$0xff]  ;;  %364 = vst [vmem:[%s4784_s27 + $0x2a0] sm:$0xff] %v363_v20  ;;  %366 = vst [vmem:[%s4784_s27 + $0x2a8] sm:$0xff] %v365_v21  ;;  %v369_v23 = vld [vmem:[%s4776_s26 + $0x568] sm:$0xff] }
  0x3d   : > { %368 = vst [vmem:[%s4784_s27 + $0x2b0] sm:$0xff] %v367_v22  ;;  %v371_v24 = vld [vmem:[%s4776_s26 + $0x580] sm:$0xff]  ;;  %v373_v25 = vld [vmem:[%s4776_s26 + $0x588] sm:$0xff]  ;;  %370 = vst [vmem:[%s4784_s27 + $0x2b8] sm:$0xff] %v369_v23 }
  0x3e   : > { %372 = vst [vmem:[%s4784_s27 + $0x2c0] sm:$0xff] %v371_v24  ;;  %374 = vst [vmem:[%s4784_s27 + $0x2c8] sm:$0xff] %v373_v25  ;;  %v375_v26 = vld [vmem:[%s4776_s26 + $0x5a0] sm:$0xff]  ;;  %v377_v27 = vld [vmem:[%s4776_s26 + $0x5a8] sm:$0xff] }
  0x3f   : > { %v379_v28 = vld [vmem:[%s4776_s26 + $0x5c0] sm:$0xff]  ;;  %376 = vst [vmem:[%s4784_s27 + $0x2d0] sm:$0xff] %v375_v26  ;;  %378 = vst [vmem:[%s4784_s27 + $0x2d8] sm:$0xff] %v377_v27  ;;  %v381_v29 = vld [vmem:[%s4776_s26 + $0x5c8] sm:$0xff] }
  0x40   : > { %380 = vst [vmem:[%s4784_s27 + $0x2e0] sm:$0xff] %v379_v28  ;;  %v383_v30 = vld [vmem:[%s4776_s26 + $0x5e0] sm:$0xff]  ;;  %v385_v31 = vld [vmem:[%s4776_s26 + $0x5e8] sm:$0xff]  ;;  %382 = vst [vmem:[%s4784_s27 + $0x2e8] sm:$0xff] %v381_v29 }
  0x41   : > { %384 = vst [vmem:[%s4784_s27 + $0x2f0] sm:$0xff] %v383_v30  ;;  %386 = vst [vmem:[%s4784_s27 + $0x2f8] sm:$0xff] %v385_v31  ;;  %v387_v32 = vld [vmem:[%s4776_s26 + $0x600] sm:$0xff]  ;;  %v389_v33 = vld [vmem:[%s4776_s26 + $0x608] sm:$0xff] }
  0x42   : > { %v391_v34 = vld [vmem:[%s4776_s26 + $0x620] sm:$0xff]  ;;  %388 = vst [vmem:[%s4784_s27 + $0x300] sm:$0xff] %v387_v32  ;;  %390 = vst [vmem:[%s4784_s27 + $0x308] sm:$0xff] %v389_v33  ;;  %v393_v35 = vld [vmem:[%s4776_s26 + $0x628] sm:$0xff] }
  0x43   : > { %392 = vst [vmem:[%s4784_s27 + $0x310] sm:$0xff] %v391_v34  ;;  %v395_v36 = vld [vmem:[%s4776_s26 + $0x640] sm:$0xff]  ;;  %v397_v37 = vld [vmem:[%s4776_s26 + $0x648] sm:$0xff]  ;;  %394 = vst [vmem:[%s4784_s27 + $0x318] sm:$0xff] %v393_v35 }
  0x44   : > { %396 = vst [vmem:[%s4784_s27 + $0x320] sm:$0xff] %v395_v36  ;;  %398 = vst [vmem:[%s4784_s27 + $0x328] sm:$0xff] %v397_v37  ;;  %v399_v38 = vld [vmem:[%s4776_s26 + $0x660] sm:$0xff]  ;;  %v401_v39 = vld [vmem:[%s4776_s26 + $0x668] sm:$0xff] }
  0x45   : > { %v403_v40 = vld [vmem:[%s4776_s26 + $0x680] sm:$0xff]  ;;  %400 = vst [vmem:[%s4784_s27 + $0x330] sm:$0xff] %v399_v38  ;;  %402 = vst [vmem:[%s4784_s27 + $0x338] sm:$0xff] %v401_v39  ;;  %v405_v41 = vld [vmem:[%s4776_s26 + $0x688] sm:$0xff] }
  0x46   : > { %404 = vst [vmem:[%s4784_s27 + $0x340] sm:$0xff] %v403_v40  ;;  %v407_v42 = vld [vmem:[%s4776_s26 + $0x6a0] sm:$0xff]  ;;  %v409_v43 = vld [vmem:[%s4776_s26 + $0x6a8] sm:$0xff]  ;;  %406 = vst [vmem:[%s4784_s27 + $0x348] sm:$0xff] %v405_v41 }
  0x47   : > { %408 = vst [vmem:[%s4784_s27 + $0x350] sm:$0xff] %v407_v42  ;;  %410 = vst [vmem:[%s4784_s27 + $0x358] sm:$0xff] %v409_v43  ;;  %v411_v44 = vld [vmem:[%s4776_s26 + $0x6c0] sm:$0xff]  ;;  %v413_v45 = vld [vmem:[%s4776_s26 + $0x6c8] sm:$0xff] }
  0x48   : > { %v415_v46 = vld [vmem:[%s4776_s26 + $0x6e0] sm:$0xff]  ;;  %412 = vst [vmem:[%s4784_s27 + $0x360] sm:$0xff] %v411_v44  ;;  %414 = vst [vmem:[%s4784_s27 + $0x368] sm:$0xff] %v413_v45  ;;  %v417_v47 = vld [vmem:[%s4776_s26 + $0x6e8] sm:$0xff] }
  0x49   : > { %416 = vst [vmem:[%s4784_s27 + $0x370] sm:$0xff] %v415_v46  ;;  %v419_v48 = vld [vmem:[%s4776_s26 + $0x700] sm:$0xff]  ;;  %v421_v49 = vld [vmem:[%s4776_s26 + $0x708] sm:$0xff]  ;;  %418 = vst [vmem:[%s4784_s27 + $0x378] sm:$0xff] %v417_v47 }
  0x4a   : > { %420 = vst [vmem:[%s4784_s27 + $0x380] sm:$0xff] %v419_v48  ;;  %422 = vst [vmem:[%s4784_s27 + $0x388] sm:$0xff] %v421_v49  ;;  %v423_v50 = vld [vmem:[%s4776_s26 + $0x720] sm:$0xff]  ;;  %v425_v51 = vld [vmem:[%s4776_s26 + $0x728] sm:$0xff] }
  0x4b   : > { %v427_v52 = vld [vmem:[%s4776_s26 + $0x740] sm:$0xff]  ;;  %424 = vst [vmem:[%s4784_s27 + $0x390] sm:$0xff] %v423_v50  ;;  %426 = vst [vmem:[%s4784_s27 + $0x398] sm:$0xff] %v425_v51  ;;  %v429_v53 = vld [vmem:[%s4776_s26 + $0x748] sm:$0xff] }
  0x4c   : > { %428 = vst [vmem:[%s4784_s27 + $0x3a0] sm:$0xff] %v427_v52  ;;  %v431_v54 = vld [vmem:[%s4776_s26 + $0x760] sm:$0xff]  ;;  %v433_v55 = vld [vmem:[%s4776_s26 + $0x768] sm:$0xff]  ;;  %430 = vst [vmem:[%s4784_s27 + $0x3a8] sm:$0xff] %v429_v53 }
  0x4d   : > { %432 = vst [vmem:[%s4784_s27 + $0x3b0] sm:$0xff] %v431_v54  ;;  %434 = vst [vmem:[%s4784_s27 + $0x3b8] sm:$0xff] %v433_v55  ;;  %v435_v56 = vld [vmem:[%s4776_s26 + $0x780] sm:$0xff]  ;;  %v437_v57 = vld [vmem:[%s4776_s26 + $0x788] sm:$0xff] }
  0x4e   : > { %v439_v58 = vld [vmem:[%s4776_s26 + $0x7a0] sm:$0xff]  ;;  %436 = vst [vmem:[%s4784_s27 + $0x3c0] sm:$0xff] %v435_v56  ;;  %438 = vst [vmem:[%s4784_s27 + $0x3c8] sm:$0xff] %v437_v57  ;;  %v441_v59 = vld [vmem:[%s4776_s26 + $0x7a8] sm:$0xff] }
  0x4f   : > { %440 = vst [vmem:[%s4784_s27 + $0x3d0] sm:$0xff] %v439_v58  ;;  %v443_v60 = vld [vmem:[%s4776_s26 + $0x7c0] sm:$0xff]  ;;  %v445_v61 = vld [vmem:[%s4776_s26 + $0x7c8] sm:$0xff]  ;;  %442 = vst [vmem:[%s4784_s27 + $0x3d8] sm:$0xff] %v441_v59 }
  0x50   : > { %444 = vst [vmem:[%s4784_s27 + $0x3e0] sm:$0xff] %v443_v60  ;;  %446 = vst [vmem:[%s4784_s27 + $0x3e8] sm:$0xff] %v445_v61  ;;  %v447_v62 = vld [vmem:[%s4776_s26 + $0x7e0] sm:$0xff]  ;;  %v449_v63 = vld [vmem:[%s4776_s26 + $0x7e8] sm:$0xff] }
  0x51   : > { %v451_v0 = vld [vmem:[%s4776_s26 + $0x800] sm:$0xff]  ;;  %448 = vst [vmem:[%s4784_s27 + $0x3f0] sm:$0xff] %v447_v62  ;;  %450 = vst [vmem:[%s4784_s27 + $0x3f8] sm:$0xff] %v449_v63  ;;  %v453_v1 = vld [vmem:[%s4776_s26 + $0x808] sm:$0xff] }
  0x52   : > { %452 = vst [vmem:[%s4784_s27 + $0x400] sm:$0xff] %v451_v0  ;;  %v455_v2 = vld [vmem:[%s4776_s26 + $0x820] sm:$0xff]  ;;  %v457_v3 = vld [vmem:[%s4776_s26 + $0x828] sm:$0xff]  ;;  %454 = vst [vmem:[%s4784_s27 + $0x408] sm:$0xff] %v453_v1 }
  0x53   : > { %456 = vst [vmem:[%s4784_s27 + $0x410] sm:$0xff] %v455_v2  ;;  %458 = vst [vmem:[%s4784_s27 + $0x418] sm:$0xff] %v457_v3  ;;  %v459_v4 = vld [vmem:[%s4776_s26 + $0x840] sm:$0xff]  ;;  %v461_v5 = vld [vmem:[%s4776_s26 + $0x848] sm:$0xff] }
  0x54   : > { %v463_v6 = vld [vmem:[%s4776_s26 + $0x860] sm:$0xff]  ;;  %460 = vst [vmem:[%s4784_s27 + $0x420] sm:$0xff] %v459_v4  ;;  %462 = vst [vmem:[%s4784_s27 + $0x428] sm:$0xff] %v461_v5  ;;  %v465_v7 = vld [vmem:[%s4776_s26 + $0x868] sm:$0xff] }
  0x55   : > { %464 = vst [vmem:[%s4784_s27 + $0x430] sm:$0xff] %v463_v6  ;;  %v467_v8 = vld [vmem:[%s4776_s26 + $0x880] sm:$0xff]  ;;  %v469_v9 = vld [vmem:[%s4776_s26 + $0x888] sm:$0xff]  ;;  %466 = vst [vmem:[%s4784_s27 + $0x438] sm:$0xff] %v465_v7 }
  0x56   : > { %468 = vst [vmem:[%s4784_s27 + $0x440] sm:$0xff] %v467_v8  ;;  %470 = vst [vmem:[%s4784_s27 + $0x448] sm:$0xff] %v469_v9  ;;  %v471_v10 = vld [vmem:[%s4776_s26 + $0x8a0] sm:$0xff]  ;;  %v473_v11 = vld [vmem:[%s4776_s26 + $0x8a8] sm:$0xff] }
  0x57   : > { %v475_v12 = vld [vmem:[%s4776_s26 + $0x8c0] sm:$0xff]  ;;  %472 = vst [vmem:[%s4784_s27 + $0x450] sm:$0xff] %v471_v10  ;;  %474 = vst [vmem:[%s4784_s27 + $0x458] sm:$0xff] %v473_v11  ;;  %v477_v13 = vld [vmem:[%s4776_s26 + $0x8c8] sm:$0xff] }
  0x58   : > { %476 = vst [vmem:[%s4784_s27 + $0x460] sm:$0xff] %v475_v12  ;;  %v479_v14 = vld [vmem:[%s4776_s26 + $0x8e0] sm:$0xff]  ;;  %v481_v15 = vld [vmem:[%s4776_s26 + $0x8e8] sm:$0xff]  ;;  %478 = vst [vmem:[%s4784_s27 + $0x468] sm:$0xff] %v477_v13 }
  0x59   : > { %480 = vst [vmem:[%s4784_s27 + $0x470] sm:$0xff] %v479_v14  ;;  %482 = vst [vmem:[%s4784_s27 + $0x478] sm:$0xff] %v481_v15  ;;  %v483_v16 = vld [vmem:[%s4776_s26 + $0x900] sm:$0xff]  ;;  %v485_v17 = vld [vmem:[%s4776_s26 + $0x908] sm:$0xff] }
  0x5a   : > { %v487_v18 = vld [vmem:[%s4776_s26 + $0x920] sm:$0xff]  ;;  %484 = vst [vmem:[%s4784_s27 + $0x480] sm:$0xff] %v483_v16  ;;  %486 = vst [vmem:[%s4784_s27 + $0x488] sm:$0xff] %v485_v17  ;;  %v489_v19 = vld [vmem:[%s4776_s26 + $0x928] sm:$0xff] }
  0x5b   : > { %488 = vst [vmem:[%s4784_s27 + $0x490] sm:$0xff] %v487_v18  ;;  %v491_v20 = vld [vmem:[%s4776_s26 + $0x940] sm:$0xff]  ;;  %v493_v21 = vld [vmem:[%s4776_s26 + $0x948] sm:$0xff]  ;;  %490 = vst [vmem:[%s4784_s27 + $0x498] sm:$0xff] %v489_v19 }
  0x5c   : > { %492 = vst [vmem:[%s4784_s27 + $0x4a0] sm:$0xff] %v491_v20  ;;  %494 = vst [vmem:[%s4784_s27 + $0x4a8] sm:$0xff] %v493_v21  ;;  %v495_v22 = vld [vmem:[%s4776_s26 + $0x960] sm:$0xff]  ;;  %v497_v23 = vld [vmem:[%s4776_s26 + $0x968] sm:$0xff] }
  0x5d   : > { %v499_v24 = vld [vmem:[%s4776_s26 + $0x980] sm:$0xff]  ;;  %496 = vst [vmem:[%s4784_s27 + $0x4b0] sm:$0xff] %v495_v22  ;;  %498 = vst [vmem:[%s4784_s27 + $0x4b8] sm:$0xff] %v497_v23  ;;  %v501_v25 = vld [vmem:[%s4776_s26 + $0x988] sm:$0xff] }
  0x5e   : > { %500 = vst [vmem:[%s4784_s27 + $0x4c0] sm:$0xff] %v499_v24  ;;  %v503_v26 = vld [vmem:[%s4776_s26 + $0x9a0] sm:$0xff]  ;;  %v505_v27 = vld [vmem:[%s4776_s26 + $0x9a8] sm:$0xff]  ;;  %502 = vst [vmem:[%s4784_s27 + $0x4c8] sm:$0xff] %v501_v25 }
  0x5f   : > { %504 = vst [vmem:[%s4784_s27 + $0x4d0] sm:$0xff] %v503_v26  ;;  %506 = vst [vmem:[%s4784_s27 + $0x4d8] sm:$0xff] %v505_v27  ;;  %v507_v28 = vld [vmem:[%s4776_s26 + $0x9c0] sm:$0xff]  ;;  %v509_v29 = vld [vmem:[%s4776_s26 + $0x9c8] sm:$0xff] }
  0x60   : > { %v511_v30 = vld [vmem:[%s4776_s26 + $0x9e0] sm:$0xff]  ;;  %508 = vst [vmem:[%s4784_s27 + $0x4e0] sm:$0xff] %v507_v28  ;;  %510 = vst [vmem:[%s4784_s27 + $0x4e8] sm:$0xff] %v509_v29  ;;  %v513_v31 = vld [vmem:[%s4776_s26 + $0x9e8] sm:$0xff] }
  0x61   : > { %512 = vst [vmem:[%s4784_s27 + $0x4f0] sm:$0xff] %v511_v30  ;;  %v515_v32 = vld [vmem:[%s4776_s26 + $0xa00] sm:$0xff]  ;;  %v517_v33 = vld [vmem:[%s4776_s26 + $0xa08] sm:$0xff]  ;;  %514 = vst [vmem:[%s4784_s27 + $0x4f8] sm:$0xff] %v513_v31 }
  0x62   : > { %516 = vst [vmem:[%s4784_s27 + $0x500] sm:$0xff] %v515_v32  ;;  %518 = vst [vmem:[%s4784_s27 + $0x508] sm:$0xff] %v517_v33  ;;  %v519_v34 = vld [vmem:[%s4776_s26 + $0xa20] sm:$0xff]  ;;  %v521_v35 = vld [vmem:[%s4776_s26 + $0xa28] sm:$0xff] }
  0x63   : > { %v523_v36 = vld [vmem:[%s4776_s26 + $0xa40] sm:$0xff]  ;;  %520 = vst [vmem:[%s4784_s27 + $0x510] sm:$0xff] %v519_v34  ;;  %522 = vst [vmem:[%s4784_s27 + $0x518] sm:$0xff] %v521_v35  ;;  %v525_v37 = vld [vmem:[%s4776_s26 + $0xa48] sm:$0xff] }
  0x64   : > { %524 = vst [vmem:[%s4784_s27 + $0x520] sm:$0xff] %v523_v36  ;;  %v527_v38 = vld [vmem:[%s4776_s26 + $0xa60] sm:$0xff]  ;;  %v529_v39 = vld [vmem:[%s4776_s26 + $0xa68] sm:$0xff]  ;;  %526 = vst [vmem:[%s4784_s27 + $0x528] sm:$0xff] %v525_v37 }
  0x65   : > { %528 = vst [vmem:[%s4784_s27 + $0x530] sm:$0xff] %v527_v38  ;;  %530 = vst [vmem:[%s4784_s27 + $0x538] sm:$0xff] %v529_v39  ;;  %v531_v40 = vld [vmem:[%s4776_s26 + $0xa80] sm:$0xff]  ;;  %v533_v41 = vld [vmem:[%s4776_s26 + $0xa88] sm:$0xff] }
  0x66   : > { %v535_v42 = vld [vmem:[%s4776_s26 + $0xaa0] sm:$0xff]  ;;  %532 = vst [vmem:[%s4784_s27 + $0x540] sm:$0xff] %v531_v40  ;;  %534 = vst [vmem:[%s4784_s27 + $0x548] sm:$0xff] %v533_v41  ;;  %v537_v43 = vld [vmem:[%s4776_s26 + $0xaa8] sm:$0xff] }
  0x67   : > { %536 = vst [vmem:[%s4784_s27 + $0x550] sm:$0xff] %v535_v42  ;;  %v539_v44 = vld [vmem:[%s4776_s26 + $0xac0] sm:$0xff]  ;;  %v541_v45 = vld [vmem:[%s4776_s26 + $0xac8] sm:$0xff]  ;;  %538 = vst [vmem:[%s4784_s27 + $0x558] sm:$0xff] %v537_v43 }
  0x68   : > { %540 = vst [vmem:[%s4784_s27 + $0x560] sm:$0xff] %v539_v44  ;;  %542 = vst [vmem:[%s4784_s27 + $0x568] sm:$0xff] %v541_v45  ;;  %v543_v46 = vld [vmem:[%s4776_s26 + $0xae0] sm:$0xff]  ;;  %v545_v47 = vld [vmem:[%s4776_s26 + $0xae8] sm:$0xff] }
  0x69   : > { %v547_v48 = vld [vmem:[%s4776_s26 + $0xb00] sm:$0xff]  ;;  %544 = vst [vmem:[%s4784_s27 + $0x570] sm:$0xff] %v543_v46  ;;  %546 = vst [vmem:[%s4784_s27 + $0x578] sm:$0xff] %v545_v47  ;;  %v549_v49 = vld [vmem:[%s4776_s26 + $0xb08] sm:$0xff] }
  0x6a   : > { %548 = vst [vmem:[%s4784_s27 + $0x580] sm:$0xff] %v547_v48  ;;  %v551_v50 = vld [vmem:[%s4776_s26 + $0xb20] sm:$0xff]  ;;  %v553_v51 = vld [vmem:[%s4776_s26 + $0xb28] sm:$0xff]  ;;  %550 = vst [vmem:[%s4784_s27 + $0x588] sm:$0xff] %v549_v49 }
  0x6b   : > { %552 = vst [vmem:[%s4784_s27 + $0x590] sm:$0xff] %v551_v50  ;;  %554 = vst [vmem:[%s4784_s27 + $0x598] sm:$0xff] %v553_v51  ;;  %v555_v52 = vld [vmem:[%s4776_s26 + $0xb40] sm:$0xff]  ;;  %v557_v53 = vld [vmem:[%s4776_s26 + $0xb48] sm:$0xff] }
  0x6c   : > { %v559_v54 = vld [vmem:[%s4776_s26 + $0xb60] sm:$0xff]  ;;  %556 = vst [vmem:[%s4784_s27 + $0x5a0] sm:$0xff] %v555_v52  ;;  %558 = vst [vmem:[%s4784_s27 + $0x5a8] sm:$0xff] %v557_v53  ;;  %v561_v55 = vld [vmem:[%s4776_s26 + $0xb68] sm:$0xff] }
  0x6d   : > { %560 = vst [vmem:[%s4784_s27 + $0x5b0] sm:$0xff] %v559_v54  ;;  %v563_v56 = vld [vmem:[%s4776_s26 + $0xb80] sm:$0xff]  ;;  %v565_v57 = vld [vmem:[%s4776_s26 + $0xb88] sm:$0xff]  ;;  %562 = vst [vmem:[%s4784_s27 + $0x5b8] sm:$0xff] %v561_v55 }
  0x6e   : > { %564 = vst [vmem:[%s4784_s27 + $0x5c0] sm:$0xff] %v563_v56  ;;  %566 = vst [vmem:[%s4784_s27 + $0x5c8] sm:$0xff] %v565_v57  ;;  %v567_v58 = vld [vmem:[%s4776_s26 + $0xba0] sm:$0xff]  ;;  %v569_v59 = vld [vmem:[%s4776_s26 + $0xba8] sm:$0xff] }
  0x6f   : > { %v571_v60 = vld [vmem:[%s4776_s26 + $0xbc0] sm:$0xff]  ;;  %568 = vst [vmem:[%s4784_s27 + $0x5d0] sm:$0xff] %v567_v58  ;;  %570 = vst [vmem:[%s4784_s27 + $0x5d8] sm:$0xff] %v569_v59  ;;  %v573_v61 = vld [vmem:[%s4776_s26 + $0xbc8] sm:$0xff] }
  0x70   : > { %572 = vst [vmem:[%s4784_s27 + $0x5e0] sm:$0xff] %v571_v60  ;;  %v575_v62 = vld [vmem:[%s4776_s26 + $0xbe0] sm:$0xff]  ;;  %v577_v63 = vld [vmem:[%s4776_s26 + $0xbe8] sm:$0xff]  ;;  %574 = vst [vmem:[%s4784_s27 + $0x5e8] sm:$0xff] %v573_v61 }
  0x71   : > { %576 = vst [vmem:[%s4784_s27 + $0x5f0] sm:$0xff] %v575_v62  ;;  %578 = vst [vmem:[%s4784_s27 + $0x5f8] sm:$0xff] %v577_v63  ;;  %v579_v0 = vld [vmem:[%s4776_s26 + $0xc00] sm:$0xff]  ;;  %v581_v1 = vld [vmem:[%s4776_s26 + $0xc08] sm:$0xff] }
  0x72   : > { %v583_v2 = vld [vmem:[%s4776_s26 + $0xc20] sm:$0xff]  ;;  %580 = vst [vmem:[%s4784_s27 + $0x600] sm:$0xff] %v579_v0  ;;  %582 = vst [vmem:[%s4784_s27 + $0x608] sm:$0xff] %v581_v1  ;;  %v585_v3 = vld [vmem:[%s4776_s26 + $0xc28] sm:$0xff] }
  0x73   : > { %584 = vst [vmem:[%s4784_s27 + $0x610] sm:$0xff] %v583_v2  ;;  %v587_v4 = vld [vmem:[%s4776_s26 + $0xc40] sm:$0xff]  ;;  %v589_v5 = vld [vmem:[%s4776_s26 + $0xc48] sm:$0xff]  ;;  %586 = vst [vmem:[%s4784_s27 + $0x618] sm:$0xff] %v585_v3 }
  0x74   : > { %588 = vst [vmem:[%s4784_s27 + $0x620] sm:$0xff] %v587_v4  ;;  %590 = vst [vmem:[%s4784_s27 + $0x628] sm:$0xff] %v589_v5  ;;  %v591_v6 = vld [vmem:[%s4776_s26 + $0xc60] sm:$0xff]  ;;  %v593_v7 = vld [vmem:[%s4776_s26 + $0xc68] sm:$0xff] }
  0x75   : > { %v595_v8 = vld [vmem:[%s4776_s26 + $0xc80] sm:$0xff]  ;;  %592 = vst [vmem:[%s4784_s27 + $0x630] sm:$0xff] %v591_v6  ;;  %594 = vst [vmem:[%s4784_s27 + $0x638] sm:$0xff] %v593_v7  ;;  %v597_v9 = vld [vmem:[%s4776_s26 + $0xc88] sm:$0xff] }
  0x76   : > { %596 = vst [vmem:[%s4784_s27 + $0x640] sm:$0xff] %v595_v8  ;;  %v599_v10 = vld [vmem:[%s4776_s26 + $0xca0] sm:$0xff]  ;;  %v601_v11 = vld [vmem:[%s4776_s26 + $0xca8] sm:$0xff]  ;;  %598 = vst [vmem:[%s4784_s27 + $0x648] sm:$0xff] %v597_v9 }
  0x77   : > { %600 = vst [vmem:[%s4784_s27 + $0x650] sm:$0xff] %v599_v10  ;;  %602 = vst [vmem:[%s4784_s27 + $0x658] sm:$0xff] %v601_v11  ;;  %v603_v12 = vld [vmem:[%s4776_s26 + $0xcc0] sm:$0xff]  ;;  %v605_v13 = vld [vmem:[%s4776_s26 + $0xcc8] sm:$0xff] }
  0x78   : > { %v607_v14 = vld [vmem:[%s4776_s26 + $0xce0] sm:$0xff]  ;;  %604 = vst [vmem:[%s4784_s27 + $0x660] sm:$0xff] %v603_v12  ;;  %606 = vst [vmem:[%s4784_s27 + $0x668] sm:$0xff] %v605_v13  ;;  %v609_v15 = vld [vmem:[%s4776_s26 + $0xce8] sm:$0xff] }
  0x79   : > { %608 = vst [vmem:[%s4784_s27 + $0x670] sm:$0xff] %v607_v14  ;;  %v611_v16 = vld [vmem:[%s4776_s26 + $0xd00] sm:$0xff]  ;;  %v613_v17 = vld [vmem:[%s4776_s26 + $0xd08] sm:$0xff]  ;;  %610 = vst [vmem:[%s4784_s27 + $0x678] sm:$0xff] %v609_v15 }
  0x7a   : > { %612 = vst [vmem:[%s4784_s27 + $0x680] sm:$0xff] %v611_v16  ;;  %614 = vst [vmem:[%s4784_s27 + $0x688] sm:$0xff] %v613_v17  ;;  %v615_v18 = vld [vmem:[%s4776_s26 + $0xd20] sm:$0xff]  ;;  %v617_v19 = vld [vmem:[%s4776_s26 + $0xd28] sm:$0xff] }
  0x7b   : > { %v619_v20 = vld [vmem:[%s4776_s26 + $0xd40] sm:$0xff]  ;;  %616 = vst [vmem:[%s4784_s27 + $0x690] sm:$0xff] %v615_v18  ;;  %618 = vst [vmem:[%s4784_s27 + $0x698] sm:$0xff] %v617_v19  ;;  %v621_v21 = vld [vmem:[%s4776_s26 + $0xd48] sm:$0xff] }
  0x7c   : > { %620 = vst [vmem:[%s4784_s27 + $0x6a0] sm:$0xff] %v619_v20  ;;  %v623_v22 = vld [vmem:[%s4776_s26 + $0xd60] sm:$0xff]  ;;  %v625_v23 = vld [vmem:[%s4776_s26 + $0xd68] sm:$0xff]  ;;  %622 = vst [vmem:[%s4784_s27 + $0x6a8] sm:$0xff] %v621_v21 }
  0x7d   : > { %624 = vst [vmem:[%s4784_s27 + $0x6b0] sm:$0xff] %v623_v22  ;;  %626 = vst [vmem:[%s4784_s27 + $0x6b8] sm:$0xff] %v625_v23  ;;  %v627_v24 = vld [vmem:[%s4776_s26 + $0xd80] sm:$0xff]  ;;  %v629_v25 = vld [vmem:[%s4776_s26 + $0xd88] sm:$0xff] }
  0x7e   : > { %v631_v26 = vld [vmem:[%s4776_s26 + $0xda0] sm:$0xff]  ;;  %628 = vst [vmem:[%s4784_s27 + $0x6c0] sm:$0xff] %v627_v24  ;;  %630 = vst [vmem:[%s4784_s27 + $0x6c8] sm:$0xff] %v629_v25  ;;  %v633_v27 = vld [vmem:[%s4776_s26 + $0xda8] sm:$0xff] }
  0x7f   : > { %632 = vst [vmem:[%s4784_s27 + $0x6d0] sm:$0xff] %v631_v26  ;;  %v635_v28 = vld [vmem:[%s4776_s26 + $0xdc0] sm:$0xff]  ;;  %v637_v29 = vld [vmem:[%s4776_s26 + $0xdc8] sm:$0xff]  ;;  %634 = vst [vmem:[%s4784_s27 + $0x6d8] sm:$0xff] %v633_v27 }
  0x80   : > { %636 = vst [vmem:[%s4784_s27 + $0x6e0] sm:$0xff] %v635_v28  ;;  %638 = vst [vmem:[%s4784_s27 + $0x6e8] sm:$0xff] %v637_v29  ;;  %v639_v30 = vld [vmem:[%s4776_s26 + $0xde0] sm:$0xff]  ;;  %v641_v31 = vld [vmem:[%s4776_s26 + $0xde8] sm:$0xff] }
  0x81   : > { %v643_v32 = vld [vmem:[%s4776_s26 + $0xe00] sm:$0xff]  ;;  %640 = vst [vmem:[%s4784_s27 + $0x6f0] sm:$0xff] %v639_v30  ;;  %642 = vst [vmem:[%s4784_s27 + $0x6f8] sm:$0xff] %v641_v31  ;;  %v645_v33 = vld [vmem:[%s4776_s26 + $0xe08] sm:$0xff] }
  0x82   : > { %644 = vst [vmem:[%s4784_s27 + $0x700] sm:$0xff] %v643_v32  ;;  %v647_v34 = vld [vmem:[%s4776_s26 + $0xe20] sm:$0xff]  ;;  %v649_v35 = vld [vmem:[%s4776_s26 + $0xe28] sm:$0xff]  ;;  %646 = vst [vmem:[%s4784_s27 + $0x708] sm:$0xff] %v645_v33 }
  0x83   : > { %648 = vst [vmem:[%s4784_s27 + $0x710] sm:$0xff] %v647_v34  ;;  %650 = vst [vmem:[%s4784_s27 + $0x718] sm:$0xff] %v649_v35  ;;  %v651_v36 = vld [vmem:[%s4776_s26 + $0xe40] sm:$0xff]  ;;  %v653_v37 = vld [vmem:[%s4776_s26 + $0xe48] sm:$0xff] }
  0x84   : > { %v655_v38 = vld [vmem:[%s4776_s26 + $0xe60] sm:$0xff]  ;;  %652 = vst [vmem:[%s4784_s27 + $0x720] sm:$0xff] %v651_v36  ;;  %654 = vst [vmem:[%s4784_s27 + $0x728] sm:$0xff] %v653_v37  ;;  %v657_v39 = vld [vmem:[%s4776_s26 + $0xe68] sm:$0xff] }
  0x85   : > { %656 = vst [vmem:[%s4784_s27 + $0x730] sm:$0xff] %v655_v38  ;;  %v659_v40 = vld [vmem:[%s4776_s26 + $0xe80] sm:$0xff]  ;;  %v661_v41 = vld [vmem:[%s4776_s26 + $0xe88] sm:$0xff]  ;;  %658 = vst [vmem:[%s4784_s27 + $0x738] sm:$0xff] %v657_v39 }
  0x86   : > { %660 = vst [vmem:[%s4784_s27 + $0x740] sm:$0xff] %v659_v40  ;;  %662 = vst [vmem:[%s4784_s27 + $0x748] sm:$0xff] %v661_v41  ;;  %v663_v42 = vld [vmem:[%s4776_s26 + $0xea0] sm:$0xff]  ;;  %v665_v43 = vld [vmem:[%s4776_s26 + $0xea8] sm:$0xff] }
  0x87   : > { %v667_v44 = vld [vmem:[%s4776_s26 + $0xec0] sm:$0xff]  ;;  %664 = vst [vmem:[%s4784_s27 + $0x750] sm:$0xff] %v663_v42  ;;  %666 = vst [vmem:[%s4784_s27 + $0x758] sm:$0xff] %v665_v43  ;;  %v669_v45 = vld [vmem:[%s4776_s26 + $0xec8] sm:$0xff] }
  0x88   : > { %668 = vst [vmem:[%s4784_s27 + $0x760] sm:$0xff] %v667_v44  ;;  %v671_v46 = vld [vmem:[%s4776_s26 + $0xee0] sm:$0xff]  ;;  %v673_v47 = vld [vmem:[%s4776_s26 + $0xee8] sm:$0xff]  ;;  %670 = vst [vmem:[%s4784_s27 + $0x768] sm:$0xff] %v669_v45 }
  0x89   : > { %672 = vst [vmem:[%s4784_s27 + $0x770] sm:$0xff] %v671_v46  ;;  %674 = vst [vmem:[%s4784_s27 + $0x778] sm:$0xff] %v673_v47  ;;  %v675_v48 = vld [vmem:[%s4776_s26 + $0xf00] sm:$0xff]  ;;  %v677_v49 = vld [vmem:[%s4776_s26 + $0xf08] sm:$0xff] }
  0x8a   : > { %v679_v50 = vld [vmem:[%s4776_s26 + $0xf20] sm:$0xff]  ;;  %676 = vst [vmem:[%s4784_s27 + $0x780] sm:$0xff] %v675_v48  ;;  %678 = vst [vmem:[%s4784_s27 + $0x788] sm:$0xff] %v677_v49  ;;  %v681_v51 = vld [vmem:[%s4776_s26 + $0xf28] sm:$0xff] }
  0x8b   : > { %680 = vst [vmem:[%s4784_s27 + $0x790] sm:$0xff] %v679_v50  ;;  %v683_v52 = vld [vmem:[%s4776_s26 + $0xf40] sm:$0xff]  ;;  %v685_v53 = vld [vmem:[%s4776_s26 + $0xf48] sm:$0xff]  ;;  %682 = vst [vmem:[%s4784_s27 + $0x798] sm:$0xff] %v681_v51 }
  0x8c   : > { %684 = vst [vmem:[%s4784_s27 + $0x7a0] sm:$0xff] %v683_v52  ;;  %686 = vst [vmem:[%s4784_s27 + $0x7a8] sm:$0xff] %v685_v53  ;;  %v687_v54 = vld [vmem:[%s4776_s26 + $0xf60] sm:$0xff]  ;;  %v689_v55 = vld [vmem:[%s4776_s26 + $0xf68] sm:$0xff] }
  0x8d   : > { %v691_v56 = vld [vmem:[%s4776_s26 + $0xf80] sm:$0xff]  ;;  %688 = vst [vmem:[%s4784_s27 + $0x7b0] sm:$0xff] %v687_v54  ;;  %690 = vst [vmem:[%s4784_s27 + $0x7b8] sm:$0xff] %v689_v55  ;;  %v693_v57 = vld [vmem:[%s4776_s26 + $0xf88] sm:$0xff] }
  0x8e   : > { %692 = vst [vmem:[%s4784_s27 + $0x7c0] sm:$0xff] %v691_v56  ;;  %v695_v58 = vld [vmem:[%s4776_s26 + $0xfa0] sm:$0xff]  ;;  %v697_v59 = vld [vmem:[%s4776_s26 + $0xfa8] sm:$0xff]  ;;  %694 = vst [vmem:[%s4784_s27 + $0x7c8] sm:$0xff] %v693_v57 }
  0x8f   : > { %696 = vst [vmem:[%s4784_s27 + $0x7d0] sm:$0xff] %v695_v58  ;;  %698 = vst [vmem:[%s4784_s27 + $0x7d8] sm:$0xff] %v697_v59  ;;  %v699_v60 = vld [vmem:[%s4776_s26 + $0xfc0] sm:$0xff]  ;;  %v701_v61 = vld [vmem:[%s4776_s26 + $0xfc8] sm:$0xff] }
  0x90   : > { %v703_v62 = vld [vmem:[%s4776_s26 + $0xfe0] sm:$0xff]  ;;  %700 = vst [vmem:[%s4784_s27 + $0x7e0] sm:$0xff] %v699_v60  ;;  %702 = vst [vmem:[%s4784_s27 + $0x7e8] sm:$0xff] %v701_v61  ;;  %v705_v63 = vld [vmem:[%s4776_s26 + $0xfe8] sm:$0xff] }
  0x91   : > { %704 = vst [vmem:[%s4784_s27 + $0x7f0] sm:$0xff] %v703_v62  ;;  %v707_v0 = vld [vmem:[%s4776_s26 + $0x1000] sm:$0xff]  ;;  %v709_v1 = vld [vmem:[%s4776_s26 + $0x1008] sm:$0xff]  ;;  %706 = vst [vmem:[%s4784_s27 + $0x7f8] sm:$0xff] %v705_v63 }
  0x92   : > { %708 = vst [vmem:[%s4784_s27 + $0x800] sm:$0xff] %v707_v0  ;;  %710 = vst [vmem:[%s4784_s27 + $0x808] sm:$0xff] %v709_v1  ;;  %v711_v2 = vld [vmem:[%s4776_s26 + $0x1020] sm:$0xff]  ;;  %v713_v3 = vld [vmem:[%s4776_s26 + $0x1028] sm:$0xff] }
  0x93   : > { %v715_v4 = vld [vmem:[%s4776_s26 + $0x1040] sm:$0xff]  ;;  %712 = vst [vmem:[%s4784_s27 + $0x810] sm:$0xff] %v711_v2  ;;  %714 = vst [vmem:[%s4784_s27 + $0x818] sm:$0xff] %v713_v3  ;;  %v717_v5 = vld [vmem:[%s4776_s26 + $0x1048] sm:$0xff] }
  0x94   : > { %716 = vst [vmem:[%s4784_s27 + $0x820] sm:$0xff] %v715_v4  ;;  %v719_v6 = vld [vmem:[%s4776_s26 + $0x1060] sm:$0xff]  ;;  %v721_v7 = vld [vmem:[%s4776_s26 + $0x1068] sm:$0xff]  ;;  %718 = vst [vmem:[%s4784_s27 + $0x828] sm:$0xff] %v717_v5 }
  0x95   : > { %720 = vst [vmem:[%s4784_s27 + $0x830] sm:$0xff] %v719_v6  ;;  %722 = vst [vmem:[%s4784_s27 + $0x838] sm:$0xff] %v721_v7  ;;  %v723_v8 = vld [vmem:[%s4776_s26 + $0x1080] sm:$0xff]  ;;  %v725_v9 = vld [vmem:[%s4776_s26 + $0x1088] sm:$0xff] }
  0x96   : > { %v727_v10 = vld [vmem:[%s4776_s26 + $0x10a0] sm:$0xff]  ;;  %724 = vst [vmem:[%s4784_s27 + $0x840] sm:$0xff] %v723_v8  ;;  %726 = vst [vmem:[%s4784_s27 + $0x848] sm:$0xff] %v725_v9  ;;  %v729_v11 = vld [vmem:[%s4776_s26 + $0x10a8] sm:$0xff] }
  0x97   : > { %728 = vst [vmem:[%s4784_s27 + $0x850] sm:$0xff] %v727_v10  ;;  %v731_v12 = vld [vmem:[%s4776_s26 + $0x10c0] sm:$0xff]  ;;  %v733_v13 = vld [vmem:[%s4776_s26 + $0x10c8] sm:$0xff]  ;;  %730 = vst [vmem:[%s4784_s27 + $0x858] sm:$0xff] %v729_v11 }
  0x98   : > { %732 = vst [vmem:[%s4784_s27 + $0x860] sm:$0xff] %v731_v12  ;;  %734 = vst [vmem:[%s4784_s27 + $0x868] sm:$0xff] %v733_v13  ;;  %v735_v14 = vld [vmem:[%s4776_s26 + $0x10e0] sm:$0xff]  ;;  %v737_v15 = vld [vmem:[%s4776_s26 + $0x10e8] sm:$0xff] }
  0x99   : > { %v739_v16 = vld [vmem:[%s4776_s26 + $0x1100] sm:$0xff]  ;;  %736 = vst [vmem:[%s4784_s27 + $0x870] sm:$0xff] %v735_v14  ;;  %738 = vst [vmem:[%s4784_s27 + $0x878] sm:$0xff] %v737_v15  ;;  %v741_v17 = vld [vmem:[%s4776_s26 + $0x1108] sm:$0xff] }
  0x9a   : > { %740 = vst [vmem:[%s4784_s27 + $0x880] sm:$0xff] %v739_v16  ;;  %v743_v18 = vld [vmem:[%s4776_s26 + $0x1120] sm:$0xff]  ;;  %v745_v19 = vld [vmem:[%s4776_s26 + $0x1128] sm:$0xff]  ;;  %742 = vst [vmem:[%s4784_s27 + $0x888] sm:$0xff] %v741_v17 }
  0x9b   : > { %744 = vst [vmem:[%s4784_s27 + $0x890] sm:$0xff] %v743_v18  ;;  %746 = vst [vmem:[%s4784_s27 + $0x898] sm:$0xff] %v745_v19  ;;  %v747_v20 = vld [vmem:[%s4776_s26 + $0x1140] sm:$0xff]  ;;  %v749_v21 = vld [vmem:[%s4776_s26 + $0x1148] sm:$0xff] }
  0x9c   : > { %v751_v22 = vld [vmem:[%s4776_s26 + $0x1160] sm:$0xff]  ;;  %748 = vst [vmem:[%s4784_s27 + $0x8a0] sm:$0xff] %v747_v20  ;;  %750 = vst [vmem:[%s4784_s27 + $0x8a8] sm:$0xff] %v749_v21  ;;  %v753_v23 = vld [vmem:[%s4776_s26 + $0x1168] sm:$0xff] }
  0x9d   : > { %752 = vst [vmem:[%s4784_s27 + $0x8b0] sm:$0xff] %v751_v22  ;;  %v755_v24 = vld [vmem:[%s4776_s26 + $0x1180] sm:$0xff]  ;;  %v757_v25 = vld [vmem:[%s4776_s26 + $0x1188] sm:$0xff]  ;;  %754 = vst [vmem:[%s4784_s27 + $0x8b8] sm:$0xff] %v753_v23 }
  0x9e   : > { %756 = vst [vmem:[%s4784_s27 + $0x8c0] sm:$0xff] %v755_v24  ;;  %758 = vst [vmem:[%s4784_s27 + $0x8c8] sm:$0xff] %v757_v25  ;;  %v759_v26 = vld [vmem:[%s4776_s26 + $0x11a0] sm:$0xff]  ;;  %v761_v27 = vld [vmem:[%s4776_s26 + $0x11a8] sm:$0xff] }
  0x9f   : > { %v763_v28 = vld [vmem:[%s4776_s26 + $0x11c0] sm:$0xff]  ;;  %760 = vst [vmem:[%s4784_s27 + $0x8d0] sm:$0xff] %v759_v26  ;;  %762 = vst [vmem:[%s4784_s27 + $0x8d8] sm:$0xff] %v761_v27  ;;  %v765_v29 = vld [vmem:[%s4776_s26 + $0x11c8] sm:$0xff] }
  0xa0   : > { %764 = vst [vmem:[%s4784_s27 + $0x8e0] sm:$0xff] %v763_v28  ;;  %v767_v30 = vld [vmem:[%s4776_s26 + $0x11e0] sm:$0xff]  ;;  %v769_v31 = vld [vmem:[%s4776_s26 + $0x11e8] sm:$0xff]  ;;  %766 = vst [vmem:[%s4784_s27 + $0x8e8] sm:$0xff] %v765_v29 }
  0xa1   : > { %768 = vst [vmem:[%s4784_s27 + $0x8f0] sm:$0xff] %v767_v30  ;;  %770 = vst [vmem:[%s4784_s27 + $0x8f8] sm:$0xff] %v769_v31  ;;  %v771_v32 = vld [vmem:[%s4776_s26 + $0x1200] sm:$0xff]  ;;  %v773_v33 = vld [vmem:[%s4776_s26 + $0x1208] sm:$0xff] }
  0xa2   : > { %v775_v34 = vld [vmem:[%s4776_s26 + $0x1220] sm:$0xff]  ;;  %772 = vst [vmem:[%s4784_s27 + $0x900] sm:$0xff] %v771_v32  ;;  %774 = vst [vmem:[%s4784_s27 + $0x908] sm:$0xff] %v773_v33  ;;  %v777_v35 = vld [vmem:[%s4776_s26 + $0x1228] sm:$0xff] }
  0xa3   : > { %776 = vst [vmem:[%s4784_s27 + $0x910] sm:$0xff] %v775_v34  ;;  %v779_v36 = vld [vmem:[%s4776_s26 + $0x1240] sm:$0xff]  ;;  %v781_v37 = vld [vmem:[%s4776_s26 + $0x1248] sm:$0xff]  ;;  %778 = vst [vmem:[%s4784_s27 + $0x918] sm:$0xff] %v777_v35 }
  0xa4   : > { %780 = vst [vmem:[%s4784_s27 + $0x920] sm:$0xff] %v779_v36  ;;  %782 = vst [vmem:[%s4784_s27 + $0x928] sm:$0xff] %v781_v37  ;;  %v783_v38 = vld [vmem:[%s4776_s26 + $0x1260] sm:$0xff]  ;;  %v785_v39 = vld [vmem:[%s4776_s26 + $0x1268] sm:$0xff] }
  0xa5   : > { %v787_v40 = vld [vmem:[%s4776_s26 + $0x1280] sm:$0xff]  ;;  %784 = vst [vmem:[%s4784_s27 + $0x930] sm:$0xff] %v783_v38  ;;  %786 = vst [vmem:[%s4784_s27 + $0x938] sm:$0xff] %v785_v39  ;;  %v789_v41 = vld [vmem:[%s4776_s26 + $0x1288] sm:$0xff] }
  0xa6   : > { %788 = vst [vmem:[%s4784_s27 + $0x940] sm:$0xff] %v787_v40  ;;  %v791_v42 = vld [vmem:[%s4776_s26 + $0x12a0] sm:$0xff]  ;;  %v793_v43 = vld [vmem:[%s4776_s26 + $0x12a8] sm:$0xff]  ;;  %790 = vst [vmem:[%s4784_s27 + $0x948] sm:$0xff] %v789_v41 }
  0xa7   : > { %792 = vst [vmem:[%s4784_s27 + $0x950] sm:$0xff] %v791_v42  ;;  %794 = vst [vmem:[%s4784_s27 + $0x958] sm:$0xff] %v793_v43  ;;  %v795_v44 = vld [vmem:[%s4776_s26 + $0x12c0] sm:$0xff]  ;;  %v797_v45 = vld [vmem:[%s4776_s26 + $0x12c8] sm:$0xff] }
  0xa8   : > { %v799_v46 = vld [vmem:[%s4776_s26 + $0x12e0] sm:$0xff]  ;;  %796 = vst [vmem:[%s4784_s27 + $0x960] sm:$0xff] %v795_v44  ;;  %798 = vst [vmem:[%s4784_s27 + $0x968] sm:$0xff] %v797_v45  ;;  %v801_v47 = vld [vmem:[%s4776_s26 + $0x12e8] sm:$0xff] }
  0xa9   : > { %800 = vst [vmem:[%s4784_s27 + $0x970] sm:$0xff] %v799_v46  ;;  %v803_v48 = vld [vmem:[%s4776_s26 + $0x1300] sm:$0xff]  ;;  %v805_v49 = vld [vmem:[%s4776_s26 + $0x1308] sm:$0xff]  ;;  %802 = vst [vmem:[%s4784_s27 + $0x978] sm:$0xff] %v801_v47 }
  0xaa   : > { %804 = vst [vmem:[%s4784_s27 + $0x980] sm:$0xff] %v803_v48  ;;  %806 = vst [vmem:[%s4784_s27 + $0x988] sm:$0xff] %v805_v49  ;;  %v807_v50 = vld [vmem:[%s4776_s26 + $0x1320] sm:$0xff]  ;;  %v809_v51 = vld [vmem:[%s4776_s26 + $0x1328] sm:$0xff] }
  0xab   : > { %v811_v52 = vld [vmem:[%s4776_s26 + $0x1340] sm:$0xff]  ;;  %808 = vst [vmem:[%s4784_s27 + $0x990] sm:$0xff] %v807_v50  ;;  %810 = vst [vmem:[%s4784_s27 + $0x998] sm:$0xff] %v809_v51  ;;  %v813_v53 = vld [vmem:[%s4776_s26 + $0x1348] sm:$0xff] }
  0xac   : > { %812 = vst [vmem:[%s4784_s27 + $0x9a0] sm:$0xff] %v811_v52  ;;  %v815_v54 = vld [vmem:[%s4776_s26 + $0x1360] sm:$0xff]  ;;  %v817_v55 = vld [vmem:[%s4776_s26 + $0x1368] sm:$0xff]  ;;  %814 = vst [vmem:[%s4784_s27 + $0x9a8] sm:$0xff] %v813_v53 }
  0xad   : > { %816 = vst [vmem:[%s4784_s27 + $0x9b0] sm:$0xff] %v815_v54  ;;  %818 = vst [vmem:[%s4784_s27 + $0x9b8] sm:$0xff] %v817_v55  ;;  %v819_v56 = vld [vmem:[%s4776_s26 + $0x1380] sm:$0xff]  ;;  %v821_v57 = vld [vmem:[%s4776_s26 + $0x1388] sm:$0xff] }
  0xae   : > { %v823_v58 = vld [vmem:[%s4776_s26 + $0x13a0] sm:$0xff]  ;;  %820 = vst [vmem:[%s4784_s27 + $0x9c0] sm:$0xff] %v819_v56  ;;  %822 = vst [vmem:[%s4784_s27 + $0x9c8] sm:$0xff] %v821_v57  ;;  %v825_v59 = vld [vmem:[%s4776_s26 + $0x13a8] sm:$0xff] }
  0xaf   : > { %824 = vst [vmem:[%s4784_s27 + $0x9d0] sm:$0xff] %v823_v58  ;;  %v827_v60 = vld [vmem:[%s4776_s26 + $0x13c0] sm:$0xff]  ;;  %v829_v61 = vld [vmem:[%s4776_s26 + $0x13c8] sm:$0xff]  ;;  %826 = vst [vmem:[%s4784_s27 + $0x9d8] sm:$0xff] %v825_v59 }
  0xb0   : > { %828 = vst [vmem:[%s4784_s27 + $0x9e0] sm:$0xff] %v827_v60  ;;  %830 = vst [vmem:[%s4784_s27 + $0x9e8] sm:$0xff] %v829_v61  ;;  %v831_v62 = vld [vmem:[%s4776_s26 + $0x13e0] sm:$0xff]  ;;  %v833_v63 = vld [vmem:[%s4776_s26 + $0x13e8] sm:$0xff] }
  0xb1   : > { %v835_v0 = vld [vmem:[%s4776_s26 + $0x1400] sm:$0xff]  ;;  %832 = vst [vmem:[%s4784_s27 + $0x9f0] sm:$0xff] %v831_v62  ;;  %834 = vst [vmem:[%s4784_s27 + $0x9f8] sm:$0xff] %v833_v63  ;;  %v837_v1 = vld [vmem:[%s4776_s26 + $0x1408] sm:$0xff] }
  0xb2   : > { %836 = vst [vmem:[%s4784_s27 + $0xa00] sm:$0xff] %v835_v0  ;;  %v839_v2 = vld [vmem:[%s4776_s26 + $0x1420] sm:$0xff]  ;;  %v841_v3 = vld [vmem:[%s4776_s26 + $0x1428] sm:$0xff]  ;;  %838 = vst [vmem:[%s4784_s27 + $0xa08] sm:$0xff] %v837_v1 }
  0xb3   : > { %840 = vst [vmem:[%s4784_s27 + $0xa10] sm:$0xff] %v839_v2  ;;  %842 = vst [vmem:[%s4784_s27 + $0xa18] sm:$0xff] %v841_v3  ;;  %v843_v4 = vld [vmem:[%s4776_s26 + $0x1440] sm:$0xff]  ;;  %v845_v5 = vld [vmem:[%s4776_s26 + $0x1448] sm:$0xff] }
  0xb4   : > { %v847_v6 = vld [vmem:[%s4776_s26 + $0x1460] sm:$0xff]  ;;  %844 = vst [vmem:[%s4784_s27 + $0xa20] sm:$0xff] %v843_v4  ;;  %846 = vst [vmem:[%s4784_s27 + $0xa28] sm:$0xff] %v845_v5  ;;  %v849_v7 = vld [vmem:[%s4776_s26 + $0x1468] sm:$0xff] }
  0xb5   : > { %848 = vst [vmem:[%s4784_s27 + $0xa30] sm:$0xff] %v847_v6  ;;  %v851_v8 = vld [vmem:[%s4776_s26 + $0x1480] sm:$0xff]  ;;  %v853_v9 = vld [vmem:[%s4776_s26 + $0x1488] sm:$0xff]  ;;  %850 = vst [vmem:[%s4784_s27 + $0xa38] sm:$0xff] %v849_v7 }
  0xb6   : > { %852 = vst [vmem:[%s4784_s27 + $0xa40] sm:$0xff] %v851_v8  ;;  %854 = vst [vmem:[%s4784_s27 + $0xa48] sm:$0xff] %v853_v9  ;;  %v855_v10 = vld [vmem:[%s4776_s26 + $0x14a0] sm:$0xff]  ;;  %v857_v11 = vld [vmem:[%s4776_s26 + $0x14a8] sm:$0xff] }
  0xb7   : > { %v859_v12 = vld [vmem:[%s4776_s26 + $0x14c0] sm:$0xff]  ;;  %856 = vst [vmem:[%s4784_s27 + $0xa50] sm:$0xff] %v855_v10  ;;  %858 = vst [vmem:[%s4784_s27 + $0xa58] sm:$0xff] %v857_v11  ;;  %v861_v13 = vld [vmem:[%s4776_s26 + $0x14c8] sm:$0xff] }
  0xb8   : > { %860 = vst [vmem:[%s4784_s27 + $0xa60] sm:$0xff] %v859_v12  ;;  %v863_v14 = vld [vmem:[%s4776_s26 + $0x14e0] sm:$0xff]  ;;  %v865_v15 = vld [vmem:[%s4776_s26 + $0x14e8] sm:$0xff]  ;;  %862 = vst [vmem:[%s4784_s27 + $0xa68] sm:$0xff] %v861_v13 }
  0xb9   : > { %864 = vst [vmem:[%s4784_s27 + $0xa70] sm:$0xff] %v863_v14  ;;  %866 = vst [vmem:[%s4784_s27 + $0xa78] sm:$0xff] %v865_v15  ;;  %v867_v16 = vld [vmem:[%s4776_s26 + $0x1500] sm:$0xff]  ;;  %v869_v17 = vld [vmem:[%s4776_s26 + $0x1508] sm:$0xff] }
  0xba   : > { %v871_v18 = vld [vmem:[%s4776_s26 + $0x1520] sm:$0xff]  ;;  %868 = vst [vmem:[%s4784_s27 + $0xa80] sm:$0xff] %v867_v16  ;;  %870 = vst [vmem:[%s4784_s27 + $0xa88] sm:$0xff] %v869_v17  ;;  %v873_v19 = vld [vmem:[%s4776_s26 + $0x1528] sm:$0xff] }
  0xbb   : > { %872 = vst [vmem:[%s4784_s27 + $0xa90] sm:$0xff] %v871_v18  ;;  %v875_v20 = vld [vmem:[%s4776_s26 + $0x1540] sm:$0xff]  ;;  %v877_v21 = vld [vmem:[%s4776_s26 + $0x1548] sm:$0xff]  ;;  %874 = vst [vmem:[%s4784_s27 + $0xa98] sm:$0xff] %v873_v19 }
  0xbc   : > { %876 = vst [vmem:[%s4784_s27 + $0xaa0] sm:$0xff] %v875_v20  ;;  %878 = vst [vmem:[%s4784_s27 + $0xaa8] sm:$0xff] %v877_v21  ;;  %v879_v22 = vld [vmem:[%s4776_s26 + $0x1560] sm:$0xff]  ;;  %v881_v23 = vld [vmem:[%s4776_s26 + $0x1568] sm:$0xff] }
  0xbd   : > { %v883_v24 = vld [vmem:[%s4776_s26 + $0x1580] sm:$0xff]  ;;  %880 = vst [vmem:[%s4784_s27 + $0xab0] sm:$0xff] %v879_v22  ;;  %882 = vst [vmem:[%s4784_s27 + $0xab8] sm:$0xff] %v881_v23  ;;  %v885_v25 = vld [vmem:[%s4776_s26 + $0x1588] sm:$0xff] }
  0xbe   : > { %884 = vst [vmem:[%s4784_s27 + $0xac0] sm:$0xff] %v883_v24  ;;  %v887_v26 = vld [vmem:[%s4776_s26 + $0x15a0] sm:$0xff]  ;;  %v889_v27 = vld [vmem:[%s4776_s26 + $0x15a8] sm:$0xff]  ;;  %886 = vst [vmem:[%s4784_s27 + $0xac8] sm:$0xff] %v885_v25 }
  0xbf   : > { %888 = vst [vmem:[%s4784_s27 + $0xad0] sm:$0xff] %v887_v26  ;;  %890 = vst [vmem:[%s4784_s27 + $0xad8] sm:$0xff] %v889_v27  ;;  %v891_v28 = vld [vmem:[%s4776_s26 + $0x15c0] sm:$0xff]  ;;  %v893_v29 = vld [vmem:[%s4776_s26 + $0x15c8] sm:$0xff] }
  0xc0   : > { %v895_v30 = vld [vmem:[%s4776_s26 + $0x15e0] sm:$0xff]  ;;  %892 = vst [vmem:[%s4784_s27 + $0xae0] sm:$0xff] %v891_v28  ;;  %894 = vst [vmem:[%s4784_s27 + $0xae8] sm:$0xff] %v893_v29  ;;  %v897_v31 = vld [vmem:[%s4776_s26 + $0x15e8] sm:$0xff] }
  0xc1   : > { %896 = vst [vmem:[%s4784_s27 + $0xaf0] sm:$0xff] %v895_v30  ;;  %v899_v32 = vld [vmem:[%s4776_s26 + $0x1600] sm:$0xff]  ;;  %v901_v33 = vld [vmem:[%s4776_s26 + $0x1608] sm:$0xff]  ;;  %898 = vst [vmem:[%s4784_s27 + $0xaf8] sm:$0xff] %v897_v31 }
  0xc2   : > { %900 = vst [vmem:[%s4784_s27 + $0xb00] sm:$0xff] %v899_v32  ;;  %902 = vst [vmem:[%s4784_s27 + $0xb08] sm:$0xff] %v901_v33  ;;  %v903_v34 = vld [vmem:[%s4776_s26 + $0x1620] sm:$0xff]  ;;  %v905_v35 = vld [vmem:[%s4776_s26 + $0x1628] sm:$0xff] }
  0xc3   : > { %v907_v36 = vld [vmem:[%s4776_s26 + $0x1640] sm:$0xff]  ;;  %904 = vst [vmem:[%s4784_s27 + $0xb10] sm:$0xff] %v903_v34  ;;  %906 = vst [vmem:[%s4784_s27 + $0xb18] sm:$0xff] %v905_v35  ;;  %v909_v37 = vld [vmem:[%s4776_s26 + $0x1648] sm:$0xff] }
  0xc4   : > { %908 = vst [vmem:[%s4784_s27 + $0xb20] sm:$0xff] %v907_v36  ;;  %v911_v38 = vld [vmem:[%s4776_s26 + $0x1660] sm:$0xff]  ;;  %v913_v39 = vld [vmem:[%s4776_s26 + $0x1668] sm:$0xff]  ;;  %910 = vst [vmem:[%s4784_s27 + $0xb28] sm:$0xff] %v909_v37 }
  0xc5   : > { %912 = vst [vmem:[%s4784_s27 + $0xb30] sm:$0xff] %v911_v38  ;;  %914 = vst [vmem:[%s4784_s27 + $0xb38] sm:$0xff] %v913_v39  ;;  %v915_v40 = vld [vmem:[%s4776_s26 + $0x1680] sm:$0xff]  ;;  %v917_v41 = vld [vmem:[%s4776_s26 + $0x1688] sm:$0xff] }
  0xc6   : > { %v919_v42 = vld [vmem:[%s4776_s26 + $0x16a0] sm:$0xff]  ;;  %916 = vst [vmem:[%s4784_s27 + $0xb40] sm:$0xff] %v915_v40  ;;  %918 = vst [vmem:[%s4784_s27 + $0xb48] sm:$0xff] %v917_v41  ;;  %v921_v43 = vld [vmem:[%s4776_s26 + $0x16a8] sm:$0xff] }
  0xc7   : > { %920 = vst [vmem:[%s4784_s27 + $0xb50] sm:$0xff] %v919_v42  ;;  %v923_v44 = vld [vmem:[%s4776_s26 + $0x16c0] sm:$0xff]  ;;  %v925_v45 = vld [vmem:[%s4776_s26 + $0x16c8] sm:$0xff]  ;;  %922 = vst [vmem:[%s4784_s27 + $0xb58] sm:$0xff] %v921_v43 }
  0xc8   : > { %924 = vst [vmem:[%s4784_s27 + $0xb60] sm:$0xff] %v923_v44  ;;  %926 = vst [vmem:[%s4784_s27 + $0xb68] sm:$0xff] %v925_v45  ;;  %v927_v46 = vld [vmem:[%s4776_s26 + $0x16e0] sm:$0xff]  ;;  %v929_v47 = vld [vmem:[%s4776_s26 + $0x16e8] sm:$0xff] }
  0xc9   : > { %v931_v48 = vld [vmem:[%s4776_s26 + $0x1700] sm:$0xff]  ;;  %928 = vst [vmem:[%s4784_s27 + $0xb70] sm:$0xff] %v927_v46  ;;  %930 = vst [vmem:[%s4784_s27 + $0xb78] sm:$0xff] %v929_v47  ;;  %v933_v49 = vld [vmem:[%s4776_s26 + $0x1708] sm:$0xff] }
  0xca   : > { %932 = vst [vmem:[%s4784_s27 + $0xb80] sm:$0xff] %v931_v48  ;;  %v935_v50 = vld [vmem:[%s4776_s26 + $0x1720] sm:$0xff]  ;;  %v937_v51 = vld [vmem:[%s4776_s26 + $0x1728] sm:$0xff]  ;;  %934 = vst [vmem:[%s4784_s27 + $0xb88] sm:$0xff] %v933_v49 }
  0xcb   : > { %936 = vst [vmem:[%s4784_s27 + $0xb90] sm:$0xff] %v935_v50  ;;  %938 = vst [vmem:[%s4784_s27 + $0xb98] sm:$0xff] %v937_v51  ;;  %v939_v52 = vld [vmem:[%s4776_s26 + $0x1740] sm:$0xff]  ;;  %v941_v53 = vld [vmem:[%s4776_s26 + $0x1748] sm:$0xff] }
  0xcc   : > { %v943_v54 = vld [vmem:[%s4776_s26 + $0x1760] sm:$0xff]  ;;  %940 = vst [vmem:[%s4784_s27 + $0xba0] sm:$0xff] %v939_v52  ;;  %942 = vst [vmem:[%s4784_s27 + $0xba8] sm:$0xff] %v941_v53  ;;  %v945_v55 = vld [vmem:[%s4776_s26 + $0x1768] sm:$0xff] }
  0xcd   : > { %944 = vst [vmem:[%s4784_s27 + $0xbb0] sm:$0xff] %v943_v54  ;;  %v947_v56 = vld [vmem:[%s4776_s26 + $0x1780] sm:$0xff]  ;;  %v949_v57 = vld [vmem:[%s4776_s26 + $0x1788] sm:$0xff]  ;;  %946 = vst [vmem:[%s4784_s27 + $0xbb8] sm:$0xff] %v945_v55 }
  0xce   : > { %948 = vst [vmem:[%s4784_s27 + $0xbc0] sm:$0xff] %v947_v56  ;;  %950 = vst [vmem:[%s4784_s27 + $0xbc8] sm:$0xff] %v949_v57  ;;  %v951_v58 = vld [vmem:[%s4776_s26 + $0x17a0] sm:$0xff]  ;;  %v953_v59 = vld [vmem:[%s4776_s26 + $0x17a8] sm:$0xff] }
  0xcf   : > { %v955_v60 = vld [vmem:[%s4776_s26 + $0x17c0] sm:$0xff]  ;;  %952 = vst [vmem:[%s4784_s27 + $0xbd0] sm:$0xff] %v951_v58  ;;  %954 = vst [vmem:[%s4784_s27 + $0xbd8] sm:$0xff] %v953_v59  ;;  %v957_v61 = vld [vmem:[%s4776_s26 + $0x17c8] sm:$0xff] }
  0xd0   : > { %956 = vst [vmem:[%s4784_s27 + $0xbe0] sm:$0xff] %v955_v60  ;;  %v959_v62 = vld [vmem:[%s4776_s26 + $0x17e0] sm:$0xff]  ;;  %v961_v63 = vld [vmem:[%s4776_s26 + $0x17e8] sm:$0xff]  ;;  %958 = vst [vmem:[%s4784_s27 + $0xbe8] sm:$0xff] %v957_v61 }
  0xd1   : > { %960 = vst [vmem:[%s4784_s27 + $0xbf0] sm:$0xff] %v959_v62  ;;  %962 = vst [vmem:[%s4784_s27 + $0xbf8] sm:$0xff] %v961_v63  ;;  %v963_v0 = vld [vmem:[%s4776_s26 + $0x1800] sm:$0xff]  ;;  %v965_v1 = vld [vmem:[%s4776_s26 + $0x1808] sm:$0xff] }
  0xd2   : > { %v967_v2 = vld [vmem:[%s4776_s26 + $0x1820] sm:$0xff]  ;;  %964 = vst [vmem:[%s4784_s27 + $0xc00] sm:$0xff] %v963_v0  ;;  %966 = vst [vmem:[%s4784_s27 + $0xc08] sm:$0xff] %v965_v1  ;;  %v969_v3 = vld [vmem:[%s4776_s26 + $0x1828] sm:$0xff] }
  0xd3   : > { %968 = vst [vmem:[%s4784_s27 + $0xc10] sm:$0xff] %v967_v2  ;;  %v971_v4 = vld [vmem:[%s4776_s26 + $0x1840] sm:$0xff]  ;;  %v973_v5 = vld [vmem:[%s4776_s26 + $0x1848] sm:$0xff]  ;;  %970 = vst [vmem:[%s4784_s27 + $0xc18] sm:$0xff] %v969_v3 }
  0xd4   : > { %972 = vst [vmem:[%s4784_s27 + $0xc20] sm:$0xff] %v971_v4  ;;  %974 = vst [vmem:[%s4784_s27 + $0xc28] sm:$0xff] %v973_v5  ;;  %v975_v6 = vld [vmem:[%s4776_s26 + $0x1860] sm:$0xff]  ;;  %v977_v7 = vld [vmem:[%s4776_s26 + $0x1868] sm:$0xff] }
  0xd5   : > { %v979_v8 = vld [vmem:[%s4776_s26 + $0x1880] sm:$0xff]  ;;  %976 = vst [vmem:[%s4784_s27 + $0xc30] sm:$0xff] %v975_v6  ;;  %978 = vst [vmem:[%s4784_s27 + $0xc38] sm:$0xff] %v977_v7  ;;  %v981_v9 = vld [vmem:[%s4776_s26 + $0x1888] sm:$0xff] }
  0xd6   : > { %980 = vst [vmem:[%s4784_s27 + $0xc40] sm:$0xff] %v979_v8  ;;  %v983_v10 = vld [vmem:[%s4776_s26 + $0x18a0] sm:$0xff]  ;;  %v985_v11 = vld [vmem:[%s4776_s26 + $0x18a8] sm:$0xff]  ;;  %982 = vst [vmem:[%s4784_s27 + $0xc48] sm:$0xff] %v981_v9 }
  0xd7   : > { %984 = vst [vmem:[%s4784_s27 + $0xc50] sm:$0xff] %v983_v10  ;;  %986 = vst [vmem:[%s4784_s27 + $0xc58] sm:$0xff] %v985_v11  ;;  %v987_v12 = vld [vmem:[%s4776_s26 + $0x18c0] sm:$0xff]  ;;  %v989_v13 = vld [vmem:[%s4776_s26 + $0x18c8] sm:$0xff] }
  0xd8   : > { %v991_v14 = vld [vmem:[%s4776_s26 + $0x18e0] sm:$0xff]  ;;  %988 = vst [vmem:[%s4784_s27 + $0xc60] sm:$0xff] %v987_v12  ;;  %990 = vst [vmem:[%s4784_s27 + $0xc68] sm:$0xff] %v989_v13  ;;  %v993_v15 = vld [vmem:[%s4776_s26 + $0x18e8] sm:$0xff] }
  0xd9   : > { %992 = vst [vmem:[%s4784_s27 + $0xc70] sm:$0xff] %v991_v14  ;;  %v995_v16 = vld [vmem:[%s4776_s26 + $0x1900] sm:$0xff]  ;;  %v997_v17 = vld [vmem:[%s4776_s26 + $0x1908] sm:$0xff]  ;;  %994 = vst [vmem:[%s4784_s27 + $0xc78] sm:$0xff] %v993_v15 }
  0xda   : > { %996 = vst [vmem:[%s4784_s27 + $0xc80] sm:$0xff] %v995_v16  ;;  %998 = vst [vmem:[%s4784_s27 + $0xc88] sm:$0xff] %v997_v17  ;;  %v999_v18 = vld [vmem:[%s4776_s26 + $0x1920] sm:$0xff]  ;;  %v1001_v19 = vld [vmem:[%s4776_s26 + $0x1928] sm:$0xff] }
  0xdb   : > { %v1003_v20 = vld [vmem:[%s4776_s26 + $0x1940] sm:$0xff]  ;;  %1000 = vst [vmem:[%s4784_s27 + $0xc90] sm:$0xff] %v999_v18  ;;  %1002 = vst [vmem:[%s4784_s27 + $0xc98] sm:$0xff] %v1001_v19  ;;  %v1005_v21 = vld [vmem:[%s4776_s26 + $0x1948] sm:$0xff] }
  0xdc   : > { %1004 = vst [vmem:[%s4784_s27 + $0xca0] sm:$0xff] %v1003_v20  ;;  %v1007_v22 = vld [vmem:[%s4776_s26 + $0x1960] sm:$0xff]  ;;  %v1009_v23 = vld [vmem:[%s4776_s26 + $0x1968] sm:$0xff]  ;;  %1006 = vst [vmem:[%s4784_s27 + $0xca8] sm:$0xff] %v1005_v21 }
  0xdd   : > { %1008 = vst [vmem:[%s4784_s27 + $0xcb0] sm:$0xff] %v1007_v22  ;;  %1010 = vst [vmem:[%s4784_s27 + $0xcb8] sm:$0xff] %v1009_v23  ;;  %v1011_v24 = vld [vmem:[%s4776_s26 + $0x1980] sm:$0xff]  ;;  %v1013_v25 = vld [vmem:[%s4776_s26 + $0x1988] sm:$0xff] }
  0xde   : > { %v1015_v26 = vld [vmem:[%s4776_s26 + $0x19a0] sm:$0xff]  ;;  %1012 = vst [vmem:[%s4784_s27 + $0xcc0] sm:$0xff] %v1011_v24  ;;  %1014 = vst [vmem:[%s4784_s27 + $0xcc8] sm:$0xff] %v1013_v25  ;;  %v1017_v27 = vld [vmem:[%s4776_s26 + $0x19a8] sm:$0xff] }
  0xdf   : > { %1016 = vst [vmem:[%s4784_s27 + $0xcd0] sm:$0xff] %v1015_v26  ;;  %v1019_v28 = vld [vmem:[%s4776_s26 + $0x19c0] sm:$0xff]  ;;  %v1021_v29 = vld [vmem:[%s4776_s26 + $0x19c8] sm:$0xff]  ;;  %1018 = vst [vmem:[%s4784_s27 + $0xcd8] sm:$0xff] %v1017_v27 }
  0xe0   : > { %1020 = vst [vmem:[%s4784_s27 + $0xce0] sm:$0xff] %v1019_v28  ;;  %1022 = vst [vmem:[%s4784_s27 + $0xce8] sm:$0xff] %v1021_v29  ;;  %v1023_v30 = vld [vmem:[%s4776_s26 + $0x19e0] sm:$0xff]  ;;  %v1025_v31 = vld [vmem:[%s4776_s26 + $0x19e8] sm:$0xff] }
  0xe1   : > { %v1027_v32 = vld [vmem:[%s4776_s26 + $0x1a00] sm:$0xff]  ;;  %1024 = vst [vmem:[%s4784_s27 + $0xcf0] sm:$0xff] %v1023_v30  ;;  %1026 = vst [vmem:[%s4784_s27 + $0xcf8] sm:$0xff] %v1025_v31  ;;  %v1029_v33 = vld [vmem:[%s4776_s26 + $0x1a08] sm:$0xff] }
  0xe2   : > { %1028 = vst [vmem:[%s4784_s27 + $0xd00] sm:$0xff] %v1027_v32  ;;  %v1031_v34 = vld [vmem:[%s4776_s26 + $0x1a20] sm:$0xff]  ;;  %v1033_v35 = vld [vmem:[%s4776_s26 + $0x1a28] sm:$0xff]  ;;  %1030 = vst [vmem:[%s4784_s27 + $0xd08] sm:$0xff] %v1029_v33 }
  0xe3   : > { %1032 = vst [vmem:[%s4784_s27 + $0xd10] sm:$0xff] %v1031_v34  ;;  %1034 = vst [vmem:[%s4784_s27 + $0xd18] sm:$0xff] %v1033_v35  ;;  %v1035_v36 = vld [vmem:[%s4776_s26 + $0x1a40] sm:$0xff]  ;;  %v1037_v37 = vld [vmem:[%s4776_s26 + $0x1a48] sm:$0xff] }
  0xe4   : > { %v1039_v38 = vld [vmem:[%s4776_s26 + $0x1a60] sm:$0xff]  ;;  %1036 = vst [vmem:[%s4784_s27 + $0xd20] sm:$0xff] %v1035_v36  ;;  %1038 = vst [vmem:[%s4784_s27 + $0xd28] sm:$0xff] %v1037_v37  ;;  %v1041_v39 = vld [vmem:[%s4776_s26 + $0x1a68] sm:$0xff] }
  0xe5   : > { %1040 = vst [vmem:[%s4784_s27 + $0xd30] sm:$0xff] %v1039_v38  ;;  %v1043_v40 = vld [vmem:[%s4776_s26 + $0x1a80] sm:$0xff]  ;;  %v1045_v41 = vld [vmem:[%s4776_s26 + $0x1a88] sm:$0xff]  ;;  %1042 = vst [vmem:[%s4784_s27 + $0xd38] sm:$0xff] %v1041_v39 }
  0xe6   : > { %1044 = vst [vmem:[%s4784_s27 + $0xd40] sm:$0xff] %v1043_v40  ;;  %1046 = vst [vmem:[%s4784_s27 + $0xd48] sm:$0xff] %v1045_v41  ;;  %v1047_v42 = vld [vmem:[%s4776_s26 + $0x1aa0] sm:$0xff]  ;;  %v1049_v43 = vld [vmem:[%s4776_s26 + $0x1aa8] sm:$0xff] }
  0xe7   : > { %v1051_v44 = vld [vmem:[%s4776_s26 + $0x1ac0] sm:$0xff]  ;;  %1048 = vst [vmem:[%s4784_s27 + $0xd50] sm:$0xff] %v1047_v42  ;;  %1050 = vst [vmem:[%s4784_s27 + $0xd58] sm:$0xff] %v1049_v43  ;;  %v1053_v45 = vld [vmem:[%s4776_s26 + $0x1ac8] sm:$0xff] }
  0xe8   : > { %1052 = vst [vmem:[%s4784_s27 + $0xd60] sm:$0xff] %v1051_v44  ;;  %v1055_v46 = vld [vmem:[%s4776_s26 + $0x1ae0] sm:$0xff]  ;;  %v1057_v47 = vld [vmem:[%s4776_s26 + $0x1ae8] sm:$0xff]  ;;  %1054 = vst [vmem:[%s4784_s27 + $0xd68] sm:$0xff] %v1053_v45 }
  0xe9   : > { %1056 = vst [vmem:[%s4784_s27 + $0xd70] sm:$0xff] %v1055_v46  ;;  %1058 = vst [vmem:[%s4784_s27 + $0xd78] sm:$0xff] %v1057_v47  ;;  %v1059_v48 = vld [vmem:[%s4776_s26 + $0x1b00] sm:$0xff]  ;;  %v1061_v49 = vld [vmem:[%s4776_s26 + $0x1b08] sm:$0xff] }
  0xea   : > { %v1063_v50 = vld [vmem:[%s4776_s26 + $0x1b20] sm:$0xff]  ;;  %1060 = vst [vmem:[%s4784_s27 + $0xd80] sm:$0xff] %v1059_v48  ;;  %1062 = vst [vmem:[%s4784_s27 + $0xd88] sm:$0xff] %v1061_v49  ;;  %v1065_v51 = vld [vmem:[%s4776_s26 + $0x1b28] sm:$0xff] }
  0xeb   : > { %1064 = vst [vmem:[%s4784_s27 + $0xd90] sm:$0xff] %v1063_v50  ;;  %v1067_v52 = vld [vmem:[%s4776_s26 + $0x1b40] sm:$0xff]  ;;  %v1069_v53 = vld [vmem:[%s4776_s26 + $0x1b48] sm:$0xff]  ;;  %1066 = vst [vmem:[%s4784_s27 + $0xd98] sm:$0xff] %v1065_v51 }
  0xec   : > { %1068 = vst [vmem:[%s4784_s27 + $0xda0] sm:$0xff] %v1067_v52  ;;  %1070 = vst [vmem:[%s4784_s27 + $0xda8] sm:$0xff] %v1069_v53  ;;  %v1071_v54 = vld [vmem:[%s4776_s26 + $0x1b60] sm:$0xff]  ;;  %v1073_v55 = vld [vmem:[%s4776_s26 + $0x1b68] sm:$0xff] }
  0xed   : > { %v1075_v56 = vld [vmem:[%s4776_s26 + $0x1b80] sm:$0xff]  ;;  %1072 = vst [vmem:[%s4784_s27 + $0xdb0] sm:$0xff] %v1071_v54  ;;  %1074 = vst [vmem:[%s4784_s27 + $0xdb8] sm:$0xff] %v1073_v55  ;;  %v1077_v57 = vld [vmem:[%s4776_s26 + $0x1b88] sm:$0xff] }
  0xee   : > { %1076 = vst [vmem:[%s4784_s27 + $0xdc0] sm:$0xff] %v1075_v56  ;;  %v1079_v58 = vld [vmem:[%s4776_s26 + $0x1ba0] sm:$0xff]  ;;  %v1081_v59 = vld [vmem:[%s4776_s26 + $0x1ba8] sm:$0xff]  ;;  %1078 = vst [vmem:[%s4784_s27 + $0xdc8] sm:$0xff] %v1077_v57 }
  0xef   : > { %1080 = vst [vmem:[%s4784_s27 + $0xdd0] sm:$0xff] %v1079_v58  ;;  %1082 = vst [vmem:[%s4784_s27 + $0xdd8] sm:$0xff] %v1081_v59  ;;  %v1083_v60 = vld [vmem:[%s4776_s26 + $0x1bc0] sm:$0xff]  ;;  %v1085_v61 = vld [vmem:[%s4776_s26 + $0x1bc8] sm:$0xff] }
  0xf0   : > { %v1087_v62 = vld [vmem:[%s4776_s26 + $0x1be0] sm:$0xff]  ;;  %1084 = vst [vmem:[%s4784_s27 + $0xde0] sm:$0xff] %v1083_v60  ;;  %1086 = vst [vmem:[%s4784_s27 + $0xde8] sm:$0xff] %v1085_v61  ;;  %v1089_v63 = vld [vmem:[%s4776_s26 + $0x1be8] sm:$0xff] }
  0xf1   : > { %1088 = vst [vmem:[%s4784_s27 + $0xdf0] sm:$0xff] %v1087_v62  ;;  %v1091_v0 = vld [vmem:[%s4776_s26 + $0x1c00] sm:$0xff]  ;;  %v1093_v1 = vld [vmem:[%s4776_s26 + $0x1c08] sm:$0xff]  ;;  %1090 = vst [vmem:[%s4784_s27 + $0xdf8] sm:$0xff] %v1089_v63 }
  0xf2   : > { %1092 = vst [vmem:[%s4784_s27 + $0xe00] sm:$0xff] %v1091_v0  ;;  %1094 = vst [vmem:[%s4784_s27 + $0xe08] sm:$0xff] %v1093_v1  ;;  %v1095_v2 = vld [vmem:[%s4776_s26 + $0x1c20] sm:$0xff]  ;;  %v1097_v3 = vld [vmem:[%s4776_s26 + $0x1c28] sm:$0xff] }
  0xf3   : > { %v1099_v4 = vld [vmem:[%s4776_s26 + $0x1c40] sm:$0xff]  ;;  %1096 = vst [vmem:[%s4784_s27 + $0xe10] sm:$0xff] %v1095_v2  ;;  %1098 = vst [vmem:[%s4784_s27 + $0xe18] sm:$0xff] %v1097_v3  ;;  %v1101_v5 = vld [vmem:[%s4776_s26 + $0x1c48] sm:$0xff] }
  0xf4   : > { %1100 = vst [vmem:[%s4784_s27 + $0xe20] sm:$0xff] %v1099_v4  ;;  %v1103_v6 = vld [vmem:[%s4776_s26 + $0x1c60] sm:$0xff]  ;;  %v1105_v7 = vld [vmem:[%s4776_s26 + $0x1c68] sm:$0xff]  ;;  %1102 = vst [vmem:[%s4784_s27 + $0xe28] sm:$0xff] %v1101_v5 }
  0xf5   : > { %1104 = vst [vmem:[%s4784_s27 + $0xe30] sm:$0xff] %v1103_v6  ;;  %1106 = vst [vmem:[%s4784_s27 + $0xe38] sm:$0xff] %v1105_v7  ;;  %v1107_v8 = vld [vmem:[%s4776_s26 + $0x1c80] sm:$0xff]  ;;  %v1109_v9 = vld [vmem:[%s4776_s26 + $0x1c88] sm:$0xff] }
  0xf6   : > { %v1111_v10 = vld [vmem:[%s4776_s26 + $0x1ca0] sm:$0xff]  ;;  %1108 = vst [vmem:[%s4784_s27 + $0xe40] sm:$0xff] %v1107_v8  ;;  %1110 = vst [vmem:[%s4784_s27 + $0xe48] sm:$0xff] %v1109_v9  ;;  %v1113_v11 = vld [vmem:[%s4776_s26 + $0x1ca8] sm:$0xff] }
  0xf7   : > { %1112 = vst [vmem:[%s4784_s27 + $0xe50] sm:$0xff] %v1111_v10  ;;  %v1115_v12 = vld [vmem:[%s4776_s26 + $0x1cc0] sm:$0xff]  ;;  %v1117_v13 = vld [vmem:[%s4776_s26 + $0x1cc8] sm:$0xff]  ;;  %1114 = vst [vmem:[%s4784_s27 + $0xe58] sm:$0xff] %v1113_v11 }
  0xf8   : > { %1116 = vst [vmem:[%s4784_s27 + $0xe60] sm:$0xff] %v1115_v12  ;;  %1118 = vst [vmem:[%s4784_s27 + $0xe68] sm:$0xff] %v1117_v13  ;;  %v1119_v14 = vld [vmem:[%s4776_s26 + $0x1ce0] sm:$0xff]  ;;  %v1121_v15 = vld [vmem:[%s4776_s26 + $0x1ce8] sm:$0xff] }
  0xf9   : > { %v1123_v16 = vld [vmem:[%s4776_s26 + $0x1d00] sm:$0xff]  ;;  %1120 = vst [vmem:[%s4784_s27 + $0xe70] sm:$0xff] %v1119_v14  ;;  %1122 = vst [vmem:[%s4784_s27 + $0xe78] sm:$0xff] %v1121_v15  ;;  %v1125_v17 = vld [vmem:[%s4776_s26 + $0x1d08] sm:$0xff] }
  0xfa   : > { %1124 = vst [vmem:[%s4784_s27 + $0xe80] sm:$0xff] %v1123_v16  ;;  %v1127_v18 = vld [vmem:[%s4776_s26 + $0x1d20] sm:$0xff]  ;;  %v1129_v19 = vld [vmem:[%s4776_s26 + $0x1d28] sm:$0xff]  ;;  %1126 = vst [vmem:[%s4784_s27 + $0xe88] sm:$0xff] %v1125_v17 }
  0xfb   : > { %1128 = vst [vmem:[%s4784_s27 + $0xe90] sm:$0xff] %v1127_v18  ;;  %1130 = vst [vmem:[%s4784_s27 + $0xe98] sm:$0xff] %v1129_v19  ;;  %v1131_v20 = vld [vmem:[%s4776_s26 + $0x1d40] sm:$0xff]  ;;  %v1133_v21 = vld [vmem:[%s4776_s26 + $0x1d48] sm:$0xff] }
  0xfc   : > { %v1135_v22 = vld [vmem:[%s4776_s26 + $0x1d60] sm:$0xff]  ;;  %1132 = vst [vmem:[%s4784_s27 + $0xea0] sm:$0xff] %v1131_v20  ;;  %1134 = vst [vmem:[%s4784_s27 + $0xea8] sm:$0xff] %v1133_v21  ;;  %v1137_v23 = vld [vmem:[%s4776_s26 + $0x1d68] sm:$0xff] }
  0xfd   : > { %1136 = vst [vmem:[%s4784_s27 + $0xeb0] sm:$0xff] %v1135_v22  ;;  %v1139_v24 = vld [vmem:[%s4776_s26 + $0x1d80] sm:$0xff]  ;;  %v1141_v25 = vld [vmem:[%s4776_s26 + $0x1d88] sm:$0xff]  ;;  %1138 = vst [vmem:[%s4784_s27 + $0xeb8] sm:$0xff] %v1137_v23 }
  0xfe   : > { %1140 = vst [vmem:[%s4784_s27 + $0xec0] sm:$0xff] %v1139_v24  ;;  %1142 = vst [vmem:[%s4784_s27 + $0xec8] sm:$0xff] %v1141_v25  ;;  %v1143_v26 = vld [vmem:[%s4776_s26 + $0x1da0] sm:$0xff]  ;;  %v1145_v27 = vld [vmem:[%s4776_s26 + $0x1da8] sm:$0xff] }
  0xff   : > { %v1147_v28 = vld [vmem:[%s4776_s26 + $0x1dc0] sm:$0xff]  ;;  %1144 = vst [vmem:[%s4784_s27 + $0xed0] sm:$0xff] %v1143_v26  ;;  %1146 = vst [vmem:[%s4784_s27 + $0xed8] sm:$0xff] %v1145_v27  ;;  %v1149_v29 = vld [vmem:[%s4776_s26 + $0x1dc8] sm:$0xff] }
 0x100   : > { %1148 = vst [vmem:[%s4784_s27 + $0xee0] sm:$0xff] %v1147_v28  ;;  %v1151_v30 = vld [vmem:[%s4776_s26 + $0x1de0] sm:$0xff]  ;;  %v1153_v31 = vld [vmem:[%s4776_s26 + $0x1de8] sm:$0xff]  ;;  %1150 = vst [vmem:[%s4784_s27 + $0xee8] sm:$0xff] %v1149_v29 }
 0x101   : > { %1152 = vst [vmem:[%s4784_s27 + $0xef0] sm:$0xff] %v1151_v30  ;;  %1154 = vst [vmem:[%s4784_s27 + $0xef8] sm:$0xff] %v1153_v31  ;;  %v1155_v32 = vld [vmem:[%s4776_s26 + $0x1e00] sm:$0xff]  ;;  %v1157_v33 = vld [vmem:[%s4776_s26 + $0x1e08] sm:$0xff] }
 0x102   : > { %v1159_v34 = vld [vmem:[%s4776_s26 + $0x1e20] sm:$0xff]  ;;  %1156 = vst [vmem:[%s4784_s27 + $0xf00] sm:$0xff] %v1155_v32  ;;  %1158 = vst [vmem:[%s4784_s27 + $0xf08] sm:$0xff] %v1157_v33  ;;  %v1161_v35 = vld [vmem:[%s4776_s26 + $0x1e28] sm:$0xff] }
 0x103   : > { %1160 = vst [vmem:[%s4784_s27 + $0xf10] sm:$0xff] %v1159_v34  ;;  %v1163_v36 = vld [vmem:[%s4776_s26 + $0x1e40] sm:$0xff]  ;;  %v1165_v37 = vld [vmem:[%s4776_s26 + $0x1e48] sm:$0xff]  ;;  %1162 = vst [vmem:[%s4784_s27 + $0xf18] sm:$0xff] %v1161_v35 }
 0x104   : > { %1164 = vst [vmem:[%s4784_s27 + $0xf20] sm:$0xff] %v1163_v36  ;;  %1166 = vst [vmem:[%s4784_s27 + $0xf28] sm:$0xff] %v1165_v37  ;;  %v1167_v38 = vld [vmem:[%s4776_s26 + $0x1e60] sm:$0xff]  ;;  %v1169_v39 = vld [vmem:[%s4776_s26 + $0x1e68] sm:$0xff] }
 0x105   : > { %v1171_v40 = vld [vmem:[%s4776_s26 + $0x1e80] sm:$0xff]  ;;  %1168 = vst [vmem:[%s4784_s27 + $0xf30] sm:$0xff] %v1167_v38  ;;  %1170 = vst [vmem:[%s4784_s27 + $0xf38] sm:$0xff] %v1169_v39  ;;  %v1173_v41 = vld [vmem:[%s4776_s26 + $0x1e88] sm:$0xff] }
 0x106   : > { %1172 = vst [vmem:[%s4784_s27 + $0xf40] sm:$0xff] %v1171_v40  ;;  %v1175_v42 = vld [vmem:[%s4776_s26 + $0x1ea0] sm:$0xff]  ;;  %v1177_v43 = vld [vmem:[%s4776_s26 + $0x1ea8] sm:$0xff]  ;;  %1174 = vst [vmem:[%s4784_s27 + $0xf48] sm:$0xff] %v1173_v41 }
 0x107   : > { %1176 = vst [vmem:[%s4784_s27 + $0xf50] sm:$0xff] %v1175_v42  ;;  %1178 = vst [vmem:[%s4784_s27 + $0xf58] sm:$0xff] %v1177_v43  ;;  %v1179_v44 = vld [vmem:[%s4776_s26 + $0x1ec0] sm:$0xff]  ;;  %v1181_v45 = vld [vmem:[%s4776_s26 + $0x1ec8] sm:$0xff] }
 0x108   : > { %v1183_v46 = vld [vmem:[%s4776_s26 + $0x1ee0] sm:$0xff]  ;;  %1180 = vst [vmem:[%s4784_s27 + $0xf60] sm:$0xff] %v1179_v44  ;;  %1182 = vst [vmem:[%s4784_s27 + $0xf68] sm:$0xff] %v1181_v45  ;;  %v1185_v47 = vld [vmem:[%s4776_s26 + $0x1ee8] sm:$0xff] }
 0x109   : > { %1184 = vst [vmem:[%s4784_s27 + $0xf70] sm:$0xff] %v1183_v46  ;;  %v1187_v48 = vld [vmem:[%s4776_s26 + $0x1f00] sm:$0xff]  ;;  %v1189_v49 = vld [vmem:[%s4776_s26 + $0x1f08] sm:$0xff]  ;;  %1186 = vst [vmem:[%s4784_s27 + $0xf78] sm:$0xff] %v1185_v47 }
 0x10a   : > { %1188 = vst [vmem:[%s4784_s27 + $0xf80] sm:$0xff] %v1187_v48  ;;  %1190 = vst [vmem:[%s4784_s27 + $0xf88] sm:$0xff] %v1189_v49  ;;  %v1191_v50 = vld [vmem:[%s4776_s26 + $0x1f20] sm:$0xff]  ;;  %v1193_v51 = vld [vmem:[%s4776_s26 + $0x1f28] sm:$0xff] }
 0x10b   : > { %v1195_v52 = vld [vmem:[%s4776_s26 + $0x1f40] sm:$0xff]  ;;  %1192 = vst [vmem:[%s4784_s27 + $0xf90] sm:$0xff] %v1191_v50  ;;  %1194 = vst [vmem:[%s4784_s27 + $0xf98] sm:$0xff] %v1193_v51  ;;  %v1197_v53 = vld [vmem:[%s4776_s26 + $0x1f48] sm:$0xff] }
 0x10c   : > { %1196 = vst [vmem:[%s4784_s27 + $0xfa0] sm:$0xff] %v1195_v52  ;;  %v1199_v54 = vld [vmem:[%s4776_s26 + $0x1f60] sm:$0xff]  ;;  %v1201_v55 = vld [vmem:[%s4776_s26 + $0x1f68] sm:$0xff]  ;;  %1198 = vst [vmem:[%s4784_s27 + $0xfa8] sm:$0xff] %v1197_v53 }
 0x10d   : > { %1200 = vst [vmem:[%s4784_s27 + $0xfb0] sm:$0xff] %v1199_v54  ;;  %1202 = vst [vmem:[%s4784_s27 + $0xfb8] sm:$0xff] %v1201_v55  ;;  %v1203_v56 = vld [vmem:[%s4776_s26 + $0x1f80] sm:$0xff]  ;;  %v1205_v57 = vld [vmem:[%s4776_s26 + $0x1f88] sm:$0xff] }
 0x10e   : > { %v1207_v58 = vld [vmem:[%s4776_s26 + $0x1fa0] sm:$0xff]  ;;  %1204 = vst [vmem:[%s4784_s27 + $0xfc0] sm:$0xff] %v1203_v56  ;;  %1206 = vst [vmem:[%s4784_s27 + $0xfc8] sm:$0xff] %v1205_v57  ;;  %v1209_v59 = vld [vmem:[%s4776_s26 + $0x1fa8] sm:$0xff] }
 0x10f   : > { %1208 = vst [vmem:[%s4784_s27 + $0xfd0] sm:$0xff] %v1207_v58  ;;  %v1211_v60 = vld [vmem:[%s4776_s26 + $0x1fc0] sm:$0xff]  ;;  %v1213_v61 = vld [vmem:[%s4776_s26 + $0x1fc8] sm:$0xff]  ;;  %1210 = vst [vmem:[%s4784_s27 + $0xfd8] sm:$0xff] %v1209_v59 }
 0x110   : > { %1212 = vst [vmem:[%s4784_s27 + $0xfe0] sm:$0xff] %v1211_v60  ;;  %1214 = vst [vmem:[%s4784_s27 + $0xfe8] sm:$0xff] %v1213_v61  ;;  %v1215_v62 = vld [vmem:[%s4776_s26 + $0x1fe0] sm:$0xff]  ;;  %v1217_v63 = vld [vmem:[%s4776_s26 + $0x1fe8] sm:$0xff] }
 0x111   : > { %v1219_v0 = vld [vmem:[%s4776_s26 + $0x2000] sm:$0xff]  ;;  %1216 = vst [vmem:[%s4784_s27 + $0xff0] sm:$0xff] %v1215_v62  ;;  %1218 = vst [vmem:[%s4784_s27 + $0xff8] sm:$0xff] %v1217_v63  ;;  %v1221_v1 = vld [vmem:[%s4776_s26 + $0x2008] sm:$0xff] }
 0x112   : > { %1220 = vst [vmem:[%s4784_s27 + $0x1000] sm:$0xff] %v1219_v0  ;;  %v1223_v2 = vld [vmem:[%s4776_s26 + $0x2020] sm:$0xff]  ;;  %v1225_v3 = vld [vmem:[%s4776_s26 + $0x2028] sm:$0xff]  ;;  %1222 = vst [vmem:[%s4784_s27 + $0x1008] sm:$0xff] %v1221_v1 }
 0x113   : > { %1224 = vst [vmem:[%s4784_s27 + $0x1010] sm:$0xff] %v1223_v2  ;;  %1226 = vst [vmem:[%s4784_s27 + $0x1018] sm:$0xff] %v1225_v3  ;;  %v1227_v4 = vld [vmem:[%s4776_s26 + $0x2040] sm:$0xff]  ;;  %v1229_v5 = vld [vmem:[%s4776_s26 + $0x2048] sm:$0xff] }
 0x114   : > { %v1231_v6 = vld [vmem:[%s4776_s26 + $0x2060] sm:$0xff]  ;;  %1228 = vst [vmem:[%s4784_s27 + $0x1020] sm:$0xff] %v1227_v4  ;;  %1230 = vst [vmem:[%s4784_s27 + $0x1028] sm:$0xff] %v1229_v5  ;;  %v1233_v7 = vld [vmem:[%s4776_s26 + $0x2068] sm:$0xff] }
 0x115   : > { %1232 = vst [vmem:[%s4784_s27 + $0x1030] sm:$0xff] %v1231_v6  ;;  %v1235_v8 = vld [vmem:[%s4776_s26 + $0x2080] sm:$0xff]  ;;  %v1237_v9 = vld [vmem:[%s4776_s26 + $0x2088] sm:$0xff]  ;;  %1234 = vst [vmem:[%s4784_s27 + $0x1038] sm:$0xff] %v1233_v7 }
 0x116   : > { %1236 = vst [vmem:[%s4784_s27 + $0x1040] sm:$0xff] %v1235_v8  ;;  %1238 = vst [vmem:[%s4784_s27 + $0x1048] sm:$0xff] %v1237_v9  ;;  %v1239_v10 = vld [vmem:[%s4776_s26 + $0x20a0] sm:$0xff]  ;;  %v1241_v11 = vld [vmem:[%s4776_s26 + $0x20a8] sm:$0xff] }
 0x117   : > { %v1243_v12 = vld [vmem:[%s4776_s26 + $0x20c0] sm:$0xff]  ;;  %1240 = vst [vmem:[%s4784_s27 + $0x1050] sm:$0xff] %v1239_v10  ;;  %1242 = vst [vmem:[%s4784_s27 + $0x1058] sm:$0xff] %v1241_v11  ;;  %v1245_v13 = vld [vmem:[%s4776_s26 + $0x20c8] sm:$0xff] }
 0x118   : > { %1244 = vst [vmem:[%s4784_s27 + $0x1060] sm:$0xff] %v1243_v12  ;;  %v1247_v14 = vld [vmem:[%s4776_s26 + $0x20e0] sm:$0xff]  ;;  %v1249_v15 = vld [vmem:[%s4776_s26 + $0x20e8] sm:$0xff]  ;;  %1246 = vst [vmem:[%s4784_s27 + $0x1068] sm:$0xff] %v1245_v13 }
 0x119   : > { %1248 = vst [vmem:[%s4784_s27 + $0x1070] sm:$0xff] %v1247_v14  ;;  %1250 = vst [vmem:[%s4784_s27 + $0x1078] sm:$0xff] %v1249_v15  ;;  %v1251_v16 = vld [vmem:[%s4776_s26 + $0x2100] sm:$0xff]  ;;  %v1253_v17 = vld [vmem:[%s4776_s26 + $0x2108] sm:$0xff] }
 0x11a   : > { %v1255_v18 = vld [vmem:[%s4776_s26 + $0x2120] sm:$0xff]  ;;  %1252 = vst [vmem:[%s4784_s27 + $0x1080] sm:$0xff] %v1251_v16  ;;  %1254 = vst [vmem:[%s4784_s27 + $0x1088] sm:$0xff] %v1253_v17  ;;  %v1257_v19 = vld [vmem:[%s4776_s26 + $0x2128] sm:$0xff] }
 0x11b   : > { %1256 = vst [vmem:[%s4784_s27 + $0x1090] sm:$0xff] %v1255_v18  ;;  %v1259_v20 = vld [vmem:[%s4776_s26 + $0x2140] sm:$0xff]  ;;  %v1261_v21 = vld [vmem:[%s4776_s26 + $0x2148] sm:$0xff]  ;;  %1258 = vst [vmem:[%s4784_s27 + $0x1098] sm:$0xff] %v1257_v19 }
 0x11c   : > { %1260 = vst [vmem:[%s4784_s27 + $0x10a0] sm:$0xff] %v1259_v20  ;;  %1262 = vst [vmem:[%s4784_s27 + $0x10a8] sm:$0xff] %v1261_v21  ;;  %v1263_v22 = vld [vmem:[%s4776_s26 + $0x2160] sm:$0xff]  ;;  %v1265_v23 = vld [vmem:[%s4776_s26 + $0x2168] sm:$0xff] }
 0x11d   : > { %v1267_v24 = vld [vmem:[%s4776_s26 + $0x2180] sm:$0xff]  ;;  %1264 = vst [vmem:[%s4784_s27 + $0x10b0] sm:$0xff] %v1263_v22  ;;  %1266 = vst [vmem:[%s4784_s27 + $0x10b8] sm:$0xff] %v1265_v23  ;;  %v1269_v25 = vld [vmem:[%s4776_s26 + $0x2188] sm:$0xff] }
 0x11e   : > { %1268 = vst [vmem:[%s4784_s27 + $0x10c0] sm:$0xff] %v1267_v24  ;;  %v1271_v26 = vld [vmem:[%s4776_s26 + $0x21a0] sm:$0xff]  ;;  %v1273_v27 = vld [vmem:[%s4776_s26 + $0x21a8] sm:$0xff]  ;;  %1270 = vst [vmem:[%s4784_s27 + $0x10c8] sm:$0xff] %v1269_v25 }
 0x11f   : > { %1272 = vst [vmem:[%s4784_s27 + $0x10d0] sm:$0xff] %v1271_v26  ;;  %1274 = vst [vmem:[%s4784_s27 + $0x10d8] sm:$0xff] %v1273_v27  ;;  %v1275_v28 = vld [vmem:[%s4776_s26 + $0x21c0] sm:$0xff]  ;;  %v1277_v29 = vld [vmem:[%s4776_s26 + $0x21c8] sm:$0xff] }
 0x120   : > { %v1279_v30 = vld [vmem:[%s4776_s26 + $0x21e0] sm:$0xff]  ;;  %1276 = vst [vmem:[%s4784_s27 + $0x10e0] sm:$0xff] %v1275_v28  ;;  %1278 = vst [vmem:[%s4784_s27 + $0x10e8] sm:$0xff] %v1277_v29  ;;  %v1281_v31 = vld [vmem:[%s4776_s26 + $0x21e8] sm:$0xff] }
 0x121   : > { %1280 = vst [vmem:[%s4784_s27 + $0x10f0] sm:$0xff] %v1279_v30  ;;  %v1283_v32 = vld [vmem:[%s4776_s26 + $0x2200] sm:$0xff]  ;;  %v1285_v33 = vld [vmem:[%s4776_s26 + $0x2208] sm:$0xff]  ;;  %1282 = vst [vmem:[%s4784_s27 + $0x10f8] sm:$0xff] %v1281_v31 }
 0x122   : > { %1284 = vst [vmem:[%s4784_s27 + $0x1100] sm:$0xff] %v1283_v32  ;;  %1286 = vst [vmem:[%s4784_s27 + $0x1108] sm:$0xff] %v1285_v33  ;;  %v1287_v34 = vld [vmem:[%s4776_s26 + $0x2220] sm:$0xff]  ;;  %v1289_v35 = vld [vmem:[%s4776_s26 + $0x2228] sm:$0xff] }
 0x123   : > { %v1291_v36 = vld [vmem:[%s4776_s26 + $0x2240] sm:$0xff]  ;;  %1288 = vst [vmem:[%s4784_s27 + $0x1110] sm:$0xff] %v1287_v34  ;;  %1290 = vst [vmem:[%s4784_s27 + $0x1118] sm:$0xff] %v1289_v35  ;;  %v1293_v37 = vld [vmem:[%s4776_s26 + $0x2248] sm:$0xff] }
 0x124   : > { %1292 = vst [vmem:[%s4784_s27 + $0x1120] sm:$0xff] %v1291_v36  ;;  %v1295_v38 = vld [vmem:[%s4776_s26 + $0x2260] sm:$0xff]  ;;  %v1297_v39 = vld [vmem:[%s4776_s26 + $0x2268] sm:$0xff]  ;;  %1294 = vst [vmem:[%s4784_s27 + $0x1128] sm:$0xff] %v1293_v37 }
 0x125   : > { %1296 = vst [vmem:[%s4784_s27 + $0x1130] sm:$0xff] %v1295_v38  ;;  %1298 = vst [vmem:[%s4784_s27 + $0x1138] sm:$0xff] %v1297_v39  ;;  %v1299_v40 = vld [vmem:[%s4776_s26 + $0x2280] sm:$0xff]  ;;  %v1301_v41 = vld [vmem:[%s4776_s26 + $0x2288] sm:$0xff] }
 0x126   : > { %v1303_v42 = vld [vmem:[%s4776_s26 + $0x22a0] sm:$0xff]  ;;  %1300 = vst [vmem:[%s4784_s27 + $0x1140] sm:$0xff] %v1299_v40  ;;  %1302 = vst [vmem:[%s4784_s27 + $0x1148] sm:$0xff] %v1301_v41  ;;  %v1305_v43 = vld [vmem:[%s4776_s26 + $0x22a8] sm:$0xff] }
 0x127   : > { %1304 = vst [vmem:[%s4784_s27 + $0x1150] sm:$0xff] %v1303_v42  ;;  %v1307_v44 = vld [vmem:[%s4776_s26 + $0x22c0] sm:$0xff]  ;;  %v1309_v45 = vld [vmem:[%s4776_s26 + $0x22c8] sm:$0xff]  ;;  %1306 = vst [vmem:[%s4784_s27 + $0x1158] sm:$0xff] %v1305_v43 }
 0x128   : > { %1308 = vst [vmem:[%s4784_s27 + $0x1160] sm:$0xff] %v1307_v44  ;;  %1310 = vst [vmem:[%s4784_s27 + $0x1168] sm:$0xff] %v1309_v45  ;;  %v1311_v46 = vld [vmem:[%s4776_s26 + $0x22e0] sm:$0xff]  ;;  %v1313_v47 = vld [vmem:[%s4776_s26 + $0x22e8] sm:$0xff] }
 0x129   : > { %v1315_v48 = vld [vmem:[%s4776_s26 + $0x2300] sm:$0xff]  ;;  %1312 = vst [vmem:[%s4784_s27 + $0x1170] sm:$0xff] %v1311_v46  ;;  %1314 = vst [vmem:[%s4784_s27 + $0x1178] sm:$0xff] %v1313_v47  ;;  %v1317_v49 = vld [vmem:[%s4776_s26 + $0x2308] sm:$0xff] }
 0x12a   : > { %1316 = vst [vmem:[%s4784_s27 + $0x1180] sm:$0xff] %v1315_v48  ;;  %v1319_v50 = vld [vmem:[%s4776_s26 + $0x2320] sm:$0xff]  ;;  %v1321_v51 = vld [vmem:[%s4776_s26 + $0x2328] sm:$0xff]  ;;  %1318 = vst [vmem:[%s4784_s27 + $0x1188] sm:$0xff] %v1317_v49 }
 0x12b   : > { %1320 = vst [vmem:[%s4784_s27 + $0x1190] sm:$0xff] %v1319_v50  ;;  %1322 = vst [vmem:[%s4784_s27 + $0x1198] sm:$0xff] %v1321_v51  ;;  %v1323_v52 = vld [vmem:[%s4776_s26 + $0x2340] sm:$0xff]  ;;  %v1325_v53 = vld [vmem:[%s4776_s26 + $0x2348] sm:$0xff] }
 0x12c   : > { %v1327_v54 = vld [vmem:[%s4776_s26 + $0x2360] sm:$0xff]  ;;  %1324 = vst [vmem:[%s4784_s27 + $0x11a0] sm:$0xff] %v1323_v52  ;;  %1326 = vst [vmem:[%s4784_s27 + $0x11a8] sm:$0xff] %v1325_v53  ;;  %v1329_v55 = vld [vmem:[%s4776_s26 + $0x2368] sm:$0xff] }
 0x12d   : > { %1328 = vst [vmem:[%s4784_s27 + $0x11b0] sm:$0xff] %v1327_v54  ;;  %v1331_v56 = vld [vmem:[%s4776_s26 + $0x2380] sm:$0xff]  ;;  %v1333_v57 = vld [vmem:[%s4776_s26 + $0x2388] sm:$0xff]  ;;  %1330 = vst [vmem:[%s4784_s27 + $0x11b8] sm:$0xff] %v1329_v55 }
 0x12e   : > { %1332 = vst [vmem:[%s4784_s27 + $0x11c0] sm:$0xff] %v1331_v56  ;;  %1334 = vst [vmem:[%s4784_s27 + $0x11c8] sm:$0xff] %v1333_v57  ;;  %v1335_v58 = vld [vmem:[%s4776_s26 + $0x23a0] sm:$0xff]  ;;  %v1337_v59 = vld [vmem:[%s4776_s26 + $0x23a8] sm:$0xff] }
 0x12f   : > { %v1339_v60 = vld [vmem:[%s4776_s26 + $0x23c0] sm:$0xff]  ;;  %1336 = vst [vmem:[%s4784_s27 + $0x11d0] sm:$0xff] %v1335_v58  ;;  %1338 = vst [vmem:[%s4784_s27 + $0x11d8] sm:$0xff] %v1337_v59  ;;  %v1341_v61 = vld [vmem:[%s4776_s26 + $0x23c8] sm:$0xff] }
 0x130   : > { %1340 = vst [vmem:[%s4784_s27 + $0x11e0] sm:$0xff] %v1339_v60  ;;  %v1343_v62 = vld [vmem:[%s4776_s26 + $0x23e0] sm:$0xff]  ;;  %v1345_v63 = vld [vmem:[%s4776_s26 + $0x23e8] sm:$0xff]  ;;  %1342 = vst [vmem:[%s4784_s27 + $0x11e8] sm:$0xff] %v1341_v61 }
 0x131   : > { %1344 = vst [vmem:[%s4784_s27 + $0x11f0] sm:$0xff] %v1343_v62  ;;  %1346 = vst [vmem:[%s4784_s27 + $0x11f8] sm:$0xff] %v1345_v63  ;;  %v1347_v0 = vld [vmem:[%s4776_s26 + $0x2400] sm:$0xff]  ;;  %v1349_v1 = vld [vmem:[%s4776_s26 + $0x2408] sm:$0xff] }
 0x132   : > { %v1351_v2 = vld [vmem:[%s4776_s26 + $0x2420] sm:$0xff]  ;;  %1348 = vst [vmem:[%s4784_s27 + $0x1200] sm:$0xff] %v1347_v0  ;;  %1350 = vst [vmem:[%s4784_s27 + $0x1208] sm:$0xff] %v1349_v1  ;;  %v1353_v3 = vld [vmem:[%s4776_s26 + $0x2428] sm:$0xff] }
 0x133   : > { %1352 = vst [vmem:[%s4784_s27 + $0x1210] sm:$0xff] %v1351_v2  ;;  %v1355_v4 = vld [vmem:[%s4776_s26 + $0x2440] sm:$0xff]  ;;  %v1357_v5 = vld [vmem:[%s4776_s26 + $0x2448] sm:$0xff]  ;;  %1354 = vst [vmem:[%s4784_s27 + $0x1218] sm:$0xff] %v1353_v3 }
 0x134   : > { %1356 = vst [vmem:[%s4784_s27 + $0x1220] sm:$0xff] %v1355_v4  ;;  %1358 = vst [vmem:[%s4784_s27 + $0x1228] sm:$0xff] %v1357_v5  ;;  %v1359_v6 = vld [vmem:[%s4776_s26 + $0x2460] sm:$0xff]  ;;  %v1361_v7 = vld [vmem:[%s4776_s26 + $0x2468] sm:$0xff] }
 0x135   : > { %v1363_v8 = vld [vmem:[%s4776_s26 + $0x2480] sm:$0xff]  ;;  %1360 = vst [vmem:[%s4784_s27 + $0x1230] sm:$0xff] %v1359_v6  ;;  %1362 = vst [vmem:[%s4784_s27 + $0x1238] sm:$0xff] %v1361_v7  ;;  %v1365_v9 = vld [vmem:[%s4776_s26 + $0x2488] sm:$0xff] }
 0x136   : > { %1364 = vst [vmem:[%s4784_s27 + $0x1240] sm:$0xff] %v1363_v8  ;;  %v1367_v10 = vld [vmem:[%s4776_s26 + $0x24a0] sm:$0xff]  ;;  %v1369_v11 = vld [vmem:[%s4776_s26 + $0x24a8] sm:$0xff]  ;;  %1366 = vst [vmem:[%s4784_s27 + $0x1248] sm:$0xff] %v1365_v9 }
 0x137   : > { %1368 = vst [vmem:[%s4784_s27 + $0x1250] sm:$0xff] %v1367_v10  ;;  %1370 = vst [vmem:[%s4784_s27 + $0x1258] sm:$0xff] %v1369_v11  ;;  %v1371_v12 = vld [vmem:[%s4776_s26 + $0x24c0] sm:$0xff]  ;;  %v1373_v13 = vld [vmem:[%s4776_s26 + $0x24c8] sm:$0xff] }
 0x138   : > { %v1375_v14 = vld [vmem:[%s4776_s26 + $0x24e0] sm:$0xff]  ;;  %1372 = vst [vmem:[%s4784_s27 + $0x1260] sm:$0xff] %v1371_v12  ;;  %1374 = vst [vmem:[%s4784_s27 + $0x1268] sm:$0xff] %v1373_v13  ;;  %v1377_v15 = vld [vmem:[%s4776_s26 + $0x24e8] sm:$0xff] }
 0x139   : > { %1376 = vst [vmem:[%s4784_s27 + $0x1270] sm:$0xff] %v1375_v14  ;;  %v1379_v16 = vld [vmem:[%s4776_s26 + $0x2500] sm:$0xff]  ;;  %v1381_v17 = vld [vmem:[%s4776_s26 + $0x2508] sm:$0xff]  ;;  %1378 = vst [vmem:[%s4784_s27 + $0x1278] sm:$0xff] %v1377_v15 }
 0x13a   : > { %1380 = vst [vmem:[%s4784_s27 + $0x1280] sm:$0xff] %v1379_v16  ;;  %1382 = vst [vmem:[%s4784_s27 + $0x1288] sm:$0xff] %v1381_v17  ;;  %v1383_v18 = vld [vmem:[%s4776_s26 + $0x2520] sm:$0xff]  ;;  %v1385_v19 = vld [vmem:[%s4776_s26 + $0x2528] sm:$0xff] }
 0x13b   : > { %v1387_v20 = vld [vmem:[%s4776_s26 + $0x2540] sm:$0xff]  ;;  %1384 = vst [vmem:[%s4784_s27 + $0x1290] sm:$0xff] %v1383_v18  ;;  %1386 = vst [vmem:[%s4784_s27 + $0x1298] sm:$0xff] %v1385_v19  ;;  %v1389_v21 = vld [vmem:[%s4776_s26 + $0x2548] sm:$0xff] }
 0x13c   : > { %1388 = vst [vmem:[%s4784_s27 + $0x12a0] sm:$0xff] %v1387_v20  ;;  %v1391_v22 = vld [vmem:[%s4776_s26 + $0x2560] sm:$0xff]  ;;  %v1393_v23 = vld [vmem:[%s4776_s26 + $0x2568] sm:$0xff]  ;;  %1390 = vst [vmem:[%s4784_s27 + $0x12a8] sm:$0xff] %v1389_v21 }
 0x13d   : > { %1392 = vst [vmem:[%s4784_s27 + $0x12b0] sm:$0xff] %v1391_v22  ;;  %1394 = vst [vmem:[%s4784_s27 + $0x12b8] sm:$0xff] %v1393_v23  ;;  %v1395_v24 = vld [vmem:[%s4776_s26 + $0x2580] sm:$0xff]  ;;  %v1397_v25 = vld [vmem:[%s4776_s26 + $0x2588] sm:$0xff] }
 0x13e   : > { %v1399_v26 = vld [vmem:[%s4776_s26 + $0x25a0] sm:$0xff]  ;;  %1396 = vst [vmem:[%s4784_s27 + $0x12c0] sm:$0xff] %v1395_v24  ;;  %1398 = vst [vmem:[%s4784_s27 + $0x12c8] sm:$0xff] %v1397_v25  ;;  %v1401_v27 = vld [vmem:[%s4776_s26 + $0x25a8] sm:$0xff] }
 0x13f   : > { %1400 = vst [vmem:[%s4784_s27 + $0x12d0] sm:$0xff] %v1399_v26  ;;  %v1403_v28 = vld [vmem:[%s4776_s26 + $0x25c0] sm:$0xff]  ;;  %v1405_v29 = vld [vmem:[%s4776_s26 + $0x25c8] sm:$0xff]  ;;  %1402 = vst [vmem:[%s4784_s27 + $0x12d8] sm:$0xff] %v1401_v27 }
 0x140   : > { %1404 = vst [vmem:[%s4784_s27 + $0x12e0] sm:$0xff] %v1403_v28  ;;  %1406 = vst [vmem:[%s4784_s27 + $0x12e8] sm:$0xff] %v1405_v29  ;;  %v1407_v30 = vld [vmem:[%s4776_s26 + $0x25e0] sm:$0xff]  ;;  %v1409_v31 = vld [vmem:[%s4776_s26 + $0x25e8] sm:$0xff] }
 0x141   : > { %v1411_v32 = vld [vmem:[%s4776_s26 + $0x2600] sm:$0xff]  ;;  %1408 = vst [vmem:[%s4784_s27 + $0x12f0] sm:$0xff] %v1407_v30  ;;  %1410 = vst [vmem:[%s4784_s27 + $0x12f8] sm:$0xff] %v1409_v31  ;;  %v1413_v33 = vld [vmem:[%s4776_s26 + $0x2608] sm:$0xff] }
 0x142   : > { %1412 = vst [vmem:[%s4784_s27 + $0x1300] sm:$0xff] %v1411_v32  ;;  %v1415_v34 = vld [vmem:[%s4776_s26 + $0x2620] sm:$0xff]  ;;  %v1417_v35 = vld [vmem:[%s4776_s26 + $0x2628] sm:$0xff]  ;;  %1414 = vst [vmem:[%s4784_s27 + $0x1308] sm:$0xff] %v1413_v33 }
 0x143   : > { %1416 = vst [vmem:[%s4784_s27 + $0x1310] sm:$0xff] %v1415_v34  ;;  %1418 = vst [vmem:[%s4784_s27 + $0x1318] sm:$0xff] %v1417_v35  ;;  %v1419_v36 = vld [vmem:[%s4776_s26 + $0x2640] sm:$0xff]  ;;  %v1421_v37 = vld [vmem:[%s4776_s26 + $0x2648] sm:$0xff] }
 0x144   : > { %v1423_v38 = vld [vmem:[%s4776_s26 + $0x2660] sm:$0xff]  ;;  %1420 = vst [vmem:[%s4784_s27 + $0x1320] sm:$0xff] %v1419_v36  ;;  %1422 = vst [vmem:[%s4784_s27 + $0x1328] sm:$0xff] %v1421_v37  ;;  %v1425_v39 = vld [vmem:[%s4776_s26 + $0x2668] sm:$0xff] }
 0x145   : > { %1424 = vst [vmem:[%s4784_s27 + $0x1330] sm:$0xff] %v1423_v38  ;;  %v1427_v40 = vld [vmem:[%s4776_s26 + $0x2680] sm:$0xff]  ;;  %v1429_v41 = vld [vmem:[%s4776_s26 + $0x2688] sm:$0xff]  ;;  %1426 = vst [vmem:[%s4784_s27 + $0x1338] sm:$0xff] %v1425_v39 }
 0x146   : > { %1428 = vst [vmem:[%s4784_s27 + $0x1340] sm:$0xff] %v1427_v40  ;;  %1430 = vst [vmem:[%s4784_s27 + $0x1348] sm:$0xff] %v1429_v41  ;;  %v1431_v42 = vld [vmem:[%s4776_s26 + $0x26a0] sm:$0xff]  ;;  %v1433_v43 = vld [vmem:[%s4776_s26 + $0x26a8] sm:$0xff] }
 0x147   : > { %v1435_v44 = vld [vmem:[%s4776_s26 + $0x26c0] sm:$0xff]  ;;  %1432 = vst [vmem:[%s4784_s27 + $0x1350] sm:$0xff] %v1431_v42  ;;  %1434 = vst [vmem:[%s4784_s27 + $0x1358] sm:$0xff] %v1433_v43  ;;  %v1437_v45 = vld [vmem:[%s4776_s26 + $0x26c8] sm:$0xff] }
 0x148   : > { %1436 = vst [vmem:[%s4784_s27 + $0x1360] sm:$0xff] %v1435_v44  ;;  %v1439_v46 = vld [vmem:[%s4776_s26 + $0x26e0] sm:$0xff]  ;;  %v1441_v47 = vld [vmem:[%s4776_s26 + $0x26e8] sm:$0xff]  ;;  %1438 = vst [vmem:[%s4784_s27 + $0x1368] sm:$0xff] %v1437_v45 }
 0x149   : > { %1440 = vst [vmem:[%s4784_s27 + $0x1370] sm:$0xff] %v1439_v46  ;;  %1442 = vst [vmem:[%s4784_s27 + $0x1378] sm:$0xff] %v1441_v47  ;;  %v1443_v48 = vld [vmem:[%s4776_s26 + $0x2700] sm:$0xff]  ;;  %v1445_v49 = vld [vmem:[%s4776_s26 + $0x2708] sm:$0xff] }
 0x14a   : > { %v1447_v50 = vld [vmem:[%s4776_s26 + $0x2720] sm:$0xff]  ;;  %1444 = vst [vmem:[%s4784_s27 + $0x1380] sm:$0xff] %v1443_v48  ;;  %1446 = vst [vmem:[%s4784_s27 + $0x1388] sm:$0xff] %v1445_v49  ;;  %v1449_v51 = vld [vmem:[%s4776_s26 + $0x2728] sm:$0xff] }
 0x14b   : > { %1448 = vst [vmem:[%s4784_s27 + $0x1390] sm:$0xff] %v1447_v50  ;;  %v1451_v52 = vld [vmem:[%s4776_s26 + $0x2740] sm:$0xff]  ;;  %v1453_v53 = vld [vmem:[%s4776_s26 + $0x2748] sm:$0xff]  ;;  %1450 = vst [vmem:[%s4784_s27 + $0x1398] sm:$0xff] %v1449_v51 }
 0x14c   : > { %1452 = vst [vmem:[%s4784_s27 + $0x13a0] sm:$0xff] %v1451_v52  ;;  %1454 = vst [vmem:[%s4784_s27 + $0x13a8] sm:$0xff] %v1453_v53  ;;  %v1455_v54 = vld [vmem:[%s4776_s26 + $0x2760] sm:$0xff]  ;;  %v1457_v55 = vld [vmem:[%s4776_s26 + $0x2768] sm:$0xff] }
 0x14d   : > { %v1459_v56 = vld [vmem:[%s4776_s26 + $0x2780] sm:$0xff]  ;;  %1456 = vst [vmem:[%s4784_s27 + $0x13b0] sm:$0xff] %v1455_v54  ;;  %1458 = vst [vmem:[%s4784_s27 + $0x13b8] sm:$0xff] %v1457_v55  ;;  %v1461_v57 = vld [vmem:[%s4776_s26 + $0x2788] sm:$0xff] }
 0x14e   : > { %1460 = vst [vmem:[%s4784_s27 + $0x13c0] sm:$0xff] %v1459_v56  ;;  %v1463_v58 = vld [vmem:[%s4776_s26 + $0x27a0] sm:$0xff]  ;;  %v1465_v59 = vld [vmem:[%s4776_s26 + $0x27a8] sm:$0xff]  ;;  %1462 = vst [vmem:[%s4784_s27 + $0x13c8] sm:$0xff] %v1461_v57 }
 0x14f   : > { %1464 = vst [vmem:[%s4784_s27 + $0x13d0] sm:$0xff] %v1463_v58  ;;  %1466 = vst [vmem:[%s4784_s27 + $0x13d8] sm:$0xff] %v1465_v59  ;;  %v1467_v60 = vld [vmem:[%s4776_s26 + $0x27c0] sm:$0xff]  ;;  %v1469_v61 = vld [vmem:[%s4776_s26 + $0x27c8] sm:$0xff] }
 0x150   : > { %v1471_v62 = vld [vmem:[%s4776_s26 + $0x27e0] sm:$0xff]  ;;  %1468 = vst [vmem:[%s4784_s27 + $0x13e0] sm:$0xff] %v1467_v60  ;;  %1470 = vst [vmem:[%s4784_s27 + $0x13e8] sm:$0xff] %v1469_v61  ;;  %v1473_v63 = vld [vmem:[%s4776_s26 + $0x27e8] sm:$0xff] }
 0x151   : > { %1472 = vst [vmem:[%s4784_s27 + $0x13f0] sm:$0xff] %v1471_v62  ;;  %v1475_v0 = vld [vmem:[%s4776_s26 + $0x2800] sm:$0xff]  ;;  %v1477_v1 = vld [vmem:[%s4776_s26 + $0x2808] sm:$0xff]  ;;  %1474 = vst [vmem:[%s4784_s27 + $0x13f8] sm:$0xff] %v1473_v63 }
 0x152   : > { %1476 = vst [vmem:[%s4784_s27 + $0x1400] sm:$0xff] %v1475_v0  ;;  %1478 = vst [vmem:[%s4784_s27 + $0x1408] sm:$0xff] %v1477_v1  ;;  %v1479_v2 = vld [vmem:[%s4776_s26 + $0x2820] sm:$0xff]  ;;  %v1481_v3 = vld [vmem:[%s4776_s26 + $0x2828] sm:$0xff] }
 0x153   : > { %v1483_v4 = vld [vmem:[%s4776_s26 + $0x2840] sm:$0xff]  ;;  %1480 = vst [vmem:[%s4784_s27 + $0x1410] sm:$0xff] %v1479_v2  ;;  %1482 = vst [vmem:[%s4784_s27 + $0x1418] sm:$0xff] %v1481_v3  ;;  %v1485_v5 = vld [vmem:[%s4776_s26 + $0x2848] sm:$0xff] }
 0x154   : > { %1484 = vst [vmem:[%s4784_s27 + $0x1420] sm:$0xff] %v1483_v4  ;;  %v1487_v6 = vld [vmem:[%s4776_s26 + $0x2860] sm:$0xff]  ;;  %v1489_v7 = vld [vmem:[%s4776_s26 + $0x2868] sm:$0xff]  ;;  %1486 = vst [vmem:[%s4784_s27 + $0x1428] sm:$0xff] %v1485_v5 }
 0x155   : > { %1488 = vst [vmem:[%s4784_s27 + $0x1430] sm:$0xff] %v1487_v6  ;;  %1490 = vst [vmem:[%s4784_s27 + $0x1438] sm:$0xff] %v1489_v7  ;;  %v1491_v8 = vld [vmem:[%s4776_s26 + $0x2880] sm:$0xff]  ;;  %v1493_v9 = vld [vmem:[%s4776_s26 + $0x2888] sm:$0xff] }
 0x156   : > { %v1495_v10 = vld [vmem:[%s4776_s26 + $0x28a0] sm:$0xff]  ;;  %1492 = vst [vmem:[%s4784_s27 + $0x1440] sm:$0xff] %v1491_v8  ;;  %1494 = vst [vmem:[%s4784_s27 + $0x1448] sm:$0xff] %v1493_v9  ;;  %v1497_v11 = vld [vmem:[%s4776_s26 + $0x28a8] sm:$0xff] }
 0x157   : > { %1496 = vst [vmem:[%s4784_s27 + $0x1450] sm:$0xff] %v1495_v10  ;;  %v1499_v12 = vld [vmem:[%s4776_s26 + $0x28c0] sm:$0xff]  ;;  %v1501_v13 = vld [vmem:[%s4776_s26 + $0x28c8] sm:$0xff]  ;;  %1498 = vst [vmem:[%s4784_s27 + $0x1458] sm:$0xff] %v1497_v11 }
 0x158   : > { %1500 = vst [vmem:[%s4784_s27 + $0x1460] sm:$0xff] %v1499_v12  ;;  %1502 = vst [vmem:[%s4784_s27 + $0x1468] sm:$0xff] %v1501_v13  ;;  %v1503_v14 = vld [vmem:[%s4776_s26 + $0x28e0] sm:$0xff]  ;;  %v1505_v15 = vld [vmem:[%s4776_s26 + $0x28e8] sm:$0xff] }
 0x159   : > { %v1507_v16 = vld [vmem:[%s4776_s26 + $0x2900] sm:$0xff]  ;;  %1504 = vst [vmem:[%s4784_s27 + $0x1470] sm:$0xff] %v1503_v14  ;;  %1506 = vst [vmem:[%s4784_s27 + $0x1478] sm:$0xff] %v1505_v15  ;;  %v1509_v17 = vld [vmem:[%s4776_s26 + $0x2908] sm:$0xff] }
 0x15a   : > { %1508 = vst [vmem:[%s4784_s27 + $0x1480] sm:$0xff] %v1507_v16  ;;  %v1511_v18 = vld [vmem:[%s4776_s26 + $0x2920] sm:$0xff]  ;;  %v1513_v19 = vld [vmem:[%s4776_s26 + $0x2928] sm:$0xff]  ;;  %1510 = vst [vmem:[%s4784_s27 + $0x1488] sm:$0xff] %v1509_v17 }
 0x15b   : > { %1512 = vst [vmem:[%s4784_s27 + $0x1490] sm:$0xff] %v1511_v18  ;;  %1514 = vst [vmem:[%s4784_s27 + $0x1498] sm:$0xff] %v1513_v19  ;;  %v1515_v20 = vld [vmem:[%s4776_s26 + $0x2940] sm:$0xff]  ;;  %v1517_v21 = vld [vmem:[%s4776_s26 + $0x2948] sm:$0xff] }
 0x15c   : > { %v1519_v22 = vld [vmem:[%s4776_s26 + $0x2960] sm:$0xff]  ;;  %1516 = vst [vmem:[%s4784_s27 + $0x14a0] sm:$0xff] %v1515_v20  ;;  %1518 = vst [vmem:[%s4784_s27 + $0x14a8] sm:$0xff] %v1517_v21  ;;  %v1521_v23 = vld [vmem:[%s4776_s26 + $0x2968] sm:$0xff] }
 0x15d   : > { %1520 = vst [vmem:[%s4784_s27 + $0x14b0] sm:$0xff] %v1519_v22  ;;  %v1523_v24 = vld [vmem:[%s4776_s26 + $0x2980] sm:$0xff]  ;;  %v1525_v25 = vld [vmem:[%s4776_s26 + $0x2988] sm:$0xff]  ;;  %1522 = vst [vmem:[%s4784_s27 + $0x14b8] sm:$0xff] %v1521_v23 }
 0x15e   : > { %1524 = vst [vmem:[%s4784_s27 + $0x14c0] sm:$0xff] %v1523_v24  ;;  %1526 = vst [vmem:[%s4784_s27 + $0x14c8] sm:$0xff] %v1525_v25  ;;  %v1527_v26 = vld [vmem:[%s4776_s26 + $0x29a0] sm:$0xff]  ;;  %v1529_v27 = vld [vmem:[%s4776_s26 + $0x29a8] sm:$0xff] }
 0x15f   : > { %v1531_v28 = vld [vmem:[%s4776_s26 + $0x29c0] sm:$0xff]  ;;  %1528 = vst [vmem:[%s4784_s27 + $0x14d0] sm:$0xff] %v1527_v26  ;;  %1530 = vst [vmem:[%s4784_s27 + $0x14d8] sm:$0xff] %v1529_v27  ;;  %v1533_v29 = vld [vmem:[%s4776_s26 + $0x29c8] sm:$0xff] }
 0x160   : > { %1532 = vst [vmem:[%s4784_s27 + $0x14e0] sm:$0xff] %v1531_v28  ;;  %v1535_v30 = vld [vmem:[%s4776_s26 + $0x29e0] sm:$0xff]  ;;  %v1537_v31 = vld [vmem:[%s4776_s26 + $0x29e8] sm:$0xff]  ;;  %1534 = vst [vmem:[%s4784_s27 + $0x14e8] sm:$0xff] %v1533_v29 }
 0x161   : > { %1536 = vst [vmem:[%s4784_s27 + $0x14f0] sm:$0xff] %v1535_v30  ;;  %1538 = vst [vmem:[%s4784_s27 + $0x14f8] sm:$0xff] %v1537_v31  ;;  %v1539_v32 = vld [vmem:[%s4776_s26 + $0x2a00] sm:$0xff]  ;;  %v1541_v33 = vld [vmem:[%s4776_s26 + $0x2a08] sm:$0xff] }
 0x162   : > { %v1543_v34 = vld [vmem:[%s4776_s26 + $0x2a20] sm:$0xff]  ;;  %1540 = vst [vmem:[%s4784_s27 + $0x1500] sm:$0xff] %v1539_v32  ;;  %1542 = vst [vmem:[%s4784_s27 + $0x1508] sm:$0xff] %v1541_v33  ;;  %v1545_v35 = vld [vmem:[%s4776_s26 + $0x2a28] sm:$0xff] }
 0x163   : > { %1544 = vst [vmem:[%s4784_s27 + $0x1510] sm:$0xff] %v1543_v34  ;;  %v1547_v36 = vld [vmem:[%s4776_s26 + $0x2a40] sm:$0xff]  ;;  %v1549_v37 = vld [vmem:[%s4776_s26 + $0x2a48] sm:$0xff]  ;;  %1546 = vst [vmem:[%s4784_s27 + $0x1518] sm:$0xff] %v1545_v35 }
 0x164   : > { %1548 = vst [vmem:[%s4784_s27 + $0x1520] sm:$0xff] %v1547_v36  ;;  %1550 = vst [vmem:[%s4784_s27 + $0x1528] sm:$0xff] %v1549_v37  ;;  %v1551_v38 = vld [vmem:[%s4776_s26 + $0x2a60] sm:$0xff]  ;;  %v1553_v39 = vld [vmem:[%s4776_s26 + $0x2a68] sm:$0xff] }
 0x165   : > { %v1555_v40 = vld [vmem:[%s4776_s26 + $0x2a80] sm:$0xff]  ;;  %1552 = vst [vmem:[%s4784_s27 + $0x1530] sm:$0xff] %v1551_v38  ;;  %1554 = vst [vmem:[%s4784_s27 + $0x1538] sm:$0xff] %v1553_v39  ;;  %v1557_v41 = vld [vmem:[%s4776_s26 + $0x2a88] sm:$0xff] }
 0x166   : > { %1556 = vst [vmem:[%s4784_s27 + $0x1540] sm:$0xff] %v1555_v40  ;;  %v1559_v42 = vld [vmem:[%s4776_s26 + $0x2aa0] sm:$0xff]  ;;  %v1561_v43 = vld [vmem:[%s4776_s26 + $0x2aa8] sm:$0xff]  ;;  %1558 = vst [vmem:[%s4784_s27 + $0x1548] sm:$0xff] %v1557_v41 }
 0x167   : > { %1560 = vst [vmem:[%s4784_s27 + $0x1550] sm:$0xff] %v1559_v42  ;;  %1562 = vst [vmem:[%s4784_s27 + $0x1558] sm:$0xff] %v1561_v43  ;;  %v1563_v44 = vld [vmem:[%s4776_s26 + $0x2ac0] sm:$0xff]  ;;  %v1565_v45 = vld [vmem:[%s4776_s26 + $0x2ac8] sm:$0xff] }
 0x168   : > { %v1567_v46 = vld [vmem:[%s4776_s26 + $0x2ae0] sm:$0xff]  ;;  %1564 = vst [vmem:[%s4784_s27 + $0x1560] sm:$0xff] %v1563_v44  ;;  %1566 = vst [vmem:[%s4784_s27 + $0x1568] sm:$0xff] %v1565_v45  ;;  %v1569_v47 = vld [vmem:[%s4776_s26 + $0x2ae8] sm:$0xff] }
 0x169   : > { %1568 = vst [vmem:[%s4784_s27 + $0x1570] sm:$0xff] %v1567_v46  ;;  %v1571_v48 = vld [vmem:[%s4776_s26 + $0x2b00] sm:$0xff]  ;;  %v1573_v49 = vld [vmem:[%s4776_s26 + $0x2b08] sm:$0xff]  ;;  %1570 = vst [vmem:[%s4784_s27 + $0x1578] sm:$0xff] %v1569_v47 }
 0x16a   : > { %1572 = vst [vmem:[%s4784_s27 + $0x1580] sm:$0xff] %v1571_v48  ;;  %1574 = vst [vmem:[%s4784_s27 + $0x1588] sm:$0xff] %v1573_v49  ;;  %v1575_v50 = vld [vmem:[%s4776_s26 + $0x2b20] sm:$0xff]  ;;  %v1577_v51 = vld [vmem:[%s4776_s26 + $0x2b28] sm:$0xff] }
 0x16b   : > { %v1579_v52 = vld [vmem:[%s4776_s26 + $0x2b40] sm:$0xff]  ;;  %1576 = vst [vmem:[%s4784_s27 + $0x1590] sm:$0xff] %v1575_v50  ;;  %1578 = vst [vmem:[%s4784_s27 + $0x1598] sm:$0xff] %v1577_v51  ;;  %v1581_v53 = vld [vmem:[%s4776_s26 + $0x2b48] sm:$0xff] }
 0x16c   : > { %1580 = vst [vmem:[%s4784_s27 + $0x15a0] sm:$0xff] %v1579_v52  ;;  %v1583_v54 = vld [vmem:[%s4776_s26 + $0x2b60] sm:$0xff]  ;;  %v1585_v55 = vld [vmem:[%s4776_s26 + $0x2b68] sm:$0xff]  ;;  %1582 = vst [vmem:[%s4784_s27 + $0x15a8] sm:$0xff] %v1581_v53 }
 0x16d   : > { %1584 = vst [vmem:[%s4784_s27 + $0x15b0] sm:$0xff] %v1583_v54  ;;  %1586 = vst [vmem:[%s4784_s27 + $0x15b8] sm:$0xff] %v1585_v55  ;;  %v1587_v56 = vld [vmem:[%s4776_s26 + $0x2b80] sm:$0xff]  ;;  %v1589_v57 = vld [vmem:[%s4776_s26 + $0x2b88] sm:$0xff] }
 0x16e   : > { %v1591_v58 = vld [vmem:[%s4776_s26 + $0x2ba0] sm:$0xff]  ;;  %1588 = vst [vmem:[%s4784_s27 + $0x15c0] sm:$0xff] %v1587_v56  ;;  %1590 = vst [vmem:[%s4784_s27 + $0x15c8] sm:$0xff] %v1589_v57  ;;  %v1593_v59 = vld [vmem:[%s4776_s26 + $0x2ba8] sm:$0xff] }
 0x16f   : > { %1592 = vst [vmem:[%s4784_s27 + $0x15d0] sm:$0xff] %v1591_v58  ;;  %v1595_v60 = vld [vmem:[%s4776_s26 + $0x2bc0] sm:$0xff]  ;;  %v1597_v61 = vld [vmem:[%s4776_s26 + $0x2bc8] sm:$0xff]  ;;  %1594 = vst [vmem:[%s4784_s27 + $0x15d8] sm:$0xff] %v1593_v59 }
 0x170   : > { %1596 = vst [vmem:[%s4784_s27 + $0x15e0] sm:$0xff] %v1595_v60  ;;  %1598 = vst [vmem:[%s4784_s27 + $0x15e8] sm:$0xff] %v1597_v61  ;;  %v1599_v62 = vld [vmem:[%s4776_s26 + $0x2be0] sm:$0xff]  ;;  %v1601_v63 = vld [vmem:[%s4776_s26 + $0x2be8] sm:$0xff] }
 0x171   : > { %v1603_v0 = vld [vmem:[%s4776_s26 + $0x2c00] sm:$0xff]  ;;  %1600 = vst [vmem:[%s4784_s27 + $0x15f0] sm:$0xff] %v1599_v62  ;;  %1602 = vst [vmem:[%s4784_s27 + $0x15f8] sm:$0xff] %v1601_v63  ;;  %v1605_v1 = vld [vmem:[%s4776_s26 + $0x2c08] sm:$0xff] }
 0x172   : > { %1604 = vst [vmem:[%s4784_s27 + $0x1600] sm:$0xff] %v1603_v0  ;;  %v1607_v2 = vld [vmem:[%s4776_s26 + $0x2c20] sm:$0xff]  ;;  %v1609_v3 = vld [vmem:[%s4776_s26 + $0x2c28] sm:$0xff]  ;;  %1606 = vst [vmem:[%s4784_s27 + $0x1608] sm:$0xff] %v1605_v1 }
 0x173   : > { %1608 = vst [vmem:[%s4784_s27 + $0x1610] sm:$0xff] %v1607_v2  ;;  %1610 = vst [vmem:[%s4784_s27 + $0x1618] sm:$0xff] %v1609_v3  ;;  %v1611_v4 = vld [vmem:[%s4776_s26 + $0x2c40] sm:$0xff]  ;;  %v1613_v5 = vld [vmem:[%s4776_s26 + $0x2c48] sm:$0xff] }
 0x174   : > { %v1615_v6 = vld [vmem:[%s4776_s26 + $0x2c60] sm:$0xff]  ;;  %1612 = vst [vmem:[%s4784_s27 + $0x1620] sm:$0xff] %v1611_v4  ;;  %1614 = vst [vmem:[%s4784_s27 + $0x1628] sm:$0xff] %v1613_v5  ;;  %v1617_v7 = vld [vmem:[%s4776_s26 + $0x2c68] sm:$0xff] }
 0x175   : > { %1616 = vst [vmem:[%s4784_s27 + $0x1630] sm:$0xff] %v1615_v6  ;;  %v1619_v8 = vld [vmem:[%s4776_s26 + $0x2c80] sm:$0xff]  ;;  %v1621_v9 = vld [vmem:[%s4776_s26 + $0x2c88] sm:$0xff]  ;;  %1618 = vst [vmem:[%s4784_s27 + $0x1638] sm:$0xff] %v1617_v7 }
 0x176   : > { %1620 = vst [vmem:[%s4784_s27 + $0x1640] sm:$0xff] %v1619_v8  ;;  %1622 = vst [vmem:[%s4784_s27 + $0x1648] sm:$0xff] %v1621_v9  ;;  %v1623_v10 = vld [vmem:[%s4776_s26 + $0x2ca0] sm:$0xff]  ;;  %v1625_v11 = vld [vmem:[%s4776_s26 + $0x2ca8] sm:$0xff] }
 0x177   : > { %v1627_v12 = vld [vmem:[%s4776_s26 + $0x2cc0] sm:$0xff]  ;;  %1624 = vst [vmem:[%s4784_s27 + $0x1650] sm:$0xff] %v1623_v10  ;;  %1626 = vst [vmem:[%s4784_s27 + $0x1658] sm:$0xff] %v1625_v11  ;;  %v1629_v13 = vld [vmem:[%s4776_s26 + $0x2cc8] sm:$0xff] }
 0x178   : > { %1628 = vst [vmem:[%s4784_s27 + $0x1660] sm:$0xff] %v1627_v12  ;;  %v1631_v14 = vld [vmem:[%s4776_s26 + $0x2ce0] sm:$0xff]  ;;  %v1633_v15 = vld [vmem:[%s4776_s26 + $0x2ce8] sm:$0xff]  ;;  %1630 = vst [vmem:[%s4784_s27 + $0x1668] sm:$0xff] %v1629_v13 }
 0x179   : > { %1632 = vst [vmem:[%s4784_s27 + $0x1670] sm:$0xff] %v1631_v14  ;;  %1634 = vst [vmem:[%s4784_s27 + $0x1678] sm:$0xff] %v1633_v15  ;;  %v1635_v16 = vld [vmem:[%s4776_s26 + $0x2d00] sm:$0xff]  ;;  %v1637_v17 = vld [vmem:[%s4776_s26 + $0x2d08] sm:$0xff] }
 0x17a   : > { %v1639_v18 = vld [vmem:[%s4776_s26 + $0x2d20] sm:$0xff]  ;;  %1636 = vst [vmem:[%s4784_s27 + $0x1680] sm:$0xff] %v1635_v16  ;;  %1638 = vst [vmem:[%s4784_s27 + $0x1688] sm:$0xff] %v1637_v17  ;;  %v1641_v19 = vld [vmem:[%s4776_s26 + $0x2d28] sm:$0xff] }
 0x17b   : > { %1640 = vst [vmem:[%s4784_s27 + $0x1690] sm:$0xff] %v1639_v18  ;;  %v1643_v20 = vld [vmem:[%s4776_s26 + $0x2d40] sm:$0xff]  ;;  %v1645_v21 = vld [vmem:[%s4776_s26 + $0x2d48] sm:$0xff]  ;;  %1642 = vst [vmem:[%s4784_s27 + $0x1698] sm:$0xff] %v1641_v19 }
 0x17c   : > { %1644 = vst [vmem:[%s4784_s27 + $0x16a0] sm:$0xff] %v1643_v20  ;;  %1646 = vst [vmem:[%s4784_s27 + $0x16a8] sm:$0xff] %v1645_v21  ;;  %v1647_v22 = vld [vmem:[%s4776_s26 + $0x2d60] sm:$0xff]  ;;  %v1649_v23 = vld [vmem:[%s4776_s26 + $0x2d68] sm:$0xff] }
 0x17d   : > { %v1651_v24 = vld [vmem:[%s4776_s26 + $0x2d80] sm:$0xff]  ;;  %1648 = vst [vmem:[%s4784_s27 + $0x16b0] sm:$0xff] %v1647_v22  ;;  %1650 = vst [vmem:[%s4784_s27 + $0x16b8] sm:$0xff] %v1649_v23  ;;  %v1653_v25 = vld [vmem:[%s4776_s26 + $0x2d88] sm:$0xff] }
 0x17e   : > { %1652 = vst [vmem:[%s4784_s27 + $0x16c0] sm:$0xff] %v1651_v24  ;;  %v1655_v26 = vld [vmem:[%s4776_s26 + $0x2da0] sm:$0xff]  ;;  %v1657_v27 = vld [vmem:[%s4776_s26 + $0x2da8] sm:$0xff]  ;;  %1654 = vst [vmem:[%s4784_s27 + $0x16c8] sm:$0xff] %v1653_v25 }
 0x17f   : > { %1656 = vst [vmem:[%s4784_s27 + $0x16d0] sm:$0xff] %v1655_v26  ;;  %1658 = vst [vmem:[%s4784_s27 + $0x16d8] sm:$0xff] %v1657_v27  ;;  %v1659_v28 = vld [vmem:[%s4776_s26 + $0x2dc0] sm:$0xff]  ;;  %v1661_v29 = vld [vmem:[%s4776_s26 + $0x2dc8] sm:$0xff] }
 0x180   : > { %v1663_v30 = vld [vmem:[%s4776_s26 + $0x2de0] sm:$0xff]  ;;  %1660 = vst [vmem:[%s4784_s27 + $0x16e0] sm:$0xff] %v1659_v28  ;;  %1662 = vst [vmem:[%s4784_s27 + $0x16e8] sm:$0xff] %v1661_v29  ;;  %v1665_v31 = vld [vmem:[%s4776_s26 + $0x2de8] sm:$0xff] }
 0x181   : > { %1664 = vst [vmem:[%s4784_s27 + $0x16f0] sm:$0xff] %v1663_v30  ;;  %v1667_v32 = vld [vmem:[%s4776_s26 + $0x2e00] sm:$0xff]  ;;  %v1669_v33 = vld [vmem:[%s4776_s26 + $0x2e08] sm:$0xff]  ;;  %1666 = vst [vmem:[%s4784_s27 + $0x16f8] sm:$0xff] %v1665_v31 }
 0x182   : > { %1668 = vst [vmem:[%s4784_s27 + $0x1700] sm:$0xff] %v1667_v32  ;;  %1670 = vst [vmem:[%s4784_s27 + $0x1708] sm:$0xff] %v1669_v33  ;;  %v1671_v34 = vld [vmem:[%s4776_s26 + $0x2e20] sm:$0xff]  ;;  %v1673_v35 = vld [vmem:[%s4776_s26 + $0x2e28] sm:$0xff] }
 0x183   : > { %v1675_v36 = vld [vmem:[%s4776_s26 + $0x2e40] sm:$0xff]  ;;  %1672 = vst [vmem:[%s4784_s27 + $0x1710] sm:$0xff] %v1671_v34  ;;  %1674 = vst [vmem:[%s4784_s27 + $0x1718] sm:$0xff] %v1673_v35  ;;  %v1677_v37 = vld [vmem:[%s4776_s26 + $0x2e48] sm:$0xff] }
 0x184   : > { %1676 = vst [vmem:[%s4784_s27 + $0x1720] sm:$0xff] %v1675_v36  ;;  %v1679_v38 = vld [vmem:[%s4776_s26 + $0x2e60] sm:$0xff]  ;;  %v1681_v39 = vld [vmem:[%s4776_s26 + $0x2e68] sm:$0xff]  ;;  %1678 = vst [vmem:[%s4784_s27 + $0x1728] sm:$0xff] %v1677_v37 }
 0x185   : > { %1680 = vst [vmem:[%s4784_s27 + $0x1730] sm:$0xff] %v1679_v38  ;;  %1682 = vst [vmem:[%s4784_s27 + $0x1738] sm:$0xff] %v1681_v39  ;;  %v1683_v40 = vld [vmem:[%s4776_s26 + $0x2e80] sm:$0xff]  ;;  %v1685_v41 = vld [vmem:[%s4776_s26 + $0x2e88] sm:$0xff] }
 0x186   : > { %v1687_v42 = vld [vmem:[%s4776_s26 + $0x2ea0] sm:$0xff]  ;;  %1684 = vst [vmem:[%s4784_s27 + $0x1740] sm:$0xff] %v1683_v40  ;;  %1686 = vst [vmem:[%s4784_s27 + $0x1748] sm:$0xff] %v1685_v41  ;;  %v1689_v43 = vld [vmem:[%s4776_s26 + $0x2ea8] sm:$0xff] }
 0x187   : > { %1688 = vst [vmem:[%s4784_s27 + $0x1750] sm:$0xff] %v1687_v42  ;;  %v1691_v44 = vld [vmem:[%s4776_s26 + $0x2ec0] sm:$0xff]  ;;  %v1693_v45 = vld [vmem:[%s4776_s26 + $0x2ec8] sm:$0xff]  ;;  %1690 = vst [vmem:[%s4784_s27 + $0x1758] sm:$0xff] %v1689_v43 }
 0x188   : > { %1692 = vst [vmem:[%s4784_s27 + $0x1760] sm:$0xff] %v1691_v44  ;;  %1694 = vst [vmem:[%s4784_s27 + $0x1768] sm:$0xff] %v1693_v45  ;;  %v1695_v46 = vld [vmem:[%s4776_s26 + $0x2ee0] sm:$0xff]  ;;  %v1697_v47 = vld [vmem:[%s4776_s26 + $0x2ee8] sm:$0xff] }
 0x189   : > { %v1699_v48 = vld [vmem:[%s4776_s26 + $0x2f00] sm:$0xff]  ;;  %1696 = vst [vmem:[%s4784_s27 + $0x1770] sm:$0xff] %v1695_v46  ;;  %1698 = vst [vmem:[%s4784_s27 + $0x1778] sm:$0xff] %v1697_v47  ;;  %v1701_v49 = vld [vmem:[%s4776_s26 + $0x2f08] sm:$0xff] }
 0x18a   : > { %1700 = vst [vmem:[%s4784_s27 + $0x1780] sm:$0xff] %v1699_v48  ;;  %v1703_v50 = vld [vmem:[%s4776_s26 + $0x2f20] sm:$0xff]  ;;  %v1705_v51 = vld [vmem:[%s4776_s26 + $0x2f28] sm:$0xff]  ;;  %1702 = vst [vmem:[%s4784_s27 + $0x1788] sm:$0xff] %v1701_v49 }
 0x18b   : > { %1704 = vst [vmem:[%s4784_s27 + $0x1790] sm:$0xff] %v1703_v50  ;;  %1706 = vst [vmem:[%s4784_s27 + $0x1798] sm:$0xff] %v1705_v51  ;;  %v1707_v52 = vld [vmem:[%s4776_s26 + $0x2f40] sm:$0xff]  ;;  %v1709_v53 = vld [vmem:[%s4776_s26 + $0x2f48] sm:$0xff] }
 0x18c   : > { %v1711_v54 = vld [vmem:[%s4776_s26 + $0x2f60] sm:$0xff]  ;;  %1708 = vst [vmem:[%s4784_s27 + $0x17a0] sm:$0xff] %v1707_v52  ;;  %1710 = vst [vmem:[%s4784_s27 + $0x17a8] sm:$0xff] %v1709_v53  ;;  %v1713_v55 = vld [vmem:[%s4776_s26 + $0x2f68] sm:$0xff] }
 0x18d   : > { %1712 = vst [vmem:[%s4784_s27 + $0x17b0] sm:$0xff] %v1711_v54  ;;  %v1715_v56 = vld [vmem:[%s4776_s26 + $0x2f80] sm:$0xff]  ;;  %v1717_v57 = vld [vmem:[%s4776_s26 + $0x2f88] sm:$0xff]  ;;  %1714 = vst [vmem:[%s4784_s27 + $0x17b8] sm:$0xff] %v1713_v55 }
 0x18e   : > { %1716 = vst [vmem:[%s4784_s27 + $0x17c0] sm:$0xff] %v1715_v56  ;;  %1718 = vst [vmem:[%s4784_s27 + $0x17c8] sm:$0xff] %v1717_v57  ;;  %v1719_v58 = vld [vmem:[%s4776_s26 + $0x2fa0] sm:$0xff]  ;;  %v1721_v59 = vld [vmem:[%s4776_s26 + $0x2fa8] sm:$0xff] }
 0x18f   : > { %v1723_v60 = vld [vmem:[%s4776_s26 + $0x2fc0] sm:$0xff]  ;;  %1720 = vst [vmem:[%s4784_s27 + $0x17d0] sm:$0xff] %v1719_v58  ;;  %1722 = vst [vmem:[%s4784_s27 + $0x17d8] sm:$0xff] %v1721_v59  ;;  %v1725_v61 = vld [vmem:[%s4776_s26 + $0x2fc8] sm:$0xff] }
 0x190   : > { %1724 = vst [vmem:[%s4784_s27 + $0x17e0] sm:$0xff] %v1723_v60  ;;  %v1727_v62 = vld [vmem:[%s4776_s26 + $0x2fe0] sm:$0xff]  ;;  %v1729_v63 = vld [vmem:[%s4776_s26 + $0x2fe8] sm:$0xff]  ;;  %1726 = vst [vmem:[%s4784_s27 + $0x17e8] sm:$0xff] %v1725_v61 }
 0x191   : > { %1728 = vst [vmem:[%s4784_s27 + $0x17f0] sm:$0xff] %v1727_v62  ;;  %1730 = vst [vmem:[%s4784_s27 + $0x17f8] sm:$0xff] %v1729_v63  ;;  %v1731_v0 = vld [vmem:[%s4776_s26 + $0x3000] sm:$0xff]  ;;  %v1733_v1 = vld [vmem:[%s4776_s26 + $0x3008] sm:$0xff] }
 0x192   : > { %v1735_v2 = vld [vmem:[%s4776_s26 + $0x3020] sm:$0xff]  ;;  %1732 = vst [vmem:[%s4784_s27 + $0x1800] sm:$0xff] %v1731_v0  ;;  %1734 = vst [vmem:[%s4784_s27 + $0x1808] sm:$0xff] %v1733_v1  ;;  %v1737_v3 = vld [vmem:[%s4776_s26 + $0x3028] sm:$0xff] }
 0x193   : > { %1736 = vst [vmem:[%s4784_s27 + $0x1810] sm:$0xff] %v1735_v2  ;;  %v1739_v4 = vld [vmem:[%s4776_s26 + $0x3040] sm:$0xff]  ;;  %v1741_v5 = vld [vmem:[%s4776_s26 + $0x3048] sm:$0xff]  ;;  %1738 = vst [vmem:[%s4784_s27 + $0x1818] sm:$0xff] %v1737_v3 }
 0x194   : > { %1740 = vst [vmem:[%s4784_s27 + $0x1820] sm:$0xff] %v1739_v4  ;;  %1742 = vst [vmem:[%s4784_s27 + $0x1828] sm:$0xff] %v1741_v5  ;;  %v1743_v6 = vld [vmem:[%s4776_s26 + $0x3060] sm:$0xff]  ;;  %v1745_v7 = vld [vmem:[%s4776_s26 + $0x3068] sm:$0xff] }
 0x195   : > { %v1747_v8 = vld [vmem:[%s4776_s26 + $0x3080] sm:$0xff]  ;;  %1744 = vst [vmem:[%s4784_s27 + $0x1830] sm:$0xff] %v1743_v6  ;;  %1746 = vst [vmem:[%s4784_s27 + $0x1838] sm:$0xff] %v1745_v7  ;;  %v1749_v9 = vld [vmem:[%s4776_s26 + $0x3088] sm:$0xff] }
 0x196   : > { %1748 = vst [vmem:[%s4784_s27 + $0x1840] sm:$0xff] %v1747_v8  ;;  %v1751_v10 = vld [vmem:[%s4776_s26 + $0x30a0] sm:$0xff]  ;;  %v1753_v11 = vld [vmem:[%s4776_s26 + $0x30a8] sm:$0xff]  ;;  %1750 = vst [vmem:[%s4784_s27 + $0x1848] sm:$0xff] %v1749_v9 }
 0x197   : > { %1752 = vst [vmem:[%s4784_s27 + $0x1850] sm:$0xff] %v1751_v10  ;;  %1754 = vst [vmem:[%s4784_s27 + $0x1858] sm:$0xff] %v1753_v11  ;;  %v1755_v12 = vld [vmem:[%s4776_s26 + $0x30c0] sm:$0xff]  ;;  %v1757_v13 = vld [vmem:[%s4776_s26 + $0x30c8] sm:$0xff] }
 0x198   : > { %v1759_v14 = vld [vmem:[%s4776_s26 + $0x30e0] sm:$0xff]  ;;  %1756 = vst [vmem:[%s4784_s27 + $0x1860] sm:$0xff] %v1755_v12  ;;  %1758 = vst [vmem:[%s4784_s27 + $0x1868] sm:$0xff] %v1757_v13  ;;  %v1761_v15 = vld [vmem:[%s4776_s26 + $0x30e8] sm:$0xff] }
 0x199   : > { %1760 = vst [vmem:[%s4784_s27 + $0x1870] sm:$0xff] %v1759_v14  ;;  %v1763_v16 = vld [vmem:[%s4776_s26 + $0x3100] sm:$0xff]  ;;  %v1765_v17 = vld [vmem:[%s4776_s26 + $0x3108] sm:$0xff]  ;;  %1762 = vst [vmem:[%s4784_s27 + $0x1878] sm:$0xff] %v1761_v15 }
 0x19a   : > { %1764 = vst [vmem:[%s4784_s27 + $0x1880] sm:$0xff] %v1763_v16  ;;  %1766 = vst [vmem:[%s4784_s27 + $0x1888] sm:$0xff] %v1765_v17  ;;  %v1767_v18 = vld [vmem:[%s4776_s26 + $0x3120] sm:$0xff]  ;;  %v1769_v19 = vld [vmem:[%s4776_s26 + $0x3128] sm:$0xff] }
 0x19b   : > { %v1771_v20 = vld [vmem:[%s4776_s26 + $0x3140] sm:$0xff]  ;;  %1768 = vst [vmem:[%s4784_s27 + $0x1890] sm:$0xff] %v1767_v18  ;;  %1770 = vst [vmem:[%s4784_s27 + $0x1898] sm:$0xff] %v1769_v19  ;;  %v1773_v21 = vld [vmem:[%s4776_s26 + $0x3148] sm:$0xff] }
 0x19c   : > { %1772 = vst [vmem:[%s4784_s27 + $0x18a0] sm:$0xff] %v1771_v20  ;;  %v1775_v22 = vld [vmem:[%s4776_s26 + $0x3160] sm:$0xff]  ;;  %v1777_v23 = vld [vmem:[%s4776_s26 + $0x3168] sm:$0xff]  ;;  %1774 = vst [vmem:[%s4784_s27 + $0x18a8] sm:$0xff] %v1773_v21 }
 0x19d   : > { %1776 = vst [vmem:[%s4784_s27 + $0x18b0] sm:$0xff] %v1775_v22  ;;  %1778 = vst [vmem:[%s4784_s27 + $0x18b8] sm:$0xff] %v1777_v23  ;;  %v1779_v24 = vld [vmem:[%s4776_s26 + $0x3180] sm:$0xff]  ;;  %v1781_v25 = vld [vmem:[%s4776_s26 + $0x3188] sm:$0xff] }
 0x19e   : > { %v1783_v26 = vld [vmem:[%s4776_s26 + $0x31a0] sm:$0xff]  ;;  %1780 = vst [vmem:[%s4784_s27 + $0x18c0] sm:$0xff] %v1779_v24  ;;  %1782 = vst [vmem:[%s4784_s27 + $0x18c8] sm:$0xff] %v1781_v25  ;;  %v1785_v27 = vld [vmem:[%s4776_s26 + $0x31a8] sm:$0xff] }
 0x19f   : > { %1784 = vst [vmem:[%s4784_s27 + $0x18d0] sm:$0xff] %v1783_v26  ;;  %v1787_v28 = vld [vmem:[%s4776_s26 + $0x31c0] sm:$0xff]  ;;  %v1789_v29 = vld [vmem:[%s4776_s26 + $0x31c8] sm:$0xff]  ;;  %1786 = vst [vmem:[%s4784_s27 + $0x18d8] sm:$0xff] %v1785_v27 }
 0x1a0   : > { %1788 = vst [vmem:[%s4784_s27 + $0x18e0] sm:$0xff] %v1787_v28  ;;  %1790 = vst [vmem:[%s4784_s27 + $0x18e8] sm:$0xff] %v1789_v29  ;;  %v1791_v30 = vld [vmem:[%s4776_s26 + $0x31e0] sm:$0xff]  ;;  %v1793_v31 = vld [vmem:[%s4776_s26 + $0x31e8] sm:$0xff] }
 0x1a1   : > { %1792 = vst [vmem:[%s4784_s27 + $0x18f0] sm:$0xff] %v1791_v30  ;;  %1794 = vst [vmem:[%s4784_s27 + $0x18f8] sm:$0xff] %v1793_v31 }
 0x1a2 PF: > { %p3798_p6 = scmp.ge.s32.totalorder %s4710_s16, 1  ;;  %p1807_p7 = scmp.lt.s32.totalorder %s4710_s16, 3 }
 0x1a4   : > { %p1808_p8 = pnand %p3798_p6, %p1807_p7 }
 0x1a5   : > { %s1814_s28 = sand.u32 (!%p1808_p8), 1, %s4694_s12   ;;  %v1882_v32 = vld [vmem:[%s7282_s0 + $0x8] sm:$0xff] (!%p1808_p8)  ;;  %s3799_s19 = sshll.u32 (!%p1808_p8), %s4702_s14, 1 }
 0x1a6   : > { %1811 = sbr.rel (%p1808_p8) target bundleno = 1073 (0x431), region = 51  ;;  %v1894_v33 = vld [vmem:[%s7282_s0 + $0x68] sm:$0xff] (!%p1808_p8)  ;;  %2770 = vmatprep.mubr.f32.mxu1 (!%p1808_p8), %v1882_v32  ;;  %p1867_p9 = scmp.lt.s32.totalorder (!%p1808_p8), %s3799_s19, 3 }
 0x1a7   : > { %s4630_s6 = smul.u32 (!%p1808_p8), 6400, %s1814_s28  ;;  %3196 = vmatprep.mubr.f32.mxu0 (!%p1808_p8), %v1894_v33 }
 0x1a9   : > { %s6389_s7 = scalar_lea.vmem (!%p1808_p8), [#allocation2], %s4630_s6 }
 0x1aa   : > { %v1907_v34 = vld [vmem:[%s6389_s7 + $0x8] sm:$0xff] (!%p1808_p8)  ;;  %v1909_v35 = vld [vmem:[%s6389_s7 + $0x18] sm:$0xff] (!%p1808_p8)  ;;  %v1906_v39 = vld [vmem:[%s6389_s7] sm:$0xff] (!%p1808_p8) }
 0x1ab   : > { %v2291_v36 = vld [vmem:[%s6389_s7 + $0xc08] sm:$0xff] (!%p1808_p8)  ;;  %v3805_v37 = vpack.c.bf16 (!%p1808_p8), %v1909_v35, %v1907_v34  ;;  %v2293_v38 = vld [vmem:[%s6389_s7 + $0xc18] sm:$0xff] (!%p1808_p8)  ;;  %v1908_v40 = vld [vmem:[%s6389_s7 + $0x10] sm:$0xff] (!%p1808_p8) }
 0x1ac   : > { %v4189_v41 = vpack.c.bf16 (!%p1808_p8), %v2293_v38, %v2291_v36  ;;  %v3807_v42 = vpack.c.bf16 (!%p1808_p8), %v1908_v40, %v1906_v39  ;;  %v2290_v43 = vld [vmem:[%s6389_s7 + $0xc00] sm:$0xff] (!%p1808_p8)  ;;  %v2292_v44 = vld [vmem:[%s6389_s7 + $0xc10] sm:$0xff] (!%p1808_p8)  ;;  %v1911_v45 = vld [vmem:[%s6389_s7 + $0x28] sm:$0xff] (!%p1808_p8) }
 0x1ad   : > { %3806 = vmatprep.subr.bf16.mxu1 %v3805_v37  ;;  %v4191_v46 = vpack.c.bf16 %v2292_v44, %v2290_v43  ;;  %v1913_v47 = vld [vmem:[%s6389_s7 + $0x38] sm:$0xff]  ;;  %v2295_v48 = vld [vmem:[%s6389_s7 + $0xc28] sm:$0xff]  ;;  %v1910_v52 = vld [vmem:[%s6389_s7 + $0x20] sm:$0xff]  ;;  %s7293_s19 = smov (!%p1867_p9, %s3799_s19), 3 }
 0x1ae   : > { %v2297_v49 = vld [vmem:[%s6389_s7 + $0xc38] sm:$0xff]  ;;  %4190 = vmatprep.subr.bf16.mxu0 %v4189_v41  ;;  %3808 = vmatpush1.bf16.msra.mxu1 %v3807_v42  ;;  %v3809_v50 = vpack.c.bf16 %v1913_v47, %v1911_v45  ;;  %v1912_v53 = vld [vmem:[%s6389_s7 + $0x30] sm:$0xff]  ;;  %v2294_v54 = vld [vmem:[%s6389_s7 + $0xc20] sm:$0xff]  ;;  %s3801_s21 = sshll.u32 %s7293_s19, 3  ;;  %s1869_s26 = scalar_lea.vmem %s7284_s2, %s7293_s19 }
 0x1af   : > { %v4193_v51 = vpack.c.bf16 %v2297_v49, %v2295_v48  ;;  %4192 = vmatpush1.bf16.msra.mxu0 %v4191_v46  ;;  %v3811_v55 = vpack.c.bf16 %v1912_v53, %v1910_v52  ;;  %v2296_v56 = vld [vmem:[%s6389_s7 + $0xc30] sm:$0xff]  ;;  %v1915_v57 = vld [vmem:[%s6389_s7 + $0x48] sm:$0xff]  ;;  %v1917_v58 = vld [vmem:[%s6389_s7 + $0x58] sm:$0xff] }
 0x1b0   : > { %3810 = vmatprep.subr.bf16.mxu1 %v3809_v50  ;;  %v4195_v59 = vpack.c.bf16 %v2296_v56, %v2294_v54  ;;  %v3813_v60 = vpack.c.bf16 %v1917_v58, %v1915_v57  ;;  %v2299_v61 = vld [vmem:[%s6389_s7 + $0xc48] sm:$0xff]  ;;  %v2301_v62 = vld [vmem:[%s6389_s7 + $0xc58] sm:$0xff]  ;;  %v1914_v63 = vld [vmem:[%s6389_s7 + $0x40] sm:$0xff] }
 0x1b1   : > { %4194 = vmatprep.subr.bf16.mxu0 %v4193_v51  ;;  %v4197_v0 = vpack.c.bf16 %v2301_v62, %v2299_v61  ;;  %v1916_v1 = vld [vmem:[%s6389_s7 + $0x50] sm:$0xff]  ;;  %v2298_v2 = vld [vmem:[%s6389_s7 + $0xc40] sm:$0xff]  ;;  %v1919_v5 = vld [vmem:[%s6389_s7 + $0x68] sm:$0xff] }
 0x1b2   : > { %v2300_v3 = vld [vmem:[%s6389_s7 + $0xc50] sm:$0xff]  ;;  %3812 = vmatpush1.bf16.msra.mxu1 %v3811_v55  ;;  %v3815_v4 = vpack.c.bf16 %v1916_v1, %v1914_v63  ;;  %v1921_v6 = vld [vmem:[%s6389_s7 + $0x78] sm:$0xff]  ;;  %v2303_v7 = vld [vmem:[%s6389_s7 + $0xc68] sm:$0xff] }
 0x1b3   : > { %4196 = vmatpush1.bf16.msra.mxu0 %v4195_v59  ;;  %3814 = vmatprep.subr.bf16.mxu1 %v3813_v60  ;;  %v4199_v8 = vpack.c.bf16 %v2300_v3, %v2298_v2  ;;  %v3817_v9 = vpack.c.bf16 %v1921_v6, %v1919_v5  ;;  %v2305_v10 = vld [vmem:[%s6389_s7 + $0xc78] sm:$0xff]  ;;  %v1918_v11 = vld [vmem:[%s6389_s7 + $0x60] sm:$0xff]  ;;  %v1920_v12 = vld [vmem:[%s6389_s7 + $0x70] sm:$0xff] }
 0x1b4   : > { %4198 = vmatprep.subr.bf16.mxu0 %v4197_v0  ;;  %v4201_v13 = vpack.c.bf16 %v2305_v10, %v2303_v7  ;;  %v2302_v14 = vld [vmem:[%s6389_s7 + $0xc60] sm:$0xff]  ;;  %v2304_v15 = vld [vmem:[%s6389_s7 + $0xc70] sm:$0xff]  ;;  %v1923_v16 = vld [vmem:[%s6389_s7 + $0x88] sm:$0xff]  ;;  %v3819_v20 = vpack.c.bf16 %v1920_v12, %v1918_v11 }
 0x1b5   : > { %v1925_v17 = vld [vmem:[%s6389_s7 + $0x98] sm:$0xff]  ;;  %v2307_v18 = vld [vmem:[%s6389_s7 + $0xc88] sm:$0xff]  ;;  %v4203_v21 = vpack.c.bf16 %v2304_v15, %v2302_v14  ;;  %v1922_v23 = vld [vmem:[%s6389_s7 + $0x80] sm:$0xff] }
 0x1b6   : > { %v2309_v19 = vld [vmem:[%s6389_s7 + $0xc98] sm:$0xff]  ;;  %3816 = vmatpush1.bf16.msra.mxu1 %v3815_v4  ;;  %v3821_v22 = vpack.c.bf16 %v1925_v17, %v1923_v16  ;;  %v1924_v24 = vld [vmem:[%s6389_s7 + $0x90] sm:$0xff]  ;;  %v2306_v25 = vld [vmem:[%s6389_s7 + $0xc80] sm:$0xff] }
 0x1b7   : > { %4200 = vmatpush1.bf16.msra.mxu0 %v4199_v8  ;;  %3818 = vmatprep.subr.bf16.mxu1 %v3817_v9  ;;  %v4205_v26 = vpack.c.bf16 %v2309_v19, %v2307_v18  ;;  %v2308_v27 = vld [vmem:[%s6389_s7 + $0xc90] sm:$0xff]  ;;  %v1927_v28 = vld [vmem:[%s6389_s7 + $0xa8] sm:$0xff]  ;;  %v1929_v29 = vld [vmem:[%s6389_s7 + $0xb8] sm:$0xff]  ;;  %v3823_v32 = vpack.c.bf16 %v1924_v24, %v1922_v23 }
 0x1b8   : > { %4202 = vmatprep.subr.bf16.mxu0 %v4201_v13  ;;  %v2311_v30 = vld [vmem:[%s6389_s7 + $0xca8] sm:$0xff]  ;;  %v2313_v31 = vld [vmem:[%s6389_s7 + $0xcb8] sm:$0xff]  ;;  %v4207_v33 = vpack.c.bf16 %v2308_v27, %v2306_v25  ;;  %v3825_v34 = vpack.c.bf16 %v1929_v29, %v1927_v28  ;;  %v1926_v35 = vld [vmem:[%s6389_s7 + $0xa0] sm:$0xff] }
 0x1b9   : > { %v1928_v36 = vld [vmem:[%s6389_s7 + $0xb0] sm:$0xff]  ;;  %v2310_v37 = vld [vmem:[%s6389_s7 + $0xca0] sm:$0xff]  ;;  %v4209_v38 = vpack.c.bf16 %v2313_v31, %v2311_v30  ;;  %v1931_v40 = vld [vmem:[%s6389_s7 + $0xc8] sm:$0xff] }
 0x1ba   : > { %3820 = vmatpush1.bf16.msra.mxu1 %v3819_v20  ;;  %v2312_v39 = vld [vmem:[%s6389_s7 + $0xcb0] sm:$0xff]  ;;  %v1933_v41 = vld [vmem:[%s6389_s7 + $0xd8] sm:$0xff]  ;;  %v2315_v42 = vld [vmem:[%s6389_s7 + $0xcc8] sm:$0xff]  ;;  %v3827_v44 = vpack.c.bf16 %v1928_v36, %v1926_v35 }
 0x1bb   : > { %4204 = vmatpush1.bf16.msra.mxu0 %v4203_v21  ;;  %3822 = vmatprep.subr.bf16.mxu1 %v3821_v22  ;;  %v2317_v43 = vld [vmem:[%s6389_s7 + $0xcd8] sm:$0xff]  ;;  %v4211_v45 = vpack.c.bf16 %v2312_v39, %v2310_v37  ;;  %v3829_v46 = vpack.c.bf16 %v1933_v41, %v1931_v40  ;;  %v1930_v47 = vld [vmem:[%s6389_s7 + $0xc0] sm:$0xff]  ;;  %v1932_v48 = vld [vmem:[%s6389_s7 + $0xd0] sm:$0xff] }
 0x1bc   : > { %4206 = vmatprep.subr.bf16.mxu0 %v4205_v26  ;;  %v2314_v49 = vld [vmem:[%s6389_s7 + $0xcc0] sm:$0xff]  ;;  %v4213_v50 = vpack.c.bf16 %v2317_v43, %v2315_v42  ;;  %v2316_v51 = vld [vmem:[%s6389_s7 + $0xcd0] sm:$0xff]  ;;  %v1935_v52 = vld [vmem:[%s6389_s7 + $0xe8] sm:$0xff]  ;;  %v3831_v56 = vpack.c.bf16 %v1932_v48, %v1930_v47 }
 0x1bd   : > { %v1937_v53 = vld [vmem:[%s6389_s7 + $0xf8] sm:$0xff]  ;;  %v2319_v54 = vld [vmem:[%s6389_s7 + $0xce8] sm:$0xff]  ;;  %v4215_v57 = vpack.c.bf16 %v2316_v51, %v2314_v49  ;;  %v1934_v59 = vld [vmem:[%s6389_s7 + $0xe0] sm:$0xff] }
 0x1be   : > { %3824 = vmatpush1.bf16.msra.mxu1 %v3823_v32  ;;  %v2321_v55 = vld [vmem:[%s6389_s7 + $0xcf8] sm:$0xff]  ;;  %v3833_v58 = vpack.c.bf16 %v1937_v53, %v1935_v52  ;;  %v1936_v60 = vld [vmem:[%s6389_s7 + $0xf0] sm:$0xff]  ;;  %v2318_v61 = vld [vmem:[%s6389_s7 + $0xce0] sm:$0xff] }
 0x1bf   : > { %4208 = vmatpush1.bf16.msra.mxu0 %v4207_v33  ;;  %3826 = vmatprep.subr.bf16.mxu1 %v3825_v34  ;;  %v4217_v62 = vpack.c.bf16 %v2321_v55, %v2319_v54  ;;  %v2320_v63 = vld [vmem:[%s6389_s7 + $0xcf0] sm:$0xff]  ;;  %v1939_v0 = vld [vmem:[%s6389_s7 + $0x108] sm:$0xff]  ;;  %v1941_v1 = vld [vmem:[%s6389_s7 + $0x118] sm:$0xff]  ;;  %v3835_v4 = vpack.c.bf16 %v1936_v60, %v1934_v59 }
 0x1c0   : > { %4210 = vmatprep.subr.bf16.mxu0 %v4209_v38  ;;  %v2323_v2 = vld [vmem:[%s6389_s7 + $0xd08] sm:$0xff]  ;;  %v2325_v3 = vld [vmem:[%s6389_s7 + $0xd18] sm:$0xff]  ;;  %v4219_v5 = vpack.c.bf16 %v2320_v63, %v2318_v61  ;;  %v3837_v6 = vpack.c.bf16 %v1941_v1, %v1939_v0  ;;  %v1938_v7 = vld [vmem:[%s6389_s7 + $0x100] sm:$0xff] }
 0x1c1   : > { %v1940_v8 = vld [vmem:[%s6389_s7 + $0x110] sm:$0xff]  ;;  %v2322_v9 = vld [vmem:[%s6389_s7 + $0xd00] sm:$0xff]  ;;  %v4221_v10 = vpack.c.bf16 %v2325_v3, %v2323_v2  ;;  %v1943_v12 = vld [vmem:[%s6389_s7 + $0x128] sm:$0xff] }
 0x1c2   : > { %3828 = vmatpush1.bf16.msra.mxu1 %v3827_v44  ;;  %v2324_v11 = vld [vmem:[%s6389_s7 + $0xd10] sm:$0xff]  ;;  %v1945_v13 = vld [vmem:[%s6389_s7 + $0x138] sm:$0xff]  ;;  %v2327_v14 = vld [vmem:[%s6389_s7 + $0xd28] sm:$0xff]  ;;  %v3839_v16 = vpack.c.bf16 %v1940_v8, %v1938_v7 }
 0x1c3   : > { %4212 = vmatpush1.bf16.msra.mxu0 %v4211_v45  ;;  %3830 = vmatprep.subr.bf16.mxu1 %v3829_v46  ;;  %v2329_v15 = vld [vmem:[%s6389_s7 + $0xd38] sm:$0xff]  ;;  %v4223_v17 = vpack.c.bf16 %v2324_v11, %v2322_v9  ;;  %v3841_v18 = vpack.c.bf16 %v1945_v13, %v1943_v12  ;;  %v1942_v19 = vld [vmem:[%s6389_s7 + $0x120] sm:$0xff]  ;;  %v1944_v20 = vld [vmem:[%s6389_s7 + $0x130] sm:$0xff] }
 0x1c4   : > { %4214 = vmatprep.subr.bf16.mxu0 %v4213_v50  ;;  %v2326_v21 = vld [vmem:[%s6389_s7 + $0xd20] sm:$0xff]  ;;  %v4225_v22 = vpack.c.bf16 %v2329_v15, %v2327_v14  ;;  %v2328_v23 = vld [vmem:[%s6389_s7 + $0xd30] sm:$0xff]  ;;  %v1947_v24 = vld [vmem:[%s6389_s7 + $0x148] sm:$0xff]  ;;  %v3843_v28 = vpack.c.bf16 %v1944_v20, %v1942_v19 }
 0x1c5   : > { %v1949_v25 = vld [vmem:[%s6389_s7 + $0x158] sm:$0xff]  ;;  %v2331_v26 = vld [vmem:[%s6389_s7 + $0xd48] sm:$0xff]  ;;  %v4227_v29 = vpack.c.bf16 %v2328_v23, %v2326_v21  ;;  %v1946_v31 = vld [vmem:[%s6389_s7 + $0x140] sm:$0xff] }
 0x1c6   : > { %3832 = vmatpush1.bf16.msra.mxu1 %v3831_v56  ;;  %v2333_v27 = vld [vmem:[%s6389_s7 + $0xd58] sm:$0xff]  ;;  %v3845_v30 = vpack.c.bf16 %v1949_v25, %v1947_v24  ;;  %v1948_v32 = vld [vmem:[%s6389_s7 + $0x150] sm:$0xff]  ;;  %v2330_v33 = vld [vmem:[%s6389_s7 + $0xd40] sm:$0xff] }
 0x1c7   : > { %4216 = vmatpush1.bf16.msra.mxu0 %v4215_v57  ;;  %3834 = vmatprep.subr.bf16.mxu1 %v3833_v58  ;;  %v4229_v34 = vpack.c.bf16 %v2333_v27, %v2331_v26  ;;  %v2332_v35 = vld [vmem:[%s6389_s7 + $0xd50] sm:$0xff]  ;;  %v1951_v36 = vld [vmem:[%s6389_s7 + $0x168] sm:$0xff]  ;;  %v1953_v37 = vld [vmem:[%s6389_s7 + $0x178] sm:$0xff]  ;;  %v3847_v40 = vpack.c.bf16 %v1948_v32, %v1946_v31 }
 0x1c8   : > { %4218 = vmatprep.subr.bf16.mxu0 %v4217_v62  ;;  %v2335_v38 = vld [vmem:[%s6389_s7 + $0xd68] sm:$0xff]  ;;  %v2337_v39 = vld [vmem:[%s6389_s7 + $0xd78] sm:$0xff]  ;;  %v4231_v41 = vpack.c.bf16 %v2332_v35, %v2330_v33  ;;  %v3849_v42 = vpack.c.bf16 %v1953_v37, %v1951_v36  ;;  %v1950_v43 = vld [vmem:[%s6389_s7 + $0x160] sm:$0xff] }
 0x1c9   : > { %v1952_v44 = vld [vmem:[%s6389_s7 + $0x170] sm:$0xff]  ;;  %v2334_v45 = vld [vmem:[%s6389_s7 + $0xd60] sm:$0xff]  ;;  %v4233_v46 = vpack.c.bf16 %v2337_v39, %v2335_v38  ;;  %v1955_v48 = vld [vmem:[%s6389_s7 + $0x188] sm:$0xff] }
 0x1ca   : > { %3836 = vmatpush1.bf16.msra.mxu1 %v3835_v4  ;;  %v2336_v47 = vld [vmem:[%s6389_s7 + $0xd70] sm:$0xff]  ;;  %v1957_v49 = vld [vmem:[%s6389_s7 + $0x198] sm:$0xff]  ;;  %v2339_v50 = vld [vmem:[%s6389_s7 + $0xd88] sm:$0xff]  ;;  %v3851_v52 = vpack.c.bf16 %v1952_v44, %v1950_v43 }
 0x1cb   : > { %4220 = vmatpush1.bf16.msra.mxu0 %v4219_v5  ;;  %3838 = vmatprep.subr.bf16.mxu1 %v3837_v6  ;;  %v2341_v51 = vld [vmem:[%s6389_s7 + $0xd98] sm:$0xff]  ;;  %v4235_v53 = vpack.c.bf16 %v2336_v47, %v2334_v45  ;;  %v3853_v54 = vpack.c.bf16 %v1957_v49, %v1955_v48  ;;  %v1954_v55 = vld [vmem:[%s6389_s7 + $0x180] sm:$0xff]  ;;  %v1956_v56 = vld [vmem:[%s6389_s7 + $0x190] sm:$0xff] }
 0x1cc   : > { %4222 = vmatprep.subr.bf16.mxu0 %v4221_v10  ;;  %v2338_v57 = vld [vmem:[%s6389_s7 + $0xd80] sm:$0xff]  ;;  %v4237_v58 = vpack.c.bf16 %v2341_v51, %v2339_v50  ;;  %v2340_v59 = vld [vmem:[%s6389_s7 + $0xd90] sm:$0xff]  ;;  %v1959_v60 = vld [vmem:[%s6389_s7 + $0x1a8] sm:$0xff]  ;;  %v3855_v0 = vpack.c.bf16 %v1956_v56, %v1954_v55 }
 0x1cd   : > { %v1961_v61 = vld [vmem:[%s6389_s7 + $0x1b8] sm:$0xff]  ;;  %v2343_v62 = vld [vmem:[%s6389_s7 + $0xda8] sm:$0xff]  ;;  %v4239_v1 = vpack.c.bf16 %v2340_v59, %v2338_v57  ;;  %v1958_v3 = vld [vmem:[%s6389_s7 + $0x1a0] sm:$0xff] }
 0x1ce   : > { %3840 = vmatpush1.bf16.msra.mxu1 %v3839_v16  ;;  %v2345_v63 = vld [vmem:[%s6389_s7 + $0xdb8] sm:$0xff]  ;;  %v3857_v2 = vpack.c.bf16 %v1961_v61, %v1959_v60  ;;  %v1960_v4 = vld [vmem:[%s6389_s7 + $0x1b0] sm:$0xff]  ;;  %v2342_v5 = vld [vmem:[%s6389_s7 + $0xda0] sm:$0xff] }
 0x1cf   : > { %4224 = vmatpush1.bf16.msra.mxu0 %v4223_v17  ;;  %3842 = vmatprep.subr.bf16.mxu1 %v3841_v18  ;;  %v4241_v6 = vpack.c.bf16 %v2345_v63, %v2343_v62  ;;  %v2344_v7 = vld [vmem:[%s6389_s7 + $0xdb0] sm:$0xff]  ;;  %v1963_v8 = vld [vmem:[%s6389_s7 + $0x1c8] sm:$0xff]  ;;  %v1965_v9 = vld [vmem:[%s6389_s7 + $0x1d8] sm:$0xff]  ;;  %v3859_v12 = vpack.c.bf16 %v1960_v4, %v1958_v3 }
 0x1d0   : > { %4226 = vmatprep.subr.bf16.mxu0 %v4225_v22  ;;  %v2347_v10 = vld [vmem:[%s6389_s7 + $0xdc8] sm:$0xff]  ;;  %v2349_v11 = vld [vmem:[%s6389_s7 + $0xdd8] sm:$0xff]  ;;  %v4243_v13 = vpack.c.bf16 %v2344_v7, %v2342_v5  ;;  %v3861_v14 = vpack.c.bf16 %v1965_v9, %v1963_v8  ;;  %v1962_v15 = vld [vmem:[%s6389_s7 + $0x1c0] sm:$0xff] }
 0x1d1   : > { %v1964_v16 = vld [vmem:[%s6389_s7 + $0x1d0] sm:$0xff]  ;;  %v2346_v17 = vld [vmem:[%s6389_s7 + $0xdc0] sm:$0xff]  ;;  %v4245_v18 = vpack.c.bf16 %v2349_v11, %v2347_v10  ;;  %v1967_v20 = vld [vmem:[%s6389_s7 + $0x1e8] sm:$0xff] }
 0x1d2   : > { %3844 = vmatpush1.bf16.msra.mxu1 %v3843_v28  ;;  %v2348_v19 = vld [vmem:[%s6389_s7 + $0xdd0] sm:$0xff]  ;;  %v1969_v21 = vld [vmem:[%s6389_s7 + $0x1f8] sm:$0xff]  ;;  %v2351_v22 = vld [vmem:[%s6389_s7 + $0xde8] sm:$0xff]  ;;  %v3863_v24 = vpack.c.bf16 %v1964_v16, %v1962_v15 }
 0x1d3   : > { %4228 = vmatpush1.bf16.msra.mxu0 %v4227_v29  ;;  %3846 = vmatprep.subr.bf16.mxu1 %v3845_v30  ;;  %v2353_v23 = vld [vmem:[%s6389_s7 + $0xdf8] sm:$0xff]  ;;  %v4247_v25 = vpack.c.bf16 %v2348_v19, %v2346_v17  ;;  %v3865_v26 = vpack.c.bf16 %v1969_v21, %v1967_v20  ;;  %v1966_v27 = vld [vmem:[%s6389_s7 + $0x1e0] sm:$0xff]  ;;  %v1968_v28 = vld [vmem:[%s6389_s7 + $0x1f0] sm:$0xff] }
 0x1d4   : > { %4230 = vmatprep.subr.bf16.mxu0 %v4229_v34  ;;  %v2350_v29 = vld [vmem:[%s6389_s7 + $0xde0] sm:$0xff]  ;;  %v4249_v30 = vpack.c.bf16 %v2353_v23, %v2351_v22  ;;  %v2352_v31 = vld [vmem:[%s6389_s7 + $0xdf0] sm:$0xff]  ;;  %v1971_v32 = vld [vmem:[%s6389_s7 + $0x208] sm:$0xff]  ;;  %v3867_v36 = vpack.c.bf16 %v1968_v28, %v1966_v27 }
 0x1d5   : > { %v1973_v33 = vld [vmem:[%s6389_s7 + $0x218] sm:$0xff]  ;;  %v2355_v34 = vld [vmem:[%s6389_s7 + $0xe08] sm:$0xff]  ;;  %v4251_v37 = vpack.c.bf16 %v2352_v31, %v2350_v29  ;;  %v1970_v39 = vld [vmem:[%s6389_s7 + $0x200] sm:$0xff] }
 0x1d6   : > { %3848 = vmatpush1.bf16.msra.mxu1 %v3847_v40  ;;  %v2357_v35 = vld [vmem:[%s6389_s7 + $0xe18] sm:$0xff]  ;;  %v3869_v38 = vpack.c.bf16 %v1973_v33, %v1971_v32  ;;  %v1972_v40 = vld [vmem:[%s6389_s7 + $0x210] sm:$0xff]  ;;  %v1975_v44 = vld [vmem:[%s6389_s7 + $0x228] sm:$0xff] }
 0x1d7   : > { %4232 = vmatpush1.bf16.msra.mxu0 %v4231_v41  ;;  %3850 = vmatprep.subr.bf16.mxu1 %v3849_v42  ;;  %v2354_v41 = vld [vmem:[%s6389_s7 + $0xe00] sm:$0xff]  ;;  %v4253_v42 = vpack.c.bf16 %v2357_v35, %v2355_v34  ;;  %v2356_v43 = vld [vmem:[%s6389_s7 + $0xe10] sm:$0xff]  ;;  %v1977_v45 = vld [vmem:[%s6389_s7 + $0x238] sm:$0xff]  ;;  %v3871_v49 = vpack.c.bf16 %v1972_v40, %v1970_v39 }
 0x1d8   : > { %4234 = vmatprep.subr.bf16.mxu0 %v4233_v46  ;;  %v2359_v46 = vld [vmem:[%s6389_s7 + $0xe28] sm:$0xff]  ;;  %v2361_v47 = vld [vmem:[%s6389_s7 + $0xe38] sm:$0xff]  ;;  %v1881_v48 = vld [vmem:[%s7282_s0] sm:$0xff]  ;;  %v4255_v51 = vpack.c.bf16 %v2356_v43, %v2354_v41 }
 0x1d9   : > { %v1893_v50 = vld [vmem:[%s7282_s0 + $0x60] sm:$0xff]  ;;  %v4257_v56 = vpack.c.bf16 %v2361_v47, %v2359_v46  ;;  %v2360_v57 = vld [vmem:[%s6389_s7 + $0xe30] sm:$0xff]  ;;  %v1981_v59 = vld [vmem:[%s6389_s7 + $0x258] sm:$0xff] }
 0x1da   : > { %3852 = vmatpush1.bf16.msra.mxu1 %v3851_v52  ;;  %v3873_v52 = vpack.c.bf16 %v1977_v45, %v1975_v44  ;;  %v2358_v55 = vld [vmem:[%s6389_s7 + $0xe20] sm:$0xff]  ;;  %v2363_v60 = vld [vmem:[%s6389_s7 + $0xe48] sm:$0xff]  ;;  %v2365_v61 = vld [vmem:[%s6389_s7 + $0xe58] sm:$0xff] }
 0x1db   : > { %4236 = vmatpush1.bf16.msra.mxu0 %v4235_v53  ;;  %3854 = vmatprep.subr.bf16.mxu1 %v3853_v54  ;;  %v1974_v53 = vld [vmem:[%s6389_s7 + $0x220] sm:$0xff]  ;;  %v1976_v54 = vld [vmem:[%s6389_s7 + $0x230] sm:$0xff]  ;;  %v4259_v63 = vpack.c.bf16 %v2360_v57, %v2358_v55  ;;  %v4261_v4 = vpack.c.bf16 %v2365_v61, %v2363_v60  ;;  %v1985_v7 = vld [vmem:[%s6389_s7 + $0x278] sm:$0xff] }
 0x1dc   : > { %4238 = vmatprep.subr.bf16.mxu0 %v4237_v58  ;;  %v1979_v58 = vld [vmem:[%s6389_s7 + $0x248] sm:$0xff]  ;;  %v3875_v62 = vpack.c.bf16 %v1976_v54, %v1974_v53  ;;  %v2362_v3 = vld [vmem:[%s6389_s7 + $0xe40] sm:$0xff]  ;;  %v2364_v5 = vld [vmem:[%s6389_s7 + $0xe50] sm:$0xff] }
 0x1dd   : > { %v2367_v8 = vld [vmem:[%s6389_s7 + $0xe68] sm:$0xff]  ;;  %v2369_v9 = vld [vmem:[%s6389_s7 + $0xe78] sm:$0xff]  ;;  %v4263_v11 = vpack.c.bf16 %v2364_v5, %v2362_v3  ;;  %v2366_v15 = vld [vmem:[%s6389_s7 + $0xe60] sm:$0xff] }
 0x1de   : > { %3856 = vmatpush1.bf16.msra.mxu1 %v3855_v0  ;;  %v3877_v0 = vpack.c.bf16 %v1981_v59, %v1979_v58  ;;  %v4265_v16 = vpack.c.bf16 %v2369_v9, %v2367_v8  ;;  %v2368_v17 = vld [vmem:[%s6389_s7 + $0xe70] sm:$0xff]  ;;  %v1989_v19 = vld [vmem:[%s6389_s7 + $0x298] sm:$0xff]  ;;  %v2371_v20 = vld [vmem:[%s6389_s7 + $0xe88] sm:$0xff] }
 0x1df   : > { %4240 = vmatpush1.bf16.msra.mxu0 %v4239_v1  ;;  %3858 = vmatprep.subr.bf16.mxu1 %v3857_v2  ;;  %v1978_v1 = vld [vmem:[%s6389_s7 + $0x240] sm:$0xff]  ;;  %v1980_v2 = vld [vmem:[%s6389_s7 + $0x250] sm:$0xff]  ;;  %v2373_v21 = vld [vmem:[%s6389_s7 + $0xe98] sm:$0xff]  ;;  %v4267_v23 = vpack.c.bf16 %v2368_v17, %v2366_v15 }
 0x1e0   : > { %4242 = vmatprep.subr.bf16.mxu0 %v4241_v6  ;;  %v1983_v6 = vld [vmem:[%s6389_s7 + $0x268] sm:$0xff]  ;;  %v3879_v10 = vpack.c.bf16 %v1980_v2, %v1978_v1  ;;  %v2370_v27 = vld [vmem:[%s6389_s7 + $0xe80] sm:$0xff]  ;;  %v4269_v28 = vpack.c.bf16 %v2373_v21, %v2371_v20  ;;  %v2372_v29 = vld [vmem:[%s6389_s7 + $0xe90] sm:$0xff] }
 0x1e1   : > { %v1993_v31 = vld [vmem:[%s6389_s7 + $0x2b8] sm:$0xff]  ;;  %v2375_v32 = vld [vmem:[%s6389_s7 + $0xea8] sm:$0xff]  ;;  %v4271_v35 = vpack.c.bf16 %v2372_v29, %v2370_v27  ;;  %v2374_v39 = vld [vmem:[%s6389_s7 + $0xea0] sm:$0xff] }
 0x1e2   : > { %3860 = vmatpush1.bf16.msra.mxu1 %v3859_v12  ;;  %v3881_v12 = vpack.c.bf16 %v1985_v7, %v1983_v6  ;;  %v2377_v33 = vld [vmem:[%s6389_s7 + $0xeb8] sm:$0xff]  ;;  %v2376_v41 = vld [vmem:[%s6389_s7 + $0xeb0] sm:$0xff]  ;;  %v2379_v44 = vld [vmem:[%s6389_s7 + $0xec8] sm:$0xff] }
 0x1e3   : > { %4244 = vmatpush1.bf16.msra.mxu0 %v4243_v13  ;;  %3862 = vmatprep.subr.bf16.mxu1 %v3861_v14  ;;  %v1982_v13 = vld [vmem:[%s6389_s7 + $0x260] sm:$0xff]  ;;  %v1984_v14 = vld [vmem:[%s6389_s7 + $0x270] sm:$0xff]  ;;  %v4273_v40 = vpack.c.bf16 %v2377_v33, %v2375_v32  ;;  %v1997_v43 = vld [vmem:[%s6389_s7 + $0x2d8] sm:$0xff] }
 0x1e4   : > { %4246 = vmatprep.subr.bf16.mxu0 %v4245_v18  ;;  %v1987_v18 = vld [vmem:[%s6389_s7 + $0x288] sm:$0xff]  ;;  %v3883_v22 = vpack.c.bf16 %v1984_v14, %v1982_v13  ;;  %v2381_v45 = vld [vmem:[%s6389_s7 + $0xed8] sm:$0xff]  ;;  %v1994_v47 = vld [vmem:[%s6389_s7 + $0x2c0] sm:$0xff] }
 0x1e5   : > { %v1884_v53 = vld [vmem:[%s7282_s0 + $0x18] sm:$0xff]  ;;  %v4277_v54 = vpack.c.bf16 %v2381_v45, %v2379_v44  ;;  %v1999_v55 = vld [vmem:[%s6389_s7 + $0x2e8] sm:$0xff]  ;;  %v2382_v1 = vld [vmem:[%s6389_s7 + $0xee0] sm:$0xff] }
 0x1e6   : > { %3864 = vmatpush1.bf16.msra.mxu1 %v3863_v24  ;;  %v3885_v24 = vpack.c.bf16 %v1989_v19, %v1987_v18  ;;  %v1896_v57 = vld [vmem:[%s7282_s0 + $0x78] sm:$0xff]  ;;  %v2383_v58 = vld [vmem:[%s6389_s7 + $0xee8] sm:$0xff]  ;;  %v2384_v3 = vld [vmem:[%s6389_s7 + $0xef0] sm:$0xff] }
 0x1e7   : > { %4248 = vmatpush1.bf16.msra.mxu0 %v4247_v25  ;;  %3866 = vmatprep.subr.bf16.mxu1 %v3865_v26  ;;  %v1986_v25 = vld [vmem:[%s6389_s7 + $0x280] sm:$0xff]  ;;  %v1988_v26 = vld [vmem:[%s6389_s7 + $0x290] sm:$0xff]  ;;  %v2385_v59 = vld [vmem:[%s6389_s7 + $0xef8] sm:$0xff]  ;;  %v4283_v9 = vpack.c.bf16 %v2384_v3, %v2382_v1 }
 0x1e8   : > { %4250 = vmatprep.subr.bf16.mxu0 %v4249_v30  ;;  %v1991_v30 = vld [vmem:[%s6389_s7 + $0x2a8] sm:$0xff]  ;;  %v3887_v34 = vpack.c.bf16 %v1988_v26, %v1986_v25  ;;  %v4281_v2 = vpack.c.bf16 %v2385_v59, %v2383_v58  ;;  %v2005_v5 = vld [vmem:[%s6389_s7 + $0x318] sm:$0xff]  ;;  %v2386_v13 = vld [vmem:[%s6389_s7 + $0xf00] sm:$0xff] }
 0x1e9   : > { %v2387_v6 = vld [vmem:[%s6389_s7 + $0xf08] sm:$0xff]  ;;  %v2389_v7 = vld [vmem:[%s6389_s7 + $0xf18] sm:$0xff]  ;;  %v2388_v15 = vld [vmem:[%s6389_s7 + $0xf10] sm:$0xff] }
 0x1ea   : > { %3868 = vmatpush1.bf16.msra.mxu1 %v3867_v36  ;;  %v3889_v36 = vpack.c.bf16 %v1993_v31, %v1991_v30  ;;  %v4285_v14 = vpack.c.bf16 %v2389_v7, %v2387_v6  ;;  %v2009_v17 = vld [vmem:[%s6389_s7 + $0x338] sm:$0xff]  ;;  %v2391_v18 = vld [vmem:[%s6389_s7 + $0xf28] sm:$0xff]  ;;  %v4287_v21 = vpack.c.bf16 %v2388_v15, %v2386_v13  ;;  %v2390_v25 = vld [vmem:[%s6389_s7 + $0xf20] sm:$0xff] }
 0x1eb   : > { %4252 = vmatpush1.bf16.msra.mxu0 %v4251_v37  ;;  %3870 = vmatprep.subr.bf16.mxu1 %v3869_v38  ;;  %v1990_v37 = vld [vmem:[%s6389_s7 + $0x2a0] sm:$0xff]  ;;  %v1992_v38 = vld [vmem:[%s6389_s7 + $0x2b0] sm:$0xff]  ;;  %v2393_v19 = vld [vmem:[%s6389_s7 + $0xf38] sm:$0xff] }
 0x1ec   : > { %4254 = vmatprep.subr.bf16.mxu0 %v4253_v42  ;;  %v1995_v42 = vld [vmem:[%s6389_s7 + $0x2c8] sm:$0xff]  ;;  %v3891_v46 = vpack.c.bf16 %v1992_v38, %v1990_v37  ;;  %v4289_v26 = vpack.c.bf16 %v2393_v19, %v2391_v18  ;;  %v2392_v27 = vld [vmem:[%s6389_s7 + $0xf30] sm:$0xff]  ;;  %v2013_v29 = vld [vmem:[%s6389_s7 + $0x358] sm:$0xff] }
 0x1ed   : > { %2771 = vmatmul.mubr.f32.vlgmr.msra.gmra.mrb[0].mxu1 %v1881_v48  ;;  %v1996_v48 = vld [vmem:[%s6389_s7 + $0x2d0] sm:$0xff]  ;;  %v2395_v30 = vld [vmem:[%s6389_s7 + $0xf48] sm:$0xff]  ;;  %v2397_v31 = vld [vmem:[%s6389_s7 + $0xf58] sm:$0xff]  ;;  %v4291_v33 = vpack.c.bf16 %v2392_v27, %v2390_v25 }
 0x1ee   : > { %3872 = vmatpush1.bf16.msra.mxu1 %v3871_v49  ;;  %3197 = vmatmul.mubr.f32.vlgmr.msra.gmra.mrb[0].mxu0 %v1893_v50  ;;  %v4275_v49 = vpack.c.bf16 %v2376_v41, %v2374_v39  ;;  %v3893_v50 = vpack.c.bf16 %v1997_v43, %v1995_v42  ;;  %v3895_v60 = vpack.c.bf16 %v1996_v48, %v1994_v47  ;;  %v2394_v37 = vld [vmem:[%s6389_s7 + $0xf40] sm:$0xff]  ;;  %v2396_v39 = vld [vmem:[%s6389_s7 + $0xf50] sm:$0xff]  ;;  %v2017_v41 = vld [vmem:[%s6389_s7 + $0x378] sm:$0xff] }
 0x1ef   : > { %4256 = vmatpush1.bf16.msra.mxu0 %v4255_v51  ;;  %3874 = vmatprep.subr.bf16.mxu1 %v3873_v52  ;;  %v2378_v51 = vld [vmem:[%s6389_s7 + $0xec0] sm:$0xff]  ;;  %v2380_v52 = vld [vmem:[%s6389_s7 + $0xed0] sm:$0xff]  ;;  %v4293_v38 = vpack.c.bf16 %v2397_v31, %v2395_v30  ;;  %v2399_v42 = vld [vmem:[%s6389_s7 + $0xf68] sm:$0xff]  ;;  %v4295_v45 = vpack.c.bf16 %v2396_v39, %v2394_v37 }
 0x1f0   : > { %4258 = vmatprep.subr.bf16.mxu0 %v4257_v56  ;;  %v2001_v56 = vld [vmem:[%s6389_s7 + $0x2f8] sm:$0xff]  ;;  %2841 = vmatprep.mubr.f32.mxu1 %v1884_v53  ;;  %v4279_v61 = vpack.c.bf16 %v2380_v52, %v2378_v51  ;;  %v2014_v47 = vld [vmem:[%s6389_s7 + $0x360] sm:$0xff]  ;;  %v2016_v48 = vld [vmem:[%s6389_s7 + $0x370] sm:$0xff] }
 0x1f1   : > { %3267 = vmatprep.mubr.f32.mxu0 %v1896_v57  ;;  %v2401_v43 = vld [vmem:[%s6389_s7 + $0xf78] sm:$0xff]  ;;  %v2400_v51 = vld [vmem:[%s6389_s7 + $0xf70] sm:$0xff]  ;;  %v2019_v52 = vld [vmem:[%s6389_s7 + $0x388] sm:$0xff] }
 0x1f2   : > { %3876 = vmatpush1.bf16.msra.mxu1 %v3875_v62  ;;  %v3897_v62 = vpack.c.bf16 %v2001_v56, %v1999_v55  ;;  %v2021_v53 = vld [vmem:[%s6389_s7 + $0x398] sm:$0xff]  ;;  %v3915_v56 = vpack.c.bf16 %v2016_v48, %v2014_v47  ;;  %v2018_v59 = vld [vmem:[%s6389_s7 + $0x380] sm:$0xff]  ;;  %v2420_v47 = vld [vmem:[%s6389_s7 + $0x1010] sm:$0xff] }
 0x1f3   : > { %4260 = vmatpush1.bf16.msra.mxu0 %v4259_v63  ;;  %3878 = vmatprep.subr.bf16.mxu1 %v3877_v0  ;;  %v1998_v63 = vld [vmem:[%s6389_s7 + $0x2e0] sm:$0xff]  ;;  %v2000_v0 = vld [vmem:[%s6389_s7 + $0x2f0] sm:$0xff]  ;;  %v2405_v55 = vld [vmem:[%s6389_s7 + $0xf98] sm:$0xff]  ;;  %v3917_v58 = vpack.c.bf16 %v2021_v53, %v2019_v52 }
 0x1f4   : > { %4262 = vmatprep.subr.bf16.mxu0 %v4261_v4  ;;  %v2003_v4 = vld [vmem:[%s6389_s7 + $0x308] sm:$0xff]  ;;  %v3899_v8 = vpack.c.bf16 %v2000_v0, %v1998_v63  ;;  %v2404_v63 = vld [vmem:[%s6389_s7 + $0xf90] sm:$0xff]  ;;  %v2025_v1 = vld [vmem:[%s6389_s7 + $0x3b8] sm:$0xff] }
 0x1f5   : > { %v2023_v0 = vld [vmem:[%s6389_s7 + $0x3a8] sm:$0xff]  ;;  %v2409_v3 = vld [vmem:[%s6389_s7 + $0xfb8] sm:$0xff]  ;;  %v2022_v7 = vld [vmem:[%s6389_s7 + $0x3a0] sm:$0xff] }
 0x1f6   : > { %3880 = vmatpush1.bf16.msra.mxu1 %v3879_v10  ;;  %v3901_v10 = vpack.c.bf16 %v2005_v5, %v2003_v4  ;;  %v3921_v6 = vpack.c.bf16 %v2025_v1, %v2023_v0  ;;  %v2029_v13 = vld [vmem:[%s6389_s7 + $0x3d8] sm:$0xff]  ;;  %v2026_v19 = vld [vmem:[%s6389_s7 + $0x3c0] sm:$0xff]  ;;  %v2039_v48 = vld [vmem:[%s6389_s7 + $0x428] sm:$0xff] }
 0x1f7   : > { %4264 = vmatpush1.bf16.msra.mxu0 %v4263_v11  ;;  %3882 = vmatprep.subr.bf16.mxu1 %v3881_v12  ;;  %v2002_v11 = vld [vmem:[%s6389_s7 + $0x300] sm:$0xff]  ;;  %v2004_v12 = vld [vmem:[%s6389_s7 + $0x310] sm:$0xff]  ;;  %v2413_v15 = vld [vmem:[%s6389_s7 + $0xfd8] sm:$0xff] }
 0x1f8   : > { %4266 = vmatprep.subr.bf16.mxu0 %v4265_v16  ;;  %v2007_v16 = vld [vmem:[%s6389_s7 + $0x328] sm:$0xff]  ;;  %v3903_v20 = vpack.c.bf16 %v2004_v12, %v2002_v11  ;;  %v2408_v11 = vld [vmem:[%s6389_s7 + $0xfb0] sm:$0xff]  ;;  %v2033_v25 = vld [vmem:[%s6389_s7 + $0x3f8] sm:$0xff] }
 0x1f9   : > { %v2027_v12 = vld [vmem:[%s6389_s7 + $0x3c8] sm:$0xff]  ;;  %v2417_v27 = vld [vmem:[%s6389_s7 + $0xff8] sm:$0xff]  ;;  %v2030_v31 = vld [vmem:[%s6389_s7 + $0x3e0] sm:$0xff] }
 0x1fa   : > { %3884 = vmatpush1.bf16.msra.mxu1 %v3883_v22  ;;  %v3905_v22 = vpack.c.bf16 %v2009_v17, %v2007_v16  ;;  %v3925_v18 = vpack.c.bf16 %v2029_v13, %v2027_v12  ;;  %v2037_v37 = vld [vmem:[%s6389_s7 + $0x418] sm:$0xff]  ;;  %v1883_v52 = vld [vmem:[%s7282_s0 + $0x10] sm:$0xff]  ;;  %v2427_v0 = vld [vmem:[%s6389_s7 + $0x1048] sm:$0xff] }
 0x1fb   : > { %4268 = vmatpush1.bf16.msra.mxu0 %v4267_v23  ;;  %3886 = vmatprep.subr.bf16.mxu1 %v3885_v24  ;;  %v2006_v23 = vld [vmem:[%s6389_s7 + $0x320] sm:$0xff]  ;;  %v2008_v24 = vld [vmem:[%s6389_s7 + $0x330] sm:$0xff]  ;;  %v2421_v39 = vld [vmem:[%s6389_s7 + $0x1018] sm:$0xff] }
 0x1fc   : > { %4270 = vmatprep.subr.bf16.mxu0 %v4269_v28  ;;  %v2011_v28 = vld [vmem:[%s6389_s7 + $0x348] sm:$0xff]  ;;  %v3907_v32 = vpack.c.bf16 %v2008_v24, %v2006_v23  ;;  %v2412_v23 = vld [vmem:[%s6389_s7 + $0xfd0] sm:$0xff]  ;;  %v2429_v1 = vld [vmem:[%s6389_s7 + $0x1058] sm:$0xff] }
 0x1fd   : > { %v2031_v24 = vld [vmem:[%s6389_s7 + $0x3e8] sm:$0xff]  ;;  %v2049_v13 = vld [vmem:[%s6389_s7 + $0x478] sm:$0xff] }
 0x1fe   : > { %3888 = vmatpush1.bf16.msra.mxu1 %v3887_v34  ;;  %v3909_v34 = vpack.c.bf16 %v2013_v29, %v2011_v28  ;;  %v3929_v30 = vpack.c.bf16 %v2033_v25, %v2031_v24  ;;  %v2047_v12 = vld [vmem:[%s6389_s7 + $0x468] sm:$0xff]  ;;  %v2053_v25 = vld [vmem:[%s6389_s7 + $0x498] sm:$0xff] }
 0x1ff   : > { %4272 = vmatpush1.bf16.msra.mxu0 %v4271_v35  ;;  %3890 = vmatprep.subr.bf16.mxu1 %v3889_v36  ;;  %v2010_v35 = vld [vmem:[%s6389_s7 + $0x340] sm:$0xff]  ;;  %v2012_v36 = vld [vmem:[%s6389_s7 + $0x350] sm:$0xff]  ;;  %v2051_v24 = vld [vmem:[%s6389_s7 + $0x488] sm:$0xff] }
 0x200   : > { %4274 = vmatprep.subr.bf16.mxu0 %v4273_v40  ;;  %v2015_v40 = vld [vmem:[%s6389_s7 + $0x368] sm:$0xff]  ;;  %v3911_v44 = vpack.c.bf16 %v2012_v36, %v2010_v35  ;;  %v2416_v35 = vld [vmem:[%s6389_s7 + $0xff0] sm:$0xff] }
 0x201   : > { %v2035_v36 = vld [vmem:[%s6389_s7 + $0x408] sm:$0xff] }
 0x202   : > { %3892 = vmatpush1.bf16.msra.mxu1 %v3891_v46  ;;  %v3913_v46 = vpack.c.bf16 %v2017_v41, %v2015_v40 }
 0x203   : > { %4276 = vmatpush1.bf16.msra.mxu0 %v4275_v49  ;;  %3894 = vmatprep.subr.bf16.mxu1 %v3893_v50  ;;  %v2398_v49 = vld [vmem:[%s6389_s7 + $0xf60] sm:$0xff]  ;;  %v4297_v50 = vpack.c.bf16 %v2401_v43, %v2399_v42  ;;  %v3933_v42 = vpack.c.bf16 %v2037_v37, %v2035_v36  ;;  %v2055_v36 = vld [vmem:[%s6389_s7 + $0x4a8] sm:$0xff]  ;;  %v2057_v37 = vld [vmem:[%s6389_s7 + $0x4b8] sm:$0xff] }
 0x204   : > { %4278 = vmatprep.subr.bf16.mxu0 %v4277_v54  ;;  %v2403_v54 = vld [vmem:[%s6389_s7 + $0xf88] sm:$0xff]  ;;  %v4299_v57 = vpack.c.bf16 %v2400_v51, %v2398_v49  ;;  %v2034_v43 = vld [vmem:[%s6389_s7 + $0x400] sm:$0xff]  ;;  %v2041_v49 = vld [vmem:[%s6389_s7 + $0x438] sm:$0xff] }
 0x205   : > { %v2425_v51 = vld [vmem:[%s6389_s7 + $0x1038] sm:$0xff] }
 0x206   : > { %3896 = vmatpush1.bf16.msra.mxu1 %v3895_v60  ;;  %v2020_v60 = vld [vmem:[%s6389_s7 + $0x390] sm:$0xff] }
 0x207   : > { %4280 = vmatpush1.bf16.msra.mxu0 %v4279_v61  ;;  %3898 = vmatprep.subr.bf16.mxu1 %v3897_v62  ;;  %v2402_v61 = vld [vmem:[%s6389_s7 + $0xf80] sm:$0xff]  ;;  %v4301_v62 = vpack.c.bf16 %v2405_v55, %v2403_v54  ;;  %v3919_v4 = vpack.c.bf16 %v2020_v60, %v2018_v59  ;;  %v1895_v54 = vld [vmem:[%s7282_s0 + $0x70] sm:$0xff] }
 0x208   : > { %4282 = vmatprep.subr.bf16.mxu0 %v4281_v2  ;;  %v2407_v2 = vld [vmem:[%s6389_s7 + $0xfa8] sm:$0xff]  ;;  %v4303_v5 = vpack.c.bf16 %v2404_v63, %v2402_v61  ;;  %v2422_v59 = vld [vmem:[%s6389_s7 + $0x1020] sm:$0xff]  ;;  %v2424_v61 = vld [vmem:[%s6389_s7 + $0x1030] sm:$0xff] }
 0x209   : > { %v2045_v63 = vld [vmem:[%s6389_s7 + $0x458] sm:$0xff] }
 0x20a   : > { %3900 = vmatpush1.bf16.msra.mxu1 %v3899_v8  ;;  %v2024_v8 = vld [vmem:[%s6389_s7 + $0x3b0] sm:$0xff] }
 0x20b   : > { %4284 = vmatpush1.bf16.msra.mxu0 %v4283_v9  ;;  %3902 = vmatprep.subr.bf16.mxu1 %v3901_v10  ;;  %v2406_v9 = vld [vmem:[%s6389_s7 + $0xfa0] sm:$0xff]  ;;  %v4305_v10 = vpack.c.bf16 %v2409_v3, %v2407_v2  ;;  %v3923_v16 = vpack.c.bf16 %v2024_v8, %v2022_v7  ;;  %v1886_v2 = vld [vmem:[%s7282_s0 + $0x28] sm:$0xff]  ;;  %v2044_v8 = vld [vmem:[%s6389_s7 + $0x450] sm:$0xff] }
 0x20c   : > { %4286 = vmatprep.subr.bf16.mxu0 %v4285_v14  ;;  %v2411_v14 = vld [vmem:[%s6389_s7 + $0xfc8] sm:$0xff]  ;;  %v4307_v17 = vpack.c.bf16 %v2408_v11, %v2406_v9  ;;  %v2042_v7 = vld [vmem:[%s6389_s7 + $0x440] sm:$0xff]  ;;  %v2428_v11 = vld [vmem:[%s6389_s7 + $0x1050] sm:$0xff] }
 0x20d   : > { %v2426_v9 = vld [vmem:[%s6389_s7 + $0x1040] sm:$0xff] }
 0x20e   : > { %3904 = vmatpush1.bf16.msra.mxu1 %v3903_v20  ;;  %v2028_v20 = vld [vmem:[%s6389_s7 + $0x3d0] sm:$0xff] }
 0x20f   : > { %4288 = vmatpush1.bf16.msra.mxu0 %v4287_v21  ;;  %3906 = vmatprep.subr.bf16.mxu1 %v3905_v22  ;;  %v2410_v21 = vld [vmem:[%s6389_s7 + $0xfc0] sm:$0xff]  ;;  %v4309_v22 = vpack.c.bf16 %v2413_v15, %v2411_v14  ;;  %v3927_v28 = vpack.c.bf16 %v2028_v20, %v2026_v19  ;;  %v2431_v14 = vld [vmem:[%s6389_s7 + $0x1068] sm:$0xff]  ;;  %v2433_v15 = vld [vmem:[%s6389_s7 + $0x1078] sm:$0xff] }
 0x210   : > { %4290 = vmatprep.subr.bf16.mxu0 %v4289_v26  ;;  %v2415_v26 = vld [vmem:[%s6389_s7 + $0xfe8] sm:$0xff]  ;;  %v4311_v29 = vpack.c.bf16 %v2412_v23, %v2410_v21  ;;  %v2046_v19 = vld [vmem:[%s6389_s7 + $0x460] sm:$0xff]  ;;  %v2048_v20 = vld [vmem:[%s6389_s7 + $0x470] sm:$0xff] }
 0x211   : > { %v2430_v21 = vld [vmem:[%s6389_s7 + $0x1060] sm:$0xff]  ;;  %v2432_v23 = vld [vmem:[%s6389_s7 + $0x1070] sm:$0xff] }
 0x212   : > { %3908 = vmatpush1.bf16.msra.mxu1 %v3907_v32  ;;  %v2032_v32 = vld [vmem:[%s6389_s7 + $0x3f0] sm:$0xff] }
 0x213   : > { %4292 = vmatpush1.bf16.msra.mxu0 %v4291_v33  ;;  %3910 = vmatprep.subr.bf16.mxu1 %v3909_v34  ;;  %v2414_v33 = vld [vmem:[%s6389_s7 + $0xfe0] sm:$0xff]  ;;  %v4313_v34 = vpack.c.bf16 %v2417_v27, %v2415_v26  ;;  %v3931_v40 = vpack.c.bf16 %v2032_v32, %v2030_v31  ;;  %v2435_v26 = vld [vmem:[%s6389_s7 + $0x1088] sm:$0xff]  ;;  %v2437_v27 = vld [vmem:[%s6389_s7 + $0x1098] sm:$0xff] }
 0x214   : > { %4294 = vmatprep.subr.bf16.mxu0 %v4293_v38  ;;  %v2419_v38 = vld [vmem:[%s6389_s7 + $0x1008] sm:$0xff]  ;;  %v4315_v41 = vpack.c.bf16 %v2416_v35, %v2414_v33  ;;  %v2050_v31 = vld [vmem:[%s6389_s7 + $0x480] sm:$0xff]  ;;  %v2052_v32 = vld [vmem:[%s6389_s7 + $0x490] sm:$0xff] }
 0x215   : > { %v2434_v33 = vld [vmem:[%s6389_s7 + $0x1080] sm:$0xff]  ;;  %v2436_v35 = vld [vmem:[%s6389_s7 + $0x1090] sm:$0xff] }
 0x216   : > { %3912 = vmatpush1.bf16.msra.mxu1 %v3911_v44  ;;  %v2036_v44 = vld [vmem:[%s6389_s7 + $0x410] sm:$0xff] }
 0x217   : > { %4296 = vmatpush1.bf16.msra.mxu0 %v4295_v45  ;;  %3914 = vmatprep.subr.bf16.mxu1 %v3913_v46  ;;  %v2418_v45 = vld [vmem:[%s6389_s7 + $0x1000] sm:$0xff]  ;;  %v4317_v46 = vpack.c.bf16 %v2421_v39, %v2419_v38  ;;  %v3935_v53 = vpack.c.bf16 %v2036_v44, %v2034_v43  ;;  %v2439_v38 = vld [vmem:[%s6389_s7 + $0x10a8] sm:$0xff]  ;;  %v2441_v39 = vld [vmem:[%s6389_s7 + $0x10b8] sm:$0xff] }
 0x218   : > { %4298 = vmatprep.subr.bf16.mxu0 %v4297_v50  ;;  %v2423_v50 = vld [vmem:[%s6389_s7 + $0x1028] sm:$0xff]  ;;  %v4319_v55 = vpack.c.bf16 %v2420_v47, %v2418_v45  ;;  %v2054_v43 = vld [vmem:[%s6389_s7 + $0x4a0] sm:$0xff]  ;;  %v2056_v44 = vld [vmem:[%s6389_s7 + $0x4b0] sm:$0xff] }
 0x219   : > { %v4321_v60 = vpack.c.bf16 %v2425_v51, %v2423_v50  ;;  %v2438_v45 = vld [vmem:[%s6389_s7 + $0x10a0] sm:$0xff]  ;;  %v2440_v47 = vld [vmem:[%s6389_s7 + $0x10b0] sm:$0xff]  ;;  %v2443_v50 = vld [vmem:[%s6389_s7 + $0x10c8] sm:$0xff] }
 0x21a   : > { %3916 = vmatpush1.bf16.msra.mxu1 %v3915_v56  ;;  %v3937_v56 = vpack.c.bf16 %v2041_v49, %v2039_v48  ;;  %v2059_v48 = vld [vmem:[%s6389_s7 + $0x4c8] sm:$0xff]  ;;  %v2061_v49 = vld [vmem:[%s6389_s7 + $0x4d8] sm:$0xff] }
 0x21b   : > { %4300 = vmatpush1.bf16.msra.mxu0 %v4299_v57  ;;  %3918 = vmatprep.subr.bf16.mxu1 %v3917_v58  ;;  %v2038_v57 = vld [vmem:[%s6389_s7 + $0x420] sm:$0xff]  ;;  %v2040_v58 = vld [vmem:[%s6389_s7 + $0x430] sm:$0xff]  ;;  %v2445_v51 = vld [vmem:[%s6389_s7 + $0x10d8] sm:$0xff] }
 0x21c   : > { %4302 = vmatprep.subr.bf16.mxu0 %v4301_v62  ;;  %v2043_v62 = vld [vmem:[%s6389_s7 + $0x448] sm:$0xff]  ;;  %v3939_v3 = vpack.c.bf16 %v2040_v58, %v2038_v57  ;;  %v2442_v57 = vld [vmem:[%s6389_s7 + $0x10c0] sm:$0xff]  ;;  %v4341_v58 = vpack.c.bf16 %v2445_v51, %v2443_v50 }
 0x21d   : > { %v2078_v51 = vld [vmem:[%s6389_s7 + $0x560] sm:$0xff] }
 0x21e   : > { %3920 = vmatpush1.bf16.msra.mxu1 %v3919_v4  ;;  %v1898_v4 = vld [vmem:[%s7282_s0 + $0x88] sm:$0xff] }
 0x21f   : > { %4304 = vmatpush1.bf16.msra.mxu0 %v4303_v5  ;;  %3922 = vmatprep.subr.bf16.mxu1 %v3921_v6  ;;  %v4323_v5 = vpack.c.bf16 %v2424_v61, %v2422_v59  ;;  %v3941_v6 = vpack.c.bf16 %v2045_v63, %v2043_v62  ;;  %v2444_v59 = vld [vmem:[%s6389_s7 + $0x10d0] sm:$0xff]  ;;  %v2065_v61 = vld [vmem:[%s6389_s7 + $0x4f8] sm:$0xff]  ;;  %v2447_v62 = vld [vmem:[%s6389_s7 + $0x10e8] sm:$0xff] }
 0x220   : > { %4306 = vmatprep.subr.bf16.mxu0 %v4305_v10  ;;  %v4325_v10 = vpack.c.bf16 %v2429_v1, %v2427_v0  ;;  %v2449_v63 = vld [vmem:[%s6389_s7 + $0x10f8] sm:$0xff]  ;;  %v4343_v1 = vpack.c.bf16 %v2444_v59, %v2442_v57 }
 0x221   : > { %v2085_v57 = vld [vmem:[%s6389_s7 + $0x598] sm:$0xff] }
 0x222   : > { %3924 = vmatpush1.bf16.msra.mxu1 %v3923_v16  ;;  %v3943_v16 = vpack.c.bf16 %v2044_v8, %v2042_v7  ;;  %v2448_v7 = vld [vmem:[%s6389_s7 + $0x10f0] sm:$0xff]  ;;  %v2067_v8 = vld [vmem:[%s6389_s7 + $0x508] sm:$0xff]  ;;  %v2469_v59 = vld [vmem:[%s6389_s7 + $0x1198] sm:$0xff] }
 0x223   : > { %4308 = vmatpush1.bf16.msra.mxu0 %v4307_v17  ;;  %3926 = vmatprep.subr.bf16.mxu1 %v3925_v18  ;;  %v4327_v17 = vpack.c.bf16 %v2428_v11, %v2426_v9  ;;  %v3945_v18 = vpack.c.bf16 %v2049_v13, %v2047_v12  ;;  %v2069_v9 = vld [vmem:[%s6389_s7 + $0x518] sm:$0xff] }
 0x224   : > { %4310 = vmatprep.subr.bf16.mxu0 %v4309_v22  ;;  %v4329_v22 = vpack.c.bf16 %v2433_v15, %v2431_v14  ;;  %v2453_v11 = vld [vmem:[%s6389_s7 + $0x1118] sm:$0xff]  ;;  %v3965_v14 = vpack.c.bf16 %v2069_v9, %v2067_v8  ;;  %v2066_v15 = vld [vmem:[%s6389_s7 + $0x500] sm:$0xff] }
 0x226   : > { %3928 = vmatpush1.bf16.msra.mxu1 %v3927_v28  ;;  %v3947_v28 = vpack.c.bf16 %v2048_v20, %v2046_v19  ;;  %v2452_v19 = vld [vmem:[%s6389_s7 + $0x1110] sm:$0xff]  ;;  %v2071_v20 = vld [vmem:[%s6389_s7 + $0x528] sm:$0xff] }
 0x227   : > { %4312 = vmatpush1.bf16.msra.mxu0 %v4311_v29  ;;  %3930 = vmatprep.subr.bf16.mxu1 %v3929_v30  ;;  %v4331_v29 = vpack.c.bf16 %v2432_v23, %v2430_v21  ;;  %v3949_v30 = vpack.c.bf16 %v2053_v25, %v2051_v24  ;;  %v2073_v21 = vld [vmem:[%s6389_s7 + $0x538] sm:$0xff] }
 0x228   : > { %4314 = vmatprep.subr.bf16.mxu0 %v4313_v34  ;;  %v4333_v34 = vpack.c.bf16 %v2437_v27, %v2435_v26  ;;  %v2457_v23 = vld [vmem:[%s6389_s7 + $0x1138] sm:$0xff]  ;;  %v3969_v26 = vpack.c.bf16 %v2073_v21, %v2071_v20  ;;  %v2070_v27 = vld [vmem:[%s6389_s7 + $0x520] sm:$0xff] }
 0x22a   : > { %3932 = vmatpush1.bf16.msra.mxu1 %v3931_v40  ;;  %v3951_v40 = vpack.c.bf16 %v2052_v32, %v2050_v31  ;;  %v2456_v31 = vld [vmem:[%s6389_s7 + $0x1130] sm:$0xff]  ;;  %v2075_v32 = vld [vmem:[%s6389_s7 + $0x548] sm:$0xff] }
 0x22b   : > { %4316 = vmatpush1.bf16.msra.mxu0 %v4315_v41  ;;  %3934 = vmatprep.subr.bf16.mxu1 %v3933_v42  ;;  %v4335_v41 = vpack.c.bf16 %v2436_v35, %v2434_v33  ;;  %v3953_v42 = vpack.c.bf16 %v2057_v37, %v2055_v36  ;;  %v2077_v33 = vld [vmem:[%s6389_s7 + $0x558] sm:$0xff] }
 0x22c   : > { %4318 = vmatprep.subr.bf16.mxu0 %v4317_v46  ;;  %v4337_v46 = vpack.c.bf16 %v2441_v39, %v2439_v38  ;;  %v2461_v35 = vld [vmem:[%s6389_s7 + $0x1158] sm:$0xff]  ;;  %v3973_v38 = vpack.c.bf16 %v2077_v33, %v2075_v32  ;;  %v2074_v39 = vld [vmem:[%s6389_s7 + $0x540] sm:$0xff] }
 0x22d   : > { %2842 = vmatmul.mubr.f32.vlgmr.msra.gmra.mrb[0].mxu1 %v1883_v52  ;;  %v3955_v52 = vpack.c.bf16 %v2056_v44, %v2054_v43  ;;  %v2460_v43 = vld [vmem:[%s6389_s7 + $0x1150] sm:$0xff]  ;;  %v2079_v44 = vld [vmem:[%s6389_s7 + $0x568] sm:$0xff] }
 0x22e   : > { %3936 = vmatpush1.bf16.msra.mxu1 %v3935_v53  ;;  %3268 = vmatmul.mubr.f32.vlgmr.msra.gmra.mrb[0].mxu0 %v1895_v54  ;;  %v4339_v53 = vpack.c.bf16 %v2440_v47, %v2438_v45  ;;  %v3957_v54 = vpack.c.bf16 %v2061_v49, %v2059_v48  ;;  %v2081_v45 = vld [vmem:[%s6389_s7 + $0x578] sm:$0xff] }
 0x22f   : > { %4320 = vmatpush1.bf16.msra.mxu0 %v4319_v55  ;;  %3938 = vmatprep.subr.bf16.mxu1 %v3937_v56  ;;  %v2058_v55 = vld [vmem:[%s6389_s7 + $0x4c0] sm:$0xff]  ;;  %v2060_v56 = vld [vmem:[%s6389_s7 + $0x4d0] sm:$0xff]  ;;  %v2465_v47 = vld [vmem:[%s6389_s7 + $0x1178] sm:$0xff]  ;;  %v3977_v50 = vpack.c.bf16 %v2081_v45, %v2079_v44 }
 0x230   : > { %4322 = vmatprep.subr.bf16.mxu0 %v4321_v60  ;;  %2912 = vmatprep.mubr.f32.mxu1 %v1886_v2  ;;  %v2063_v60 = vld [vmem:[%s6389_s7 + $0x4e8] sm:$0xff]  ;;  %v3959_v0 = vpack.c.bf16 %v2060_v56, %v2058_v55  ;;  %v2464_v55 = vld [vmem:[%s6389_s7 + $0x1170] sm:$0xff] }
 0x231   : > { %3338 = vmatprep.mubr.f32.mxu0 %v1898_v4  ;;  %v3961_v2 = vpack.c.bf16 %v2065_v61, %v2063_v60  ;;  %v2064_v4 = vld [vmem:[%s6389_s7 + $0x4f0] sm:$0xff]  ;;  %v2083_v56 = vld [vmem:[%s6389_s7 + $0x588] sm:$0xff] }
 0x232   : > { %3940 = vmatpush1.bf16.msra.mxu1 %v3939_v3  ;;  %v2062_v3 = vld [vmem:[%s6389_s7 + $0x4e0] sm:$0xff] }
 0x233   : > { %4324 = vmatpush1.bf16.msra.mxu0 %v4323_v5  ;;  %3942 = vmatprep.subr.bf16.mxu1 %v3941_v6  ;;  %v2446_v5 = vld [vmem:[%s6389_s7 + $0x10e0] sm:$0xff]  ;;  %v4345_v6 = vpack.c.bf16 %v2449_v63, %v2447_v62  ;;  %v3963_v12 = vpack.c.bf16 %v2064_v4, %v2062_v3  ;;  %v3981_v62 = vpack.c.bf16 %v2085_v57, %v2083_v56  ;;  %v2468_v3 = vld [vmem:[%s6389_s7 + $0x1190] sm:$0xff]  ;;  %v2087_v4 = vld [vmem:[%s6389_s7 + $0x5a8] sm:$0xff] }
 0x234   : > { %4326 = vmatprep.subr.bf16.mxu0 %v4325_v10  ;;  %v2451_v10 = vld [vmem:[%s6389_s7 + $0x1108] sm:$0xff]  ;;  %v4347_v13 = vpack.c.bf16 %v2448_v7, %v2446_v5  ;;  %v2082_v63 = vld [vmem:[%s6389_s7 + $0x580] sm:$0xff]  ;;  %v2089_v5 = vld [vmem:[%s6389_s7 + $0x5b8] sm:$0xff] }
 0x235   : > { %v2473_v7 = vld [vmem:[%s6389_s7 + $0x11b8] sm:$0xff]  ;;  %v1885_v56 = vld [vmem:[%s7282_s0 + $0x20] sm:$0xff] }
 0x236   : > { %3944 = vmatpush1.bf16.msra.mxu1 %v3943_v16  ;;  %v2068_v16 = vld [vmem:[%s6389_s7 + $0x510] sm:$0xff] }
 0x237   : > { %4328 = vmatpush1.bf16.msra.mxu0 %v4327_v17  ;;  %3946 = vmatprep.subr.bf16.mxu1 %v3945_v18  ;;  %v2450_v17 = vld [vmem:[%s6389_s7 + $0x1100] sm:$0xff]  ;;  %v4349_v18 = vpack.c.bf16 %v2453_v11, %v2451_v10  ;;  %v3967_v24 = vpack.c.bf16 %v2068_v16, %v2066_v15  ;;  %v3985_v10 = vpack.c.bf16 %v2089_v5, %v2087_v4  ;;  %v2472_v15 = vld [vmem:[%s6389_s7 + $0x11b0] sm:$0xff]  ;;  %v2091_v16 = vld [vmem:[%s6389_s7 + $0x5c8] sm:$0xff] }
 0x238   : > { %4330 = vmatprep.subr.bf16.mxu0 %v4329_v22  ;;  %v2455_v22 = vld [vmem:[%s6389_s7 + $0x1128] sm:$0xff]  ;;  %v4351_v25 = vpack.c.bf16 %v2452_v19, %v2450_v17  ;;  %v2086_v11 = vld [vmem:[%s6389_s7 + $0x5a0] sm:$0xff]  ;;  %v2093_v17 = vld [vmem:[%s6389_s7 + $0x5d8] sm:$0xff] }
 0x239   : > { %v2477_v19 = vld [vmem:[%s6389_s7 + $0x11d8] sm:$0xff]  ;;  %v2491_v4 = vld [vmem:[%s6389_s7 + $0x1248] sm:$0xff] }
 0x23a   : > { %3948 = vmatpush1.bf16.msra.mxu1 %v3947_v28  ;;  %v2072_v28 = vld [vmem:[%s6389_s7 + $0x530] sm:$0xff]  ;;  %v2493_v5 = vld [vmem:[%s6389_s7 + $0x1258] sm:$0xff] }
 0x23b   : > { %4332 = vmatpush1.bf16.msra.mxu0 %v4331_v29  ;;  %3950 = vmatprep.subr.bf16.mxu1 %v3949_v30  ;;  %v2454_v29 = vld [vmem:[%s6389_s7 + $0x1120] sm:$0xff]  ;;  %v4353_v30 = vpack.c.bf16 %v2457_v23, %v2455_v22  ;;  %v3971_v36 = vpack.c.bf16 %v2072_v28, %v2070_v27  ;;  %v3989_v22 = vpack.c.bf16 %v2093_v17, %v2091_v16  ;;  %v2476_v27 = vld [vmem:[%s6389_s7 + $0x11d0] sm:$0xff]  ;;  %v2095_v28 = vld [vmem:[%s6389_s7 + $0x5e8] sm:$0xff] }
 0x23c   : > { %4334 = vmatprep.subr.bf16.mxu0 %v4333_v34  ;;  %v2459_v34 = vld [vmem:[%s6389_s7 + $0x1148] sm:$0xff]  ;;  %v4355_v37 = vpack.c.bf16 %v2456_v31, %v2454_v29  ;;  %v2090_v23 = vld [vmem:[%s6389_s7 + $0x5c0] sm:$0xff]  ;;  %v2097_v29 = vld [vmem:[%s6389_s7 + $0x5f8] sm:$0xff] }
 0x23d   : > { %v2481_v31 = vld [vmem:[%s6389_s7 + $0x11f8] sm:$0xff]  ;;  %v2111_v16 = vld [vmem:[%s6389_s7 + $0x668] sm:$0xff] }
 0x23e   : > { %3952 = vmatpush1.bf16.msra.mxu1 %v3951_v40  ;;  %v2076_v40 = vld [vmem:[%s6389_s7 + $0x550] sm:$0xff]  ;;  %v2113_v17 = vld [vmem:[%s6389_s7 + $0x678] sm:$0xff] }
 0x23f   : > { %4336 = vmatpush1.bf16.msra.mxu0 %v4335_v41  ;;  %3954 = vmatprep.subr.bf16.mxu1 %v3953_v42  ;;  %v2458_v41 = vld [vmem:[%s6389_s7 + $0x1140] sm:$0xff]  ;;  %v4357_v42 = vpack.c.bf16 %v2461_v35, %v2459_v34  ;;  %v3975_v48 = vpack.c.bf16 %v2076_v40, %v2074_v39  ;;  %v3993_v34 = vpack.c.bf16 %v2097_v29, %v2095_v28  ;;  %v2480_v39 = vld [vmem:[%s6389_s7 + $0x11f0] sm:$0xff]  ;;  %v2099_v40 = vld [vmem:[%s6389_s7 + $0x608] sm:$0xff] }
 0x240   : > { %4338 = vmatprep.subr.bf16.mxu0 %v4337_v46  ;;  %v2463_v46 = vld [vmem:[%s6389_s7 + $0x1168] sm:$0xff]  ;;  %v4359_v49 = vpack.c.bf16 %v2460_v43, %v2458_v41  ;;  %v2094_v35 = vld [vmem:[%s6389_s7 + $0x5e0] sm:$0xff]  ;;  %v2101_v41 = vld [vmem:[%s6389_s7 + $0x618] sm:$0xff] }
 0x241   : > { %v2485_v43 = vld [vmem:[%s6389_s7 + $0x1218] sm:$0xff]  ;;  %v2115_v28 = vld [vmem:[%s6389_s7 + $0x688] sm:$0xff] }
 0x242   : > { %3956 = vmatpush1.bf16.msra.mxu1 %v3955_v52  ;;  %v2080_v52 = vld [vmem:[%s6389_s7 + $0x570] sm:$0xff]  ;;  %v2117_v29 = vld [vmem:[%s6389_s7 + $0x698] sm:$0xff] }
 0x243   : > { %4340 = vmatpush1.bf16.msra.mxu0 %v4339_v53  ;;  %3958 = vmatprep.subr.bf16.mxu1 %v3957_v54  ;;  %v2462_v53 = vld [vmem:[%s6389_s7 + $0x1160] sm:$0xff]  ;;  %v4361_v54 = vpack.c.bf16 %v2465_v47, %v2463_v46  ;;  %v3979_v60 = vpack.c.bf16 %v2080_v52, %v2078_v51  ;;  %v3997_v46 = vpack.c.bf16 %v2101_v41, %v2099_v40  ;;  %v2484_v51 = vld [vmem:[%s6389_s7 + $0x1210] sm:$0xff]  ;;  %v2103_v52 = vld [vmem:[%s6389_s7 + $0x628] sm:$0xff] }
 0x244   : > { %4342 = vmatprep.subr.bf16.mxu0 %v4341_v58  ;;  %v2467_v58 = vld [vmem:[%s6389_s7 + $0x1188] sm:$0xff]  ;;  %v4363_v61 = vpack.c.bf16 %v2464_v55, %v2462_v53  ;;  %v2098_v47 = vld [vmem:[%s6389_s7 + $0x600] sm:$0xff]  ;;  %v2105_v53 = vld [vmem:[%s6389_s7 + $0x638] sm:$0xff] }
 0x245   : > { %v2489_v55 = vld [vmem:[%s6389_s7 + $0x1238] sm:$0xff]  ;;  %v2119_v40 = vld [vmem:[%s6389_s7 + $0x6a8] sm:$0xff] }
 0x246   : > { %3960 = vmatpush1.bf16.msra.mxu1 %v3959_v0  ;;  %v2084_v0 = vld [vmem:[%s6389_s7 + $0x590] sm:$0xff]  ;;  %v2121_v41 = vld [vmem:[%s6389_s7 + $0x6b8] sm:$0xff] }
 0x247   : > { %4344 = vmatpush1.bf16.msra.mxu0 %v4343_v1  ;;  %3962 = vmatprep.subr.bf16.mxu1 %v3961_v2  ;;  %v2466_v1 = vld [vmem:[%s6389_s7 + $0x1180] sm:$0xff]  ;;  %v4365_v2 = vpack.c.bf16 %v2469_v59, %v2467_v58  ;;  %v3983_v8 = vpack.c.bf16 %v2084_v0, %v2082_v63 }
 0x248   : > { %4346 = vmatprep.subr.bf16.mxu0 %v4345_v6  ;;  %v2471_v6 = vld [vmem:[%s6389_s7 + $0x11a8] sm:$0xff]  ;;  %v4367_v9 = vpack.c.bf16 %v2468_v3, %v2466_v1  ;;  %v1897_v58 = vld [vmem:[%s7282_s0 + $0x80] sm:$0xff]  ;;  %v2488_v1 = vld [vmem:[%s6389_s7 + $0x1230] sm:$0xff] }
 0x249   : > { %v2486_v63 = vld [vmem:[%s6389_s7 + $0x1220] sm:$0xff]  ;;  %v2109_v3 = vld [vmem:[%s6389_s7 + $0x658] sm:$0xff] }
 0x24a   : > { %3964 = vmatpush1.bf16.msra.mxu1 %v3963_v12  ;;  %v2088_v12 = vld [vmem:[%s6389_s7 + $0x5b0] sm:$0xff] }
 0x24b   : > { %4348 = vmatpush1.bf16.msra.mxu0 %v4347_v13  ;;  %3966 = vmatprep.subr.bf16.mxu1 %v3965_v14  ;;  %v2470_v13 = vld [vmem:[%s6389_s7 + $0x11a0] sm:$0xff]  ;;  %v4369_v14 = vpack.c.bf16 %v2473_v7, %v2471_v6  ;;  %v3987_v20 = vpack.c.bf16 %v2088_v12, %v2086_v11  ;;  %v1888_v6 = vld [vmem:[%s7282_s0 + $0x38] sm:$0xff]  ;;  %v2108_v12 = vld [vmem:[%s6389_s7 + $0x650] sm:$0xff] }
 0x24c   : > { %4350 = vmatprep.subr.bf16.mxu0 %v4349_v18  ;;  %v2475_v18 = vld [vmem:[%s6389_s7 + $0x11c8] sm:$0xff]  ;;  %v4371_v21 = vpack.c.bf16 %v2472_v15, %v2470_v13  ;;  %v2106_v11 = vld [vmem:[%s6389_s7 + $0x640] sm:$0xff]  ;;  %v2492_v15 = vld [vmem:[%s6389_s7 + $0x1250] sm:$0xff] }
 0x24d   : > { %v2490_v13 = vld [vmem:[%s6389_s7 + $0x1240] sm:$0xff] }
 0x24e   : > { %3968 = vmatpush1.bf16.msra.mxu1 %v3967_v24  ;;  %v2092_v24 = vld [vmem:[%s6389_s7 + $0x5d0] sm:$0xff] }
 0x24f   : > { %4352 = vmatpush1.bf16.msra.mxu0 %v4351_v25  ;;  %3970 = vmatprep.subr.bf16.mxu1 %v3969_v26  ;;  %v2474_v25 = vld [vmem:[%s6389_s7 + $0x11c0] sm:$0xff]  ;;  %v4373_v26 = vpack.c.bf16 %v2477_v19, %v2475_v18  ;;  %v3991_v32 = vpack.c.bf16 %v2092_v24, %v2090_v23  ;;  %v2495_v18 = vld [vmem:[%s6389_s7 + $0x1268] sm:$0xff]  ;;  %v2497_v19 = vld [vmem:[%s6389_s7 + $0x1278] sm:$0xff] }
 0x250   : > { %4354 = vmatprep.subr.bf16.mxu0 %v4353_v30  ;;  %v2479_v30 = vld [vmem:[%s6389_s7 + $0x11e8] sm:$0xff]  ;;  %v4375_v33 = vpack.c.bf16 %v2476_v27, %v2474_v25  ;;  %v2110_v23 = vld [vmem:[%s6389_s7 + $0x660] sm:$0xff]  ;;  %v2112_v24 = vld [vmem:[%s6389_s7 + $0x670] sm:$0xff] }
 0x251   : > { %v2494_v25 = vld [vmem:[%s6389_s7 + $0x1260] sm:$0xff]  ;;  %v2496_v27 = vld [vmem:[%s6389_s7 + $0x1270] sm:$0xff] }
 0x252   : > { %3972 = vmatpush1.bf16.msra.mxu1 %v3971_v36  ;;  %v2096_v36 = vld [vmem:[%s6389_s7 + $0x5f0] sm:$0xff] }
 0x253   : > { %4356 = vmatpush1.bf16.msra.mxu0 %v4355_v37  ;;  %3974 = vmatprep.subr.bf16.mxu1 %v3973_v38  ;;  %v2478_v37 = vld [vmem:[%s6389_s7 + $0x11e0] sm:$0xff]  ;;  %v4377_v38 = vpack.c.bf16 %v2481_v31, %v2479_v30  ;;  %v3995_v44 = vpack.c.bf16 %v2096_v36, %v2094_v35  ;;  %v2499_v30 = vld [vmem:[%s6389_s7 + $0x1288] sm:$0xff]  ;;  %v2501_v31 = vld [vmem:[%s6389_s7 + $0x1298] sm:$0xff] }
 0x254   : > { %4358 = vmatprep.subr.bf16.mxu0 %v4357_v42  ;;  %v2483_v42 = vld [vmem:[%s6389_s7 + $0x1208] sm:$0xff]  ;;  %v4379_v45 = vpack.c.bf16 %v2480_v39, %v2478_v37  ;;  %v2114_v35 = vld [vmem:[%s6389_s7 + $0x680] sm:$0xff]  ;;  %v2116_v36 = vld [vmem:[%s6389_s7 + $0x690] sm:$0xff] }
 0x255   : > { %v2498_v37 = vld [vmem:[%s6389_s7 + $0x1280] sm:$0xff]  ;;  %v2500_v39 = vld [vmem:[%s6389_s7 + $0x1290] sm:$0xff] }
 0x256   : > { %3976 = vmatpush1.bf16.msra.mxu1 %v3975_v48  ;;  %v2100_v48 = vld [vmem:[%s6389_s7 + $0x610] sm:$0xff] }
 0x257   : > { %4360 = vmatpush1.bf16.msra.mxu0 %v4359_v49  ;;  %3978 = vmatprep.subr.bf16.mxu1 %v3977_v50  ;;  %v2482_v49 = vld [vmem:[%s6389_s7 + $0x1200] sm:$0xff]  ;;  %v4381_v50 = vpack.c.bf16 %v2485_v43, %v2483_v42  ;;  %v3999_v57 = vpack.c.bf16 %v2100_v48, %v2098_v47  ;;  %v2503_v42 = vld [vmem:[%s6389_s7 + $0x12a8] sm:$0xff]  ;;  %v2505_v43 = vld [vmem:[%s6389_s7 + $0x12b8] sm:$0xff] }
 0x258   : > { %4362 = vmatprep.subr.bf16.mxu0 %v4361_v54  ;;  %v2487_v54 = vld [vmem:[%s6389_s7 + $0x1228] sm:$0xff]  ;;  %v4383_v59 = vpack.c.bf16 %v2484_v51, %v2482_v49  ;;  %v2118_v47 = vld [vmem:[%s6389_s7 + $0x6a0] sm:$0xff]  ;;  %v2120_v48 = vld [vmem:[%s6389_s7 + $0x6b0] sm:$0xff] }
 0x259   : > { %v4385_v0 = vpack.c.bf16 %v2489_v55, %v2487_v54  ;;  %v2502_v49 = vld [vmem:[%s6389_s7 + $0x12a0] sm:$0xff]  ;;  %v2504_v51 = vld [vmem:[%s6389_s7 + $0x12b0] sm:$0xff]  ;;  %v2507_v54 = vld [vmem:[%s6389_s7 + $0x12c8] sm:$0xff] }
 0x25a   : > { %3980 = vmatpush1.bf16.msra.mxu1 %v3979_v60  ;;  %v4001_v60 = vpack.c.bf16 %v2105_v53, %v2103_v52  ;;  %v2123_v52 = vld [vmem:[%s6389_s7 + $0x6c8] sm:$0xff]  ;;  %v2125_v53 = vld [vmem:[%s6389_s7 + $0x6d8] sm:$0xff] }
 0x25b   : > { %4364 = vmatpush1.bf16.msra.mxu0 %v4363_v61  ;;  %3982 = vmatprep.subr.bf16.mxu1 %v3981_v62  ;;  %v2102_v61 = vld [vmem:[%s6389_s7 + $0x620] sm:$0xff]  ;;  %v2104_v62 = vld [vmem:[%s6389_s7 + $0x630] sm:$0xff]  ;;  %v2509_v55 = vld [vmem:[%s6389_s7 + $0x12d8] sm:$0xff] }
 0x25c   : > { %4366 = vmatprep.subr.bf16.mxu0 %v4365_v2  ;;  %v2107_v2 = vld [vmem:[%s6389_s7 + $0x648] sm:$0xff]  ;;  %v4003_v7 = vpack.c.bf16 %v2104_v62, %v2102_v61  ;;  %v2506_v61 = vld [vmem:[%s6389_s7 + $0x12c0] sm:$0xff]  ;;  %v4405_v62 = vpack.c.bf16 %v2509_v55, %v2507_v54 }
 0x25d   : > { %v2142_v55 = vld [vmem:[%s6389_s7 + $0x760] sm:$0xff] }
 0x25e   : > { %3984 = vmatpush1.bf16.msra.mxu1 %v3983_v8  ;;  %v1900_v8 = vld [vmem:[%s7282_s0 + $0x98] sm:$0xff] }
 0x25f   : > { %4368 = vmatpush1.bf16.msra.mxu0 %v4367_v9  ;;  %3986 = vmatprep.subr.bf16.mxu1 %v3985_v10  ;;  %v4387_v9 = vpack.c.bf16 %v2488_v1, %v2486_v63  ;;  %v4005_v10 = vpack.c.bf16 %v2109_v3, %v2107_v2  ;;  %v2508_v63 = vld [vmem:[%s6389_s7 + $0x12d0] sm:$0xff]  ;;  %v2129_v1 = vld [vmem:[%s6389_s7 + $0x6f8] sm:$0xff]  ;;  %v2511_v2 = vld [vmem:[%s6389_s7 + $0x12e8] sm:$0xff] }
 0x260   : > { %4370 = vmatprep.subr.bf16.mxu0 %v4369_v14  ;;  %v4389_v14 = vpack.c.bf16 %v2493_v5, %v2491_v4  ;;  %v2513_v3 = vld [vmem:[%s6389_s7 + $0x12f8] sm:$0xff]  ;;  %v4407_v5 = vpack.c.bf16 %v2508_v63, %v2506_v61 }
 0x261   : > { %v2149_v61 = vld [vmem:[%s6389_s7 + $0x798] sm:$0xff] }
 0x262   : > { %3988 = vmatpush1.bf16.msra.mxu1 %v3987_v20  ;;  %v4007_v20 = vpack.c.bf16 %v2108_v12, %v2106_v11  ;;  %v2512_v11 = vld [vmem:[%s6389_s7 + $0x12f0] sm:$0xff]  ;;  %v2131_v12 = vld [vmem:[%s6389_s7 + $0x708] sm:$0xff]  ;;  %v2533_v63 = vld [vmem:[%s6389_s7 + $0x1398] sm:$0xff] }
 0x263   : > { %4372 = vmatpush1.bf16.msra.mxu0 %v4371_v21  ;;  %3990 = vmatprep.subr.bf16.mxu1 %v3989_v22  ;;  %v4391_v21 = vpack.c.bf16 %v2492_v15, %v2490_v13  ;;  %v4009_v22 = vpack.c.bf16 %v2113_v17, %v2111_v16  ;;  %v2133_v13 = vld [vmem:[%s6389_s7 + $0x718] sm:$0xff] }
 0x264   : > { %4374 = vmatprep.subr.bf16.mxu0 %v4373_v26  ;;  %v4393_v26 = vpack.c.bf16 %v2497_v19, %v2495_v18  ;;  %v2517_v15 = vld [vmem:[%s6389_s7 + $0x1318] sm:$0xff]  ;;  %v4029_v18 = vpack.c.bf16 %v2133_v13, %v2131_v12  ;;  %v2130_v19 = vld [vmem:[%s6389_s7 + $0x700] sm:$0xff] }
 0x266   : > { %3992 = vmatpush1.bf16.msra.mxu1 %v3991_v32  ;;  %v4011_v32 = vpack.c.bf16 %v2112_v24, %v2110_v23  ;;  %v2516_v23 = vld [vmem:[%s6389_s7 + $0x1310] sm:$0xff]  ;;  %v2135_v24 = vld [vmem:[%s6389_s7 + $0x728] sm:$0xff] }
 0x267   : > { %4376 = vmatpush1.bf16.msra.mxu0 %v4375_v33  ;;  %3994 = vmatprep.subr.bf16.mxu1 %v3993_v34  ;;  %v4395_v33 = vpack.c.bf16 %v2496_v27, %v2494_v25  ;;  %v4013_v34 = vpack.c.bf16 %v2117_v29, %v2115_v28  ;;  %v2137_v25 = vld [vmem:[%s6389_s7 + $0x738] sm:$0xff] }
 0x268   : > { %4378 = vmatprep.subr.bf16.mxu0 %v4377_v38  ;;  %v4397_v38 = vpack.c.bf16 %v2501_v31, %v2499_v30  ;;  %v2521_v27 = vld [vmem:[%s6389_s7 + $0x1338] sm:$0xff]  ;;  %v4033_v30 = vpack.c.bf16 %v2137_v25, %v2135_v24  ;;  %v2134_v31 = vld [vmem:[%s6389_s7 + $0x720] sm:$0xff] }
 0x26a   : > { %3996 = vmatpush1.bf16.msra.mxu1 %v3995_v44  ;;  %v4015_v44 = vpack.c.bf16 %v2116_v36, %v2114_v35  ;;  %v2520_v35 = vld [vmem:[%s6389_s7 + $0x1330] sm:$0xff]  ;;  %v2139_v36 = vld [vmem:[%s6389_s7 + $0x748] sm:$0xff] }
 0x26b   : > { %4380 = vmatpush1.bf16.msra.mxu0 %v4379_v45  ;;  %3998 = vmatprep.subr.bf16.mxu1 %v3997_v46  ;;  %v4399_v45 = vpack.c.bf16 %v2500_v39, %v2498_v37  ;;  %v4017_v46 = vpack.c.bf16 %v2121_v41, %v2119_v40  ;;  %v2141_v37 = vld [vmem:[%s6389_s7 + $0x758] sm:$0xff] }
 0x26c   : > { %4382 = vmatprep.subr.bf16.mxu0 %v4381_v50  ;;  %v4401_v50 = vpack.c.bf16 %v2505_v43, %v2503_v42  ;;  %v2525_v39 = vld [vmem:[%s6389_s7 + $0x1358] sm:$0xff]  ;;  %v4037_v42 = vpack.c.bf16 %v2141_v37, %v2139_v36  ;;  %v2138_v43 = vld [vmem:[%s6389_s7 + $0x740] sm:$0xff] }
 0x26d   : > { %2913 = vmatmul.mubr.f32.vlgmr.msra.gmra.mrb[0].mxu1 %v1885_v56  ;;  %v4019_v56 = vpack.c.bf16 %v2120_v48, %v2118_v47  ;;  %v2524_v47 = vld [vmem:[%s6389_s7 + $0x1350] sm:$0xff]  ;;  %v2143_v48 = vld [vmem:[%s6389_s7 + $0x768] sm:$0xff] }
 0x26e   : > { %4000 = vmatpush1.bf16.msra.mxu1 %v3999_v57  ;;  %3339 = vmatmul.mubr.f32.vlgmr.msra.gmra.mrb[0].mxu0 %v1897_v58  ;;  %v4403_v57 = vpack.c.bf16 %v2504_v51, %v2502_v49  ;;  %v4021_v58 = vpack.c.bf16 %v2125_v53, %v2123_v52  ;;  %v2145_v49 = vld [vmem:[%s6389_s7 + $0x778] sm:$0xff] }
 0x26f   : > { %4384 = vmatpush1.bf16.msra.mxu0 %v4383_v59  ;;  %4002 = vmatprep.subr.bf16.mxu1 %v4001_v60  ;;  %v2122_v59 = vld [vmem:[%s6389_s7 + $0x6c0] sm:$0xff]  ;;  %v2124_v60 = vld [vmem:[%s6389_s7 + $0x6d0] sm:$0xff]  ;;  %v2529_v51 = vld [vmem:[%s6389_s7 + $0x1378] sm:$0xff]  ;;  %v4041_v54 = vpack.c.bf16 %v2145_v49, %v2143_v48 }
 0x270   : > { %4386 = vmatprep.subr.bf16.mxu0 %v4385_v0  ;;  %2983 = vmatprep.mubr.f32.mxu1 %v1888_v6  ;;  %v2127_v0 = vld [vmem:[%s6389_s7 + $0x6e8] sm:$0xff]  ;;  %v4023_v4 = vpack.c.bf16 %v2124_v60, %v2122_v59  ;;  %v2528_v59 = vld [vmem:[%s6389_s7 + $0x1370] sm:$0xff] }
 0x271   : > { %3409 = vmatprep.mubr.f32.mxu0 %v1900_v8  ;;  %v4025_v6 = vpack.c.bf16 %v2129_v1, %v2127_v0  ;;  %v2128_v8 = vld [vmem:[%s6389_s7 + $0x6f0] sm:$0xff]  ;;  %v2147_v60 = vld [vmem:[%s6389_s7 + $0x788] sm:$0xff] }
 0x272   : > { %4004 = vmatpush1.bf16.msra.mxu1 %v4003_v7  ;;  %v2126_v7 = vld [vmem:[%s6389_s7 + $0x6e0] sm:$0xff] }
 0x273   : > { %4388 = vmatpush1.bf16.msra.mxu0 %v4387_v9  ;;  %4006 = vmatprep.subr.bf16.mxu1 %v4005_v10  ;;  %v2510_v9 = vld [vmem:[%s6389_s7 + $0x12e0] sm:$0xff]  ;;  %v4409_v10 = vpack.c.bf16 %v2513_v3, %v2511_v2  ;;  %v4027_v16 = vpack.c.bf16 %v2128_v8, %v2126_v7  ;;  %v4045_v2 = vpack.c.bf16 %v2149_v61, %v2147_v60  ;;  %v2532_v7 = vld [vmem:[%s6389_s7 + $0x1390] sm:$0xff]  ;;  %v2151_v8 = vld [vmem:[%s6389_s7 + $0x7a8] sm:$0xff] }
 0x274   : > { %4390 = vmatprep.subr.bf16.mxu0 %v4389_v14  ;;  %v2515_v14 = vld [vmem:[%s6389_s7 + $0x1308] sm:$0xff]  ;;  %v4411_v17 = vpack.c.bf16 %v2512_v11, %v2510_v9  ;;  %v2146_v3 = vld [vmem:[%s6389_s7 + $0x780] sm:$0xff]  ;;  %v2153_v9 = vld [vmem:[%s6389_s7 + $0x7b8] sm:$0xff] }
 0x275   : > { %v2537_v11 = vld [vmem:[%s6389_s7 + $0x13b8] sm:$0xff]  ;;  %v1887_v60 = vld [vmem:[%s7282_s0 + $0x30] sm:$0xff] }
 0x276   : > { %4008 = vmatpush1.bf16.msra.mxu1 %v4007_v20  ;;  %v2132_v20 = vld [vmem:[%s6389_s7 + $0x710] sm:$0xff] }
 0x277   : > { %4392 = vmatpush1.bf16.msra.mxu0 %v4391_v21  ;;  %4010 = vmatprep.subr.bf16.mxu1 %v4009_v22  ;;  %v2514_v21 = vld [vmem:[%s6389_s7 + $0x1300] sm:$0xff]  ;;  %v4413_v22 = vpack.c.bf16 %v2517_v15, %v2515_v14  ;;  %v4031_v28 = vpack.c.bf16 %v2132_v20, %v2130_v19  ;;  %v4049_v14 = vpack.c.bf16 %v2153_v9, %v2151_v8  ;;  %v2536_v19 = vld [vmem:[%s6389_s7 + $0x13b0] sm:$0xff]  ;;  %v2155_v20 = vld [vmem:[%s6389_s7 + $0x7c8] sm:$0xff] }
 0x278   : > { %4394 = vmatprep.subr.bf16.mxu0 %v4393_v26  ;;  %v2519_v26 = vld [vmem:[%s6389_s7 + $0x1328] sm:$0xff]  ;;  %v4415_v29 = vpack.c.bf16 %v2516_v23, %v2514_v21  ;;  %v2150_v15 = vld [vmem:[%s6389_s7 + $0x7a0] sm:$0xff]  ;;  %v2157_v21 = vld [vmem:[%s6389_s7 + $0x7d8] sm:$0xff] }
 0x279   : > { %v2541_v23 = vld [vmem:[%s6389_s7 + $0x13d8] sm:$0xff]  ;;  %v2555_v8 = vld [vmem:[%s6389_s7 + $0x1448] sm:$0xff] }
 0x27a   : > { %4012 = vmatpush1.bf16.msra.mxu1 %v4011_v32  ;;  %v2136_v32 = vld [vmem:[%s6389_s7 + $0x730] sm:$0xff]  ;;  %v2557_v9 = vld [vmem:[%s6389_s7 + $0x1458] sm:$0xff] }
 0x27b   : > { %4396 = vmatpush1.bf16.msra.mxu0 %v4395_v33  ;;  %4014 = vmatprep.subr.bf16.mxu1 %v4013_v34  ;;  %v2518_v33 = vld [vmem:[%s6389_s7 + $0x1320] sm:$0xff]  ;;  %v4417_v34 = vpack.c.bf16 %v2521_v27, %v2519_v26  ;;  %v4035_v40 = vpack.c.bf16 %v2136_v32, %v2134_v31  ;;  %v4053_v26 = vpack.c.bf16 %v2157_v21, %v2155_v20  ;;  %v2540_v31 = vld [vmem:[%s6389_s7 + $0x13d0] sm:$0xff]  ;;  %v2159_v32 = vld [vmem:[%s6389_s7 + $0x7e8] sm:$0xff] }
 0x27c   : > { %4398 = vmatprep.subr.bf16.mxu0 %v4397_v38  ;;  %v2523_v38 = vld [vmem:[%s6389_s7 + $0x1348] sm:$0xff]  ;;  %v4419_v41 = vpack.c.bf16 %v2520_v35, %v2518_v33  ;;  %v2154_v27 = vld [vmem:[%s6389_s7 + $0x7c0] sm:$0xff]  ;;  %v2161_v33 = vld [vmem:[%s6389_s7 + $0x7f8] sm:$0xff] }
 0x27d   : > { %v2545_v35 = vld [vmem:[%s6389_s7 + $0x13f8] sm:$0xff]  ;;  %v2175_v20 = vld [vmem:[%s6389_s7 + $0x868] sm:$0xff] }
 0x27e   : > { %4016 = vmatpush1.bf16.msra.mxu1 %v4015_v44  ;;  %v2140_v44 = vld [vmem:[%s6389_s7 + $0x750] sm:$0xff]  ;;  %v2177_v21 = vld [vmem:[%s6389_s7 + $0x878] sm:$0xff] }
 0x27f   : > { %4400 = vmatpush1.bf16.msra.mxu0 %v4399_v45  ;;  %4018 = vmatprep.subr.bf16.mxu1 %v4017_v46  ;;  %v2522_v45 = vld [vmem:[%s6389_s7 + $0x1340] sm:$0xff]  ;;  %v4421_v46 = vpack.c.bf16 %v2525_v39, %v2523_v38  ;;  %v4039_v52 = vpack.c.bf16 %v2140_v44, %v2138_v43  ;;  %v4057_v38 = vpack.c.bf16 %v2161_v33, %v2159_v32  ;;  %v2544_v43 = vld [vmem:[%s6389_s7 + $0x13f0] sm:$0xff]  ;;  %v2163_v44 = vld [vmem:[%s6389_s7 + $0x808] sm:$0xff] }
 0x280   : > { %4402 = vmatprep.subr.bf16.mxu0 %v4401_v50  ;;  %v2527_v50 = vld [vmem:[%s6389_s7 + $0x1368] sm:$0xff]  ;;  %v4423_v53 = vpack.c.bf16 %v2524_v47, %v2522_v45  ;;  %v2158_v39 = vld [vmem:[%s6389_s7 + $0x7e0] sm:$0xff]  ;;  %v2165_v45 = vld [vmem:[%s6389_s7 + $0x818] sm:$0xff] }
 0x281   : > { %v2549_v47 = vld [vmem:[%s6389_s7 + $0x1418] sm:$0xff]  ;;  %v2179_v32 = vld [vmem:[%s6389_s7 + $0x888] sm:$0xff] }
 0x282   : > { %4020 = vmatpush1.bf16.msra.mxu1 %v4019_v56  ;;  %v2144_v56 = vld [vmem:[%s6389_s7 + $0x770] sm:$0xff]  ;;  %v2181_v33 = vld [vmem:[%s6389_s7 + $0x898] sm:$0xff] }
 0x283   : > { %4404 = vmatpush1.bf16.msra.mxu0 %v4403_v57  ;;  %4022 = vmatprep.subr.bf16.mxu1 %v4021_v58  ;;  %v2526_v57 = vld [vmem:[%s6389_s7 + $0x1360] sm:$0xff]  ;;  %v4425_v58 = vpack.c.bf16 %v2529_v51, %v2527_v50  ;;  %v4043_v0 = vpack.c.bf16 %v2144_v56, %v2142_v55  ;;  %v4061_v50 = vpack.c.bf16 %v2165_v45, %v2163_v44  ;;  %v2548_v55 = vld [vmem:[%s6389_s7 + $0x1410] sm:$0xff]  ;;  %v2167_v56 = vld [vmem:[%s6389_s7 + $0x828] sm:$0xff] }
 0x284   : > { %4406 = vmatprep.subr.bf16.mxu0 %v4405_v62  ;;  %v2531_v62 = vld [vmem:[%s6389_s7 + $0x1388] sm:$0xff]  ;;  %v4427_v1 = vpack.c.bf16 %v2528_v59, %v2526_v57  ;;  %v2162_v51 = vld [vmem:[%s6389_s7 + $0x800] sm:$0xff]  ;;  %v2169_v57 = vld [vmem:[%s6389_s7 + $0x838] sm:$0xff] }
 0x285   : > { %v2553_v59 = vld [vmem:[%s6389_s7 + $0x1438] sm:$0xff]  ;;  %v2183_v44 = vld [vmem:[%s6389_s7 + $0x8a8] sm:$0xff] }
 0x286   : > { %4024 = vmatpush1.bf16.msra.mxu1 %v4023_v4  ;;  %v2148_v4 = vld [vmem:[%s6389_s7 + $0x790] sm:$0xff]  ;;  %v2185_v45 = vld [vmem:[%s6389_s7 + $0x8b8] sm:$0xff] }
 0x287   : > { %4408 = vmatpush1.bf16.msra.mxu0 %v4407_v5  ;;  %4026 = vmatprep.subr.bf16.mxu1 %v4025_v6  ;;  %v2530_v5 = vld [vmem:[%s6389_s7 + $0x1380] sm:$0xff]  ;;  %v4429_v6 = vpack.c.bf16 %v2533_v63, %v2531_v62  ;;  %v4047_v12 = vpack.c.bf16 %v2148_v4, %v2146_v3  ;;  %v1899_v62 = vld [vmem:[%s7282_s0 + $0x90] sm:$0xff] }
 0x288   : > { %4410 = vmatprep.subr.bf16.mxu0 %v4409_v10  ;;  %v2535_v10 = vld [vmem:[%s6389_s7 + $0x13a8] sm:$0xff]  ;;  %v4431_v13 = vpack.c.bf16 %v2532_v7, %v2530_v5  ;;  %v2550_v3 = vld [vmem:[%s6389_s7 + $0x1420] sm:$0xff]  ;;  %v2552_v5 = vld [vmem:[%s6389_s7 + $0x1430] sm:$0xff] }
 0x289   : > { %v2173_v7 = vld [vmem:[%s6389_s7 + $0x858] sm:$0xff] }
 0x28a   : > { %4028 = vmatpush1.bf16.msra.mxu1 %v4027_v16  ;;  %v2152_v16 = vld [vmem:[%s6389_s7 + $0x7b0] sm:$0xff] }
 0x28b   : > { %4412 = vmatpush1.bf16.msra.mxu0 %v4411_v17  ;;  %4030 = vmatprep.subr.bf16.mxu1 %v4029_v18  ;;  %v2534_v17 = vld [vmem:[%s6389_s7 + $0x13a0] sm:$0xff]  ;;  %v4433_v18 = vpack.c.bf16 %v2537_v11, %v2535_v10  ;;  %v4051_v24 = vpack.c.bf16 %v2152_v16, %v2150_v15  ;;  %v1890_v10 = vld [vmem:[%s7282_s0 + $0x48] sm:$0xff]  ;;  %v2172_v16 = vld [vmem:[%s6389_s7 + $0x850] sm:$0xff] }
 0x28c   : > { %4414 = vmatprep.subr.bf16.mxu0 %v4413_v22  ;;  %v2539_v22 = vld [vmem:[%s6389_s7 + $0x13c8] sm:$0xff]  ;;  %v4435_v25 = vpack.c.bf16 %v2536_v19, %v2534_v17  ;;  %v2170_v15 = vld [vmem:[%s6389_s7 + $0x840] sm:$0xff]  ;;  %v2556_v19 = vld [vmem:[%s6389_s7 + $0x1450] sm:$0xff] }
 0x28d   : > { %v2554_v17 = vld [vmem:[%s6389_s7 + $0x1440] sm:$0xff] }
 0x28e   : > { %4032 = vmatpush1.bf16.msra.mxu1 %v4031_v28  ;;  %v2156_v28 = vld [vmem:[%s6389_s7 + $0x7d0] sm:$0xff] }
 0x28f   : > { %4416 = vmatpush1.bf16.msra.mxu0 %v4415_v29  ;;  %4034 = vmatprep.subr.bf16.mxu1 %v4033_v30  ;;  %v2538_v29 = vld [vmem:[%s6389_s7 + $0x13c0] sm:$0xff]  ;;  %v4437_v30 = vpack.c.bf16 %v2541_v23, %v2539_v22  ;;  %v4055_v36 = vpack.c.bf16 %v2156_v28, %v2154_v27  ;;  %v2559_v22 = vld [vmem:[%s6389_s7 + $0x1468] sm:$0xff]  ;;  %v2561_v23 = vld [vmem:[%s6389_s7 + $0x1478] sm:$0xff] }
 0x290   : > { %4418 = vmatprep.subr.bf16.mxu0 %v4417_v34  ;;  %v2543_v34 = vld [vmem:[%s6389_s7 + $0x13e8] sm:$0xff]  ;;  %v4439_v37 = vpack.c.bf16 %v2540_v31, %v2538_v29  ;;  %v2174_v27 = vld [vmem:[%s6389_s7 + $0x860] sm:$0xff]  ;;  %v2176_v28 = vld [vmem:[%s6389_s7 + $0x870] sm:$0xff] }
 0x291   : > { %v2558_v29 = vld [vmem:[%s6389_s7 + $0x1460] sm:$0xff]  ;;  %v2560_v31 = vld [vmem:[%s6389_s7 + $0x1470] sm:$0xff] }
 0x292   : > { %4036 = vmatpush1.bf16.msra.mxu1 %v4035_v40  ;;  %v2160_v40 = vld [vmem:[%s6389_s7 + $0x7f0] sm:$0xff] }
 0x293   : > { %4420 = vmatpush1.bf16.msra.mxu0 %v4419_v41  ;;  %4038 = vmatprep.subr.bf16.mxu1 %v4037_v42  ;;  %v2542_v41 = vld [vmem:[%s6389_s7 + $0x13e0] sm:$0xff]  ;;  %v4441_v42 = vpack.c.bf16 %v2545_v35, %v2543_v34  ;;  %v4059_v48 = vpack.c.bf16 %v2160_v40, %v2158_v39  ;;  %v2563_v34 = vld [vmem:[%s6389_s7 + $0x1488] sm:$0xff]  ;;  %v2565_v35 = vld [vmem:[%s6389_s7 + $0x1498] sm:$0xff] }
 0x294   : > { %4422 = vmatprep.subr.bf16.mxu0 %v4421_v46  ;;  %v2547_v46 = vld [vmem:[%s6389_s7 + $0x1408] sm:$0xff]  ;;  %v4443_v49 = vpack.c.bf16 %v2544_v43, %v2542_v41  ;;  %v2178_v39 = vld [vmem:[%s6389_s7 + $0x880] sm:$0xff]  ;;  %v2180_v40 = vld [vmem:[%s6389_s7 + $0x890] sm:$0xff] }
 0x295   : > { %v2562_v41 = vld [vmem:[%s6389_s7 + $0x1480] sm:$0xff]  ;;  %v2564_v43 = vld [vmem:[%s6389_s7 + $0x1490] sm:$0xff] }
 0x296   : > { %4040 = vmatpush1.bf16.msra.mxu1 %v4039_v52  ;;  %v2164_v52 = vld [vmem:[%s6389_s7 + $0x810] sm:$0xff] }
 0x297   : > { %4424 = vmatpush1.bf16.msra.mxu0 %v4423_v53  ;;  %4042 = vmatprep.subr.bf16.mxu1 %v4041_v54  ;;  %v2546_v53 = vld [vmem:[%s6389_s7 + $0x1400] sm:$0xff]  ;;  %v4445_v54 = vpack.c.bf16 %v2549_v47, %v2547_v46  ;;  %v4063_v61 = vpack.c.bf16 %v2164_v52, %v2162_v51  ;;  %v2567_v46 = vld [vmem:[%s6389_s7 + $0x14a8] sm:$0xff]  ;;  %v2569_v47 = vld [vmem:[%s6389_s7 + $0x14b8] sm:$0xff] }
 0x298   : > { %4426 = vmatprep.subr.bf16.mxu0 %v4425_v58  ;;  %v2551_v58 = vld [vmem:[%s6389_s7 + $0x1428] sm:$0xff]  ;;  %v4447_v63 = vpack.c.bf16 %v2548_v55, %v2546_v53  ;;  %v2182_v51 = vld [vmem:[%s6389_s7 + $0x8a0] sm:$0xff]  ;;  %v2184_v52 = vld [vmem:[%s6389_s7 + $0x8b0] sm:$0xff] }
 0x299   : > { %v4449_v4 = vpack.c.bf16 %v2553_v59, %v2551_v58  ;;  %v2566_v53 = vld [vmem:[%s6389_s7 + $0x14a0] sm:$0xff]  ;;  %v2568_v55 = vld [vmem:[%s6389_s7 + $0x14b0] sm:$0xff]  ;;  %v2571_v58 = vld [vmem:[%s6389_s7 + $0x14c8] sm:$0xff] }
 0x29a   : > { %4044 = vmatpush1.bf16.msra.mxu1 %v4043_v0  ;;  %v4065_v0 = vpack.c.bf16 %v2169_v57, %v2167_v56  ;;  %v2187_v56 = vld [vmem:[%s6389_s7 + $0x8c8] sm:$0xff]  ;;  %v2189_v57 = vld [vmem:[%s6389_s7 + $0x8d8] sm:$0xff] }
 0x29b   : > { %4428 = vmatpush1.bf16.msra.mxu0 %v4427_v1  ;;  %4046 = vmatprep.subr.bf16.mxu1 %v4045_v2  ;;  %v2166_v1 = vld [vmem:[%s6389_s7 + $0x820] sm:$0xff]  ;;  %v2168_v2 = vld [vmem:[%s6389_s7 + $0x830] sm:$0xff]  ;;  %v2573_v59 = vld [vmem:[%s6389_s7 + $0x14d8] sm:$0xff] }
 0x29c   : > { %4430 = vmatprep.subr.bf16.mxu0 %v4429_v6  ;;  %v2171_v6 = vld [vmem:[%s6389_s7 + $0x848] sm:$0xff]  ;;  %v4067_v11 = vpack.c.bf16 %v2168_v2, %v2166_v1  ;;  %v2570_v1 = vld [vmem:[%s6389_s7 + $0x14c0] sm:$0xff]  ;;  %v4469_v2 = vpack.c.bf16 %v2573_v59, %v2571_v58 }
 0x29d   : > { %v2206_v59 = vld [vmem:[%s6389_s7 + $0x960] sm:$0xff] }
 0x29e   : > { %4048 = vmatpush1.bf16.msra.mxu1 %v4047_v12  ;;  %v1902_v12 = vld [vmem:[%s7282_s0 + $0xa8] sm:$0xff] }
 0x29f   : > { %4432 = vmatpush1.bf16.msra.mxu0 %v4431_v13  ;;  %4050 = vmatprep.subr.bf16.mxu1 %v4049_v14  ;;  %v4451_v13 = vpack.c.bf16 %v2552_v5, %v2550_v3  ;;  %v4069_v14 = vpack.c.bf16 %v2173_v7, %v2171_v6  ;;  %v2572_v3 = vld [vmem:[%s6389_s7 + $0x14d0] sm:$0xff]  ;;  %v2193_v5 = vld [vmem:[%s6389_s7 + $0x8f8] sm:$0xff]  ;;  %v2575_v6 = vld [vmem:[%s6389_s7 + $0x14e8] sm:$0xff] }
 0x2a0   : > { %4434 = vmatprep.subr.bf16.mxu0 %v4433_v18  ;;  %v4453_v18 = vpack.c.bf16 %v2557_v9, %v2555_v8  ;;  %v2577_v7 = vld [vmem:[%s6389_s7 + $0x14f8] sm:$0xff]  ;;  %v4471_v9 = vpack.c.bf16 %v2572_v3, %v2570_v1 }
 0x2a1   : > { %v2213_v1 = vld [vmem:[%s6389_s7 + $0x998] sm:$0xff] }
 0x2a2   : > { %4052 = vmatpush1.bf16.msra.mxu1 %v4051_v24  ;;  %v4071_v24 = vpack.c.bf16 %v2172_v16, %v2170_v15  ;;  %v2576_v15 = vld [vmem:[%s6389_s7 + $0x14f0] sm:$0xff]  ;;  %v2195_v16 = vld [vmem:[%s6389_s7 + $0x908] sm:$0xff]  ;;  %v2597_v3 = vld [vmem:[%s6389_s7 + $0x1598] sm:$0xff] }
 0x2a3   : > { %4436 = vmatpush1.bf16.msra.mxu0 %v4435_v25  ;;  %4054 = vmatprep.subr.bf16.mxu1 %v4053_v26  ;;  %v4455_v25 = vpack.c.bf16 %v2556_v19, %v2554_v17  ;;  %v4073_v26 = vpack.c.bf16 %v2177_v21, %v2175_v20  ;;  %v2197_v17 = vld [vmem:[%s6389_s7 + $0x918] sm:$0xff] }
 0x2a4   : > { %4438 = vmatprep.subr.bf16.mxu0 %v4437_v30  ;;  %v4457_v30 = vpack.c.bf16 %v2561_v23, %v2559_v22  ;;  %v2581_v19 = vld [vmem:[%s6389_s7 + $0x1518] sm:$0xff]  ;;  %v4093_v22 = vpack.c.bf16 %v2197_v17, %v2195_v16  ;;  %v2194_v23 = vld [vmem:[%s6389_s7 + $0x900] sm:$0xff] }
 0x2a6   : > { %4056 = vmatpush1.bf16.msra.mxu1 %v4055_v36  ;;  %v4075_v36 = vpack.c.bf16 %v2176_v28, %v2174_v27  ;;  %v2580_v27 = vld [vmem:[%s6389_s7 + $0x1510] sm:$0xff]  ;;  %v2199_v28 = vld [vmem:[%s6389_s7 + $0x928] sm:$0xff] }
 0x2a7   : > { %4440 = vmatpush1.bf16.msra.mxu0 %v4439_v37  ;;  %4058 = vmatprep.subr.bf16.mxu1 %v4057_v38  ;;  %v4459_v37 = vpack.c.bf16 %v2560_v31, %v2558_v29  ;;  %v4077_v38 = vpack.c.bf16 %v2181_v33, %v2179_v32  ;;  %v2201_v29 = vld [vmem:[%s6389_s7 + $0x938] sm:$0xff] }
 0x2a8   : > { %4442 = vmatprep.subr.bf16.mxu0 %v4441_v42  ;;  %v4461_v42 = vpack.c.bf16 %v2565_v35, %v2563_v34  ;;  %v2585_v31 = vld [vmem:[%s6389_s7 + $0x1538] sm:$0xff]  ;;  %v4097_v34 = vpack.c.bf16 %v2201_v29, %v2199_v28  ;;  %v2198_v35 = vld [vmem:[%s6389_s7 + $0x920] sm:$0xff] }
 0x2aa   : > { %4060 = vmatpush1.bf16.msra.mxu1 %v4059_v48  ;;  %v4079_v48 = vpack.c.bf16 %v2180_v40, %v2178_v39  ;;  %v2584_v39 = vld [vmem:[%s6389_s7 + $0x1530] sm:$0xff]  ;;  %v2203_v40 = vld [vmem:[%s6389_s7 + $0x948] sm:$0xff] }
 0x2ab   : > { %4444 = vmatpush1.bf16.msra.mxu0 %v4443_v49  ;;  %4062 = vmatprep.subr.bf16.mxu1 %v4061_v50  ;;  %v4463_v49 = vpack.c.bf16 %v2564_v43, %v2562_v41  ;;  %v4081_v50 = vpack.c.bf16 %v2185_v45, %v2183_v44  ;;  %v2205_v41 = vld [vmem:[%s6389_s7 + $0x958] sm:$0xff] }
 0x2ac   : > { %4446 = vmatprep.subr.bf16.mxu0 %v4445_v54  ;;  %v4465_v54 = vpack.c.bf16 %v2569_v47, %v2567_v46  ;;  %v2589_v43 = vld [vmem:[%s6389_s7 + $0x1558] sm:$0xff]  ;;  %v4101_v46 = vpack.c.bf16 %v2205_v41, %v2203_v40  ;;  %v2202_v47 = vld [vmem:[%s6389_s7 + $0x940] sm:$0xff] }
 0x2ad   : > { %2984 = vmatmul.mubr.f32.vlgmr.msra.gmra.mrb[0].mxu1 %v1887_v60  ;;  %v4083_v60 = vpack.c.bf16 %v2184_v52, %v2182_v51  ;;  %v2588_v51 = vld [vmem:[%s6389_s7 + $0x1550] sm:$0xff]  ;;  %v2207_v52 = vld [vmem:[%s6389_s7 + $0x968] sm:$0xff] }
 0x2ae   : > { %4064 = vmatpush1.bf16.msra.mxu1 %v4063_v61  ;;  %3410 = vmatmul.mubr.f32.vlgmr.msra.gmra.mrb[0].mxu0 %v1899_v62  ;;  %v4467_v61 = vpack.c.bf16 %v2568_v55, %v2566_v53  ;;  %v4085_v62 = vpack.c.bf16 %v2189_v57, %v2187_v56  ;;  %v2209_v53 = vld [vmem:[%s6389_s7 + $0x978] sm:$0xff] }
 0x2af   : > { %4448 = vmatpush1.bf16.msra.mxu0 %v4447_v63  ;;  %4066 = vmatprep.subr.bf16.mxu1 %v4065_v0  ;;  %v2186_v63 = vld [vmem:[%s6389_s7 + $0x8c0] sm:$0xff]  ;;  %v2188_v0 = vld [vmem:[%s6389_s7 + $0x8d0] sm:$0xff]  ;;  %v2593_v55 = vld [vmem:[%s6389_s7 + $0x1578] sm:$0xff]  ;;  %v4105_v58 = vpack.c.bf16 %v2209_v53, %v2207_v52 }
 0x2b0   : > { %4450 = vmatprep.subr.bf16.mxu0 %v4449_v4  ;;  %3054 = vmatprep.mubr.f32.mxu1 %v1890_v10  ;;  %v2191_v4 = vld [vmem:[%s6389_s7 + $0x8e8] sm:$0xff]  ;;  %v4087_v8 = vpack.c.bf16 %v2188_v0, %v2186_v63  ;;  %v2592_v63 = vld [vmem:[%s6389_s7 + $0x1570] sm:$0xff] }
 0x2b1   : > { %3480 = vmatprep.mubr.f32.mxu0 %v1902_v12  ;;  %v4089_v10 = vpack.c.bf16 %v2193_v5, %v2191_v4  ;;  %v2192_v12 = vld [vmem:[%s6389_s7 + $0x8f0] sm:$0xff]  ;;  %v2211_v0 = vld [vmem:[%s6389_s7 + $0x988] sm:$0xff] }
 0x2b2   : > { %4068 = vmatpush1.bf16.msra.mxu1 %v4067_v11  ;;  %v2190_v11 = vld [vmem:[%s6389_s7 + $0x8e0] sm:$0xff] }
 0x2b3   : > { %4452 = vmatpush1.bf16.msra.mxu0 %v4451_v13  ;;  %4070 = vmatprep.subr.bf16.mxu1 %v4069_v14  ;;  %v2574_v13 = vld [vmem:[%s6389_s7 + $0x14e0] sm:$0xff]  ;;  %v4473_v14 = vpack.c.bf16 %v2577_v7, %v2575_v6  ;;  %v4091_v20 = vpack.c.bf16 %v2192_v12, %v2190_v11  ;;  %v4109_v6 = vpack.c.bf16 %v2213_v1, %v2211_v0  ;;  %v2596_v11 = vld [vmem:[%s6389_s7 + $0x1590] sm:$0xff]  ;;  %v2215_v12 = vld [vmem:[%s6389_s7 + $0x9a8] sm:$0xff] }
 0x2b4   : > { %4454 = vmatprep.subr.bf16.mxu0 %v4453_v18  ;;  %v2579_v18 = vld [vmem:[%s6389_s7 + $0x1508] sm:$0xff]  ;;  %v4475_v21 = vpack.c.bf16 %v2576_v15, %v2574_v13  ;;  %v2210_v7 = vld [vmem:[%s6389_s7 + $0x980] sm:$0xff]  ;;  %v2217_v13 = vld [vmem:[%s6389_s7 + $0x9b8] sm:$0xff] }
 0x2b5   : > { %v2601_v15 = vld [vmem:[%s6389_s7 + $0x15b8] sm:$0xff]  ;;  %v1889_v0 = vld [vmem:[%s7282_s0 + $0x40] sm:$0xff] }
 0x2b6   : > { %4072 = vmatpush1.bf16.msra.mxu1 %v4071_v24  ;;  %v2196_v24 = vld [vmem:[%s6389_s7 + $0x910] sm:$0xff] }
 0x2b7   : > { %4456 = vmatpush1.bf16.msra.mxu0 %v4455_v25  ;;  %4074 = vmatprep.subr.bf16.mxu1 %v4073_v26  ;;  %v2578_v25 = vld [vmem:[%s6389_s7 + $0x1500] sm:$0xff]  ;;  %v4477_v26 = vpack.c.bf16 %v2581_v19, %v2579_v18  ;;  %v4095_v32 = vpack.c.bf16 %v2196_v24, %v2194_v23  ;;  %v4113_v18 = vpack.c.bf16 %v2217_v13, %v2215_v12  ;;  %v2600_v23 = vld [vmem:[%s6389_s7 + $0x15b0] sm:$0xff]  ;;  %v2219_v24 = vld [vmem:[%s6389_s7 + $0x9c8] sm:$0xff] }
 0x2b8   : > { %4458 = vmatprep.subr.bf16.mxu0 %v4457_v30  ;;  %v2583_v30 = vld [vmem:[%s6389_s7 + $0x1528] sm:$0xff]  ;;  %v4479_v33 = vpack.c.bf16 %v2580_v27, %v2578_v25  ;;  %v2214_v19 = vld [vmem:[%s6389_s7 + $0x9a0] sm:$0xff]  ;;  %v2221_v25 = vld [vmem:[%s6389_s7 + $0x9d8] sm:$0xff] }
 0x2b9   : > { %v2605_v27 = vld [vmem:[%s6389_s7 + $0x15d8] sm:$0xff]  ;;  %v2619_v12 = vld [vmem:[%s6389_s7 + $0x1648] sm:$0xff] }
 0x2ba   : > { %4076 = vmatpush1.bf16.msra.mxu1 %v4075_v36  ;;  %v2200_v36 = vld [vmem:[%s6389_s7 + $0x930] sm:$0xff]  ;;  %v2621_v13 = vld [vmem:[%s6389_s7 + $0x1658] sm:$0xff] }
 0x2bb   : > { %4460 = vmatpush1.bf16.msra.mxu0 %v4459_v37  ;;  %4078 = vmatprep.subr.bf16.mxu1 %v4077_v38  ;;  %v2582_v37 = vld [vmem:[%s6389_s7 + $0x1520] sm:$0xff]  ;;  %v4481_v38 = vpack.c.bf16 %v2585_v31, %v2583_v30  ;;  %v4099_v44 = vpack.c.bf16 %v2200_v36, %v2198_v35  ;;  %v4117_v30 = vpack.c.bf16 %v2221_v25, %v2219_v24  ;;  %v2604_v35 = vld [vmem:[%s6389_s7 + $0x15d0] sm:$0xff]  ;;  %v2223_v36 = vld [vmem:[%s6389_s7 + $0x9e8] sm:$0xff] }
 0x2bc   : > { %4462 = vmatprep.subr.bf16.mxu0 %v4461_v42  ;;  %v2587_v42 = vld [vmem:[%s6389_s7 + $0x1548] sm:$0xff]  ;;  %v4483_v45 = vpack.c.bf16 %v2584_v39, %v2582_v37  ;;  %v2218_v31 = vld [vmem:[%s6389_s7 + $0x9c0] sm:$0xff]  ;;  %v2225_v37 = vld [vmem:[%s6389_s7 + $0x9f8] sm:$0xff] }
 0x2bd   : > { %v2609_v39 = vld [vmem:[%s6389_s7 + $0x15f8] sm:$0xff]  ;;  %v2239_v24 = vld [vmem:[%s6389_s7 + $0xa68] sm:$0xff] }
 0x2be   : > { %4080 = vmatpush1.bf16.msra.mxu1 %v4079_v48  ;;  %v2204_v48 = vld [vmem:[%s6389_s7 + $0x950] sm:$0xff]  ;;  %v2241_v25 = vld [vmem:[%s6389_s7 + $0xa78] sm:$0xff] }
 0x2bf   : > { %4464 = vmatpush1.bf16.msra.mxu0 %v4463_v49  ;;  %4082 = vmatprep.subr.bf16.mxu1 %v4081_v50  ;;  %v2586_v49 = vld [vmem:[%s6389_s7 + $0x1540] sm:$0xff]  ;;  %v4485_v50 = vpack.c.bf16 %v2589_v43, %v2587_v42  ;;  %v4103_v56 = vpack.c.bf16 %v2204_v48, %v2202_v47  ;;  %v4121_v42 = vpack.c.bf16 %v2225_v37, %v2223_v36  ;;  %v2608_v47 = vld [vmem:[%s6389_s7 + $0x15f0] sm:$0xff]  ;;  %v2227_v48 = vld [vmem:[%s6389_s7 + $0xa08] sm:$0xff] }
 0x2c0   : > { %4466 = vmatprep.subr.bf16.mxu0 %v4465_v54  ;;  %v2591_v54 = vld [vmem:[%s6389_s7 + $0x1568] sm:$0xff]  ;;  %v4487_v57 = vpack.c.bf16 %v2588_v51, %v2586_v49  ;;  %v2222_v43 = vld [vmem:[%s6389_s7 + $0x9e0] sm:$0xff]  ;;  %v2229_v49 = vld [vmem:[%s6389_s7 + $0xa18] sm:$0xff] }
 0x2c1   : > { %v2613_v51 = vld [vmem:[%s6389_s7 + $0x1618] sm:$0xff]  ;;  %v2243_v36 = vld [vmem:[%s6389_s7 + $0xa88] sm:$0xff] }
 0x2c2   : > { %4084 = vmatpush1.bf16.msra.mxu1 %v4083_v60  ;;  %v2208_v60 = vld [vmem:[%s6389_s7 + $0x970] sm:$0xff]  ;;  %v2245_v37 = vld [vmem:[%s6389_s7 + $0xa98] sm:$0xff] }
 0x2c3   : > { %4468 = vmatpush1.bf16.msra.mxu0 %v4467_v61  ;;  %4086 = vmatprep.subr.bf16.mxu1 %v4085_v62  ;;  %v2590_v61 = vld [vmem:[%s6389_s7 + $0x1560] sm:$0xff]  ;;  %v4489_v62 = vpack.c.bf16 %v2593_v55, %v2591_v54  ;;  %v4107_v4 = vpack.c.bf16 %v2208_v60, %v2206_v59  ;;  %v4125_v54 = vpack.c.bf16 %v2229_v49, %v2227_v48  ;;  %v2612_v59 = vld [vmem:[%s6389_s7 + $0x1610] sm:$0xff]  ;;  %v2231_v60 = vld [vmem:[%s6389_s7 + $0xa28] sm:$0xff] }
 0x2c4   : > { %4470 = vmatprep.subr.bf16.mxu0 %v4469_v2  ;;  %v2595_v2 = vld [vmem:[%s6389_s7 + $0x1588] sm:$0xff]  ;;  %v4491_v5 = vpack.c.bf16 %v2592_v63, %v2590_v61  ;;  %v2226_v55 = vld [vmem:[%s6389_s7 + $0xa00] sm:$0xff]  ;;  %v2233_v61 = vld [vmem:[%s6389_s7 + $0xa38] sm:$0xff] }
 0x2c5   : > { %v2617_v63 = vld [vmem:[%s6389_s7 + $0x1638] sm:$0xff]  ;;  %v2247_v48 = vld [vmem:[%s6389_s7 + $0xaa8] sm:$0xff] }
 0x2c6   : > { %4088 = vmatpush1.bf16.msra.mxu1 %v4087_v8  ;;  %v2212_v8 = vld [vmem:[%s6389_s7 + $0x990] sm:$0xff]  ;;  %v2249_v49 = vld [vmem:[%s6389_s7 + $0xab8] sm:$0xff] }
 0x2c7   : > { %4472 = vmatpush1.bf16.msra.mxu0 %v4471_v9  ;;  %4090 = vmatprep.subr.bf16.mxu1 %v4089_v10  ;;  %v2594_v9 = vld [vmem:[%s6389_s7 + $0x1580] sm:$0xff]  ;;  %v4493_v10 = vpack.c.bf16 %v2597_v3, %v2595_v2  ;;  %v4111_v16 = vpack.c.bf16 %v2212_v8, %v2210_v7 }
 0x2c8   : > { %4474 = vmatprep.subr.bf16.mxu0 %v4473_v14  ;;  %v2599_v14 = vld [vmem:[%s6389_s7 + $0x15a8] sm:$0xff]  ;;  %v4495_v17 = vpack.c.bf16 %v2596_v11, %v2594_v9  ;;  %v1901_v2 = vld [vmem:[%s7282_s0 + $0xa0] sm:$0xff]  ;;  %v2616_v9 = vld [vmem:[%s6389_s7 + $0x1630] sm:$0xff] }
 0x2c9   : > { %v2614_v7 = vld [vmem:[%s6389_s7 + $0x1620] sm:$0xff]  ;;  %v2237_v11 = vld [vmem:[%s6389_s7 + $0xa58] sm:$0xff] }
 0x2ca   : > { %4092 = vmatpush1.bf16.msra.mxu1 %v4091_v20  ;;  %v2216_v20 = vld [vmem:[%s6389_s7 + $0x9b0] sm:$0xff] }
 0x2cb   : > { %4476 = vmatpush1.bf16.msra.mxu0 %v4475_v21  ;;  %4094 = vmatprep.subr.bf16.mxu1 %v4093_v22  ;;  %v2598_v21 = vld [vmem:[%s6389_s7 + $0x15a0] sm:$0xff]  ;;  %v4497_v22 = vpack.c.bf16 %v2601_v15, %v2599_v14  ;;  %v4115_v28 = vpack.c.bf16 %v2216_v20, %v2214_v19  ;;  %v1892_v14 = vld [vmem:[%s7282_s0 + $0x58] sm:$0xff]  ;;  %v2236_v20 = vld [vmem:[%s6389_s7 + $0xa50] sm:$0xff] }
 0x2cc   : > { %4478 = vmatprep.subr.bf16.mxu0 %v4477_v26  ;;  %v2603_v26 = vld [vmem:[%s6389_s7 + $0x15c8] sm:$0xff]  ;;  %v4499_v29 = vpack.c.bf16 %v2600_v23, %v2598_v21  ;;  %v2234_v19 = vld [vmem:[%s6389_s7 + $0xa40] sm:$0xff]  ;;  %v2620_v23 = vld [vmem:[%s6389_s7 + $0x1650] sm:$0xff] }
 0x2cd   : > { %v2618_v21 = vld [vmem:[%s6389_s7 + $0x1640] sm:$0xff] }
 0x2ce   : > { %4096 = vmatpush1.bf16.msra.mxu1 %v4095_v32  ;;  %v2220_v32 = vld [vmem:[%s6389_s7 + $0x9d0] sm:$0xff] }
 0x2cf   : > { %4480 = vmatpush1.bf16.msra.mxu0 %v4479_v33  ;;  %4098 = vmatprep.subr.bf16.mxu1 %v4097_v34  ;;  %v2602_v33 = vld [vmem:[%s6389_s7 + $0x15c0] sm:$0xff]  ;;  %v4501_v34 = vpack.c.bf16 %v2605_v27, %v2603_v26  ;;  %v4119_v40 = vpack.c.bf16 %v2220_v32, %v2218_v31  ;;  %v2623_v26 = vld [vmem:[%s6389_s7 + $0x1668] sm:$0xff]  ;;  %v2625_v27 = vld [vmem:[%s6389_s7 + $0x1678] sm:$0xff] }
 0x2d0   : > { %4482 = vmatprep.subr.bf16.mxu0 %v4481_v38  ;;  %v2607_v38 = vld [vmem:[%s6389_s7 + $0x15e8] sm:$0xff]  ;;  %v4503_v41 = vpack.c.bf16 %v2604_v35, %v2602_v33  ;;  %v2238_v31 = vld [vmem:[%s6389_s7 + $0xa60] sm:$0xff]  ;;  %v2240_v32 = vld [vmem:[%s6389_s7 + $0xa70] sm:$0xff] }
 0x2d1   : > { %v2622_v33 = vld [vmem:[%s6389_s7 + $0x1660] sm:$0xff]  ;;  %v2624_v35 = vld [vmem:[%s6389_s7 + $0x1670] sm:$0xff] }
 0x2d2   : > { %4100 = vmatpush1.bf16.msra.mxu1 %v4099_v44  ;;  %v2224_v44 = vld [vmem:[%s6389_s7 + $0x9f0] sm:$0xff] }
 0x2d3   : > { %4484 = vmatpush1.bf16.msra.mxu0 %v4483_v45  ;;  %4102 = vmatprep.subr.bf16.mxu1 %v4101_v46  ;;  %v2606_v45 = vld [vmem:[%s6389_s7 + $0x15e0] sm:$0xff]  ;;  %v4505_v46 = vpack.c.bf16 %v2609_v39, %v2607_v38  ;;  %v4123_v52 = vpack.c.bf16 %v2224_v44, %v2222_v43  ;;  %v2627_v38 = vld [vmem:[%s6389_s7 + $0x1688] sm:$0xff]  ;;  %v2629_v39 = vld [vmem:[%s6389_s7 + $0x1698] sm:$0xff] }
 0x2d4   : > { %4486 = vmatprep.subr.bf16.mxu0 %v4485_v50  ;;  %v2611_v50 = vld [vmem:[%s6389_s7 + $0x1608] sm:$0xff]  ;;  %v4507_v53 = vpack.c.bf16 %v2608_v47, %v2606_v45  ;;  %v2242_v43 = vld [vmem:[%s6389_s7 + $0xa80] sm:$0xff]  ;;  %v2244_v44 = vld [vmem:[%s6389_s7 + $0xa90] sm:$0xff] }
 0x2d5   : > { %v2626_v45 = vld [vmem:[%s6389_s7 + $0x1680] sm:$0xff]  ;;  %v2628_v47 = vld [vmem:[%s6389_s7 + $0x1690] sm:$0xff] }
 0x2d6   : > { %4104 = vmatpush1.bf16.msra.mxu1 %v4103_v56  ;;  %v2228_v56 = vld [vmem:[%s6389_s7 + $0xa10] sm:$0xff] }
 0x2d7   : > { %4488 = vmatpush1.bf16.msra.mxu0 %v4487_v57  ;;  %4106 = vmatprep.subr.bf16.mxu1 %v4105_v58  ;;  %v2610_v57 = vld [vmem:[%s6389_s7 + $0x1600] sm:$0xff]  ;;  %v4509_v58 = vpack.c.bf16 %v2613_v51, %v2611_v50  ;;  %v4127_v1 = vpack.c.bf16 %v2228_v56, %v2226_v55  ;;  %v2631_v50 = vld [vmem:[%s6389_s7 + $0x16a8] sm:$0xff]  ;;  %v2633_v51 = vld [vmem:[%s6389_s7 + $0x16b8] sm:$0xff] }
 0x2d8   : > { %4490 = vmatprep.subr.bf16.mxu0 %v4489_v62  ;;  %v2615_v62 = vld [vmem:[%s6389_s7 + $0x1628] sm:$0xff]  ;;  %v4511_v3 = vpack.c.bf16 %v2612_v59, %v2610_v57  ;;  %v2246_v55 = vld [vmem:[%s6389_s7 + $0xaa0] sm:$0xff]  ;;  %v2248_v56 = vld [vmem:[%s6389_s7 + $0xab0] sm:$0xff] }
 0x2d9   : > { %v4513_v8 = vpack.c.bf16 %v2617_v63, %v2615_v62  ;;  %v2630_v57 = vld [vmem:[%s6389_s7 + $0x16a0] sm:$0xff]  ;;  %v2632_v59 = vld [vmem:[%s6389_s7 + $0x16b0] sm:$0xff]  ;;  %v2635_v62 = vld [vmem:[%s6389_s7 + $0x16c8] sm:$0xff] }
 0x2da   : > { %4108 = vmatpush1.bf16.msra.mxu1 %v4107_v4  ;;  %v4129_v4 = vpack.c.bf16 %v2233_v61, %v2231_v60  ;;  %v2251_v60 = vld [vmem:[%s6389_s7 + $0xac8] sm:$0xff]  ;;  %v2253_v61 = vld [vmem:[%s6389_s7 + $0xad8] sm:$0xff] }
 0x2db   : > { %4492 = vmatpush1.bf16.msra.mxu0 %v4491_v5  ;;  %4110 = vmatprep.subr.bf16.mxu1 %v4109_v6  ;;  %v2230_v5 = vld [vmem:[%s6389_s7 + $0xa20] sm:$0xff]  ;;  %v2232_v6 = vld [vmem:[%s6389_s7 + $0xa30] sm:$0xff]  ;;  %v2637_v63 = vld [vmem:[%s6389_s7 + $0x16d8] sm:$0xff] }
 0x2dc   : > { %4494 = vmatprep.subr.bf16.mxu0 %v4493_v10  ;;  %v2235_v10 = vld [vmem:[%s6389_s7 + $0xa48] sm:$0xff]  ;;  %v4131_v15 = vpack.c.bf16 %v2232_v6, %v2230_v5  ;;  %v2634_v5 = vld [vmem:[%s6389_s7 + $0x16c0] sm:$0xff]  ;;  %v4533_v6 = vpack.c.bf16 %v2637_v63, %v2635_v62 }
 0x2dd   : > { %v2270_v63 = vld [vmem:[%s6389_s7 + $0xb60] sm:$0xff] }
 0x2de   : > { %4112 = vmatpush1.bf16.msra.mxu1 %v4111_v16  ;;  %v1904_v16 = vld [vmem:[%s7282_s0 + $0xb8] sm:$0xff] }
 0x2df   : > { %4496 = vmatpush1.bf16.msra.mxu0 %v4495_v17  ;;  %4114 = vmatprep.subr.bf16.mxu1 %v4113_v18  ;;  %v4515_v17 = vpack.c.bf16 %v2616_v9, %v2614_v7  ;;  %v4133_v18 = vpack.c.bf16 %v2237_v11, %v2235_v10  ;;  %v2636_v7 = vld [vmem:[%s6389_s7 + $0x16d0] sm:$0xff]  ;;  %v2257_v9 = vld [vmem:[%s6389_s7 + $0xaf8] sm:$0xff]  ;;  %v2639_v10 = vld [vmem:[%s6389_s7 + $0x16e8] sm:$0xff] }
 0x2e0   : > { %4498 = vmatprep.subr.bf16.mxu0 %v4497_v22  ;;  %v4517_v22 = vpack.c.bf16 %v2621_v13, %v2619_v12  ;;  %v2641_v11 = vld [vmem:[%s6389_s7 + $0x16f8] sm:$0xff]  ;;  %v4535_v13 = vpack.c.bf16 %v2636_v7, %v2634_v5 }
 0x2e1   : > { %v2277_v5 = vld [vmem:[%s6389_s7 + $0xb98] sm:$0xff] }
 0x2e2   : > { %4116 = vmatpush1.bf16.msra.mxu1 %v4115_v28  ;;  %v4135_v28 = vpack.c.bf16 %v2236_v20, %v2234_v19  ;;  %v2640_v19 = vld [vmem:[%s6389_s7 + $0x16f0] sm:$0xff]  ;;  %v2259_v20 = vld [vmem:[%s6389_s7 + $0xb08] sm:$0xff]  ;;  %v2661_v7 = vld [vmem:[%s6389_s7 + $0x1798] sm:$0xff] }
 0x2e3   : > { %4500 = vmatpush1.bf16.msra.mxu0 %v4499_v29  ;;  %4118 = vmatprep.subr.bf16.mxu1 %v4117_v30  ;;  %v4519_v29 = vpack.c.bf16 %v2620_v23, %v2618_v21  ;;  %v4137_v30 = vpack.c.bf16 %v2241_v25, %v2239_v24  ;;  %v2261_v21 = vld [vmem:[%s6389_s7 + $0xb18] sm:$0xff] }
 0x2e4   : > { %4502 = vmatprep.subr.bf16.mxu0 %v4501_v34  ;;  %v4521_v34 = vpack.c.bf16 %v2625_v27, %v2623_v26  ;;  %v2645_v23 = vld [vmem:[%s6389_s7 + $0x1718] sm:$0xff]  ;;  %v4157_v26 = vpack.c.bf16 %v2261_v21, %v2259_v20  ;;  %v2258_v27 = vld [vmem:[%s6389_s7 + $0xb00] sm:$0xff] }
 0x2e6   : > { %4120 = vmatpush1.bf16.msra.mxu1 %v4119_v40  ;;  %v4139_v40 = vpack.c.bf16 %v2240_v32, %v2238_v31  ;;  %v2644_v31 = vld [vmem:[%s6389_s7 + $0x1710] sm:$0xff]  ;;  %v2263_v32 = vld [vmem:[%s6389_s7 + $0xb28] sm:$0xff] }
 0x2e7   : > { %4504 = vmatpush1.bf16.msra.mxu0 %v4503_v41  ;;  %4122 = vmatprep.subr.bf16.mxu1 %v4121_v42  ;;  %v4523_v41 = vpack.c.bf16 %v2624_v35, %v2622_v33  ;;  %v4141_v42 = vpack.c.bf16 %v2245_v37, %v2243_v36  ;;  %v2265_v33 = vld [vmem:[%s6389_s7 + $0xb38] sm:$0xff] }
 0x2e8   : > { %4506 = vmatprep.subr.bf16.mxu0 %v4505_v46  ;;  %v4525_v46 = vpack.c.bf16 %v2629_v39, %v2627_v38  ;;  %v2649_v35 = vld [vmem:[%s6389_s7 + $0x1738] sm:$0xff]  ;;  %v4161_v38 = vpack.c.bf16 %v2265_v33, %v2263_v32  ;;  %v2262_v39 = vld [vmem:[%s6389_s7 + $0xb20] sm:$0xff] }
 0x2ea   : > { %4124 = vmatpush1.bf16.msra.mxu1 %v4123_v52  ;;  %v4143_v52 = vpack.c.bf16 %v2244_v44, %v2242_v43  ;;  %v2648_v43 = vld [vmem:[%s6389_s7 + $0x1730] sm:$0xff]  ;;  %v2267_v44 = vld [vmem:[%s6389_s7 + $0xb48] sm:$0xff] }
 0x2eb   : > { %4508 = vmatpush1.bf16.msra.mxu0 %v4507_v53  ;;  %4126 = vmatprep.subr.bf16.mxu1 %v4125_v54  ;;  %v4527_v53 = vpack.c.bf16 %v2628_v47, %v2626_v45  ;;  %v4145_v54 = vpack.c.bf16 %v2249_v49, %v2247_v48  ;;  %v2269_v45 = vld [vmem:[%s6389_s7 + $0xb58] sm:$0xff] }
 0x2ec   : > { %4510 = vmatprep.subr.bf16.mxu0 %v4509_v58  ;;  %v4529_v58 = vpack.c.bf16 %v2633_v51, %v2631_v50  ;;  %v2653_v47 = vld [vmem:[%s6389_s7 + $0x1758] sm:$0xff]  ;;  %v4165_v50 = vpack.c.bf16 %v2269_v45, %v2267_v44  ;;  %v2266_v51 = vld [vmem:[%s6389_s7 + $0xb40] sm:$0xff] }
 0x2ed   : > { %3055 = vmatmul.mubr.f32.vlgmr.msra.gmra.mrb[0].mxu1 %v1889_v0  ;;  %v4147_v0 = vpack.c.bf16 %v2248_v56, %v2246_v55  ;;  %v2652_v55 = vld [vmem:[%s6389_s7 + $0x1750] sm:$0xff]  ;;  %v2271_v56 = vld [vmem:[%s6389_s7 + $0xb68] sm:$0xff] }
 0x2ee   : > { %4128 = vmatpush1.bf16.msra.mxu1 %v4127_v1  ;;  %3481 = vmatmul.mubr.f32.vlgmr.msra.gmra.mrb[0].mxu0 %v1901_v2  ;;  %v4531_v1 = vpack.c.bf16 %v2632_v59, %v2630_v57  ;;  %v4149_v2 = vpack.c.bf16 %v2253_v61, %v2251_v60  ;;  %v2273_v57 = vld [vmem:[%s6389_s7 + $0xb78] sm:$0xff] }
 0x2ef   : > { %4512 = vmatpush1.bf16.msra.mxu0 %v4511_v3  ;;  %4130 = vmatprep.subr.bf16.mxu1 %v4129_v4  ;;  %v2250_v3 = vld [vmem:[%s6389_s7 + $0xac0] sm:$0xff]  ;;  %v2252_v4 = vld [vmem:[%s6389_s7 + $0xad0] sm:$0xff]  ;;  %v2657_v59 = vld [vmem:[%s6389_s7 + $0x1778] sm:$0xff]  ;;  %v4169_v62 = vpack.c.bf16 %v2273_v57, %v2271_v56 }
 0x2f0   : > { %4514 = vmatprep.subr.bf16.mxu0 %v4513_v8  ;;  %3125 = vmatprep.mubr.f32.mxu1 %v1892_v14  ;;  %v2255_v8 = vld [vmem:[%s6389_s7 + $0xae8] sm:$0xff]  ;;  %v4151_v12 = vpack.c.bf16 %v2252_v4, %v2250_v3  ;;  %v2656_v3 = vld [vmem:[%s6389_s7 + $0x1770] sm:$0xff]  ;;  %v2674_v57 = vld [vmem:[%s6389_s7 + $0x1800] sm:$0xff] }
 0x2f1   : > { %3551 = vmatprep.mubr.f32.mxu0 %v1904_v16  ;;  %v4153_v14 = vpack.c.bf16 %v2257_v9, %v2255_v8  ;;  %v2256_v16 = vld [vmem:[%s6389_s7 + $0xaf0] sm:$0xff]  ;;  %v2275_v4 = vld [vmem:[%s6389_s7 + $0xb88] sm:$0xff] }
 0x2f2   : > { %4132 = vmatpush1.bf16.msra.mxu1 %v4131_v15  ;;  %v2254_v15 = vld [vmem:[%s6389_s7 + $0xae0] sm:$0xff] }
 0x2f3   : > { %4516 = vmatpush1.bf16.msra.mxu0 %v4515_v17  ;;  %4134 = vmatprep.subr.bf16.mxu1 %v4133_v18  ;;  %v2638_v17 = vld [vmem:[%s6389_s7 + $0x16e0] sm:$0xff]  ;;  %v4537_v18 = vpack.c.bf16 %v2641_v11, %v2639_v10  ;;  %v4155_v24 = vpack.c.bf16 %v2256_v16, %v2254_v15  ;;  %v4173_v10 = vpack.c.bf16 %v2277_v5, %v2275_v4  ;;  %v2660_v15 = vld [vmem:[%s6389_s7 + $0x1790] sm:$0xff]  ;;  %v2279_v16 = vld [vmem:[%s6389_s7 + $0xba8] sm:$0xff] }
 0x2f4   : > { %4518 = vmatprep.subr.bf16.mxu0 %v4517_v22  ;;  %v2643_v22 = vld [vmem:[%s6389_s7 + $0x1708] sm:$0xff]  ;;  %v4539_v25 = vpack.c.bf16 %v2640_v19, %v2638_v17  ;;  %v2274_v11 = vld [vmem:[%s6389_s7 + $0xb80] sm:$0xff]  ;;  %v2281_v17 = vld [vmem:[%s6389_s7 + $0xbb8] sm:$0xff] }
 0x2f5   : > { %v2665_v19 = vld [vmem:[%s6389_s7 + $0x17b8] sm:$0xff] }
 0x2f6   : > { %4136 = vmatpush1.bf16.msra.mxu1 %v4135_v28  ;;  %v2260_v28 = vld [vmem:[%s6389_s7 + $0xb10] sm:$0xff]  ;;  %v2685_v4 = vld [vmem:[%s6389_s7 + $0x1858] sm:$0xff] }
 0x2f7   : > { %4520 = vmatpush1.bf16.msra.mxu0 %v4519_v29  ;;  %4138 = vmatprep.subr.bf16.mxu1 %v4137_v30  ;;  %v2642_v29 = vld [vmem:[%s6389_s7 + $0x1700] sm:$0xff]  ;;  %v4541_v30 = vpack.c.bf16 %v2645_v23, %v2643_v22  ;;  %v4159_v36 = vpack.c.bf16 %v2260_v28, %v2258_v27  ;;  %v4177_v22 = vpack.c.bf16 %v2281_v17, %v2279_v16  ;;  %v2664_v27 = vld [vmem:[%s6389_s7 + $0x17b0] sm:$0xff]  ;;  %v2283_v28 = vld [vmem:[%s6389_s7 + $0xbc8] sm:$0xff] }
 0x2f8   : > { %4522 = vmatprep.subr.bf16.mxu0 %v4521_v34  ;;  %v2647_v34 = vld [vmem:[%s6389_s7 + $0x1728] sm:$0xff]  ;;  %v4543_v37 = vpack.c.bf16 %v2644_v31, %v2642_v29  ;;  %v2278_v23 = vld [vmem:[%s6389_s7 + $0xba0] sm:$0xff]  ;;  %v2285_v29 = vld [vmem:[%s6389_s7 + $0xbd8] sm:$0xff] }
 0x2f9   : > { %v2669_v31 = vld [vmem:[%s6389_s7 + $0x17d8] sm:$0xff]  ;;  %v2691_v16 = vld [vmem:[%s6389_s7 + $0x1888] sm:$0xff] }
 0x2fa   : > { %4140 = vmatpush1.bf16.msra.mxu1 %v4139_v40  ;;  %v2264_v40 = vld [vmem:[%s6389_s7 + $0xb30] sm:$0xff]  ;;  %v2693_v17 = vld [vmem:[%s6389_s7 + $0x1898] sm:$0xff] }
 0x2fb   : > { %4524 = vmatpush1.bf16.msra.mxu0 %v4523_v41  ;;  %4142 = vmatprep.subr.bf16.mxu1 %v4141_v42  ;;  %v2646_v41 = vld [vmem:[%s6389_s7 + $0x1720] sm:$0xff]  ;;  %v4545_v42 = vpack.c.bf16 %v2649_v35, %v2647_v34  ;;  %v4163_v48 = vpack.c.bf16 %v2264_v40, %v2262_v39  ;;  %v4181_v34 = vpack.c.bf16 %v2285_v29, %v2283_v28  ;;  %v2668_v39 = vld [vmem:[%s6389_s7 + $0x17d0] sm:$0xff]  ;;  %v2287_v40 = vld [vmem:[%s6389_s7 + $0xbe8] sm:$0xff] }
 0x2fc   : > { %4526 = vmatprep.subr.bf16.mxu0 %v4525_v46  ;;  %v2651_v46 = vld [vmem:[%s6389_s7 + $0x1748] sm:$0xff]  ;;  %v4547_v49 = vpack.c.bf16 %v2648_v43, %v2646_v41  ;;  %v2282_v35 = vld [vmem:[%s6389_s7 + $0xbc0] sm:$0xff]  ;;  %v2289_v41 = vld [vmem:[%s6389_s7 + $0xbf8] sm:$0xff] }
 0x2fd   : > { %v2673_v43 = vld [vmem:[%s6389_s7 + $0x17f8] sm:$0xff]  ;;  %v2699_v28 = vld [vmem:[%s6389_s7 + $0x18c8] sm:$0xff] }
 0x2fe   : > { %4144 = vmatpush1.bf16.msra.mxu1 %v4143_v52  ;;  %v2268_v52 = vld [vmem:[%s6389_s7 + $0xb50] sm:$0xff]  ;;  %v2701_v29 = vld [vmem:[%s6389_s7 + $0x18d8] sm:$0xff] }
 0x2ff   : > { %4528 = vmatpush1.bf16.msra.mxu0 %v4527_v53  ;;  %4146 = vmatprep.subr.bf16.mxu1 %v4145_v54  ;;  %v2650_v53 = vld [vmem:[%s6389_s7 + $0x1740] sm:$0xff]  ;;  %v4549_v54 = vpack.c.bf16 %v2653_v47, %v2651_v46  ;;  %v4167_v60 = vpack.c.bf16 %v2268_v52, %v2266_v51  ;;  %v4185_v46 = vpack.c.bf16 %v2289_v41, %v2287_v40  ;;  %v2672_v51 = vld [vmem:[%s6389_s7 + $0x17f0] sm:$0xff]  ;;  %v2675_v52 = vld [vmem:[%s6389_s7 + $0x1808] sm:$0xff] }
 0x300   : > { %4530 = vmatprep.subr.bf16.mxu0 %v4529_v58  ;;  %v2655_v58 = vld [vmem:[%s6389_s7 + $0x1768] sm:$0xff]  ;;  %v4551_v61 = vpack.c.bf16 %v2652_v55, %v2650_v53  ;;  %v2286_v47 = vld [vmem:[%s6389_s7 + $0xbe0] sm:$0xff]  ;;  %v2677_v53 = vld [vmem:[%s6389_s7 + $0x1818] sm:$0xff] }
 0x301   : > { %v4573_v56 = vpack.c.bf16 %v2677_v53, %v2675_v52  ;;  %v1905_v41 = vld [vmem:[%s7282_s0 + $0xc0] sm:$0xff] }
 0x302   : > { %4148 = vmatpush1.bf16.msra.mxu1 %v4147_v0  ;;  %v2272_v0 = vld [vmem:[%s6389_s7 + $0xb70] sm:$0xff] }
 0x303   : > { %4532 = vmatpush1.bf16.msra.mxu0 %v4531_v1  ;;  %4150 = vmatprep.subr.bf16.mxu1 %v4149_v2  ;;  %v2654_v1 = vld [vmem:[%s6389_s7 + $0x1760] sm:$0xff]  ;;  %v4553_v2 = vpack.c.bf16 %v2657_v59, %v2655_v58  ;;  %v4171_v8 = vpack.c.bf16 %v2272_v0, %v2270_v63  ;;  %v2676_v58 = vld [vmem:[%s6389_s7 + $0x1810] sm:$0xff]  ;;  %v2679_v59 = vld [vmem:[%s6389_s7 + $0x1828] sm:$0xff] }
 0x304   : > { %4534 = vmatprep.subr.bf16.mxu0 %v4533_v6  ;;  %v2659_v6 = vld [vmem:[%s6389_s7 + $0x1788] sm:$0xff]  ;;  %v4555_v9 = vpack.c.bf16 %v2656_v3, %v2654_v1  ;;  %v4575_v63 = vpack.c.bf16 %v2676_v58, %v2674_v57  ;;  %v2678_v1 = vld [vmem:[%s6389_s7 + $0x1820] sm:$0xff] }
 0x305   : > { %v2683_v3 = vld [vmem:[%s6389_s7 + $0x1848] sm:$0xff] }
 0x306   : > { %4152 = vmatpush1.bf16.msra.mxu1 %v4151_v12  ;;  %v2276_v12 = vld [vmem:[%s6389_s7 + $0xb90] sm:$0xff] }
 0x307   : > { %4536 = vmatpush1.bf16.msra.mxu0 %v4535_v13  ;;  %4154 = vmatprep.subr.bf16.mxu1 %v4153_v14  ;;  %v2658_v13 = vld [vmem:[%s6389_s7 + $0x1780] sm:$0xff]  ;;  %v4557_v14 = vpack.c.bf16 %v2661_v7, %v2659_v6  ;;  %v4175_v20 = vpack.c.bf16 %v2276_v12, %v2274_v11  ;;  %v4712_v6 = vmov 0.0   ;;  %v4581_v7 = vpack.c.bf16 %v2685_v4, %v2683_v3  ;;  %v2689_v11 = vld [vmem:[%s6389_s7 + $0x1878] sm:$0xff] }
 0x308   : > { %4538 = vmatprep.subr.bf16.mxu0 %v4537_v18  ;;  %v2663_v18 = vld [vmem:[%s6389_s7 + $0x17a8] sm:$0xff]  ;;  %v4559_v21 = vpack.c.bf16 %v2660_v15, %v2658_v13  ;;  %v2688_v15 = vld [vmem:[%s6389_s7 + $0x1870] sm:$0xff] }
 0x30a   : > { %4156 = vmatpush1.bf16.msra.mxu1 %v4155_v24  ;;  %v2280_v24 = vld [vmem:[%s6389_s7 + $0xbb0] sm:$0xff] }
 0x30b   : > { %4540 = vmatpush1.bf16.msra.mxu0 %v4539_v25  ;;  %4158 = vmatprep.subr.bf16.mxu1 %v4157_v26  ;;  %v2662_v25 = vld [vmem:[%s6389_s7 + $0x17a0] sm:$0xff]  ;;  %v4561_v26 = vpack.c.bf16 %v2665_v19, %v2663_v18  ;;  %v4179_v32 = vpack.c.bf16 %v2280_v24, %v2278_v23  ;;  %v4589_v19 = vpack.c.bf16 %v2693_v17, %v2691_v16  ;;  %v2697_v23 = vld [vmem:[%s6389_s7 + $0x18b8] sm:$0xff] }
 0x30c   : > { %4542 = vmatprep.subr.bf16.mxu0 %v4541_v30  ;;  %v2667_v30 = vld [vmem:[%s6389_s7 + $0x17c8] sm:$0xff]  ;;  %v4563_v33 = vpack.c.bf16 %v2664_v27, %v2662_v25  ;;  %v2696_v27 = vld [vmem:[%s6389_s7 + $0x18b0] sm:$0xff] }
 0x30e   : > { %4160 = vmatpush1.bf16.msra.mxu1 %v4159_v36  ;;  %v2284_v36 = vld [vmem:[%s6389_s7 + $0xbd0] sm:$0xff] }
 0x30f   : > { %4544 = vmatpush1.bf16.msra.mxu0 %v4543_v37  ;;  %4162 = vmatprep.subr.bf16.mxu1 %v4161_v38  ;;  %v2666_v37 = vld [vmem:[%s6389_s7 + $0x17c0] sm:$0xff]  ;;  %v4565_v38 = vpack.c.bf16 %v2669_v31, %v2667_v30  ;;  %v4183_v44 = vpack.c.bf16 %v2284_v36, %v2282_v35  ;;  %v4597_v31 = vpack.c.bf16 %v2701_v29, %v2699_v28  ;;  %v2705_v35 = vld [vmem:[%s6389_s7 + $0x18f8] sm:$0xff] }
 0x310   : > { %4546 = vmatprep.subr.bf16.mxu0 %v4545_v42  ;;  %v2671_v42 = vld [vmem:[%s6389_s7 + $0x17e8] sm:$0xff]  ;;  %v4567_v45 = vpack.c.bf16 %v2668_v39, %v2666_v37  ;;  %v2704_v39 = vld [vmem:[%s6389_s7 + $0x18f0] sm:$0xff] }
 0x312   : > { %4164 = vmatpush1.bf16.msra.mxu1 %v4163_v48  ;;  %v2288_v48 = vld [vmem:[%s6389_s7 + $0xbf0] sm:$0xff] }
 0x313   : > { %4548 = vmatpush1.bf16.msra.mxu0 %v4547_v49  ;;  %4166 = vmatprep.subr.bf16.mxu1 %v4165_v50  ;;  %v4569_v49 = vpack.c.bf16 %v2673_v43, %v2671_v42  ;;  %v2670_v50 = vld [vmem:[%s6389_s7 + $0x17e0] sm:$0xff] }
 0x314   : > { %4550 = vmatprep.subr.bf16.mxu0 %v4549_v54  ;;  %v4187_v54 = vpack.c.bf16 %v2288_v48, %v2286_v47  ;;  %v4571_v55 = vpack.c.bf16 %v2672_v51, %v2670_v50  ;;  %v3650_v51 = vld [vmem:[%s1869_s26] sm:$0x3] }
 0x316   : > { %4168 = vmatpush1.bf16.msra.mxu1 %v4167_v60  ;;  %v2681_v60 = vld [vmem:[%s6389_s7 + $0x1838] sm:$0xff] }
 0x317   : > { %4552 = vmatpush1.bf16.msra.mxu0 %v4551_v61  ;;  %4170 = vmatprep.subr.bf16.mxu1 %v4169_v62  ;;  %v1891_v61 = vld [vmem:[%s7282_s0 + $0x50] sm:$0xff]  ;;  %v4577_v0 = vpack.c.bf16 %v2681_v60, %v2679_v59 }
 0x318   : > { %4554 = vmatprep.subr.bf16.mxu0 %v4553_v2  ;;  %v1903_v62 = vld [vmem:[%s7282_s0 + $0xb0] sm:$0xff] }
 0x319   : > { %v2680_v2 = vld [vmem:[%s6389_s7 + $0x1830] sm:$0xff] }
 0x31a   : > { %4172 = vmatpush1.bf16.msra.mxu1 %v4171_v8  ;;  %v4579_v5 = vpack.c.bf16 %v2680_v2, %v2678_v1  ;;  %v2682_v8 = vld [vmem:[%s6389_s7 + $0x1840] sm:$0xff] }
 0x31b   : > { %4556 = vmatpush1.bf16.msra.mxu0 %v4555_v9  ;;  %4174 = vmatprep.subr.bf16.mxu1 %v4173_v10  ;;  %v2684_v9 = vld [vmem:[%s6389_s7 + $0x1850] sm:$0xff]  ;;  %v2687_v10 = vld [vmem:[%s6389_s7 + $0x1868] sm:$0xff] }
 0x31c   : > { %4558 = vmatprep.subr.bf16.mxu0 %v4557_v14  ;;  %v4583_v12 = vpack.c.bf16 %v2684_v9, %v2682_v8  ;;  %v4585_v13 = vpack.c.bf16 %v2689_v11, %v2687_v10  ;;  %v2686_v14 = vld [vmem:[%s6389_s7 + $0x1860] sm:$0xff] }
 0x31d   : > { %v4587_v18 = vpack.c.bf16 %v2688_v15, %v2686_v14 }
 0x31e   : > { %4176 = vmatpush1.bf16.msra.mxu1 %v4175_v20  ;;  %v2690_v20 = vld [vmem:[%s6389_s7 + $0x1880] sm:$0xff] }
 0x31f   : > { %4560 = vmatpush1.bf16.msra.mxu0 %v4559_v21  ;;  %4178 = vmatprep.subr.bf16.mxu1 %v4177_v22  ;;  %v2692_v21 = vld [vmem:[%s6389_s7 + $0x1890] sm:$0xff]  ;;  %v2695_v22 = vld [vmem:[%s6389_s7 + $0x18a8] sm:$0xff] }
 0x320   : > { %4562 = vmatprep.subr.bf16.mxu0 %v4561_v26  ;;  %v4591_v24 = vpack.c.bf16 %v2692_v21, %v2690_v20  ;;  %v4593_v25 = vpack.c.bf16 %v2697_v23, %v2695_v22  ;;  %v2694_v26 = vld [vmem:[%s6389_s7 + $0x18a0] sm:$0xff] }
 0x321   : > { %v4595_v30 = vpack.c.bf16 %v2696_v27, %v2694_v26 }
 0x322   : > { %4180 = vmatpush1.bf16.msra.mxu1 %v4179_v32  ;;  %v2698_v32 = vld [vmem:[%s6389_s7 + $0x18c0] sm:$0xff] }
 0x323   : > { %4564 = vmatpush1.bf16.msra.mxu0 %v4563_v33  ;;  %4182 = vmatprep.subr.bf16.mxu1 %v4181_v34  ;;  %v2700_v33 = vld [vmem:[%s6389_s7 + $0x18d0] sm:$0xff]  ;;  %v2703_v34 = vld [vmem:[%s6389_s7 + $0x18e8] sm:$0xff] }
 0x324   : > { %4566 = vmatprep.subr.bf16.mxu0 %v4565_v38  ;;  %v4599_v36 = vpack.c.bf16 %v2700_v33, %v2698_v32  ;;  %v4601_v37 = vpack.c.bf16 %v2705_v35, %v2703_v34  ;;  %v2702_v38 = vld [vmem:[%s6389_s7 + $0x18e0] sm:$0xff]  ;;  %s1879_s7 = scalar_lea.vmem %s7285_s3, %s3801_s21 }
 0x325   : > { %v4603_v40 = vpack.c.bf16 %v2704_v39, %v2702_v38 }
 0x326   : > { %4184 = vmatpush1.bf16.msra.mxu1 %v4183_v44  ;;  %v3652_v44 = vlaneseq }
 0x327   : > { %4568 = vmatpush1.bf16.msra.mxu0 %v4567_v45  ;;  %4186 = vmatprep.subr.bf16.mxu1 %v4185_v46 }
 0x328   : > { %4570 = vmatprep.subr.bf16.mxu0 %v4569_v49  ;;  %v3653_v45 = vshrl.u32 %v3652_v44, 7 }
 0x32a   : > { %4188 = vmatpush1.bf16.msra.mxu1 %v4187_v54  ;;  %v3658_v50 = vsub.s32 1, %v3653_v45  ;;  %v3654_v52 = vsub.s32 0, %v3653_v45 }
 0x32b   : > { %4572 = vmatpush1.bf16.msra.mxu0 %v4571_v55 }
 0x32c   : > { %4574 = vmatprep.subr.bf16.mxu0 %v4573_v56  ;;  %v3659_v53 = vrot.slane %v3650_v51, %v3658_v50  ;;  %v3655_v54 = vrot.slane %v3650_v51, %v3654_v52 }
 0x32d   : > { %3126 = vmatmul.mubr.f32.vlgmr.msra.gmra.mrb[0].mxu1 %v1891_v61 }
 0x32e   : > { %3552 = vmatmul.mubr.f32.vlgmr.msra.gmra.mrb[0].mxu0 %v1903_v62 }
 0x32f   : > { %4576 = vmatpush1.bf16.msra.mxu0 %v4575_v63  ;;  %3622 = vmatprep.mubr.f32.mxu0 %v4712_v6 }
 0x330   : > { %4578 = vmatprep.subr.bf16.mxu0 %v4577_v0 }
 0x333   : > { %4580 = vmatpush1.bf16.msra.mxu0 %v4579_v5 }
 0x334   : > { %4582 = vmatprep.subr.bf16.mxu0 %v4581_v7 }
 0x337   : > { %4584 = vmatpush1.bf16.msra.mxu0 %v4583_v12 }
 0x338   : > { %4586 = vmatprep.subr.bf16.mxu0 %v4585_v13 }
 0x33b   : > { %4588 = vmatpush1.bf16.msra.mxu0 %v4587_v18 }
 0x33c   : > { %4590 = vmatprep.subr.bf16.mxu0 %v4589_v19 }
 0x33f   : > { %4592 = vmatpush1.bf16.msra.mxu0 %v4591_v24 }
 0x340   : > { %4594 = vmatprep.subr.bf16.mxu0 %v4593_v25 }
 0x343   : > { %4596 = vmatpush1.bf16.msra.mxu0 %v4595_v30 }
 0x344   : > { %4598 = vmatprep.subr.bf16.mxu0 %v4597_v31 }
 0x347   : > { %4600 = vmatpush1.bf16.msra.mxu0 %v4599_v36 }
 0x348   : > { %4602 = vmatprep.subr.bf16.mxu0 %v4601_v37 }
 0x34b   : > { %4604 = vmatpush1.bf16.msra.mxu0 %v4603_v40 }
 0x34e   : > { %3623 = vmatmul.mubr.f32.vlgmr.msra.gmra.mrb[0].mxu0 %v1905_v41 }
 0x400   : > { %v3127_v42 = vpop.f32.mrb[0].mxu1 }
 0x401   : > { %v3129_v43 = vpop.f32.mrb[1].mxu1 }
 0x421   : > { %v3624_v46 = vpop.f32.mrb[0].mxu0 }
 0x422   : > { %v4605_v47 = vadd.f32 %v3624_v46, %v3127_v42  ;;  %v3626_v48 = vpop.f32.mrb[1].mxu0 }
 0x423   : > { %v4606_v49 = vadd.f32 %v3626_v48, %v3129_v43 }
 0x424   : > { %3633 = vst [vmem:[%s1879_s7] sm:$0xff] %v4605_v47 }
 0x425   : > { %3634 = vst [vmem:[%s1879_s7 + $0x8] sm:$0xff] %v4606_v49  ;;  %v3663_v56 = vadd.f32 %v4606_v49, %v3659_v53 }
 0x427   : > { %v3665_v59 = vmax.f32 %v3663_v56, 0.0 }
 0x429   : > { %3667 = vst [vmem:[%s1879_s7 + $0x8] sm:$0xff] %v3665_v59 }
 0x42b   : > { %v3648_v55 = vld [vmem:[%s1879_s7] sm:$0xff] }
 0x42c   : > { %v3662_v57 = vadd.f32 %v3655_v54, %v3648_v55 }
 0x42e   : > { %v3664_v58 = vmax.f32 %v3662_v57, 0.0 }
 0x430   : > { %3666 = vst [vmem:[%s1879_s7] sm:$0xff] %v3664_v58 }
 0x431 PF: > { %s13_s16 = sadd.s32 1, %s4710_s16   ;;  %s7286_s12 = smov %s4698_s13 }
 0x432   : > { %p10_p10 = scmp.ge.s32.totalorder %s13_s16, 4   ;;  %s7287_s13 = smov %s4768_s20 }
 0x433   : > { %s7288_s14 = smov %s4706_s15  ;;  %s7289_s15 = smov %s7291_s17 }
 0x434   :  { %12 = sbr.rel (!%p10_p10) target bundleno = 3 (0x3), region = 108 }

</bundles_post_ra>
